<compile_context>
chip_gen: v7x
topology: tpu7x:2x2x1
jax: 0.10.0
libtpu: 0.0.40
codegen_flags: <defaults>
</compile_context>

<pallas_src>
import functools

import jax
import jax.numpy as jnp
from jax.experimental import pallas as pl
from jax.experimental.pallas import tpu as pltpu


_LANE = 128


def _cdiv(a, b):
    return -(-a // b)


def _round_up(a, b):
    return _cdiv(a, b) * b


def _vmem_budget_bytes():
    """Per-generation VMEM budget: ~48 MiB on v7x (64 MiB VMEM/core), 64 MiB on v5e/v6e."""
    cap = 128 * 1024 * 1024
    try:
        info = pltpu.get_tpu_info()
        cap = int(getattr(info, "vmem_capacity_bytes", cap))
    except Exception:
        pass
    return min(3 * cap // 4, 64 * 1024 * 1024)


# ----------------------------------------------------------------------------
# Polyphase packing of ConvTranspose1d(C_in, C_out, K, stride, padding=(K-s)//2)
# ----------------------------------------------------------------------------
def _polyphase_pack(w, b, stride):
    """Returns (w_poly (s*C_out, Jtot*C_in), b_poly (s*C_out, 1) f32, D, Jtot) with
      y[co, q*s + r] = b[co] + sum_{jj,ci} w_poly[r*C_out+co, jj*C_in+ci] * x[ci, q + D - jj]
    where out-of-range x columns are treated as zero."""
    C_in, C_out, K = w.shape
    s = stride
    p = (K - s) // 2
    offs = [(r + p) // s for r in range(s)]
    D = max(offs)
    taps = []
    Jtot = 1
    for r in range(s):
        kmin = (r + p) % s
        j = 0
        while kmin + j * s < K:
            k = kmin + j * s
            jj = j + (D - offs[r])
            taps.append((r, jj, k))
            Jtot = max(Jtot, jj + 1)
            j += 1
    w_poly = jnp.zeros((s * C_out, Jtot * C_in), dtype=w.dtype)
    for (r, jj, k) in taps:
        w_poly = w_poly.at[r * C_out:(r + 1) * C_out,
                           jj * C_in:(jj + 1) * C_in].set(w[:, :, k].T)
    b_poly = jnp.tile(b.reshape(1, C_out), (s, 1)).reshape(s * C_out, 1)
    return w_poly, b_poly.astype(jnp.float32), D, Jtot


# ----------------------------------------------------------------------------
# Fused kernel: polyphase tconv + Snake + residual dilated-conv chains (sum).
# ----------------------------------------------------------------------------
def _make_fused_kernel(*, s, c_in, c_out, jtot, dd, tq, hq, hx, mq,
                       l_in, l_out, kernel_sizes, dilation_sizes,
                       cdtype, use_acc_scratch):
    C = c_out
    sC = s * c_out
    Eq = tq + 2 * hq                     # extended frame window
    nb = len(kernel_sizes)

    def kernel(*refs):
        xm_ref, xl_ref, xr_ref, wp_ref, bp_ref = refs[:5]
        blk = refs[5:5 + 2 * nb]
        o_ref = refs[5 + 2 * nb]
        scr = refs[6 + 2 * nb:]
        xe_ref, yph_ref, wka_ref, wkb_ref = scr[0], scr[1], scr[2], scr[3]
        acc_ref = scr[4] if use_acc_scratch else None

        ti = pl.program_id(1)
        q0 = ti * tq                      # first centre frame of this tile

        # --- 1. masked input window (frames [q0-hx, q0+tq+hx)) -> xe ---
        def in_mask(width, off):
            col = jax.lax.broadcasted_iota(jnp.int32, (1, width), 1) + (q0 + off)
            return jnp.logical_and(col >= 0, col < l_in)

        z = jnp.zeros((), cdtype)
        xe_ref[:, :hx] = jnp.where(in_mask(hx, -hx), xl_ref[0], z)
        xe_ref[:, hx:hx + tq] = jnp.where(in_mask(tq, 0), xm_ref[0], z)
        xe_ref[:, hx + tq:] = jnp.where(in_mask(hx, tq), xr_ref[0], z)

        # --- 2. polyphase ConvTranspose1d over the extended window (phase-major) ---
        yph_ref[...] = jnp.broadcast_to(bp_ref[...], (sC, Eq))
        for jj in range(jtot):
            off = hx - hq + dd - jj
            yph_ref[...] += jnp.dot(wp_ref[:, jj * c_in:(jj + 1) * c_in],
                                    xe_ref[:, off:off + Eq],
                                    preferred_element_type=jnp.float32)

        # Per-phase validity masks over the extended window (reused every stage).
        frame = jax.lax.broadcasted_iota(jnp.int32, (1, Eq), 1) + (q0 - hq)
        masks = [jnp.logical_and(frame >= 0,
                                 frame * s + r < l_out).astype(jnp.float32)
                 for r in range(s)]
        for r in range(s):
            yph_ref[r * C:(r + 1) * C, :] *= masks[r]

        # --- 3. zero the conv margins of the ping-pong buffers (stay zero) ---
        if mq > 0:
            zpad = jnp.zeros((sC, mq), jnp.float32)
            wka_ref[:, :mq] = zpad
            wka_ref[:, mq + Eq:] = zpad
            wkb_ref[:, :mq] = zpad
            wkb_ref[:, mq + Eq:] = zpad

        # --- 4. AmpComplex: sum over AmpBlocks ---
        if use_acc_scratch:
            acc_ref[...] = jnp.zeros((sC, tq), jnp.float32)
        else:
            acc = jnp.zeros((sC, tq), jnp.float32)

        for bi in range(nb):
            K = kernel_sizes[bi]
            dils = dilation_sizes[bi]
            alpha_ref = blk[2 * bi]
            wm_ref = blk[2 * bi + 1]
            alpha = alpha_ref[...]                      # (sC, 1) f32
            inv_alpha = 1.0 / (alpha + 1e-9)            # hoisted, eps-guarded

            # Snake activation of the shared tconv output.
            # TODO(synk): UpDownSnake1d source unavailable; plain Snake used.
            for r in range(s):
                rows = slice(r * C, (r + 1) * C)
                yg = yph_ref[rows, :]
                sa = jnp.sin(alpha[rows, :] * yg)
                wka_ref[rows, mq:mq + Eq] = yg + sa * sa * inv_alpha[rows, :]
            cur, nxt = wka_ref, wkb_ref

            # Residual dilated-conv chain, phase-major: K accumulated shifted
            # dots per output phase (no im2col stack scratch / stores).
            for d in dils:
                pad_l = d * (K - 1) // 2
                di = dils.index(d) if False else None  # (placeholder, unused)
                di = list(dils).index(d)
                for r in range(s):
                    conv = None
                    for k in range(K):
                        c_off = r + k * d - pad_l
                        p_, a_ = c_off % s, c_off // s
                        src = cur[p_ * C:(p_ + 1) * C, mq + a_:mq + a_ + Eq]
                        wk = wm_ref[di, :, k * C:(k + 1) * C]
                        term = jnp.dot(wk, src.astype(cdtype),
                                       preferred_element_type=jnp.float32)
                        conv = term if conv is None else conv + term
                    res = cur[r * C:(r + 1) * C, mq:mq + Eq]
                    nxt[r * C:(r + 1) * C, mq:mq + Eq] = (conv + res) * masks[r]
                cur, nxt = nxt, cur

            centre = cur[:, mq + hq:mq + hq + tq]
            if use_acc_scratch:
                acc_ref[...] += centre
            else:
                acc = acc + centre

        o_ref[0] = (acc_ref[...] if use_acc_scratch else acc).astype(o_ref.dtype)

    return kernel


# ----------------------------------------------------------------------------
# GeneralBlock forward (fused).
# ----------------------------------------------------------------------------
@functools.partial(jax.jit,
                   static_argnames=("stride", "amp_kernel_sizes",
                                    "amp_dilation_sizes", "tile_frames"))
def general_block(x, w_t, b_t, stride, amp_kernel_sizes, amp_dilation_sizes,
                  amp_params, tile_frames=512):
    """x (B, C_in, L_in); w_t (C_in, C_out, K); b_t (C_out,);
    amp_params: per AmpBlock (alpha (C_out,), conv weights (nD, C_out, C_out, K)).
    Returns (B, C_out, L_out)."""
    B, C_in, L_in = x.shape
    _, C_out, K_t = w_t.shape
    s = stride
    sC = s * C_out
    cdtype = x.dtype
    cbytes = jnp.dtype(cdtype).itemsize
    p_t = (K_t - s) // 2
    L_out = (L_in - 1) * s - 2 * p_t + K_t
    Lq = _cdiv(L_out, s)

    w_poly, b_poly, D, Jtot = _polyphase_pack(w_t.astype(cdtype), b_t, s)

    # Amp receptive-field halo (interleaved samples) + per-stage frame-shift margin.
    h_max, mq = 0, 0
    for K_a, dils in zip(amp_kernel_sizes, amp_dilation_sizes):
        pl_sum = sum(d * (K_a - 1) // 2 for d in dils)
        pr_sum = sum(d * (K_a - 1) - d * (K_a - 1) // 2 for d in dils)
        h_max = max(h_max, pl_sum, pr_sum)
        for d in dils:
            pad_l = d * (K_a - 1) // 2
            for r in range(s):
                for k in range(K_a):
                    mq = max(mq, abs((r + k * d - pad_l) // s))
    hq = _cdiv(h_max, s) if h_max > 0 else 0

    # Input-frame halo slab width (multiple of 128 so slabs tile the array).
    left_need = hq + max(Jtot - 1 - D, 0)
    right_need = hq + D
    hx = _LANE * _cdiv(max(left_need, right_need, 1), _LANE)

    # Frame tile sized from the per-generation VMEM budget.
    vmem_limit = _vmem_budget_bytes()
    tq = max(hx, min(_round_up(tile_frames, hx), _round_up(Lq, hx)))

    def _tile_bytes(tq_):
        eq_ = tq_ + 2 * hq
        wq_ = eq_ + 2 * mq
        scr = C_in * (tq_ + 2 * hx) * cbytes + sC * eq_ * 4 + 2 * sC * wq_ * 4
        if sC * tq_ * 4 > 16 * 4096:
            scr += sC * tq_ * 4
        io = 2 * ((C_in * tq_ + 2 * C_in * hx) + sC * tq_) * cbytes
        wts = 2 * (w_poly.size + b_poly.size) * cbytes
        for (alpha, ws) in amp_params:
            wts += 2 * (alpha.size * 4 + ws.size * cbytes)
        return scr + io + wts

    while tq > hx and _tile_bytes(tq) > vmem_limit // 2:
        tq -= hx

    use_acc_scratch = sC * tq * 4 > 16 * 4096
    n_t = _cdiv(Lq, tq)
    lq_pad = n_t * tq
    rq = tq // hx
    n_bx = lq_pad // hx
    eq = tq + 2 * hq
    wq = eq + 2 * mq

    x_pad = jnp.pad(x, ((0, 0), (0, 0), (0, lq_pad - L_in)))

    operands = [x_pad, x_pad, x_pad, w_poly, b_poly]
    in_specs = [
        pl.BlockSpec((1, C_in, tq), lambda bi, ti: (bi, 0, ti)),
        pl.BlockSpec((1, C_in, hx),
                     lambda bi, ti: (bi, 0, jnp.maximum(ti * rq - 1, 0))),
        pl.BlockSpec((1, C_in, hx),
                     lambda bi, ti: (bi, 0, jnp.minimum((ti + 1) * rq, n_bx - 1))),
        pl.BlockSpec((sC, Jtot * C_in), lambda bi, ti: (0, 0)),
        pl.BlockSpec((sC, 1), lambda bi, ti: (0, 0)),
    ]
    for (alpha, ws), K_a, dils in zip(amp_params, amp_kernel_sizes,
                                      amp_dilation_sizes):
        nD = len(dils)
        alpha_t = jnp.tile(alpha.reshape(1, C_out), (s, 1)).reshape(sC, 1)
        operands += [alpha_t.astype(jnp.float32),
                     jnp.transpose(ws, (0, 1, 3, 2))
                        .reshape(nD, C_out, K_a * C_out).astype(cdtype)]
        in_specs += [
            pl.BlockSpec((sC, 1), lambda bi, ti: (0, 0)),
            pl.BlockSpec((nD, C_out, K_a * C_out), lambda bi, ti: (0, 0, 0)),
        ]

    scratch = [
        pltpu.VMEM((C_in, tq + 2 * hx), cdtype),     # masked x window
        pltpu.VMEM((sC, eq), jnp.float32),           # tconv output (phase-major)
        pltpu.VMEM((sC, wq), jnp.float32),           # chain ping buffer (+margins)
        pltpu.VMEM((sC, wq), jnp.float32),           # chain pong buffer (+margins)
    ]
    if use_acc_scratch:
        scratch.append(pltpu.VMEM((sC, tq), jnp.float32))

    kernel = _make_fused_kernel(
        s=s, c_in=C_in, c_out=C_out, jtot=Jtot, dd=D, tq=tq, hq=hq, hx=hx,
        mq=mq, l_in=L_in, l_out=L_out,
        kernel_sizes=tuple(amp_kernel_sizes),
        dilation_sizes=tuple(tuple(d) for d in amp_dilation_sizes),
        cdtype=cdtype, use_acc_scratch=use_acc_scratch)

    # Advisory cost estimate (includes halo recompute, weights, halo slabs).
    n_steps = B * n_t
    pos = eq * s
    flops = n_steps * 2 * eq * sC * (Jtot * C_in)
    trans = 0
    wbytes = (w_poly.size + b_poly.size) * cbytes
    for (alpha, ws), K_a, dils in zip(amp_params, amp_kernel_sizes,
                                      amp_dilation_sizes):
        flops += n_steps * 2 * pos * C_out * C_out * K_a * len(dils)
        trans += n_steps * pos * C_out
        wbytes += alpha.size * 4 + ws.size * cbytes
    bytes_accessed = int((B * C_in * lq_pad + n_steps * 2 * C_in * hx) * cbytes
                         + n_steps * wbytes + B * sC * lq_pad * cbytes)

    y_ph = pl.pallas_call(
        kernel,
        out_shape=jax.ShapeDtypeStruct((B, sC, lq_pad), x.dtype),
        grid_spec=pltpu.PrefetchScalarGridSpec(
            num_scalar_prefetch=0,
            grid=(B, n_t),
            in_specs=in_specs,
            out_specs=pl.BlockSpec((1, sC, tq), lambda bi, ti: (bi, 0, ti)),
            scratch_shapes=scratch),
        compiler_params=pltpu.CompilerParams(
            dimension_semantics=("parallel", "parallel"),
            vmem_limit_bytes=vmem_limit),
        cost_estimate=pl.CostEstimate(flops=int(flops),
                                      transcendentals=int(trans),
                                      bytes_accessed=bytes_accessed),
    )(*operands)

    # Single phase-interleave pass: y[b, c, q*s + r] = y_ph[b, r*C + c, q].
    y = y_ph.reshape(B, s, C_out, lq_pad)
    y = jnp.transpose(y, (0, 2, 3, 1)).reshape(B, C_out, lq_pad * s)
    return y[:, :, :L_out]


# ----------------------------------------------------------------------------
# Pure-JAX reference of the PyTorch module (same Snake substitution).
# ----------------------------------------------------------------------------
def _reference_general_block(x, w_t, b_t, stride, ks, dil_sizes, params):
    s = stride
    B, C_in, L_in = x.shape
    _, C_out, K = w_t.shape
    p = (K - s) // 2
    L_out = (L_in - 1) * s - 2 * p + K
    full_len = (L_in - 1) * s + K
    t = jnp.einsum('bci,cok->boik', x, w_t)
    full = jnp.zeros((B, C_out, full_len), jnp.float32)
    for k in range(K):
        full = full.at[:, :, k:k + (L_in - 1) * s + 1:s].add(t[:, :, :, k])
    y = full[:, :, p:p + L_out] + b_t[None, :, None]

    out = jnp.zeros_like(y)
    for (alpha, ws), K_a, dils in zip(params, ks, dil_sizes):
        a = alpha[None, :, None]
        z = y + jnp.sin(a * y) ** 2 / (a + 1e-9)
        for di, d in enumerate(dils):
            pad_total = d * (K_a - 1)
            pad_left = pad_total // 2
            zp = jnp.pad(z, ((0, 0), (0, 0), (pad_left, pad_total - pad_left)))
            conv = jnp.zeros_like(z)
            for k in range(K_a):
                conv = conv + jnp.einsum('oc,bcl->bol', ws[di][:, :, k],
                                         zp[:, :, k * d:k * d + L_out])
            z = conv + z
        out = out + z
    return out


if __name__ == "__main__":
    key = jax.random.PRNGKey(0)

    # Small config consistent with the module.
    B, C_in, L_in = 2, 8, 16
    C_out = 8
    K_t, stride = 8, 4
    amp_kernel_sizes = (3, 7)
    amp_dilation_sizes = ((1, 3), (1, 3))

    k_x, k_w, k_b, k_amp = jax.random.split(key, 4)
    x = jax.random.normal(k_x, (B, C_in, L_in), jnp.float32)
    w_t = jax.random.normal(k_w, (C_in, C_out, K_t), jnp.float32) * 0.1
    b_t = jax.random.normal(k_b, (C_out,), jnp.float32) * 0.1

    amp_params = []
    block_keys = jax.random.split(k_amp, len(amp_kernel_sizes))
    for bk, K_a, dils in zip(block_keys, amp_kernel_sizes, amp_dilation_sizes):
        ak, wk = jax.random.split(bk)
        alpha = 1.0 + 0.1 * jax.random.normal(ak, (C_out,), jnp.float32)
        wkeys = jax.random.split(wk, len(dils))
        ws = jnp.stack([jax.random.normal(k_, (C_out, C_out, K_a), jnp.float32) * 0.05
                        for k_ in wkeys])
        amp_params.append((alpha, ws))

    y = general_block(x, w_t, b_t, stride, amp_kernel_sizes,
                      amp_dilation_sizes, amp_params)
    jax.block_until_ready(y)

    L_out = (L_in - 1) * stride - 2 * ((K_t - stride) // 2) + K_t
    assert y.shape == (B, C_out, L_out), y.shape

    y_ref = _reference_general_block(x, w_t, b_t, stride, amp_kernel_sizes,
                                     amp_dilation_sizes, amp_params)
    err = float(jnp.max(jnp.abs(y - y_ref)))
    assert err < 1e-3, f"max abs error vs reference: {err}"
    print("KERNEL_OK")
</pallas_src>

<mosaic_0001>
module attributes {stable_mosaic.version = 11 : i64} {
  func.func @kernel(%arg0: i32, %arg1: i32, %arg2: memref<1x8x128xf32, #tpu.memory_space<vmem>>, %arg3: memref<1x8x128xf32, #tpu.memory_space<vmem>>, %arg4: memref<1x8x128xf32, #tpu.memory_space<vmem>>, %arg5: memref<32x24xf32, #tpu.memory_space<vmem>>, %arg6: memref<32x1xf32, #tpu.memory_space<vmem>>, %arg7: memref<32x1xf32, #tpu.memory_space<vmem>>, %arg8: memref<2x8x24xf32, #tpu.memory_space<vmem>>, %arg9: memref<32x1xf32, #tpu.memory_space<vmem>>, %arg10: memref<2x8x56xf32, #tpu.memory_space<vmem>>, %arg11: memref<1x32x128xf32, #tpu.memory_space<vmem>>, %arg12: memref<8x384xf32, #tpu.memory_space<vmem>>, %arg13: memref<32x134xf32, #tpu.memory_space<vmem>>, %arg14: memref<32x140xf32, #tpu.memory_space<vmem>>, %arg15: memref<32x140xf32, #tpu.memory_space<vmem>>) attributes {dimension_semantics = [#tpu.dimension_semantics<parallel>, #tpu.dimension_semantics<parallel>], iteration_bounds = array<i64: 2, 1>, scalar_prefetch = 0 : i64, scratch_operands = 4 : i64, tpu.core_type = #tpu.core_type<tc>, window_params = [{transform_indices = @transform_0, window_bounds = array<i64: 1, 8, 128>}, {transform_indices = @transform_1, window_bounds = array<i64: 1, 8, 128>}, {transform_indices = @transform_2, window_bounds = array<i64: 1, 8, 128>}, {pipeline_mode = #tpu.pipeline_mode<synchronous>, transform_indices = @transform_3, window_bounds = array<i64: 32, 24>}, {pipeline_mode = #tpu.pipeline_mode<synchronous>, transform_indices = @transform_4, window_bounds = array<i64: 32, 1>}, {pipeline_mode = #tpu.pipeline_mode<synchronous>, transform_indices = @transform_5, window_bounds = array<i64: 32, 1>}, {pipeline_mode = #tpu.pipeline_mode<synchronous>, transform_indices = @transform_6, window_bounds = array<i64: 2, 8, 24>}, {pipeline_mode = #tpu.pipeline_mode<synchronous>, transform_indices = @transform_7, window_bounds = array<i64: 32, 1>}, {pipeline_mode = #tpu.pipeline_mode<synchronous>, transform_indices = @transform_8, window_bounds = array<i64: 2, 8, 56>}, {transform_indices = @transform_9, window_bounds = array<i64: 1, 32, 128>}]} {
    %c128_i32 = arith.constant 128 : i32
    %0 = arith.muli %arg1, %c128_i32 : i32
    %1 = tpu.iota {dimensions = array<i32: 1>} : vector<1x128xi32>
    %c-128_i32 = arith.constant -128 : i32
    %2 = arith.addi %0, %c-128_i32 : i32
    %3 = vector.broadcast %2 : i32 to vector<1x128xi32>
    %4 = arith.addi %1, %3 : vector<1x128xi32>
    %c0_i32 = arith.constant 0 : i32
    %5 = vector.broadcast %c0_i32 : i32 to vector<1x128xi32>
    %6 = arith.cmpi sge, %4, %5 : vector<1x128xi32>
    %c16_i32 = arith.constant 16 : i32
    %7 = vector.broadcast %c16_i32 : i32 to vector<1x128xi32>
    %8 = arith.cmpi slt, %4, %7 : vector<1x128xi32>
    %9 = arith.andi %6, %8 : vector<1x128xi1>
    %c0 = arith.constant 0 : index
    %c0_0 = arith.constant 0 : index
    %c0_1 = arith.constant 0 : index
    %10 = vector.load %arg3[%c0, %c0_0, %c0_1] : memref<1x8x128xf32, #tpu.memory_space<vmem>>, vector<1x8x128xf32>
    %11 = vector.shape_cast %10 : vector<1x8x128xf32> to vector<8x128xf32>
    %cst = arith.constant 0.000000e+00 : f32
    %12 = vector.shape_cast %9 : vector<1x128xi1> to vector<1x128xi1>
    %13 = vector.broadcast %12 : vector<1x128xi1> to vector<8x128xi1>
    %14 = vector.broadcast %cst : f32 to vector<8x128xf32>
    %15 = arith.select %13, %11, %14 : vector<8x128xi1>, vector<8x128xf32>
    %c0_2 = arith.constant 0 : index
    %c0_3 = arith.constant 0 : index
    %16 = vector.load %arg12[%c0_2, %c0_3] : memref<8x384xf32, #tpu.memory_space<vmem>>, vector<8x128xf32>
    tpu.vector_store %arg12[%c0_2, %c0_3], %15 {strides = array<i32>} : memref<8x384xf32, #tpu.memory_space<vmem>>, vector<8x128xf32>,
    %17 = tpu.iota {dimensions = array<i32: 1>} : vector<1x128xi32>
    %c0_i32_4 = arith.constant 0 : i32
    %18 = arith.addi %0, %c0_i32_4 : i32
    %19 = vector.broadcast %18 : i32 to vector<1x128xi32>
    %20 = arith.addi %17, %19 : vector<1x128xi32>
    %c0_i32_5 = arith.constant 0 : i32
    %21 = vector.broadcast %c0_i32_5 : i32 to vector<1x128xi32>
    %22 = arith.cmpi sge, %20, %21 : vector<1x128xi32>
    %c16_i32_6 = arith.constant 16 : i32
    %23 = vector.broadcast %c16_i32_6 : i32 to vector<1x128xi32>
    %24 = arith.cmpi slt, %20, %23 : vector<1x128xi32>
    %25 = arith.andi %22, %24 : vector<1x128xi1>
    %c0_7 = arith.constant 0 : index
    %c0_8 = arith.constant 0 : index
    %c0_9 = arith.constant 0 : index
    %26 = vector.load %arg2[%c0_7, %c0_8, %c0_9] : memref<1x8x128xf32, #tpu.memory_space<vmem>>, vector<1x8x128xf32>
    %27 = vector.shape_cast %26 : vector<1x8x128xf32> to vector<8x128xf32>
    %cst_10 = arith.constant 0.000000e+00 : f32
    %28 = vector.shape_cast %25 : vector<1x128xi1> to vector<1x128xi1>
    %29 = vector.broadcast %28 : vector<1x128xi1> to vector<8x128xi1>
    %30 = vector.broadcast %cst_10 : f32 to vector<8x128xf32>
    %31 = arith.select %29, %27, %30 : vector<8x128xi1>, vector<8x128xf32>
    %c0_11 = arith.constant 0 : index
    %c128 = arith.constant 128 : index
    %32 = vector.load %arg12[%c0_11, %c128] : memref<8x384xf32, #tpu.memory_space<vmem>>, vector<8x128xf32>
    tpu.vector_store %arg12[%c0_11, %c128], %31 {strides = array<i32>} : memref<8x384xf32, #tpu.memory_space<vmem>>, vector<8x128xf32>,
    %33 = tpu.iota {dimensions = array<i32: 1>} : vector<1x128xi32>
    %c128_i32_12 = arith.constant 128 : i32
    %34 = arith.addi %0, %c128_i32_12 : i32
    %35 = vector.broadcast %34 : i32 to vector<1x128xi32>
    %36 = arith.addi %33, %35 : vector<1x128xi32>
    %c0_i32_13 = arith.constant 0 : i32
    %37 = vector.broadcast %c0_i32_13 : i32 to vector<1x128xi32>
    %38 = arith.cmpi sge, %36, %37 : vector<1x128xi32>
    %c16_i32_14 = arith.constant 16 : i32
    %39 = vector.broadcast %c16_i32_14 : i32 to vector<1x128xi32>
    %40 = arith.cmpi slt, %36, %39 : vector<1x128xi32>
    %41 = arith.andi %38, %40 : vector<1x128xi1>
    %c0_15 = arith.constant 0 : index
    %c0_16 = arith.constant 0 : index
    %c0_17 = arith.constant 0 : index
    %42 = vector.load %arg4[%c0_15, %c0_16, %c0_17] : memref<1x8x128xf32, #tpu.memory_space<vmem>>, vector<1x8x128xf32>
    %43 = vector.shape_cast %42 : vector<1x8x128xf32> to vector<8x128xf32>
    %cst_18 = arith.constant 0.000000e+00 : f32
    %44 = vector.shape_cast %41 : vector<1x128xi1> to vector<1x128xi1>
    %45 = vector.broadcast %44 : vector<1x128xi1> to vector<8x128xi1>
    %46 = vector.broadcast %cst_18 : f32 to vector<8x128xf32>
    %47 = arith.select %45, %43, %46 : vector<8x128xi1>, vector<8x128xf32>
    %c0_19 = arith.constant 0 : index
    %c256 = arith.constant 256 : index
    %48 = vector.load %arg12[%c0_19, %c256] : memref<8x384xf32, #tpu.memory_space<vmem>>, vector<8x128xf32>
    tpu.vector_store %arg12[%c0_19, %c256], %47 {strides = array<i32>} : memref<8x384xf32, #tpu.memory_space<vmem>>, vector<8x128xf32>,
    %c0_20 = arith.constant 0 : index
    %c0_21 = arith.constant 0 : index
    %49 = vector.load %arg6[%c0_20, %c0_21] : memref<32x1xf32, #tpu.memory_space<vmem>>, vector<32x1xf32>
    %50 = vector.shape_cast %49 : vector<32x1xf32> to vector<32x1xf32>
    %51 = vector.broadcast %50 : vector<32x1xf32> to vector<32x134xf32>
    %c0_22 = arith.constant 0 : index
    %c0_23 = arith.constant 0 : index
    %52 = vector.load %arg13[%c0_22, %c0_23] : memref<32x134xf32, #tpu.memory_space<vmem>>, vector<32x134xf32>
    tpu.vector_store %arg13[%c0_22, %c0_23], %51 {strides = array<i32>} : memref<32x134xf32, #tpu.memory_space<vmem>>, vector<32x134xf32>,
    %c0_24 = arith.constant 0 : index
    %c0_25 = arith.constant 0 : index
    %53 = vector.load %arg13[%c0_24, %c0_25] : memref<32x134xf32, #tpu.memory_space<vmem>>, vector<32x134xf32>
    %c0_26 = arith.constant 0 : index
    %c0_27 = arith.constant 0 : index
    %54 = vector.load %arg5[%c0_26, %c0_27] : memref<32x24xf32, #tpu.memory_space<vmem>>, vector<32x8xf32>
    %c0_28 = arith.constant 0 : index
    %c126 = arith.constant 126 : index
    %55 = vector.load %arg12[%c0_28, %c126] : memref<8x384xf32, #tpu.memory_space<vmem>>, vector<8x134xf32>
    %cst_29 = arith.constant dense<0.000000e+00> : vector<32x134xf32>
    %56 = tpu.matmul %54, %55, %cst_29 {dimension_numbers = #tpu.dot_dimension_numbers<[1], [0], [0], [1], [0, 0, 1, 1], [], []>} : vector<32x8xf32>, vector<8x134xf32>, vector<32x134xf32> -> vector<32x134xf32>
    %57 = arith.addf %53, %56 : vector<32x134xf32>
    %c0_30 = arith.constant 0 : index
    %c0_31 = arith.constant 0 : index
    %58 = vector.load %arg13[%c0_30, %c0_31] : memref<32x134xf32, #tpu.memory_space<vmem>>, vector<32x134xf32>
    tpu.vector_store %arg13[%c0_30, %c0_31], %57 {strides = array<i32>} : memref<32x134xf32, #tpu.memory_space<vmem>>, vector<32x134xf32>,
    %c0_32 = arith.constant 0 : index
    %c0_33 = arith.constant 0 : index
    %59 = vector.load %arg13[%c0_32, %c0_33] : memref<32x134xf32, #tpu.memory_space<vmem>>, vector<32x134xf32>
    %c0_34 = arith.constant 0 : index
    %c8 = arith.constant 8 : index
    %60 = vector.load %arg5[%c0_34, %c8] : memref<32x24xf32, #tpu.memory_space<vmem>>, vector<32x8xf32>
    %c0_35 = arith.constant 0 : index
    %c125 = arith.constant 125 : index
    %61 = vector.load %arg12[%c0_35, %c125] : memref<8x384xf32, #tpu.memory_space<vmem>>, vector<8x134xf32>
    %cst_36 = arith.constant dense<0.000000e+00> : vector<32x134xf32>
    %62 = tpu.matmul %60, %61, %cst_36 {dimension_numbers = #tpu.dot_dimension_numbers<[1], [0], [0], [1], [0, 0, 1, 1], [], []>} : vector<32x8xf32>, vector<8x134xf32>, vector<32x134xf32> -> vector<32x134xf32>
    %63 = arith.addf %59, %62 : vector<32x134xf32>
    %c0_37 = arith.constant 0 : index
    %c0_38 = arith.constant 0 : index
    %64 = vector.load %arg13[%c0_37, %c0_38] : memref<32x134xf32, #tpu.memory_space<vmem>>, vector<32x134xf32>
    tpu.vector_store %arg13[%c0_37, %c0_38], %63 {strides = array<i32>} : memref<32x134xf32, #tpu.memory_space<vmem>>, vector<32x134xf32>,
    %c0_39 = arith.constant 0 : index
    %c0_40 = arith.constant 0 : index
    %65 = vector.load %arg13[%c0_39, %c0_40] : memref<32x134xf32, #tpu.memory_space<vmem>>, vector<32x134xf32>
    %c0_41 = arith.constant 0 : index
    %c16 = arith.constant 16 : index
    %66 = vector.load %arg5[%c0_41, %c16] : memref<32x24xf32, #tpu.memory_space<vmem>>, vector<32x8xf32>
    %c0_42 = arith.constant 0 : index
    %c124 = arith.constant 124 : index
    %67 = vector.load %arg12[%c0_42, %c124] : memref<8x384xf32, #tpu.memory_space<vmem>>, vector<8x134xf32>
    %cst_43 = arith.constant dense<0.000000e+00> : vector<32x134xf32>
    %68 = tpu.matmul %66, %67, %cst_43 {dimension_numbers = #tpu.dot_dimension_numbers<[1], [0], [0], [1], [0, 0, 1, 1], [], []>} : vector<32x8xf32>, vector<8x134xf32>, vector<32x134xf32> -> vector<32x134xf32>
    %69 = arith.addf %65, %68 : vector<32x134xf32>
    %c0_44 = arith.constant 0 : index
    %c0_45 = arith.constant 0 : index
    %70 = vector.load %arg13[%c0_44, %c0_45] : memref<32x134xf32, #tpu.memory_space<vmem>>, vector<32x134xf32>
    tpu.vector_store %arg13[%c0_44, %c0_45], %69 {strides = array<i32>} : memref<32x134xf32, #tpu.memory_space<vmem>>, vector<32x134xf32>,
    %71 = tpu.iota {dimensions = array<i32: 1>} : vector<1x134xi32>
    %c3_i32 = arith.constant 3 : i32
    %72 = arith.subi %0, %c3_i32 : i32
    %73 = vector.broadcast %72 : i32 to vector<1x134xi32>
    %74 = arith.addi %71, %73 : vector<1x134xi32>
    %c0_i32_46 = arith.constant 0 : i32
    %75 = vector.broadcast %c0_i32_46 : i32 to vector<1x134xi32>
    %76 = arith.cmpi sge, %74, %75 : vector<1x134xi32>
    %c4_i32 = arith.constant 4 : i32
    %77 = vector.broadcast %c4_i32 : i32 to vector<1x134xi32>
    %78 = arith.muli %74, %77 : vector<1x134xi32>
    %c0_i32_47 = arith.constant 0 : i32
    %79 = vector.broadcast %c0_i32_47 : i32 to vector<1x134xi32>
    %80 = arith.addi %78, %79 : vector<1x134xi32>
    %c64_i32 = arith.constant 64 : i32
    %81 = vector.broadcast %c64_i32 : i32 to vector<1x134xi32>
    %82 = arith.cmpi slt, %80, %81 : vector<1x134xi32>
    %83 = arith.andi %76, %82 : vector<1x134xi1>
    %84 = arith.extui %83 : vector<1x134xi1> to vector<1x134xi32>
    %85 = arith.sitofp %84 : vector<1x134xi32> to vector<1x134xf32>
    %c0_i32_48 = arith.constant 0 : i32
    %86 = vector.broadcast %c0_i32_48 : i32 to vector<1x134xi32>
    %87 = arith.cmpi sge, %74, %86 : vector<1x134xi32>
    %c4_i32_49 = arith.constant 4 : i32
    %88 = vector.broadcast %c4_i32_49 : i32 to vector<1x134xi32>
    %89 = arith.muli %74, %88 : vector<1x134xi32>
    %c1_i32 = arith.constant 1 : i32
    %90 = vector.broadcast %c1_i32 : i32 to vector<1x134xi32>
    %91 = arith.addi %89, %90 : vector<1x134xi32>
    %c64_i32_50 = arith.constant 64 : i32
    %92 = vector.broadcast %c64_i32_50 : i32 to vector<1x134xi32>
    %93 = arith.cmpi slt, %91, %92 : vector<1x134xi32>
    %94 = arith.andi %87, %93 : vector<1x134xi1>
    %95 = arith.extui %94 : vector<1x134xi1> to vector<1x134xi32>
    %96 = arith.sitofp %95 : vector<1x134xi32> to vector<1x134xf32>
    %c0_i32_51 = arith.constant 0 : i32
    %97 = vector.broadcast %c0_i32_51 : i32 to vector<1x134xi32>
    %98 = arith.cmpi sge, %74, %97 : vector<1x134xi32>
    %c4_i32_52 = arith.constant 4 : i32
    %99 = vector.broadcast %c4_i32_52 : i32 to vector<1x134xi32>
    %100 = arith.muli %74, %99 : vector<1x134xi32>
    %c2_i32 = arith.constant 2 : i32
    %101 = vector.broadcast %c2_i32 : i32 to vector<1x134xi32>
    %102 = arith.addi %100, %101 : vector<1x134xi32>
    %c64_i32_53 = arith.constant 64 : i32
    %103 = vector.broadcast %c64_i32_53 : i32 to vector<1x134xi32>
    %104 = arith.cmpi slt, %102, %103 : vector<1x134xi32>
    %105 = arith.andi %98, %104 : vector<1x134xi1>
    %106 = arith.extui %105 : vector<1x134xi1> to vector<1x134xi32>
    %107 = arith.sitofp %106 : vector<1x134xi32> to vector<1x134xf32>
    %c0_i32_54 = arith.constant 0 : i32
    %108 = vector.broadcast %c0_i32_54 : i32 to vector<1x134xi32>
    %109 = arith.cmpi sge, %74, %108 : vector<1x134xi32>
    %c4_i32_55 = arith.constant 4 : i32
    %110 = vector.broadcast %c4_i32_55 : i32 to vector<1x134xi32>
    %111 = arith.muli %74, %110 : vector<1x134xi32>
    %c3_i32_56 = arith.constant 3 : i32
    %112 = vector.broadcast %c3_i32_56 : i32 to vector<1x134xi32>
    %113 = arith.addi %111, %112 : vector<1x134xi32>
    %c64_i32_57 = arith.constant 64 : i32
    %114 = vector.broadcast %c64_i32_57 : i32 to vector<1x134xi32>
    %115 = arith.cmpi slt, %113, %114 : vector<1x134xi32>
    %116 = arith.andi %109, %115 : vector<1x134xi1>
    %117 = arith.extui %116 : vector<1x134xi1> to vector<1x134xi32>
    %118 = arith.sitofp %117 : vector<1x134xi32> to vector<1x134xf32>
    %c0_58 = arith.constant 0 : index
    %c0_59 = arith.constant 0 : index
    %119 = vector.load %arg13[%c0_58, %c0_59] : memref<32x134xf32, #tpu.memory_space<vmem>>, vector<8x134xf32>
    %120 = vector.broadcast %85 : vector<1x134xf32> to vector<8x134xf32>
    %121 = arith.mulf %119, %120 : vector<8x134xf32>
    %c0_60 = arith.constant 0 : index
    %c0_61 = arith.constant 0 : index
    %122 = vector.load %arg13[%c0_60, %c0_61] : memref<32x134xf32, #tpu.memory_space<vmem>>, vector<8x134xf32>
    tpu.vector_store %arg13[%c0_60, %c0_61], %121 {strides = array<i32>} : memref<32x134xf32, #tpu.memory_space<vmem>>, vector<8x134xf32>,
    %c8_62 = arith.constant 8 : index
    %c0_63 = arith.constant 0 : index
    %123 = vector.load %arg13[%c8_62, %c0_63] : memref<32x134xf32, #tpu.memory_space<vmem>>, vector<8x134xf32>
    %124 = vector.broadcast %96 : vector<1x134xf32> to vector<8x134xf32>
    %125 = arith.mulf %123, %124 : vector<8x134xf32>
    %c8_64 = arith.constant 8 : index
    %c0_65 = arith.constant 0 : index
    %126 = vector.load %arg13[%c8_64, %c0_65] : memref<32x134xf32, #tpu.memory_space<vmem>>, vector<8x134xf32>
    tpu.vector_store %arg13[%c8_64, %c0_65], %125 {strides = array<i32>} : memref<32x134xf32, #tpu.memory_space<vmem>>, vector<8x134xf32>,
    %c16_66 = arith.constant 16 : index
    %c0_67 = arith.constant 0 : index
    %127 = vector.load %arg13[%c16_66, %c0_67] : memref<32x134xf32, #tpu.memory_space<vmem>>, vector<8x134xf32>
    %128 = vector.broadcast %107 : vector<1x134xf32> to vector<8x134xf32>
    %129 = arith.mulf %127, %128 : vector<8x134xf32>
    %c16_68 = arith.constant 16 : index
    %c0_69 = arith.constant 0 : index
    %130 = vector.load %arg13[%c16_68, %c0_69] : memref<32x134xf32, #tpu.memory_space<vmem>>, vector<8x134xf32>
    tpu.vector_store %arg13[%c16_68, %c0_69], %129 {strides = array<i32>} : memref<32x134xf32, #tpu.memory_space<vmem>>, vector<8x134xf32>,
    %c24 = arith.constant 24 : index
    %c0_70 = arith.constant 0 : index
    %131 = vector.load %arg13[%c24, %c0_70] : memref<32x134xf32, #tpu.memory_space<vmem>>, vector<8x134xf32>
    %132 = vector.broadcast %118 : vector<1x134xf32> to vector<8x134xf32>
    %133 = arith.mulf %131, %132 : vector<8x134xf32>
    %c24_71 = arith.constant 24 : index
    %c0_72 = arith.constant 0 : index
    %134 = vector.load %arg13[%c24_71, %c0_72] : memref<32x134xf32, #tpu.memory_space<vmem>>, vector<8x134xf32>
    tpu.vector_store %arg13[%c24_71, %c0_72], %133 {strides = array<i32>} : memref<32x134xf32, #tpu.memory_space<vmem>>, vector<8x134xf32>,
    %cst_73 = arith.constant 0.000000e+00 : f32
    %135 = vector.broadcast %cst_73 : f32 to vector<32x3xf32>
    %c0_74 = arith.constant 0 : index
    %c0_75 = arith.constant 0 : index
    %136 = vector.load %arg14[%c0_74, %c0_75] : memref<32x140xf32, #tpu.memory_space<vmem>>, vector<32x3xf32>
    tpu.vector_store %arg14[%c0_74, %c0_75], %135 {strides = array<i32>} : memref<32x140xf32, #tpu.memory_space<vmem>>, vector<32x3xf32>,
    %c0_76 = arith.constant 0 : index
    %c137 = arith.constant 137 : index
    %137 = vector.load %arg14[%c0_76, %c137] : memref<32x140xf32, #tpu.memory_space<vmem>>, vector<32x3xf32>
    tpu.vector_store %arg14[%c0_76, %c137], %135 {strides = array<i32>} : memref<32x140xf32, #tpu.memory_space<vmem>>, vector<32x3xf32>,
    %c0_77 = arith.constant 0 : index
    %c0_78 = arith.constant 0 : index
    %138 = vector.load %arg15[%c0_77, %c0_78] : memref<32x140xf32, #tpu.memory_space<vmem>>, vector<32x3xf32>
    tpu.vector_store %arg15[%c0_77, %c0_78], %135 {strides = array<i32>} : memref<32x140xf32, #tpu.memory_space<vmem>>, vector<32x3xf32>,
    %c0_79 = arith.constant 0 : index
    %c137_80 = arith.constant 137 : index
    %139 = vector.load %arg15[%c0_79, %c137_80] : memref<32x140xf32, #tpu.memory_space<vmem>>, vector<32x3xf32>
    tpu.vector_store %arg15[%c0_79, %c137_80], %135 {strides = array<i32>} : memref<32x140xf32, #tpu.memory_space<vmem>>, vector<32x3xf32>,
    %cst_81 = arith.constant 0.000000e+00 : f32
    %140 = vector.broadcast %cst_81 : f32 to vector<32x128xf32>
    %c0_82 = arith.constant 0 : index
    %c0_83 = arith.constant 0 : index
    %141 = vector.load %arg7[%c0_82, %c0_83] : memref<32x1xf32, #tpu.memory_space<vmem>>, vector<32x1xf32>
    %cst_84 = arith.constant 9.99999971E-10 : f32
    %142 = vector.broadcast %cst_84 : f32 to vector<32x1xf32>
    %143 = arith.addf %141, %142 : vector<32x1xf32>
    %cst_85 = arith.constant 1.000000e+00 : f32
    %144 = vector.broadcast %cst_85 : f32 to vector<32x1xf32>
    %145 = arith.divf %144, %143 : vector<32x1xf32>
    %c0_86 = arith.constant 0 : index
    %c0_87 = arith.constant 0 : index
    %146 = vector.load %arg13[%c0_86, %c0_87] : memref<32x134xf32, #tpu.memory_space<vmem>>, vector<8x134xf32>
    %147 = vector.extract_strided_slice %141 {offsets = [0, 0], sizes = [8, 1], strides = [1, 1]} : vector<32x1xf32> to vector<8x1xf32>
    %148 = vector.broadcast %147 : vector<8x1xf32> to vector<8x134xf32>
    %149 = arith.mulf %148, %146 : vector<8x134xf32>
    %150 = math.sin %149 : vector<8x134xf32>
    %151 = arith.mulf %150, %150 : vector<8x134xf32>
    %152 = vector.extract_strided_slice %145 {offsets = [0, 0], sizes = [8, 1], strides = [1, 1]} : vector<32x1xf32> to vector<8x1xf32>
    %153 = vector.broadcast %152 : vector<8x1xf32> to vector<8x134xf32>
    %154 = arith.mulf %151, %153 : vector<8x134xf32>
    %155 = arith.addf %146, %154 : vector<8x134xf32>
    %c0_88 = arith.constant 0 : index
    %c3 = arith.constant 3 : index
    %156 = vector.load %arg14[%c0_88, %c3] : memref<32x140xf32, #tpu.memory_space<vmem>>, vector<8x134xf32>
    tpu.vector_store %arg14[%c0_88, %c3], %155 {strides = array<i32>} : memref<32x140xf32, #tpu.memory_space<vmem>>, vector<8x134xf32>,
    %c8_89 = arith.constant 8 : index
    %c0_90 = arith.constant 0 : index
    %157 = vector.load %arg13[%c8_89, %c0_90] : memref<32x134xf32, #tpu.memory_space<vmem>>, vector<8x134xf32>
    %158 = vector.extract_strided_slice %141 {offsets = [8, 0], sizes = [8, 1], strides = [1, 1]} : vector<32x1xf32> to vector<8x1xf32>
    %159 = vector.broadcast %158 : vector<8x1xf32> to vector<8x134xf32>
    %160 = arith.mulf %159, %157 : vector<8x134xf32>
    %161 = math.sin %160 : vector<8x134xf32>
    %162 = arith.mulf %161, %161 : vector<8x134xf32>
    %163 = vector.extract_strided_slice %145 {offsets = [8, 0], sizes = [8, 1], strides = [1, 1]} : vector<32x1xf32> to vector<8x1xf32>
    %164 = vector.broadcast %163 : vector<8x1xf32> to vector<8x134xf32>
    %165 = arith.mulf %162, %164 : vector<8x134xf32>
    %166 = arith.addf %157, %165 : vector<8x134xf32>
    %c8_91 = arith.constant 8 : index
    %c3_92 = arith.constant 3 : index
    %167 = vector.load %arg14[%c8_91, %c3_92] : memref<32x140xf32, #tpu.memory_space<vmem>>, vector<8x134xf32>
    tpu.vector_store %arg14[%c8_91, %c3_92], %166 {strides = array<i32>} : memref<32x140xf32, #tpu.memory_space<vmem>>, vector<8x134xf32>,
    %c16_93 = arith.constant 16 : index
    %c0_94 = arith.constant 0 : index
    %168 = vector.load %arg13[%c16_93, %c0_94] : memref<32x134xf32, #tpu.memory_space<vmem>>, vector<8x134xf32>
    %169 = vector.extract_strided_slice %141 {offsets = [16, 0], sizes = [8, 1], strides = [1, 1]} : vector<32x1xf32> to vector<8x1xf32>
    %170 = vector.broadcast %169 : vector<8x1xf32> to vector<8x134xf32>
    %171 = arith.mulf %170, %168 : vector<8x134xf32>
    %172 = math.sin %171 : vector<8x134xf32>
    %173 = arith.mulf %172, %172 : vector<8x134xf32>
    %174 = vector.extract_strided_slice %145 {offsets = [16, 0], sizes = [8, 1], strides = [1, 1]} : vector<32x1xf32> to vector<8x1xf32>
    %175 = vector.broadcast %174 : vector<8x1xf32> to vector<8x134xf32>
    %176 = arith.mulf %173, %175 : vector<8x134xf32>
    %177 = arith.addf %168, %176 : vector<8x134xf32>
    %c16_95 = arith.constant 16 : index
    %c3_96 = arith.constant 3 : index
    %178 = vector.load %arg14[%c16_95, %c3_96] : memref<32x140xf32, #tpu.memory_space<vmem>>, vector<8x134xf32>
    tpu.vector_store %arg14[%c16_95, %c3_96], %177 {strides = array<i32>} : memref<32x140xf32, #tpu.memory_space<vmem>>, vector<8x134xf32>,
    %c24_97 = arith.constant 24 : index
    %c0_98 = arith.constant 0 : index
    %179 = vector.load %arg13[%c24_97, %c0_98] : memref<32x134xf32, #tpu.memory_space<vmem>>, vector<8x134xf32>
    %180 = vector.extract_strided_slice %141 {offsets = [24, 0], sizes = [8, 1], strides = [1, 1]} : vector<32x1xf32> to vector<8x1xf32>
    %181 = vector.broadcast %180 : vector<8x1xf32> to vector<8x134xf32>
    %182 = arith.mulf %181, %179 : vector<8x134xf32>
    %183 = math.sin %182 : vector<8x134xf32>
    %184 = arith.mulf %183, %183 : vector<8x134xf32>
    %185 = vector.extract_strided_slice %145 {offsets = [24, 0], sizes = [8, 1], strides = [1, 1]} : vector<32x1xf32> to vector<8x1xf32>
    %186 = vector.broadcast %185 : vector<8x1xf32> to vector<8x134xf32>
    %187 = arith.mulf %184, %186 : vector<8x134xf32>
    %188 = arith.addf %179, %187 : vector<8x134xf32>
    %c24_99 = arith.constant 24 : index
    %c3_100 = arith.constant 3 : index
    %189 = vector.load %arg14[%c24_99, %c3_100] : memref<32x140xf32, #tpu.memory_space<vmem>>, vector<8x134xf32>
    tpu.vector_store %arg14[%c24_99, %c3_100], %188 {strides = array<i32>} : memref<32x140xf32, #tpu.memory_space<vmem>>, vector<8x134xf32>,
    %c24_101 = arith.constant 24 : index
    %c2 = arith.constant 2 : index
    %190 = vector.load %arg14[%c24_101, %c2] : memref<32x140xf32, #tpu.memory_space<vmem>>, vector<8x134xf32>
    %c0_102 = arith.constant 0 : index
    %c0_103 = arith.constant 0 : index
    %c0_104 = arith.constant 0 : index
    %191 = vector.load %arg8[%c0_102, %c0_103, %c0_104] : memref<2x8x24xf32, #tpu.memory_space<vmem>>, vector<1x8x8xf32>
    %192 = vector.shape_cast %191 : vector<1x8x8xf32> to vector<8x8xf32>
    %cst_105 = arith.constant dense<0.000000e+00> : vector<8x134xf32>
    %193 = tpu.matmul %192, %190, %cst_105 {dimension_numbers = #tpu.dot_dimension_numbers<[1], [0], [0], [1], [0, 0, 1, 1], [], []>} : vector<8x8xf32>, vector<8x134xf32>, vector<8x134xf32> -> vector<8x134xf32>
    %c0_106 = arith.constant 0 : index
    %c3_107 = arith.constant 3 : index
    %194 = vector.load %arg14[%c0_106, %c3_107] : memref<32x140xf32, #tpu.memory_space<vmem>>, vector<8x134xf32>
    %c0_108 = arith.constant 0 : index
    %c0_109 = arith.constant 0 : index
    %c8_110 = arith.constant 8 : index
    %195 = vector.load %arg8[%c0_108, %c0_109, %c8_110] : memref<2x8x24xf32, #tpu.memory_space<vmem>>, vector<1x8x8xf32>
    %196 = vector.shape_cast %195 : vector<1x8x8xf32> to vector<8x8xf32>
    %cst_111 = arith.constant dense<0.000000e+00> : vector<8x134xf32>
    %197 = tpu.matmul %196, %194, %cst_111 {dimension_numbers = #tpu.dot_dimension_numbers<[1], [0], [0], [1], [0, 0, 1, 1], [], []>} : vector<8x8xf32>, vector<8x134xf32>, vector<8x134xf32> -> vector<8x134xf32>
    %198 = arith.addf %193, %197 : vector<8x134xf32>
    %c8_112 = arith.constant 8 : index
    %c3_113 = arith.constant 3 : index
    %199 = vector.load %arg14[%c8_112, %c3_113] : memref<32x140xf32, #tpu.memory_space<vmem>>, vector<8x134xf32>
    %c0_114 = arith.constant 0 : index
    %c0_115 = arith.constant 0 : index
    %c16_116 = arith.constant 16 : index
    %200 = vector.load %arg8[%c0_114, %c0_115, %c16_116] : memref<2x8x24xf32, #tpu.memory_space<vmem>>, vector<1x8x8xf32>
    %201 = vector.shape_cast %200 : vector<1x8x8xf32> to vector<8x8xf32>
    %cst_117 = arith.constant dense<0.000000e+00> : vector<8x134xf32>
    %202 = tpu.matmul %201, %199, %cst_117 {dimension_numbers = #tpu.dot_dimension_numbers<[1], [0], [0], [1], [0, 0, 1, 1], [], []>} : vector<8x8xf32>, vector<8x134xf32>, vector<8x134xf32> -> vector<8x134xf32>
    %203 = arith.addf %198, %202 : vector<8x134xf32>
    %c0_118 = arith.constant 0 : index
    %c3_119 = arith.constant 3 : index
    %204 = vector.load %arg14[%c0_118, %c3_119] : memref<32x140xf32, #tpu.memory_space<vmem>>, vector<8x134xf32>
    %205 = arith.addf %203, %204 : vector<8x134xf32>
    %206 = vector.broadcast %85 : vector<1x134xf32> to vector<8x134xf32>
    %207 = arith.mulf %205, %206 : vector<8x134xf32>
    %c0_120 = arith.constant 0 : index
    %c3_121 = arith.constant 3 : index
    %208 = vector.load %arg15[%c0_120, %c3_121] : memref<32x140xf32, #tpu.memory_space<vmem>>, vector<8x134xf32>
    tpu.vector_store %arg15[%c0_120, %c3_121], %207 {strides = array<i32>} : memref<32x140xf32, #tpu.memory_space<vmem>>, vector<8x134xf32>,
    %c0_122 = arith.constant 0 : index
    %c3_123 = arith.constant 3 : index
    %209 = vector.load %arg14[%c0_122, %c3_123] : memref<32x140xf32, #tpu.memory_space<vmem>>, vector<8x134xf32>
    %c0_124 = arith.constant 0 : index
    %c0_125 = arith.constant 0 : index
    %c0_126 = arith.constant 0 : index
    %210 = vector.load %arg8[%c0_124, %c0_125, %c0_126] : memref<2x8x24xf32, #tpu.memory_space<vmem>>, vector<1x8x8xf32>
    %211 = vector.shape_cast %210 : vector<1x8x8xf32> to vector<8x8xf32>
    %cst_127 = arith.constant dense<0.000000e+00> : vector<8x134xf32>
    %212 = tpu.matmul %211, %209, %cst_127 {dimension_numbers = #tpu.dot_dimension_numbers<[1], [0], [0], [1], [0, 0, 1, 1], [], []>} : vector<8x8xf32>, vector<8x134xf32>, vector<8x134xf32> -> vector<8x134xf32>
    %c8_128 = arith.constant 8 : index
    %c3_129 = arith.constant 3 : index
    %213 = vector.load %arg14[%c8_128, %c3_129] : memref<32x140xf32, #tpu.memory_space<vmem>>, vector<8x134xf32>
    %c0_130 = arith.constant 0 : index
    %c0_131 = arith.constant 0 : index
    %c8_132 = arith.constant 8 : index
    %214 = vector.load %arg8[%c0_130, %c0_131, %c8_132] : memref<2x8x24xf32, #tpu.memory_space<vmem>>, vector<1x8x8xf32>
    %215 = vector.shape_cast %214 : vector<1x8x8xf32> to vector<8x8xf32>
    %cst_133 = arith.constant dense<0.000000e+00> : vector<8x134xf32>
    %216 = tpu.matmul %215, %213, %cst_133 {dimension_numbers = #tpu.dot_dimension_numbers<[1], [0], [0], [1], [0, 0, 1, 1], [], []>} : vector<8x8xf32>, vector<8x134xf32>, vector<8x134xf32> -> vector<8x134xf32>
    %217 = arith.addf %212, %216 : vector<8x134xf32>
    %c16_134 = arith.constant 16 : index
    %c3_135 = arith.constant 3 : index
    %218 = vector.load %arg14[%c16_134, %c3_135] : memref<32x140xf32, #tpu.memory_space<vmem>>, vector<8x134xf32>
    %c0_136 = arith.constant 0 : index
    %c0_137 = arith.constant 0 : index
    %c16_138 = arith.constant 16 : index
    %219 = vector.load %arg8[%c0_136, %c0_137, %c16_138] : memref<2x8x24xf32, #tpu.memory_space<vmem>>, vector<1x8x8xf32>
    %220 = vector.shape_cast %219 : vector<1x8x8xf32> to vector<8x8xf32>
    %cst_139 = arith.constant dense<0.000000e+00> : vector<8x134xf32>
    %221 = tpu.matmul %220, %218, %cst_139 {dimension_numbers = #tpu.dot_dimension_numbers<[1], [0], [0], [1], [0, 0, 1, 1], [], []>} : vector<8x8xf32>, vector<8x134xf32>, vector<8x134xf32> -> vector<8x134xf32>
    %222 = arith.addf %217, %221 : vector<8x134xf32>
    %c8_140 = arith.constant 8 : index
    %c3_141 = arith.constant 3 : index
    %223 = vector.load %arg14[%c8_140, %c3_141] : memref<32x140xf32, #tpu.memory_space<vmem>>, vector<8x134xf32>
    %224 = arith.addf %222, %223 : vector<8x134xf32>
    %225 = vector.broadcast %96 : vector<1x134xf32> to vector<8x134xf32>
    %226 = arith.mulf %224, %225 : vector<8x134xf32>
    %c8_142 = arith.constant 8 : index
    %c3_143 = arith.constant 3 : index
    %227 = vector.load %arg15[%c8_142, %c3_143] : memref<32x140xf32, #tpu.memory_space<vmem>>, vector<8x134xf32>
    tpu.vector_store %arg15[%c8_142, %c3_143], %226 {strides = array<i32>} : memref<32x140xf32, #tpu.memory_space<vmem>>, vector<8x134xf32>,
    %c8_144 = arith.constant 8 : index
    %c3_145 = arith.constant 3 : index
    %228 = vector.load %arg14[%c8_144, %c3_145] : memref<32x140xf32, #tpu.memory_space<vmem>>, vector<8x134xf32>
    %c0_146 = arith.constant 0 : index
    %c0_147 = arith.constant 0 : index
    %c0_148 = arith.constant 0 : index
    %229 = vector.load %arg8[%c0_146, %c0_147, %c0_148] : memref<2x8x24xf32, #tpu.memory_space<vmem>>, vector<1x8x8xf32>
    %230 = vector.shape_cast %229 : vector<1x8x8xf32> to vector<8x8xf32>
    %cst_149 = arith.constant dense<0.000000e+00> : vector<8x134xf32>
    %231 = tpu.matmul %230, %228, %cst_149 {dimension_numbers = #tpu.dot_dimension_numbers<[1], [0], [0], [1], [0, 0, 1, 1], [], []>} : vector<8x8xf32>, vector<8x134xf32>, vector<8x134xf32> -> vector<8x134xf32>
    %c16_150 = arith.constant 16 : index
    %c3_151 = arith.constant 3 : index
    %232 = vector.load %arg14[%c16_150, %c3_151] : memref<32x140xf32, #tpu.memory_space<vmem>>, vector<8x134xf32>
    %c0_152 = arith.constant 0 : index
    %c0_153 = arith.constant 0 : index
    %c8_154 = arith.constant 8 : index
    %233 = vector.load %arg8[%c0_152, %c0_153, %c8_154] : memref<2x8x24xf32, #tpu.memory_space<vmem>>, vector<1x8x8xf32>
    %234 = vector.shape_cast %233 : vector<1x8x8xf32> to vector<8x8xf32>
    %cst_155 = arith.constant dense<0.000000e+00> : vector<8x134xf32>
    %235 = tpu.matmul %234, %232, %cst_155 {dimension_numbers = #tpu.dot_dimension_numbers<[1], [0], [0], [1], [0, 0, 1, 1], [], []>} : vector<8x8xf32>, vector<8x134xf32>, vector<8x134xf32> -> vector<8x134xf32>
    %236 = arith.addf %231, %235 : vector<8x134xf32>
    %c24_156 = arith.constant 24 : index
    %c3_157 = arith.constant 3 : index
    %237 = vector.load %arg14[%c24_156, %c3_157] : memref<32x140xf32, #tpu.memory_space<vmem>>, vector<8x134xf32>
    %c0_158 = arith.constant 0 : index
    %c0_159 = arith.constant 0 : index
    %c16_160 = arith.constant 16 : index
    %238 = vector.load %arg8[%c0_158, %c0_159, %c16_160] : memref<2x8x24xf32, #tpu.memory_space<vmem>>, vector<1x8x8xf32>
    %239 = vector.shape_cast %238 : vector<1x8x8xf32> to vector<8x8xf32>
    %cst_161 = arith.constant dense<0.000000e+00> : vector<8x134xf32>
    %240 = tpu.matmul %239, %237, %cst_161 {dimension_numbers = #tpu.dot_dimension_numbers<[1], [0], [0], [1], [0, 0, 1, 1], [], []>} : vector<8x8xf32>, vector<8x134xf32>, vector<8x134xf32> -> vector<8x134xf32>
    %241 = arith.addf %236, %240 : vector<8x134xf32>
    %c16_162 = arith.constant 16 : index
    %c3_163 = arith.constant 3 : index
    %242 = vector.load %arg14[%c16_162, %c3_163] : memref<32x140xf32, #tpu.memory_space<vmem>>, vector<8x134xf32>
    %243 = arith.addf %241, %242 : vector<8x134xf32>
    %244 = vector.broadcast %107 : vector<1x134xf32> to vector<8x134xf32>
    %245 = arith.mulf %243, %244 : vector<8x134xf32>
    %c16_164 = arith.constant 16 : index
    %c3_165 = arith.constant 3 : index
    %246 = vector.load %arg15[%c16_164, %c3_165] : memref<32x140xf32, #tpu.memory_space<vmem>>, vector<8x134xf32>
    tpu.vector_store %arg15[%c16_164, %c3_165], %245 {strides = array<i32>} : memref<32x140xf32, #tpu.memory_space<vmem>>, vector<8x134xf32>,
    %c16_166 = arith.constant 16 : index
    %c3_167 = arith.constant 3 : index
    %247 = vector.load %arg14[%c16_166, %c3_167] : memref<32x140xf32, #tpu.memory_space<vmem>>, vector<8x134xf32>
    %c0_168 = arith.constant 0 : index
    %c0_169 = arith.constant 0 : index
    %c0_170 = arith.constant 0 : index
    %248 = vector.load %arg8[%c0_168, %c0_169, %c0_170] : memref<2x8x24xf32, #tpu.memory_space<vmem>>, vector<1x8x8xf32>
    %249 = vector.shape_cast %248 : vector<1x8x8xf32> to vector<8x8xf32>
    %cst_171 = arith.constant dense<0.000000e+00> : vector<8x134xf32>
    %250 = tpu.matmul %249, %247, %cst_171 {dimension_numbers = #tpu.dot_dimension_numbers<[1], [0], [0], [1], [0, 0, 1, 1], [], []>} : vector<8x8xf32>, vector<8x134xf32>, vector<8x134xf32> -> vector<8x134xf32>
    %c24_172 = arith.constant 24 : index
    %c3_173 = arith.constant 3 : index
    %251 = vector.load %arg14[%c24_172, %c3_173] : memref<32x140xf32, #tpu.memory_space<vmem>>, vector<8x134xf32>
    %c0_174 = arith.constant 0 : index
    %c0_175 = arith.constant 0 : index
    %c8_176 = arith.constant 8 : index
    %252 = vector.load %arg8[%c0_174, %c0_175, %c8_176] : memref<2x8x24xf32, #tpu.memory_space<vmem>>, vector<1x8x8xf32>
    %253 = vector.shape_cast %252 : vector<1x8x8xf32> to vector<8x8xf32>
    %cst_177 = arith.constant dense<0.000000e+00> : vector<8x134xf32>
    %254 = tpu.matmul %253, %251, %cst_177 {dimension_numbers = #tpu.dot_dimension_numbers<[1], [0], [0], [1], [0, 0, 1, 1], [], []>} : vector<8x8xf32>, vector<8x134xf32>, vector<8x134xf32> -> vector<8x134xf32>
    %255 = arith.addf %250, %254 : vector<8x134xf32>
    %c0_178 = arith.constant 0 : index
    %c4 = arith.constant 4 : index
    %256 = vector.load %arg14[%c0_178, %c4] : memref<32x140xf32, #tpu.memory_space<vmem>>, vector<8x134xf32>
    %c0_179 = arith.constant 0 : index
    %c0_180 = arith.constant 0 : index
    %c16_181 = arith.constant 16 : index
    %257 = vector.load %arg8[%c0_179, %c0_180, %c16_181] : memref<2x8x24xf32, #tpu.memory_space<vmem>>, vector<1x8x8xf32>
    %258 = vector.shape_cast %257 : vector<1x8x8xf32> to vector<8x8xf32>
    %cst_182 = arith.constant dense<0.000000e+00> : vector<8x134xf32>
    %259 = tpu.matmul %258, %256, %cst_182 {dimension_numbers = #tpu.dot_dimension_numbers<[1], [0], [0], [1], [0, 0, 1, 1], [], []>} : vector<8x8xf32>, vector<8x134xf32>, vector<8x134xf32> -> vector<8x134xf32>
    %260 = arith.addf %255, %259 : vector<8x134xf32>
    %c24_183 = arith.constant 24 : index
    %c3_184 = arith.constant 3 : index
    %261 = vector.load %arg14[%c24_183, %c3_184] : memref<32x140xf32, #tpu.memory_space<vmem>>, vector<8x134xf32>
    %262 = arith.addf %260, %261 : vector<8x134xf32>
    %263 = vector.broadcast %118 : vector<1x134xf32> to vector<8x134xf32>
    %264 = arith.mulf %262, %263 : vector<8x134xf32>
    %c24_185 = arith.constant 24 : index
    %c3_186 = arith.constant 3 : index
    %265 = vector.load %arg15[%c24_185, %c3_186] : memref<32x140xf32, #tpu.memory_space<vmem>>, vector<8x134xf32>
    tpu.vector_store %arg15[%c24_185, %c3_186], %264 {strides = array<i32>} : memref<32x140xf32, #tpu.memory_space<vmem>>, vector<8x134xf32>,
    %c8_187 = arith.constant 8 : index
    %c2_188 = arith.constant 2 : index
    %266 = vector.load %arg15[%c8_187, %c2_188] : memref<32x140xf32, #tpu.memory_space<vmem>>, vector<8x134xf32>
    %c1 = arith.constant 1 : index
    %c0_189 = arith.constant 0 : index
    %c0_190 = arith.constant 0 : index
    %267 = vector.load %arg8[%c1, %c0_189, %c0_190] : memref<2x8x24xf32, #tpu.memory_space<vmem>>, vector<1x8x8xf32>
    %268 = vector.shape_cast %267 : vector<1x8x8xf32> to vector<8x8xf32>
    %cst_191 = arith.constant dense<0.000000e+00> : vector<8x134xf32>
    %269 = tpu.matmul %268, %266, %cst_191 {dimension_numbers = #tpu.dot_dimension_numbers<[1], [0], [0], [1], [0, 0, 1, 1], [], []>} : vector<8x8xf32>, vector<8x134xf32>, vector<8x134xf32> -> vector<8x134xf32>
    %c0_192 = arith.constant 0 : index
    %c3_193 = arith.constant 3 : index
    %270 = vector.load %arg15[%c0_192, %c3_193] : memref<32x140xf32, #tpu.memory_space<vmem>>, vector<8x134xf32>
    %c1_194 = arith.constant 1 : index
    %c0_195 = arith.constant 0 : index
    %c8_196 = arith.constant 8 : index
    %271 = vector.load %arg8[%c1_194, %c0_195, %c8_196] : memref<2x8x24xf32, #tpu.memory_space<vmem>>, vector<1x8x8xf32>
    %272 = vector.shape_cast %271 : vector<1x8x8xf32> to vector<8x8xf32>
    %cst_197 = arith.constant dense<0.000000e+00> : vector<8x134xf32>
    %273 = tpu.matmul %272, %270, %cst_197 {dimension_numbers = #tpu.dot_dimension_numbers<[1], [0], [0], [1], [0, 0, 1, 1], [], []>} : vector<8x8xf32>, vector<8x134xf32>, vector<8x134xf32> -> vector<8x134xf32>
    %274 = arith.addf %269, %273 : vector<8x134xf32>
    %c24_198 = arith.constant 24 : index
    %c3_199 = arith.constant 3 : index
    %275 = vector.load %arg15[%c24_198, %c3_199] : memref<32x140xf32, #tpu.memory_space<vmem>>, vector<8x134xf32>
    %c1_200 = arith.constant 1 : index
    %c0_201 = arith.constant 0 : index
    %c16_202 = arith.constant 16 : index
    %276 = vector.load %arg8[%c1_200, %c0_201, %c16_202] : memref<2x8x24xf32, #tpu.memory_space<vmem>>, vector<1x8x8xf32>
    %277 = vector.shape_cast %276 : vector<1x8x8xf32> to vector<8x8xf32>
    %cst_203 = arith.constant dense<0.000000e+00> : vector<8x134xf32>
    %278 = tpu.matmul %277, %275, %cst_203 {dimension_numbers = #tpu.dot_dimension_numbers<[1], [0], [0], [1], [0, 0, 1, 1], [], []>} : vector<8x8xf32>, vector<8x134xf32>, vector<8x134xf32> -> vector<8x134xf32>
    %279 = arith.addf %274, %278 : vector<8x134xf32>
    %c0_204 = arith.constant 0 : index
    %c3_205 = arith.constant 3 : index
    %280 = vector.load %arg15[%c0_204, %c3_205] : memref<32x140xf32, #tpu.memory_space<vmem>>, vector<8x134xf32>
    %281 = arith.addf %279, %280 : vector<8x134xf32>
    %282 = vector.broadcast %85 : vector<1x134xf32> to vector<8x134xf32>
    %283 = arith.mulf %281, %282 : vector<8x134xf32>
    %c0_206 = arith.constant 0 : index
    %c3_207 = arith.constant 3 : index
    %284 = vector.load %arg14[%c0_206, %c3_207] : memref<32x140xf32, #tpu.memory_space<vmem>>, vector<8x134xf32>
    tpu.vector_store %arg14[%c0_206, %c3_207], %283 {strides = array<i32>} : memref<32x140xf32, #tpu.memory_space<vmem>>, vector<8x134xf32>,
    %c16_208 = arith.constant 16 : index
    %c2_209 = arith.constant 2 : index
    %285 = vector.load %arg15[%c16_208, %c2_209] : memref<32x140xf32, #tpu.memory_space<vmem>>, vector<8x134xf32>
    %c1_210 = arith.constant 1 : index
    %c0_211 = arith.constant 0 : index
    %c0_212 = arith.constant 0 : index
    %286 = vector.load %arg8[%c1_210, %c0_211, %c0_212] : memref<2x8x24xf32, #tpu.memory_space<vmem>>, vector<1x8x8xf32>
    %287 = vector.shape_cast %286 : vector<1x8x8xf32> to vector<8x8xf32>
    %cst_213 = arith.constant dense<0.000000e+00> : vector<8x134xf32>
    %288 = tpu.matmul %287, %285, %cst_213 {dimension_numbers = #tpu.dot_dimension_numbers<[1], [0], [0], [1], [0, 0, 1, 1], [], []>} : vector<8x8xf32>, vector<8x134xf32>, vector<8x134xf32> -> vector<8x134xf32>
    %c8_214 = arith.constant 8 : index
    %c3_215 = arith.constant 3 : index
    %289 = vector.load %arg15[%c8_214, %c3_215] : memref<32x140xf32, #tpu.memory_space<vmem>>, vector<8x134xf32>
    %c1_216 = arith.constant 1 : index
    %c0_217 = arith.constant 0 : index
    %c8_218 = arith.constant 8 : index
    %290 = vector.load %arg8[%c1_216, %c0_217, %c8_218] : memref<2x8x24xf32, #tpu.memory_space<vmem>>, vector<1x8x8xf32>
    %291 = vector.shape_cast %290 : vector<1x8x8xf32> to vector<8x8xf32>
    %cst_219 = arith.constant dense<0.000000e+00> : vector<8x134xf32>
    %292 = tpu.matmul %291, %289, %cst_219 {dimension_numbers = #tpu.dot_dimension_numbers<[1], [0], [0], [1], [0, 0, 1, 1], [], []>} : vector<8x8xf32>, vector<8x134xf32>, vector<8x134xf32> -> vector<8x134xf32>
    %293 = arith.addf %288, %292 : vector<8x134xf32>
    %c0_220 = arith.constant 0 : index
    %c4_221 = arith.constant 4 : index
    %294 = vector.load %arg15[%c0_220, %c4_221] : memref<32x140xf32, #tpu.memory_space<vmem>>, vector<8x134xf32>
    %c1_222 = arith.constant 1 : index
    %c0_223 = arith.constant 0 : index
    %c16_224 = arith.constant 16 : index
    %295 = vector.load %arg8[%c1_222, %c0_223, %c16_224] : memref<2x8x24xf32, #tpu.memory_space<vmem>>, vector<1x8x8xf32>
    %296 = vector.shape_cast %295 : vector<1x8x8xf32> to vector<8x8xf32>
    %cst_225 = arith.constant dense<0.000000e+00> : vector<8x134xf32>
    %297 = tpu.matmul %296, %294, %cst_225 {dimension_numbers = #tpu.dot_dimension_numbers<[1], [0], [0], [1], [0, 0, 1, 1], [], []>} : vector<8x8xf32>, vector<8x134xf32>, vector<8x134xf32> -> vector<8x134xf32>
    %298 = arith.addf %293, %297 : vector<8x134xf32>
    %c8_226 = arith.constant 8 : index
    %c3_227 = arith.constant 3 : index
    %299 = vector.load %arg15[%c8_226, %c3_227] : memref<32x140xf32, #tpu.memory_space<vmem>>, vector<8x134xf32>
    %300 = arith.addf %298, %299 : vector<8x134xf32>
    %301 = vector.broadcast %96 : vector<1x134xf32> to vector<8x134xf32>
    %302 = arith.mulf %300, %301 : vector<8x134xf32>
    %c8_228 = arith.constant 8 : index
    %c3_229 = arith.constant 3 : index
    %303 = vector.load %arg14[%c8_228, %c3_229] : memref<32x140xf32, #tpu.memory_space<vmem>>, vector<8x134xf32>
    tpu.vector_store %arg14[%c8_228, %c3_229], %302 {strides = array<i32>} : memref<32x140xf32, #tpu.memory_space<vmem>>, vector<8x134xf32>,
    %c24_230 = arith.constant 24 : index
    %c2_231 = arith.constant 2 : index
    %304 = vector.load %arg15[%c24_230, %c2_231] : memref<32x140xf32, #tpu.memory_space<vmem>>, vector<8x134xf32>
    %c1_232 = arith.constant 1 : index
    %c0_233 = arith.constant 0 : index
    %c0_234 = arith.constant 0 : index
    %305 = vector.load %arg8[%c1_232, %c0_233, %c0_234] : memref<2x8x24xf32, #tpu.memory_space<vmem>>, vector<1x8x8xf32>
    %306 = vector.shape_cast %305 : vector<1x8x8xf32> to vector<8x8xf32>
    %cst_235 = arith.constant dense<0.000000e+00> : vector<8x134xf32>
    %307 = tpu.matmul %306, %304, %cst_235 {dimension_numbers = #tpu.dot_dimension_numbers<[1], [0], [0], [1], [0, 0, 1, 1], [], []>} : vector<8x8xf32>, vector<8x134xf32>, vector<8x134xf32> -> vector<8x134xf32>
    %c16_236 = arith.constant 16 : index
    %c3_237 = arith.constant 3 : index
    %308 = vector.load %arg15[%c16_236, %c3_237] : memref<32x140xf32, #tpu.memory_space<vmem>>, vector<8x134xf32>
    %c1_238 = arith.constant 1 : index
    %c0_239 = arith.constant 0 : index
    %c8_240 = arith.constant 8 : index
    %309 = vector.load %arg8[%c1_238, %c0_239, %c8_240] : memref<2x8x24xf32, #tpu.memory_space<vmem>>, vector<1x8x8xf32>
    %310 = vector.shape_cast %309 : vector<1x8x8xf32> to vector<8x8xf32>
    %cst_241 = arith.constant dense<0.000000e+00> : vector<8x134xf32>
    %311 = tpu.matmul %310, %308, %cst_241 {dimension_numbers = #tpu.dot_dimension_numbers<[1], [0], [0], [1], [0, 0, 1, 1], [], []>} : vector<8x8xf32>, vector<8x134xf32>, vector<8x134xf32> -> vector<8x134xf32>
    %312 = arith.addf %307, %311 : vector<8x134xf32>
    %c8_242 = arith.constant 8 : index
    %c4_243 = arith.constant 4 : index
    %313 = vector.load %arg15[%c8_242, %c4_243] : memref<32x140xf32, #tpu.memory_space<vmem>>, vector<8x134xf32>
    %c1_244 = arith.constant 1 : index
    %c0_245 = arith.constant 0 : index
    %c16_246 = arith.constant 16 : index
    %314 = vector.load %arg8[%c1_244, %c0_245, %c16_246] : memref<2x8x24xf32, #tpu.memory_space<vmem>>, vector<1x8x8xf32>
    %315 = vector.shape_cast %314 : vector<1x8x8xf32> to vector<8x8xf32>
    %cst_247 = arith.constant dense<0.000000e+00> : vector<8x134xf32>
    %316 = tpu.matmul %315, %313, %cst_247 {dimension_numbers = #tpu.dot_dimension_numbers<[1], [0], [0], [1], [0, 0, 1, 1], [], []>} : vector<8x8xf32>, vector<8x134xf32>, vector<8x134xf32> -> vector<8x134xf32>
    %317 = arith.addf %312, %316 : vector<8x134xf32>
    %c16_248 = arith.constant 16 : index
    %c3_249 = arith.constant 3 : index
    %318 = vector.load %arg15[%c16_248, %c3_249] : memref<32x140xf32, #tpu.memory_space<vmem>>, vector<8x134xf32>
    %319 = arith.addf %317, %318 : vector<8x134xf32>
    %320 = vector.broadcast %107 : vector<1x134xf32> to vector<8x134xf32>
    %321 = arith.mulf %319, %320 : vector<8x134xf32>
    %c16_250 = arith.constant 16 : index
    %c3_251 = arith.constant 3 : index
    %322 = vector.load %arg14[%c16_250, %c3_251] : memref<32x140xf32, #tpu.memory_space<vmem>>, vector<8x134xf32>
    tpu.vector_store %arg14[%c16_250, %c3_251], %321 {strides = array<i32>} : memref<32x140xf32, #tpu.memory_space<vmem>>, vector<8x134xf32>,
    %c0_252 = arith.constant 0 : index
    %c3_253 = arith.constant 3 : index
    %323 = vector.load %arg15[%c0_252, %c3_253] : memref<32x140xf32, #tpu.memory_space<vmem>>, vector<8x134xf32>
    %c1_254 = arith.constant 1 : index
    %c0_255 = arith.constant 0 : index
    %c0_256 = arith.constant 0 : index
    %324 = vector.load %arg8[%c1_254, %c0_255, %c0_256] : memref<2x8x24xf32, #tpu.memory_space<vmem>>, vector<1x8x8xf32>
    %325 = vector.shape_cast %324 : vector<1x8x8xf32> to vector<8x8xf32>
    %cst_257 = arith.constant dense<0.000000e+00> : vector<8x134xf32>
    %326 = tpu.matmul %325, %323, %cst_257 {dimension_numbers = #tpu.dot_dimension_numbers<[1], [0], [0], [1], [0, 0, 1, 1], [], []>} : vector<8x8xf32>, vector<8x134xf32>, vector<8x134xf32> -> vector<8x134xf32>
    %c24_258 = arith.constant 24 : index
    %c3_259 = arith.constant 3 : index
    %327 = vector.load %arg15[%c24_258, %c3_259] : memref<32x140xf32, #tpu.memory_space<vmem>>, vector<8x134xf32>
    %c1_260 = arith.constant 1 : index
    %c0_261 = arith.constant 0 : index
    %c8_262 = arith.constant 8 : index
    %328 = vector.load %arg8[%c1_260, %c0_261, %c8_262] : memref<2x8x24xf32, #tpu.memory_space<vmem>>, vector<1x8x8xf32>
    %329 = vector.shape_cast %328 : vector<1x8x8xf32> to vector<8x8xf32>
    %cst_263 = arith.constant dense<0.000000e+00> : vector<8x134xf32>
    %330 = tpu.matmul %329, %327, %cst_263 {dimension_numbers = #tpu.dot_dimension_numbers<[1], [0], [0], [1], [0, 0, 1, 1], [], []>} : vector<8x8xf32>, vector<8x134xf32>, vector<8x134xf32> -> vector<8x134xf32>
    %331 = arith.addf %326, %330 : vector<8x134xf32>
    %c16_264 = arith.constant 16 : index
    %c4_265 = arith.constant 4 : index
    %332 = vector.load %arg15[%c16_264, %c4_265] : memref<32x140xf32, #tpu.memory_space<vmem>>, vector<8x134xf32>
    %c1_266 = arith.constant 1 : index
    %c0_267 = arith.constant 0 : index
    %c16_268 = arith.constant 16 : index
    %333 = vector.load %arg8[%c1_266, %c0_267, %c16_268] : memref<2x8x24xf32, #tpu.memory_space<vmem>>, vector<1x8x8xf32>
    %334 = vector.shape_cast %333 : vector<1x8x8xf32> to vector<8x8xf32>
    %cst_269 = arith.constant dense<0.000000e+00> : vector<8x134xf32>
    %335 = tpu.matmul %334, %332, %cst_269 {dimension_numbers = #tpu.dot_dimension_numbers<[1], [0], [0], [1], [0, 0, 1, 1], [], []>} : vector<8x8xf32>, vector<8x134xf32>, vector<8x134xf32> -> vector<8x134xf32>
    %336 = arith.addf %331, %335 : vector<8x134xf32>
    %c24_270 = arith.constant 24 : index
    %c3_271 = arith.constant 3 : index
    %337 = vector.load %arg15[%c24_270, %c3_271] : memref<32x140xf32, #tpu.memory_space<vmem>>, vector<8x134xf32>
    %338 = arith.addf %336, %337 : vector<8x134xf32>
    %339 = vector.broadcast %118 : vector<1x134xf32> to vector<8x134xf32>
    %340 = arith.mulf %338, %339 : vector<8x134xf32>
    %c24_272 = arith.constant 24 : index
    %c3_273 = arith.constant 3 : index
    %341 = vector.load %arg14[%c24_272, %c3_273] : memref<32x140xf32, #tpu.memory_space<vmem>>, vector<8x134xf32>
    tpu.vector_store %arg14[%c24_272, %c3_273], %340 {strides = array<i32>} : memref<32x140xf32, #tpu.memory_space<vmem>>, vector<8x134xf32>,
    %c0_274 = arith.constant 0 : index
    %c6 = arith.constant 6 : index
    %342 = vector.load %arg14[%c0_274, %c6] : memref<32x140xf32, #tpu.memory_space<vmem>>, vector<32x128xf32>
    %343 = arith.addf %140, %342 : vector<32x128xf32>
    %c0_275 = arith.constant 0 : index
    %c0_276 = arith.constant 0 : index
    %344 = vector.load %arg9[%c0_275, %c0_276] : memref<32x1xf32, #tpu.memory_space<vmem>>, vector<32x1xf32>
    %cst_277 = arith.constant 9.99999971E-10 : f32
    %345 = vector.broadcast %cst_277 : f32 to vector<32x1xf32>
    %346 = arith.addf %344, %345 : vector<32x1xf32>
    %cst_278 = arith.constant 1.000000e+00 : f32
    %347 = vector.broadcast %cst_278 : f32 to vector<32x1xf32>
    %348 = arith.divf %347, %346 : vector<32x1xf32>
    %c0_279 = arith.constant 0 : index
    %c0_280 = arith.constant 0 : index
    %349 = vector.load %arg13[%c0_279, %c0_280] : memref<32x134xf32, #tpu.memory_space<vmem>>, vector<8x134xf32>
    %350 = vector.extract_strided_slice %344 {offsets = [0, 0], sizes = [8, 1], strides = [1, 1]} : vector<32x1xf32> to vector<8x1xf32>
    %351 = vector.broadcast %350 : vector<8x1xf32> to vector<8x134xf32>
    %352 = arith.mulf %351, %349 : vector<8x134xf32>
    %353 = math.sin %352 : vector<8x134xf32>
    %354 = arith.mulf %353, %353 : vector<8x134xf32>
    %355 = vector.extract_strided_slice %348 {offsets = [0, 0], sizes = [8, 1], strides = [1, 1]} : vector<32x1xf32> to vector<8x1xf32>
    %356 = vector.broadcast %355 : vector<8x1xf32> to vector<8x134xf32>
    %357 = arith.mulf %354, %356 : vector<8x134xf32>
    %358 = arith.addf %349, %357 : vector<8x134xf32>
    %c0_281 = arith.constant 0 : index
    %c3_282 = arith.constant 3 : index
    %359 = vector.load %arg14[%c0_281, %c3_282] : memref<32x140xf32, #tpu.memory_space<vmem>>, vector<8x134xf32>
    tpu.vector_store %arg14[%c0_281, %c3_282], %358 {strides = array<i32>} : memref<32x140xf32, #tpu.memory_space<vmem>>, vector<8x134xf32>,
    %c8_283 = arith.constant 8 : index
    %c0_284 = arith.constant 0 : index
    %360 = vector.load %arg13[%c8_283, %c0_284] : memref<32x134xf32, #tpu.memory_space<vmem>>, vector<8x134xf32>
    %361 = vector.extract_strided_slice %344 {offsets = [8, 0], sizes = [8, 1], strides = [1, 1]} : vector<32x1xf32> to vector<8x1xf32>
    %362 = vector.broadcast %361 : vector<8x1xf32> to vector<8x134xf32>
    %363 = arith.mulf %362, %360 : vector<8x134xf32>
    %364 = math.sin %363 : vector<8x134xf32>
    %365 = arith.mulf %364, %364 : vector<8x134xf32>
    %366 = vector.extract_strided_slice %348 {offsets = [8, 0], sizes = [8, 1], strides = [1, 1]} : vector<32x1xf32> to vector<8x1xf32>
    %367 = vector.broadcast %366 : vector<8x1xf32> to vector<8x134xf32>
    %368 = arith.mulf %365, %367 : vector<8x134xf32>
    %369 = arith.addf %360, %368 : vector<8x134xf32>
    %c8_285 = arith.constant 8 : index
    %c3_286 = arith.constant 3 : index
    %370 = vector.load %arg14[%c8_285, %c3_286] : memref<32x140xf32, #tpu.memory_space<vmem>>, vector<8x134xf32>
    tpu.vector_store %arg14[%c8_285, %c3_286], %369 {strides = array<i32>} : memref<32x140xf32, #tpu.memory_space<vmem>>, vector<8x134xf32>,
    %c16_287 = arith.constant 16 : index
    %c0_288 = arith.constant 0 : index
    %371 = vector.load %arg13[%c16_287, %c0_288] : memref<32x134xf32, #tpu.memory_space<vmem>>, vector<8x134xf32>
    %372 = vector.extract_strided_slice %344 {offsets = [16, 0], sizes = [8, 1], strides = [1, 1]} : vector<32x1xf32> to vector<8x1xf32>
    %373 = vector.broadcast %372 : vector<8x1xf32> to vector<8x134xf32>
    %374 = arith.mulf %373, %371 : vector<8x134xf32>
    %375 = math.sin %374 : vector<8x134xf32>
    %376 = arith.mulf %375, %375 : vector<8x134xf32>
    %377 = vector.extract_strided_slice %348 {offsets = [16, 0], sizes = [8, 1], strides = [1, 1]} : vector<32x1xf32> to vector<8x1xf32>
    %378 = vector.broadcast %377 : vector<8x1xf32> to vector<8x134xf32>
    %379 = arith.mulf %376, %378 : vector<8x134xf32>
    %380 = arith.addf %371, %379 : vector<8x134xf32>
    %c16_289 = arith.constant 16 : index
    %c3_290 = arith.constant 3 : index
    %381 = vector.load %arg14[%c16_289, %c3_290] : memref<32x140xf32, #tpu.memory_space<vmem>>, vector<8x134xf32>
    tpu.vector_store %arg14[%c16_289, %c3_290], %380 {strides = array<i32>} : memref<32x140xf32, #tpu.memory_space<vmem>>, vector<8x134xf32>,
    %c24_291 = arith.constant 24 : index
    %c0_292 = arith.constant 0 : index
    %382 = vector.load %arg13[%c24_291, %c0_292] : memref<32x134xf32, #tpu.memory_space<vmem>>, vector<8x134xf32>
    %383 = vector.extract_strided_slice %344 {offsets = [24, 0], sizes = [8, 1], strides = [1, 1]} : vector<32x1xf32> to vector<8x1xf32>
    %384 = vector.broadcast %383 : vector<8x1xf32> to vector<8x134xf32>
    %385 = arith.mulf %384, %382 : vector<8x134xf32>
    %386 = math.sin %385 : vector<8x134xf32>
    %387 = arith.mulf %386, %386 : vector<8x134xf32>
    %388 = vector.extract_strided_slice %348 {offsets = [24, 0], sizes = [8, 1], strides = [1, 1]} : vector<32x1xf32> to vector<8x1xf32>
    %389 = vector.broadcast %388 : vector<8x1xf32> to vector<8x134xf32>
    %390 = arith.mulf %387, %389 : vector<8x134xf32>
    %391 = arith.addf %382, %390 : vector<8x134xf32>
    %c24_293 = arith.constant 24 : index
    %c3_294 = arith.constant 3 : index
    %392 = vector.load %arg14[%c24_293, %c3_294] : memref<32x140xf32, #tpu.memory_space<vmem>>, vector<8x134xf32>
    tpu.vector_store %arg14[%c24_293, %c3_294], %391 {strides = array<i32>} : memref<32x140xf32, #tpu.memory_space<vmem>>, vector<8x134xf32>,
    %c8_295 = arith.constant 8 : index
    %c2_296 = arith.constant 2 : index
    %393 = vector.load %arg14[%c8_295, %c2_296] : memref<32x140xf32, #tpu.memory_space<vmem>>, vector<8x134xf32>
    %c0_297 = arith.constant 0 : index
    %c0_298 = arith.constant 0 : index
    %c0_299 = arith.constant 0 : index
    %394 = vector.load %arg10[%c0_297, %c0_298, %c0_299] : memref<2x8x56xf32, #tpu.memory_space<vmem>>, vector<1x8x8xf32>
    %395 = vector.shape_cast %394 : vector<1x8x8xf32> to vector<8x8xf32>
    %cst_300 = arith.constant dense<0.000000e+00> : vector<8x134xf32>
    %396 = tpu.matmul %395, %393, %cst_300 {dimension_numbers = #tpu.dot_dimension_numbers<[1], [0], [0], [1], [0, 0, 1, 1], [], []>} : vector<8x8xf32>, vector<8x134xf32>, vector<8x134xf32> -> vector<8x134xf32>
    %c16_301 = arith.constant 16 : index
    %c2_302 = arith.constant 2 : index
    %397 = vector.load %arg14[%c16_301, %c2_302] : memref<32x140xf32, #tpu.memory_space<vmem>>, vector<8x134xf32>
    %c0_303 = arith.constant 0 : index
    %c0_304 = arith.constant 0 : index
    %c8_305 = arith.constant 8 : index
    %398 = vector.load %arg10[%c0_303, %c0_304, %c8_305] : memref<2x8x56xf32, #tpu.memory_space<vmem>>, vector<1x8x8xf32>
    %399 = vector.shape_cast %398 : vector<1x8x8xf32> to vector<8x8xf32>
    %cst_306 = arith.constant dense<0.000000e+00> : vector<8x134xf32>
    %400 = tpu.matmul %399, %397, %cst_306 {dimension_numbers = #tpu.dot_dimension_numbers<[1], [0], [0], [1], [0, 0, 1, 1], [], []>} : vector<8x8xf32>, vector<8x134xf32>, vector<8x134xf32> -> vector<8x134xf32>
    %401 = arith.addf %396, %400 : vector<8x134xf32>
    %c24_307 = arith.constant 24 : index
    %c2_308 = arith.constant 2 : index
    %402 = vector.load %arg14[%c24_307, %c2_308] : memref<32x140xf32, #tpu.memory_space<vmem>>, vector<8x134xf32>
    %c0_309 = arith.constant 0 : index
    %c0_310 = arith.constant 0 : index
    %c16_311 = arith.constant 16 : index
    %403 = vector.load %arg10[%c0_309, %c0_310, %c16_311] : memref<2x8x56xf32, #tpu.memory_space<vmem>>, vector<1x8x8xf32>
    %404 = vector.shape_cast %403 : vector<1x8x8xf32> to vector<8x8xf32>
    %cst_312 = arith.constant dense<0.000000e+00> : vector<8x134xf32>
    %405 = tpu.matmul %404, %402, %cst_312 {dimension_numbers = #tpu.dot_dimension_numbers<[1], [0], [0], [1], [0, 0, 1, 1], [], []>} : vector<8x8xf32>, vector<8x134xf32>, vector<8x134xf32> -> vector<8x134xf32>
    %406 = arith.addf %401, %405 : vector<8x134xf32>
    %c0_313 = arith.constant 0 : index
    %c3_314 = arith.constant 3 : index
    %407 = vector.load %arg14[%c0_313, %c3_314] : memref<32x140xf32, #tpu.memory_space<vmem>>, vector<8x134xf32>
    %c0_315 = arith.constant 0 : index
    %c0_316 = arith.constant 0 : index
    %c24_317 = arith.constant 24 : index
    %408 = vector.load %arg10[%c0_315, %c0_316, %c24_317] : memref<2x8x56xf32, #tpu.memory_space<vmem>>, vector<1x8x8xf32>
    %409 = vector.shape_cast %408 : vector<1x8x8xf32> to vector<8x8xf32>
    %cst_318 = arith.constant dense<0.000000e+00> : vector<8x134xf32>
    %410 = tpu.matmul %409, %407, %cst_318 {dimension_numbers = #tpu.dot_dimension_numbers<[1], [0], [0], [1], [0, 0, 1, 1], [], []>} : vector<8x8xf32>, vector<8x134xf32>, vector<8x134xf32> -> vector<8x134xf32>
    %411 = arith.addf %406, %410 : vector<8x134xf32>
    %c8_319 = arith.constant 8 : index
    %c3_320 = arith.constant 3 : index
    %412 = vector.load %arg14[%c8_319, %c3_320] : memref<32x140xf32, #tpu.memory_space<vmem>>, vector<8x134xf32>
    %c0_321 = arith.constant 0 : index
    %c0_322 = arith.constant 0 : index
    %c32 = arith.constant 32 : index
    %413 = vector.load %arg10[%c0_321, %c0_322, %c32] : memref<2x8x56xf32, #tpu.memory_space<vmem>>, vector<1x8x8xf32>
    %414 = vector.shape_cast %413 : vector<1x8x8xf32> to vector<8x8xf32>
    %cst_323 = arith.constant dense<0.000000e+00> : vector<8x134xf32>
    %415 = tpu.matmul %414, %412, %cst_323 {dimension_numbers = #tpu.dot_dimension_numbers<[1], [0], [0], [1], [0, 0, 1, 1], [], []>} : vector<8x8xf32>, vector<8x134xf32>, vector<8x134xf32> -> vector<8x134xf32>
    %416 = arith.addf %411, %415 : vector<8x134xf32>
    %c16_324 = arith.constant 16 : index
    %c3_325 = arith.constant 3 : index
    %417 = vector.load %arg14[%c16_324, %c3_325] : memref<32x140xf32, #tpu.memory_space<vmem>>, vector<8x134xf32>
    %c0_326 = arith.constant 0 : index
    %c0_327 = arith.constant 0 : index
    %c40 = arith.constant 40 : index
    %418 = vector.load %arg10[%c0_326, %c0_327, %c40] : memref<2x8x56xf32, #tpu.memory_space<vmem>>, vector<1x8x8xf32>
    %419 = vector.shape_cast %418 : vector<1x8x8xf32> to vector<8x8xf32>
    %cst_328 = arith.constant dense<0.000000e+00> : vector<8x134xf32>
    %420 = tpu.matmul %419, %417, %cst_328 {dimension_numbers = #tpu.dot_dimension_numbers<[1], [0], [0], [1], [0, 0, 1, 1], [], []>} : vector<8x8xf32>, vector<8x134xf32>, vector<8x134xf32> -> vector<8x134xf32>
    %421 = arith.addf %416, %420 : vector<8x134xf32>
    %c24_329 = arith.constant 24 : index
    %c3_330 = arith.constant 3 : index
    %422 = vector.load %arg14[%c24_329, %c3_330] : memref<32x140xf32, #tpu.memory_space<vmem>>, vector<8x134xf32>
    %c0_331 = arith.constant 0 : index
    %c0_332 = arith.constant 0 : index
    %c48 = arith.constant 48 : index
    %423 = vector.load %arg10[%c0_331, %c0_332, %c48] : memref<2x8x56xf32, #tpu.memory_space<vmem>>, vector<1x8x8xf32>
    %424 = vector.shape_cast %423 : vector<1x8x8xf32> to vector<8x8xf32>
    %cst_333 = arith.constant dense<0.000000e+00> : vector<8x134xf32>
    %425 = tpu.matmul %424, %422, %cst_333 {dimension_numbers = #tpu.dot_dimension_numbers<[1], [0], [0], [1], [0, 0, 1, 1], [], []>} : vector<8x8xf32>, vector<8x134xf32>, vector<8x134xf32> -> vector<8x134xf32>
    %426 = arith.addf %421, %425 : vector<8x134xf32>
    %c0_334 = arith.constant 0 : index
    %c3_335 = arith.constant 3 : index
    %427 = vector.load %arg14[%c0_334, %c3_335] : memref<32x140xf32, #tpu.memory_space<vmem>>, vector<8x134xf32>
    %428 = arith.addf %426, %427 : vector<8x134xf32>
    %429 = vector.broadcast %85 : vector<1x134xf32> to vector<8x134xf32>
    %430 = arith.mulf %428, %429 : vector<8x134xf32>
    %c0_336 = arith.constant 0 : index
    %c3_337 = arith.constant 3 : index
    %431 = vector.load %arg15[%c0_336, %c3_337] : memref<32x140xf32, #tpu.memory_space<vmem>>, vector<8x134xf32>
    tpu.vector_store %arg15[%c0_336, %c3_337], %430 {strides = array<i32>} : memref<32x140xf32, #tpu.memory_space<vmem>>, vector<8x134xf32>,
    %c16_338 = arith.constant 16 : index
    %c2_339 = arith.constant 2 : index
    %432 = vector.load %arg14[%c16_338, %c2_339] : memref<32x140xf32, #tpu.memory_space<vmem>>, vector<8x134xf32>
    %c0_340 = arith.constant 0 : index
    %c0_341 = arith.constant 0 : index
    %c0_342 = arith.constant 0 : index
    %433 = vector.load %arg10[%c0_340, %c0_341, %c0_342] : memref<2x8x56xf32, #tpu.memory_space<vmem>>, vector<1x8x8xf32>
    %434 = vector.shape_cast %433 : vector<1x8x8xf32> to vector<8x8xf32>
    %cst_343 = arith.constant dense<0.000000e+00> : vector<8x134xf32>
    %435 = tpu.matmul %434, %432, %cst_343 {dimension_numbers = #tpu.dot_dimension_numbers<[1], [0], [0], [1], [0, 0, 1, 1], [], []>} : vector<8x8xf32>, vector<8x134xf32>, vector<8x134xf32> -> vector<8x134xf32>
    %c24_344 = arith.constant 24 : index
    %c2_345 = arith.constant 2 : index
    %436 = vector.load %arg14[%c24_344, %c2_345] : memref<32x140xf32, #tpu.memory_space<vmem>>, vector<8x134xf32>
    %c0_346 = arith.constant 0 : index
    %c0_347 = arith.constant 0 : index
    %c8_348 = arith.constant 8 : index
    %437 = vector.load %arg10[%c0_346, %c0_347, %c8_348] : memref<2x8x56xf32, #tpu.memory_space<vmem>>, vector<1x8x8xf32>
    %438 = vector.shape_cast %437 : vector<1x8x8xf32> to vector<8x8xf32>
    %cst_349 = arith.constant dense<0.000000e+00> : vector<8x134xf32>
    %439 = tpu.matmul %438, %436, %cst_349 {dimension_numbers = #tpu.dot_dimension_numbers<[1], [0], [0], [1], [0, 0, 1, 1], [], []>} : vector<8x8xf32>, vector<8x134xf32>, vector<8x134xf32> -> vector<8x134xf32>
    %440 = arith.addf %435, %439 : vector<8x134xf32>
    %c0_350 = arith.constant 0 : index
    %c3_351 = arith.constant 3 : index
    %441 = vector.load %arg14[%c0_350, %c3_351] : memref<32x140xf32, #tpu.memory_space<vmem>>, vector<8x134xf32>
    %c0_352 = arith.constant 0 : index
    %c0_353 = arith.constant 0 : index
    %c16_354 = arith.constant 16 : index
    %442 = vector.load %arg10[%c0_352, %c0_353, %c16_354] : memref<2x8x56xf32, #tpu.memory_space<vmem>>, vector<1x8x8xf32>
    %443 = vector.shape_cast %442 : vector<1x8x8xf32> to vector<8x8xf32>
    %cst_355 = arith.constant dense<0.000000e+00> : vector<8x134xf32>
    %444 = tpu.matmul %443, %441, %cst_355 {dimension_numbers = #tpu.dot_dimension_numbers<[1], [0], [0], [1], [0, 0, 1, 1], [], []>} : vector<8x8xf32>, vector<8x134xf32>, vector<8x134xf32> -> vector<8x134xf32>
    %445 = arith.addf %440, %444 : vector<8x134xf32>
    %c8_356 = arith.constant 8 : index
    %c3_357 = arith.constant 3 : index
    %446 = vector.load %arg14[%c8_356, %c3_357] : memref<32x140xf32, #tpu.memory_space<vmem>>, vector<8x134xf32>
    %c0_358 = arith.constant 0 : index
    %c0_359 = arith.constant 0 : index
    %c24_360 = arith.constant 24 : index
    %447 = vector.load %arg10[%c0_358, %c0_359, %c24_360] : memref<2x8x56xf32, #tpu.memory_space<vmem>>, vector<1x8x8xf32>
    %448 = vector.shape_cast %447 : vector<1x8x8xf32> to vector<8x8xf32>
    %cst_361 = arith.constant dense<0.000000e+00> : vector<8x134xf32>
    %449 = tpu.matmul %448, %446, %cst_361 {dimension_numbers = #tpu.dot_dimension_numbers<[1], [0], [0], [1], [0, 0, 1, 1], [], []>} : vector<8x8xf32>, vector<8x134xf32>, vector<8x134xf32> -> vector<8x134xf32>
    %450 = arith.addf %445, %449 : vector<8x134xf32>
    %c16_362 = arith.constant 16 : index
    %c3_363 = arith.constant 3 : index
    %451 = vector.load %arg14[%c16_362, %c3_363] : memref<32x140xf32, #tpu.memory_space<vmem>>, vector<8x134xf32>
    %c0_364 = arith.constant 0 : index
    %c0_365 = arith.constant 0 : index
    %c32_366 = arith.constant 32 : index
    %452 = vector.load %arg10[%c0_364, %c0_365, %c32_366] : memref<2x8x56xf32, #tpu.memory_space<vmem>>, vector<1x8x8xf32>
    %453 = vector.shape_cast %452 : vector<1x8x8xf32> to vector<8x8xf32>
    %cst_367 = arith.constant dense<0.000000e+00> : vector<8x134xf32>
    %454 = tpu.matmul %453, %451, %cst_367 {dimension_numbers = #tpu.dot_dimension_numbers<[1], [0], [0], [1], [0, 0, 1, 1], [], []>} : vector<8x8xf32>, vector<8x134xf32>, vector<8x134xf32> -> vector<8x134xf32>
    %455 = arith.addf %450, %454 : vector<8x134xf32>
    %c24_368 = arith.constant 24 : index
    %c3_369 = arith.constant 3 : index
    %456 = vector.load %arg14[%c24_368, %c3_369] : memref<32x140xf32, #tpu.memory_space<vmem>>, vector<8x134xf32>
    %c0_370 = arith.constant 0 : index
    %c0_371 = arith.constant 0 : index
    %c40_372 = arith.constant 40 : index
    %457 = vector.load %arg10[%c0_370, %c0_371, %c40_372] : memref<2x8x56xf32, #tpu.memory_space<vmem>>, vector<1x8x8xf32>
    %458 = vector.shape_cast %457 : vector<1x8x8xf32> to vector<8x8xf32>
    %cst_373 = arith.constant dense<0.000000e+00> : vector<8x134xf32>
    %459 = tpu.matmul %458, %456, %cst_373 {dimension_numbers = #tpu.dot_dimension_numbers<[1], [0], [0], [1], [0, 0, 1, 1], [], []>} : vector<8x8xf32>, vector<8x134xf32>, vector<8x134xf32> -> vector<8x134xf32>
    %460 = arith.addf %455, %459 : vector<8x134xf32>
    %c0_374 = arith.constant 0 : index
    %c4_375 = arith.constant 4 : index
    %461 = vector.load %arg14[%c0_374, %c4_375] : memref<32x140xf32, #tpu.memory_space<vmem>>, vector<8x134xf32>
    %c0_376 = arith.constant 0 : index
    %c0_377 = arith.constant 0 : index
    %c48_378 = arith.constant 48 : index
    %462 = vector.load %arg10[%c0_376, %c0_377, %c48_378] : memref<2x8x56xf32, #tpu.memory_space<vmem>>, vector<1x8x8xf32>
    %463 = vector.shape_cast %462 : vector<1x8x8xf32> to vector<8x8xf32>
    %cst_379 = arith.constant dense<0.000000e+00> : vector<8x134xf32>
    %464 = tpu.matmul %463, %461, %cst_379 {dimension_numbers = #tpu.dot_dimension_numbers<[1], [0], [0], [1], [0, 0, 1, 1], [], []>} : vector<8x8xf32>, vector<8x134xf32>, vector<8x134xf32> -> vector<8x134xf32>
    %465 = arith.addf %460, %464 : vector<8x134xf32>
    %c8_380 = arith.constant 8 : index
    %c3_381 = arith.constant 3 : index
    %466 = vector.load %arg14[%c8_380, %c3_381] : memref<32x140xf32, #tpu.memory_space<vmem>>, vector<8x134xf32>
    %467 = arith.addf %465, %466 : vector<8x134xf32>
    %468 = vector.broadcast %96 : vector<1x134xf32> to vector<8x134xf32>
    %469 = arith.mulf %467, %468 : vector<8x134xf32>
    %c8_382 = arith.constant 8 : index
    %c3_383 = arith.constant 3 : index
    %470 = vector.load %arg15[%c8_382, %c3_383] : memref<32x140xf32, #tpu.memory_space<vmem>>, vector<8x134xf32>
    tpu.vector_store %arg15[%c8_382, %c3_383], %469 {strides = array<i32>} : memref<32x140xf32, #tpu.memory_space<vmem>>, vector<8x134xf32>,
    %c24_384 = arith.constant 24 : index
    %c2_385 = arith.constant 2 : index
    %471 = vector.load %arg14[%c24_384, %c2_385] : memref<32x140xf32, #tpu.memory_space<vmem>>, vector<8x134xf32>
    %c0_386 = arith.constant 0 : index
    %c0_387 = arith.constant 0 : index
    %c0_388 = arith.constant 0 : index
    %472 = vector.load %arg10[%c0_386, %c0_387, %c0_388] : memref<2x8x56xf32, #tpu.memory_space<vmem>>, vector<1x8x8xf32>
    %473 = vector.shape_cast %472 : vector<1x8x8xf32> to vector<8x8xf32>
    %cst_389 = arith.constant dense<0.000000e+00> : vector<8x134xf32>
    %474 = tpu.matmul %473, %471, %cst_389 {dimension_numbers = #tpu.dot_dimension_numbers<[1], [0], [0], [1], [0, 0, 1, 1], [], []>} : vector<8x8xf32>, vector<8x134xf32>, vector<8x134xf32> -> vector<8x134xf32>
    %c0_390 = arith.constant 0 : index
    %c3_391 = arith.constant 3 : index
    %475 = vector.load %arg14[%c0_390, %c3_391] : memref<32x140xf32, #tpu.memory_space<vmem>>, vector<8x134xf32>
    %c0_392 = arith.constant 0 : index
    %c0_393 = arith.constant 0 : index
    %c8_394 = arith.constant 8 : index
    %476 = vector.load %arg10[%c0_392, %c0_393, %c8_394] : memref<2x8x56xf32, #tpu.memory_space<vmem>>, vector<1x8x8xf32>
    %477 = vector.shape_cast %476 : vector<1x8x8xf32> to vector<8x8xf32>
    %cst_395 = arith.constant dense<0.000000e+00> : vector<8x134xf32>
    %478 = tpu.matmul %477, %475, %cst_395 {dimension_numbers = #tpu.dot_dimension_numbers<[1], [0], [0], [1], [0, 0, 1, 1], [], []>} : vector<8x8xf32>, vector<8x134xf32>, vector<8x134xf32> -> vector<8x134xf32>
    %479 = arith.addf %474, %478 : vector<8x134xf32>
    %c8_396 = arith.constant 8 : index
    %c3_397 = arith.constant 3 : index
    %480 = vector.load %arg14[%c8_396, %c3_397] : memref<32x140xf32, #tpu.memory_space<vmem>>, vector<8x134xf32>
    %c0_398 = arith.constant 0 : index
    %c0_399 = arith.constant 0 : index
    %c16_400 = arith.constant 16 : index
    %481 = vector.load %arg10[%c0_398, %c0_399, %c16_400] : memref<2x8x56xf32, #tpu.memory_space<vmem>>, vector<1x8x8xf32>
    %482 = vector.shape_cast %481 : vector<1x8x8xf32> to vector<8x8xf32>
    %cst_401 = arith.constant dense<0.000000e+00> : vector<8x134xf32>
    %483 = tpu.matmul %482, %480, %cst_401 {dimension_numbers = #tpu.dot_dimension_numbers<[1], [0], [0], [1], [0, 0, 1, 1], [], []>} : vector<8x8xf32>, vector<8x134xf32>, vector<8x134xf32> -> vector<8x134xf32>
    %484 = arith.addf %479, %483 : vector<8x134xf32>
    %c16_402 = arith.constant 16 : index
    %c3_403 = arith.constant 3 : index
    %485 = vector.load %arg14[%c16_402, %c3_403] : memref<32x140xf32, #tpu.memory_space<vmem>>, vector<8x134xf32>
    %c0_404 = arith.constant 0 : index
    %c0_405 = arith.constant 0 : index
    %c24_406 = arith.constant 24 : index
    %486 = vector.load %arg10[%c0_404, %c0_405, %c24_406] : memref<2x8x56xf32, #tpu.memory_space<vmem>>, vector<1x8x8xf32>
    %487 = vector.shape_cast %486 : vector<1x8x8xf32> to vector<8x8xf32>
    %cst_407 = arith.constant dense<0.000000e+00> : vector<8x134xf32>
    %488 = tpu.matmul %487, %485, %cst_407 {dimension_numbers = #tpu.dot_dimension_numbers<[1], [0], [0], [1], [0, 0, 1, 1], [], []>} : vector<8x8xf32>, vector<8x134xf32>, vector<8x134xf32> -> vector<8x134xf32>
    %489 = arith.addf %484, %488 : vector<8x134xf32>
    %c24_408 = arith.constant 24 : index
    %c3_409 = arith.constant 3 : index
    %490 = vector.load %arg14[%c24_408, %c3_409] : memref<32x140xf32, #tpu.memory_space<vmem>>, vector<8x134xf32>
    %c0_410 = arith.constant 0 : index
    %c0_411 = arith.constant 0 : index
    %c32_412 = arith.constant 32 : index
    %491 = vector.load %arg10[%c0_410, %c0_411, %c32_412] : memref<2x8x56xf32, #tpu.memory_space<vmem>>, vector<1x8x8xf32>
    %492 = vector.shape_cast %491 : vector<1x8x8xf32> to vector<8x8xf32>
    %cst_413 = arith.constant dense<0.000000e+00> : vector<8x134xf32>
    %493 = tpu.matmul %492, %490, %cst_413 {dimension_numbers = #tpu.dot_dimension_numbers<[1], [0], [0], [1], [0, 0, 1, 1], [], []>} : vector<8x8xf32>, vector<8x134xf32>, vector<8x134xf32> -> vector<8x134xf32>
    %494 = arith.addf %489, %493 : vector<8x134xf32>
    %c0_414 = arith.constant 0 : index
    %c4_415 = arith.constant 4 : index
    %495 = vector.load %arg14[%c0_414, %c4_415] : memref<32x140xf32, #tpu.memory_space<vmem>>, vector<8x134xf32>
    %c0_416 = arith.constant 0 : index
    %c0_417 = arith.constant 0 : index
    %c40_418 = arith.constant 40 : index
    %496 = vector.load %arg10[%c0_416, %c0_417, %c40_418] : memref<2x8x56xf32, #tpu.memory_space<vmem>>, vector<1x8x8xf32>
    %497 = vector.shape_cast %496 : vector<1x8x8xf32> to vector<8x8xf32>
    %cst_419 = arith.constant dense<0.000000e+00> : vector<8x134xf32>
    %498 = tpu.matmul %497, %495, %cst_419 {dimension_numbers = #tpu.dot_dimension_numbers<[1], [0], [0], [1], [0, 0, 1, 1], [], []>} : vector<8x8xf32>, vector<8x134xf32>, vector<8x134xf32> -> vector<8x134xf32>
    %499 = arith.addf %494, %498 : vector<8x134xf32>
    %c8_420 = arith.constant 8 : index
    %c4_421 = arith.constant 4 : index
    %500 = vector.load %arg14[%c8_420, %c4_421] : memref<32x140xf32, #tpu.memory_space<vmem>>, vector<8x134xf32>
    %c0_422 = arith.constant 0 : index
    %c0_423 = arith.constant 0 : index
    %c48_424 = arith.constant 48 : index
    %501 = vector.load %arg10[%c0_422, %c0_423, %c48_424] : memref<2x8x56xf32, #tpu.memory_space<vmem>>, vector<1x8x8xf32>
    %502 = vector.shape_cast %501 : vector<1x8x8xf32> to vector<8x8xf32>
    %cst_425 = arith.constant dense<0.000000e+00> : vector<8x134xf32>
    %503 = tpu.matmul %502, %500, %cst_425 {dimension_numbers = #tpu.dot_dimension_numbers<[1], [0], [0], [1], [0, 0, 1, 1], [], []>} : vector<8x8xf32>, vector<8x134xf32>, vector<8x134xf32> -> vector<8x134xf32>
    %504 = arith.addf %499, %503 : vector<8x134xf32>
    %c16_426 = arith.constant 16 : index
    %c3_427 = arith.constant 3 : index
    %505 = vector.load %arg14[%c16_426, %c3_427] : memref<32x140xf32, #tpu.memory_space<vmem>>, vector<8x134xf32>
    %506 = arith.addf %504, %505 : vector<8x134xf32>
    %507 = vector.broadcast %107 : vector<1x134xf32> to vector<8x134xf32>
    %508 = arith.mulf %506, %507 : vector<8x134xf32>
    %c16_428 = arith.constant 16 : index
    %c3_429 = arith.constant 3 : index
    %509 = vector.load %arg15[%c16_428, %c3_429] : memref<32x140xf32, #tpu.memory_space<vmem>>, vector<8x134xf32>
    tpu.vector_store %arg15[%c16_428, %c3_429], %508 {strides = array<i32>} : memref<32x140xf32, #tpu.memory_space<vmem>>, vector<8x134xf32>,
    %c0_430 = arith.constant 0 : index
    %c3_431 = arith.constant 3 : index
    %510 = vector.load %arg14[%c0_430, %c3_431] : memref<32x140xf32, #tpu.memory_space<vmem>>, vector<8x134xf32>
    %c0_432 = arith.constant 0 : index
    %c0_433 = arith.constant 0 : index
    %c0_434 = arith.constant 0 : index
    %511 = vector.load %arg10[%c0_432, %c0_433, %c0_434] : memref<2x8x56xf32, #tpu.memory_space<vmem>>, vector<1x8x8xf32>
    %512 = vector.shape_cast %511 : vector<1x8x8xf32> to vector<8x8xf32>
    %cst_435 = arith.constant dense<0.000000e+00> : vector<8x134xf32>
    %513 = tpu.matmul %512, %510, %cst_435 {dimension_numbers = #tpu.dot_dimension_numbers<[1], [0], [0], [1], [0, 0, 1, 1], [], []>} : vector<8x8xf32>, vector<8x134xf32>, vector<8x134xf32> -> vector<8x134xf32>
    %c8_436 = arith.constant 8 : index
    %c3_437 = arith.constant 3 : index
    %514 = vector.load %arg14[%c8_436, %c3_437] : memref<32x140xf32, #tpu.memory_space<vmem>>, vector<8x134xf32>
    %c0_438 = arith.constant 0 : index
    %c0_439 = arith.constant 0 : index
    %c8_440 = arith.constant 8 : index
    %515 = vector.load %arg10[%c0_438, %c0_439, %c8_440] : memref<2x8x56xf32, #tpu.memory_space<vmem>>, vector<1x8x8xf32>
    %516 = vector.shape_cast %515 : vector<1x8x8xf32> to vector<8x8xf32>
    %cst_441 = arith.constant dense<0.000000e+00> : vector<8x134xf32>
    %517 = tpu.matmul %516, %514, %cst_441 {dimension_numbers = #tpu.dot_dimension_numbers<[1], [0], [0], [1], [0, 0, 1, 1], [], []>} : vector<8x8xf32>, vector<8x134xf32>, vector<8x134xf32> -> vector<8x134xf32>
    %518 = arith.addf %513, %517 : vector<8x134xf32>
    %c16_442 = arith.constant 16 : index
    %c3_443 = arith.constant 3 : index
    %519 = vector.load %arg14[%c16_442, %c3_443] : memref<32x140xf32, #tpu.memory_space<vmem>>, vector<8x134xf32>
    %c0_444 = arith.constant 0 : index
    %c0_445 = arith.constant 0 : index
    %c16_446 = arith.constant 16 : index
    %520 = vector.load %arg10[%c0_444, %c0_445, %c16_446] : memref<2x8x56xf32, #tpu.memory_space<vmem>>, vector<1x8x8xf32>
    %521 = vector.shape_cast %520 : vector<1x8x8xf32> to vector<8x8xf32>
    %cst_447 = arith.constant dense<0.000000e+00> : vector<8x134xf32>
    %522 = tpu.matmul %521, %519, %cst_447 {dimension_numbers = #tpu.dot_dimension_numbers<[1], [0], [0], [1], [0, 0, 1, 1], [], []>} : vector<8x8xf32>, vector<8x134xf32>, vector<8x134xf32> -> vector<8x134xf32>
    %523 = arith.addf %518, %522 : vector<8x134xf32>
    %c24_448 = arith.constant 24 : index
    %c3_449 = arith.constant 3 : index
    %524 = vector.load %arg14[%c24_448, %c3_449] : memref<32x140xf32, #tpu.memory_space<vmem>>, vector<8x134xf32>
    %c0_450 = arith.constant 0 : index
    %c0_451 = arith.constant 0 : index
    %c24_452 = arith.constant 24 : index
    %525 = vector.load %arg10[%c0_450, %c0_451, %c24_452] : memref<2x8x56xf32, #tpu.memory_space<vmem>>, vector<1x8x8xf32>
    %526 = vector.shape_cast %525 : vector<1x8x8xf32> to vector<8x8xf32>
    %cst_453 = arith.constant dense<0.000000e+00> : vector<8x134xf32>
    %527 = tpu.matmul %526, %524, %cst_453 {dimension_numbers = #tpu.dot_dimension_numbers<[1], [0], [0], [1], [0, 0, 1, 1], [], []>} : vector<8x8xf32>, vector<8x134xf32>, vector<8x134xf32> -> vector<8x134xf32>
    %528 = arith.addf %523, %527 : vector<8x134xf32>
    %c0_454 = arith.constant 0 : index
    %c4_455 = arith.constant 4 : index
    %529 = vector.load %arg14[%c0_454, %c4_455] : memref<32x140xf32, #tpu.memory_space<vmem>>, vector<8x134xf32>
    %c0_456 = arith.constant 0 : index
    %c0_457 = arith.constant 0 : index
    %c32_458 = arith.constant 32 : index
    %530 = vector.load %arg10[%c0_456, %c0_457, %c32_458] : memref<2x8x56xf32, #tpu.memory_space<vmem>>, vector<1x8x8xf32>
    %531 = vector.shape_cast %530 : vector<1x8x8xf32> to vector<8x8xf32>
    %cst_459 = arith.constant dense<0.000000e+00> : vector<8x134xf32>
    %532 = tpu.matmul %531, %529, %cst_459 {dimension_numbers = #tpu.dot_dimension_numbers<[1], [0], [0], [1], [0, 0, 1, 1], [], []>} : vector<8x8xf32>, vector<8x134xf32>, vector<8x134xf32> -> vector<8x134xf32>
    %533 = arith.addf %528, %532 : vector<8x134xf32>
    %c8_460 = arith.constant 8 : index
    %c4_461 = arith.constant 4 : index
    %534 = vector.load %arg14[%c8_460, %c4_461] : memref<32x140xf32, #tpu.memory_space<vmem>>, vector<8x134xf32>
    %c0_462 = arith.constant 0 : index
    %c0_463 = arith.constant 0 : index
    %c40_464 = arith.constant 40 : index
    %535 = vector.load %arg10[%c0_462, %c0_463, %c40_464] : memref<2x8x56xf32, #tpu.memory_space<vmem>>, vector<1x8x8xf32>
    %536 = vector.shape_cast %535 : vector<1x8x8xf32> to vector<8x8xf32>
    %cst_465 = arith.constant dense<0.000000e+00> : vector<8x134xf32>
    %537 = tpu.matmul %536, %534, %cst_465 {dimension_numbers = #tpu.dot_dimension_numbers<[1], [0], [0], [1], [0, 0, 1, 1], [], []>} : vector<8x8xf32>, vector<8x134xf32>, vector<8x134xf32> -> vector<8x134xf32>
    %538 = arith.addf %533, %537 : vector<8x134xf32>
    %c16_466 = arith.constant 16 : index
    %c4_467 = arith.constant 4 : index
    %539 = vector.load %arg14[%c16_466, %c4_467] : memref<32x140xf32, #tpu.memory_space<vmem>>, vector<8x134xf32>
    %c0_468 = arith.constant 0 : index
    %c0_469 = arith.constant 0 : index
    %c48_470 = arith.constant 48 : index
    %540 = vector.load %arg10[%c0_468, %c0_469, %c48_470] : memref<2x8x56xf32, #tpu.memory_space<vmem>>, vector<1x8x8xf32>
    %541 = vector.shape_cast %540 : vector<1x8x8xf32> to vector<8x8xf32>
    %cst_471 = arith.constant dense<0.000000e+00> : vector<8x134xf32>
    %542 = tpu.matmul %541, %539, %cst_471 {dimension_numbers = #tpu.dot_dimension_numbers<[1], [0], [0], [1], [0, 0, 1, 1], [], []>} : vector<8x8xf32>, vector<8x134xf32>, vector<8x134xf32> -> vector<8x134xf32>
    %543 = arith.addf %538, %542 : vector<8x134xf32>
    %c24_472 = arith.constant 24 : index
    %c3_473 = arith.constant 3 : index
    %544 = vector.load %arg14[%c24_472, %c3_473] : memref<32x140xf32, #tpu.memory_space<vmem>>, vector<8x134xf32>
    %545 = arith.addf %543, %544 : vector<8x134xf32>
    %546 = vector.broadcast %118 : vector<1x134xf32> to vector<8x134xf32>
    %547 = arith.mulf %545, %546 : vector<8x134xf32>
    %c24_474 = arith.constant 24 : index
    %c3_475 = arith.constant 3 : index
    %548 = vector.load %arg15[%c24_474, %c3_475] : memref<32x140xf32, #tpu.memory_space<vmem>>, vector<8x134xf32>
    tpu.vector_store %arg15[%c24_474, %c3_475], %547 {strides = array<i32>} : memref<32x140xf32, #tpu.memory_space<vmem>>, vector<8x134xf32>,
    %c24_476 = arith.constant 24 : index
    %c0_477 = arith.constant 0 : index
    %549 = vector.load %arg15[%c24_476, %c0_477] : memref<32x140xf32, #tpu.memory_space<vmem>>, vector<8x134xf32>
    %c1_478 = arith.constant 1 : index
    %c0_479 = arith.constant 0 : index
    %c0_480 = arith.constant 0 : index
    %550 = vector.load %arg10[%c1_478, %c0_479, %c0_480] : memref<2x8x56xf32, #tpu.memory_space<vmem>>, vector<1x8x8xf32>
    %551 = vector.shape_cast %550 : vector<1x8x8xf32> to vector<8x8xf32>
    %cst_481 = arith.constant dense<0.000000e+00> : vector<8x134xf32>
    %552 = tpu.matmul %551, %549, %cst_481 {dimension_numbers = #tpu.dot_dimension_numbers<[1], [0], [0], [1], [0, 0, 1, 1], [], []>} : vector<8x8xf32>, vector<8x134xf32>, vector<8x134xf32> -> vector<8x134xf32>
    %c16_482 = arith.constant 16 : index
    %c1_483 = arith.constant 1 : index
    %553 = vector.load %arg15[%c16_482, %c1_483] : memref<32x140xf32, #tpu.memory_space<vmem>>, vector<8x134xf32>
    %c1_484 = arith.constant 1 : index
    %c0_485 = arith.constant 0 : index
    %c8_486 = arith.constant 8 : index
    %554 = vector.load %arg10[%c1_484, %c0_485, %c8_486] : memref<2x8x56xf32, #tpu.memory_space<vmem>>, vector<1x8x8xf32>
    %555 = vector.shape_cast %554 : vector<1x8x8xf32> to vector<8x8xf32>
    %cst_487 = arith.constant dense<0.000000e+00> : vector<8x134xf32>
    %556 = tpu.matmul %555, %553, %cst_487 {dimension_numbers = #tpu.dot_dimension_numbers<[1], [0], [0], [1], [0, 0, 1, 1], [], []>} : vector<8x8xf32>, vector<8x134xf32>, vector<8x134xf32> -> vector<8x134xf32>
    %557 = arith.addf %552, %556 : vector<8x134xf32>
    %c8_488 = arith.constant 8 : index
    %c2_489 = arith.constant 2 : index
    %558 = vector.load %arg15[%c8_488, %c2_489] : memref<32x140xf32, #tpu.memory_space<vmem>>, vector<8x134xf32>
    %c1_490 = arith.constant 1 : index
    %c0_491 = arith.constant 0 : index
    %c16_492 = arith.constant 16 : index
    %559 = vector.load %arg10[%c1_490, %c0_491, %c16_492] : memref<2x8x56xf32, #tpu.memory_space<vmem>>, vector<1x8x8xf32>
    %560 = vector.shape_cast %559 : vector<1x8x8xf32> to vector<8x8xf32>
    %cst_493 = arith.constant dense<0.000000e+00> : vector<8x134xf32>
    %561 = tpu.matmul %560, %558, %cst_493 {dimension_numbers = #tpu.dot_dimension_numbers<[1], [0], [0], [1], [0, 0, 1, 1], [], []>} : vector<8x8xf32>, vector<8x134xf32>, vector<8x134xf32> -> vector<8x134xf32>
    %562 = arith.addf %557, %561 : vector<8x134xf32>
    %c0_494 = arith.constant 0 : index
    %c3_495 = arith.constant 3 : index
    %563 = vector.load %arg15[%c0_494, %c3_495] : memref<32x140xf32, #tpu.memory_space<vmem>>, vector<8x134xf32>
    %c1_496 = arith.constant 1 : index
    %c0_497 = arith.constant 0 : index
    %c24_498 = arith.constant 24 : index
    %564 = vector.load %arg10[%c1_496, %c0_497, %c24_498] : memref<2x8x56xf32, #tpu.memory_space<vmem>>, vector<1x8x8xf32>
    %565 = vector.shape_cast %564 : vector<1x8x8xf32> to vector<8x8xf32>
    %cst_499 = arith.constant dense<0.000000e+00> : vector<8x134xf32>
    %566 = tpu.matmul %565, %563, %cst_499 {dimension_numbers = #tpu.dot_dimension_numbers<[1], [0], [0], [1], [0, 0, 1, 1], [], []>} : vector<8x8xf32>, vector<8x134xf32>, vector<8x134xf32> -> vector<8x134xf32>
    %567 = arith.addf %562, %566 : vector<8x134xf32>
    %c24_500 = arith.constant 24 : index
    %c3_501 = arith.constant 3 : index
    %568 = vector.load %arg15[%c24_500, %c3_501] : memref<32x140xf32, #tpu.memory_space<vmem>>, vector<8x134xf32>
    %c1_502 = arith.constant 1 : index
    %c0_503 = arith.constant 0 : index
    %c32_504 = arith.constant 32 : index
    %569 = vector.load %arg10[%c1_502, %c0_503, %c32_504] : memref<2x8x56xf32, #tpu.memory_space<vmem>>, vector<1x8x8xf32>
    %570 = vector.shape_cast %569 : vector<1x8x8xf32> to vector<8x8xf32>
    %cst_505 = arith.constant dense<0.000000e+00> : vector<8x134xf32>
    %571 = tpu.matmul %570, %568, %cst_505 {dimension_numbers = #tpu.dot_dimension_numbers<[1], [0], [0], [1], [0, 0, 1, 1], [], []>} : vector<8x8xf32>, vector<8x134xf32>, vector<8x134xf32> -> vector<8x134xf32>
    %572 = arith.addf %567, %571 : vector<8x134xf32>
    %c16_506 = arith.constant 16 : index
    %c4_507 = arith.constant 4 : index
    %573 = vector.load %arg15[%c16_506, %c4_507] : memref<32x140xf32, #tpu.memory_space<vmem>>, vector<8x134xf32>
    %c1_508 = arith.constant 1 : index
    %c0_509 = arith.constant 0 : index
    %c40_510 = arith.constant 40 : index
    %574 = vector.load %arg10[%c1_508, %c0_509, %c40_510] : memref<2x8x56xf32, #tpu.memory_space<vmem>>, vector<1x8x8xf32>
    %575 = vector.shape_cast %574 : vector<1x8x8xf32> to vector<8x8xf32>
    %cst_511 = arith.constant dense<0.000000e+00> : vector<8x134xf32>
    %576 = tpu.matmul %575, %573, %cst_511 {dimension_numbers = #tpu.dot_dimension_numbers<[1], [0], [0], [1], [0, 0, 1, 1], [], []>} : vector<8x8xf32>, vector<8x134xf32>, vector<8x134xf32> -> vector<8x134xf32>
    %577 = arith.addf %572, %576 : vector<8x134xf32>
    %c8_512 = arith.constant 8 : index
    %c5 = arith.constant 5 : index
    %578 = vector.load %arg15[%c8_512, %c5] : memref<32x140xf32, #tpu.memory_space<vmem>>, vector<8x134xf32>
    %c1_513 = arith.constant 1 : index
    %c0_514 = arith.constant 0 : index
    %c48_515 = arith.constant 48 : index
    %579 = vector.load %arg10[%c1_513, %c0_514, %c48_515] : memref<2x8x56xf32, #tpu.memory_space<vmem>>, vector<1x8x8xf32>
    %580 = vector.shape_cast %579 : vector<1x8x8xf32> to vector<8x8xf32>
    %cst_516 = arith.constant dense<0.000000e+00> : vector<8x134xf32>
    %581 = tpu.matmul %580, %578, %cst_516 {dimension_numbers = #tpu.dot_dimension_numbers<[1], [0], [0], [1], [0, 0, 1, 1], [], []>} : vector<8x8xf32>, vector<8x134xf32>, vector<8x134xf32> -> vector<8x134xf32>
    %582 = arith.addf %577, %581 : vector<8x134xf32>
    %c0_517 = arith.constant 0 : index
    %c3_518 = arith.constant 3 : index
    %583 = vector.load %arg15[%c0_517, %c3_518] : memref<32x140xf32, #tpu.memory_space<vmem>>, vector<8x134xf32>
    %584 = arith.addf %582, %583 : vector<8x134xf32>
    %585 = vector.broadcast %85 : vector<1x134xf32> to vector<8x134xf32>
    %586 = arith.mulf %584, %585 : vector<8x134xf32>
    %c0_519 = arith.constant 0 : index
    %c3_520 = arith.constant 3 : index
    %587 = vector.load %arg14[%c0_519, %c3_520] : memref<32x140xf32, #tpu.memory_space<vmem>>, vector<8x134xf32>
    tpu.vector_store %arg14[%c0_519, %c3_520], %586 {strides = array<i32>} : memref<32x140xf32, #tpu.memory_space<vmem>>, vector<8x134xf32>,
    %c0_521 = arith.constant 0 : index
    %c1_522 = arith.constant 1 : index
    %588 = vector.load %arg15[%c0_521, %c1_522] : memref<32x140xf32, #tpu.memory_space<vmem>>, vector<8x134xf32>
    %c1_523 = arith.constant 1 : index
    %c0_524 = arith.constant 0 : index
    %c0_525 = arith.constant 0 : index
    %589 = vector.load %arg10[%c1_523, %c0_524, %c0_525] : memref<2x8x56xf32, #tpu.memory_space<vmem>>, vector<1x8x8xf32>
    %590 = vector.shape_cast %589 : vector<1x8x8xf32> to vector<8x8xf32>
    %cst_526 = arith.constant dense<0.000000e+00> : vector<8x134xf32>
    %591 = tpu.matmul %590, %588, %cst_526 {dimension_numbers = #tpu.dot_dimension_numbers<[1], [0], [0], [1], [0, 0, 1, 1], [], []>} : vector<8x8xf32>, vector<8x134xf32>, vector<8x134xf32> -> vector<8x134xf32>
    %c24_527 = arith.constant 24 : index
    %c1_528 = arith.constant 1 : index
    %592 = vector.load %arg15[%c24_527, %c1_528] : memref<32x140xf32, #tpu.memory_space<vmem>>, vector<8x134xf32>
    %c1_529 = arith.constant 1 : index
    %c0_530 = arith.constant 0 : index
    %c8_531 = arith.constant 8 : index
    %593 = vector.load %arg10[%c1_529, %c0_530, %c8_531] : memref<2x8x56xf32, #tpu.memory_space<vmem>>, vector<1x8x8xf32>
    %594 = vector.shape_cast %593 : vector<1x8x8xf32> to vector<8x8xf32>
    %cst_532 = arith.constant dense<0.000000e+00> : vector<8x134xf32>
    %595 = tpu.matmul %594, %592, %cst_532 {dimension_numbers = #tpu.dot_dimension_numbers<[1], [0], [0], [1], [0, 0, 1, 1], [], []>} : vector<8x8xf32>, vector<8x134xf32>, vector<8x134xf32> -> vector<8x134xf32>
    %596 = arith.addf %591, %595 : vector<8x134xf32>
    %c16_533 = arith.constant 16 : index
    %c2_534 = arith.constant 2 : index
    %597 = vector.load %arg15[%c16_533, %c2_534] : memref<32x140xf32, #tpu.memory_space<vmem>>, vector<8x134xf32>
    %c1_535 = arith.constant 1 : index
    %c0_536 = arith.constant 0 : index
    %c16_537 = arith.constant 16 : index
    %598 = vector.load %arg10[%c1_535, %c0_536, %c16_537] : memref<2x8x56xf32, #tpu.memory_space<vmem>>, vector<1x8x8xf32>
    %599 = vector.shape_cast %598 : vector<1x8x8xf32> to vector<8x8xf32>
    %cst_538 = arith.constant dense<0.000000e+00> : vector<8x134xf32>
    %600 = tpu.matmul %599, %597, %cst_538 {dimension_numbers = #tpu.dot_dimension_numbers<[1], [0], [0], [1], [0, 0, 1, 1], [], []>} : vector<8x8xf32>, vector<8x134xf32>, vector<8x134xf32> -> vector<8x134xf32>
    %601 = arith.addf %596, %600 : vector<8x134xf32>
    %c8_539 = arith.constant 8 : index
    %c3_540 = arith.constant 3 : index
    %602 = vector.load %arg15[%c8_539, %c3_540] : memref<32x140xf32, #tpu.memory_space<vmem>>, vector<8x134xf32>
    %c1_541 = arith.constant 1 : index
    %c0_542 = arith.constant 0 : index
    %c24_543 = arith.constant 24 : index
    %603 = vector.load %arg10[%c1_541, %c0_542, %c24_543] : memref<2x8x56xf32, #tpu.memory_space<vmem>>, vector<1x8x8xf32>
    %604 = vector.shape_cast %603 : vector<1x8x8xf32> to vector<8x8xf32>
    %cst_544 = arith.constant dense<0.000000e+00> : vector<8x134xf32>
    %605 = tpu.matmul %604, %602, %cst_544 {dimension_numbers = #tpu.dot_dimension_numbers<[1], [0], [0], [1], [0, 0, 1, 1], [], []>} : vector<8x8xf32>, vector<8x134xf32>, vector<8x134xf32> -> vector<8x134xf32>
    %606 = arith.addf %601, %605 : vector<8x134xf32>
    %c0_545 = arith.constant 0 : index
    %c4_546 = arith.constant 4 : index
    %607 = vector.load %arg15[%c0_545, %c4_546] : memref<32x140xf32, #tpu.memory_space<vmem>>, vector<8x134xf32>
    %c1_547 = arith.constant 1 : index
    %c0_548 = arith.constant 0 : index
    %c32_549 = arith.constant 32 : index
    %608 = vector.load %arg10[%c1_547, %c0_548, %c32_549] : memref<2x8x56xf32, #tpu.memory_space<vmem>>, vector<1x8x8xf32>
    %609 = vector.shape_cast %608 : vector<1x8x8xf32> to vector<8x8xf32>
    %cst_550 = arith.constant dense<0.000000e+00> : vector<8x134xf32>
    %610 = tpu.matmul %609, %607, %cst_550 {dimension_numbers = #tpu.dot_dimension_numbers<[1], [0], [0], [1], [0, 0, 1, 1], [], []>} : vector<8x8xf32>, vector<8x134xf32>, vector<8x134xf32> -> vector<8x134xf32>
    %611 = arith.addf %606, %610 : vector<8x134xf32>
    %c24_551 = arith.constant 24 : index
    %c4_552 = arith.constant 4 : index
    %612 = vector.load %arg15[%c24_551, %c4_552] : memref<32x140xf32, #tpu.memory_space<vmem>>, vector<8x134xf32>
    %c1_553 = arith.constant 1 : index
    %c0_554 = arith.constant 0 : index
    %c40_555 = arith.constant 40 : index
    %613 = vector.load %arg10[%c1_553, %c0_554, %c40_555] : memref<2x8x56xf32, #tpu.memory_space<vmem>>, vector<1x8x8xf32>
    %614 = vector.shape_cast %613 : vector<1x8x8xf32> to vector<8x8xf32>
    %cst_556 = arith.constant dense<0.000000e+00> : vector<8x134xf32>
    %615 = tpu.matmul %614, %612, %cst_556 {dimension_numbers = #tpu.dot_dimension_numbers<[1], [0], [0], [1], [0, 0, 1, 1], [], []>} : vector<8x8xf32>, vector<8x134xf32>, vector<8x134xf32> -> vector<8x134xf32>
    %616 = arith.addf %611, %615 : vector<8x134xf32>
    %c16_557 = arith.constant 16 : index
    %c5_558 = arith.constant 5 : index
    %617 = vector.load %arg15[%c16_557, %c5_558] : memref<32x140xf32, #tpu.memory_space<vmem>>, vector<8x134xf32>
    %c1_559 = arith.constant 1 : index
    %c0_560 = arith.constant 0 : index
    %c48_561 = arith.constant 48 : index
    %618 = vector.load %arg10[%c1_559, %c0_560, %c48_561] : memref<2x8x56xf32, #tpu.memory_space<vmem>>, vector<1x8x8xf32>
    %619 = vector.shape_cast %618 : vector<1x8x8xf32> to vector<8x8xf32>
    %cst_562 = arith.constant dense<0.000000e+00> : vector<8x134xf32>
    %620 = tpu.matmul %619, %617, %cst_562 {dimension_numbers = #tpu.dot_dimension_numbers<[1], [0], [0], [1], [0, 0, 1, 1], [], []>} : vector<8x8xf32>, vector<8x134xf32>, vector<8x134xf32> -> vector<8x134xf32>
    %621 = arith.addf %616, %620 : vector<8x134xf32>
    %c8_563 = arith.constant 8 : index
    %c3_564 = arith.constant 3 : index
    %622 = vector.load %arg15[%c8_563, %c3_564] : memref<32x140xf32, #tpu.memory_space<vmem>>, vector<8x134xf32>
    %623 = arith.addf %621, %622 : vector<8x134xf32>
    %624 = vector.broadcast %96 : vector<1x134xf32> to vector<8x134xf32>
    %625 = arith.mulf %623, %624 : vector<8x134xf32>
    %c8_565 = arith.constant 8 : index
    %c3_566 = arith.constant 3 : index
    %626 = vector.load %arg14[%c8_565, %c3_566] : memref<32x140xf32, #tpu.memory_space<vmem>>, vector<8x134xf32>
    tpu.vector_store %arg14[%c8_565, %c3_566], %625 {strides = array<i32>} : memref<32x140xf32, #tpu.memory_space<vmem>>, vector<8x134xf32>,
    %c8_567 = arith.constant 8 : index
    %c1_568 = arith.constant 1 : index
    %627 = vector.load %arg15[%c8_567, %c1_568] : memref<32x140xf32, #tpu.memory_space<vmem>>, vector<8x134xf32>
    %c1_569 = arith.constant 1 : index
    %c0_570 = arith.constant 0 : index
    %c0_571 = arith.constant 0 : index
    %628 = vector.load %arg10[%c1_569, %c0_570, %c0_571] : memref<2x8x56xf32, #tpu.memory_space<vmem>>, vector<1x8x8xf32>
    %629 = vector.shape_cast %628 : vector<1x8x8xf32> to vector<8x8xf32>
    %cst_572 = arith.constant dense<0.000000e+00> : vector<8x134xf32>
    %630 = tpu.matmul %629, %627, %cst_572 {dimension_numbers = #tpu.dot_dimension_numbers<[1], [0], [0], [1], [0, 0, 1, 1], [], []>} : vector<8x8xf32>, vector<8x134xf32>, vector<8x134xf32> -> vector<8x134xf32>
    %c0_573 = arith.constant 0 : index
    %c2_574 = arith.constant 2 : index
    %631 = vector.load %arg15[%c0_573, %c2_574] : memref<32x140xf32, #tpu.memory_space<vmem>>, vector<8x134xf32>
    %c1_575 = arith.constant 1 : index
    %c0_576 = arith.constant 0 : index
    %c8_577 = arith.constant 8 : index
    %632 = vector.load %arg10[%c1_575, %c0_576, %c8_577] : memref<2x8x56xf32, #tpu.memory_space<vmem>>, vector<1x8x8xf32>
    %633 = vector.shape_cast %632 : vector<1x8x8xf32> to vector<8x8xf32>
    %cst_578 = arith.constant dense<0.000000e+00> : vector<8x134xf32>
    %634 = tpu.matmul %633, %631, %cst_578 {dimension_numbers = #tpu.dot_dimension_numbers<[1], [0], [0], [1], [0, 0, 1, 1], [], []>} : vector<8x8xf32>, vector<8x134xf32>, vector<8x134xf32> -> vector<8x134xf32>
    %635 = arith.addf %630, %634 : vector<8x134xf32>
    %c24_579 = arith.constant 24 : index
    %c2_580 = arith.constant 2 : index
    %636 = vector.load %arg15[%c24_579, %c2_580] : memref<32x140xf32, #tpu.memory_space<vmem>>, vector<8x134xf32>
    %c1_581 = arith.constant 1 : index
    %c0_582 = arith.constant 0 : index
    %c16_583 = arith.constant 16 : index
    %637 = vector.load %arg10[%c1_581, %c0_582, %c16_583] : memref<2x8x56xf32, #tpu.memory_space<vmem>>, vector<1x8x8xf32>
    %638 = vector.shape_cast %637 : vector<1x8x8xf32> to vector<8x8xf32>
    %cst_584 = arith.constant dense<0.000000e+00> : vector<8x134xf32>
    %639 = tpu.matmul %638, %636, %cst_584 {dimension_numbers = #tpu.dot_dimension_numbers<[1], [0], [0], [1], [0, 0, 1, 1], [], []>} : vector<8x8xf32>, vector<8x134xf32>, vector<8x134xf32> -> vector<8x134xf32>
    %640 = arith.addf %635, %639 : vector<8x134xf32>
    %c16_585 = arith.constant 16 : index
    %c3_586 = arith.constant 3 : index
    %641 = vector.load %arg15[%c16_585, %c3_586] : memref<32x140xf32, #tpu.memory_space<vmem>>, vector<8x134xf32>
    %c1_587 = arith.constant 1 : index
    %c0_588 = arith.constant 0 : index
    %c24_589 = arith.constant 24 : index
    %642 = vector.load %arg10[%c1_587, %c0_588, %c24_589] : memref<2x8x56xf32, #tpu.memory_space<vmem>>, vector<1x8x8xf32>
    %643 = vector.shape_cast %642 : vector<1x8x8xf32> to vector<8x8xf32>
    %cst_590 = arith.constant dense<0.000000e+00> : vector<8x134xf32>
    %644 = tpu.matmul %643, %641, %cst_590 {dimension_numbers = #tpu.dot_dimension_numbers<[1], [0], [0], [1], [0, 0, 1, 1], [], []>} : vector<8x8xf32>, vector<8x134xf32>, vector<8x134xf32> -> vector<8x134xf32>
    %645 = arith.addf %640, %644 : vector<8x134xf32>
    %c8_591 = arith.constant 8 : index
    %c4_592 = arith.constant 4 : index
    %646 = vector.load %arg15[%c8_591, %c4_592] : memref<32x140xf32, #tpu.memory_space<vmem>>, vector<8x134xf32>
    %c1_593 = arith.constant 1 : index
    %c0_594 = arith.constant 0 : index
    %c32_595 = arith.constant 32 : index
    %647 = vector.load %arg10[%c1_593, %c0_594, %c32_595] : memref<2x8x56xf32, #tpu.memory_space<vmem>>, vector<1x8x8xf32>
    %648 = vector.shape_cast %647 : vector<1x8x8xf32> to vector<8x8xf32>
    %cst_596 = arith.constant dense<0.000000e+00> : vector<8x134xf32>
    %649 = tpu.matmul %648, %646, %cst_596 {dimension_numbers = #tpu.dot_dimension_numbers<[1], [0], [0], [1], [0, 0, 1, 1], [], []>} : vector<8x8xf32>, vector<8x134xf32>, vector<8x134xf32> -> vector<8x134xf32>
    %650 = arith.addf %645, %649 : vector<8x134xf32>
    %c0_597 = arith.constant 0 : index
    %c5_598 = arith.constant 5 : index
    %651 = vector.load %arg15[%c0_597, %c5_598] : memref<32x140xf32, #tpu.memory_space<vmem>>, vector<8x134xf32>
    %c1_599 = arith.constant 1 : index
    %c0_600 = arith.constant 0 : index
    %c40_601 = arith.constant 40 : index
    %652 = vector.load %arg10[%c1_599, %c0_600, %c40_601] : memref<2x8x56xf32, #tpu.memory_space<vmem>>, vector<1x8x8xf32>
    %653 = vector.shape_cast %652 : vector<1x8x8xf32> to vector<8x8xf32>
    %cst_602 = arith.constant dense<0.000000e+00> : vector<8x134xf32>
    %654 = tpu.matmul %653, %651, %cst_602 {dimension_numbers = #tpu.dot_dimension_numbers<[1], [0], [0], [1], [0, 0, 1, 1], [], []>} : vector<8x8xf32>, vector<8x134xf32>, vector<8x134xf32> -> vector<8x134xf32>
    %655 = arith.addf %650, %654 : vector<8x134xf32>
    %c24_603 = arith.constant 24 : index
    %c5_604 = arith.constant 5 : index
    %656 = vector.load %arg15[%c24_603, %c5_604] : memref<32x140xf32, #tpu.memory_space<vmem>>, vector<8x134xf32>
    %c1_605 = arith.constant 1 : index
    %c0_606 = arith.constant 0 : index
    %c48_607 = arith.constant 48 : index
    %657 = vector.load %arg10[%c1_605, %c0_606, %c48_607] : memref<2x8x56xf32, #tpu.memory_space<vmem>>, vector<1x8x8xf32>
    %658 = vector.shape_cast %657 : vector<1x8x8xf32> to vector<8x8xf32>
    %cst_608 = arith.constant dense<0.000000e+00> : vector<8x134xf32>
    %659 = tpu.matmul %658, %656, %cst_608 {dimension_numbers = #tpu.dot_dimension_numbers<[1], [0], [0], [1], [0, 0, 1, 1], [], []>} : vector<8x8xf32>, vector<8x134xf32>, vector<8x134xf32> -> vector<8x134xf32>
    %660 = arith.addf %655, %659 : vector<8x134xf32>
    %c16_609 = arith.constant 16 : index
    %c3_610 = arith.constant 3 : index
    %661 = vector.load %arg15[%c16_609, %c3_610] : memref<32x140xf32, #tpu.memory_space<vmem>>, vector<8x134xf32>
    %662 = arith.addf %660, %661 : vector<8x134xf32>
    %663 = vector.broadcast %107 : vector<1x134xf32> to vector<8x134xf32>
    %664 = arith.mulf %662, %663 : vector<8x134xf32>
    %c16_611 = arith.constant 16 : index
    %c3_612 = arith.constant 3 : index
    %665 = vector.load %arg14[%c16_611, %c3_612] : memref<32x140xf32, #tpu.memory_space<vmem>>, vector<8x134xf32>
    tpu.vector_store %arg14[%c16_611, %c3_612], %664 {strides = array<i32>} : memref<32x140xf32, #tpu.memory_space<vmem>>, vector<8x134xf32>,
    %c16_613 = arith.constant 16 : index
    %c1_614 = arith.constant 1 : index
    %666 = vector.load %arg15[%c16_613, %c1_614] : memref<32x140xf32, #tpu.memory_space<vmem>>, vector<8x134xf32>
    %c1_615 = arith.constant 1 : index
    %c0_616 = arith.constant 0 : index
    %c0_617 = arith.constant 0 : index
    %667 = vector.load %arg10[%c1_615, %c0_616, %c0_617] : memref<2x8x56xf32, #tpu.memory_space<vmem>>, vector<1x8x8xf32>
    %668 = vector.shape_cast %667 : vector<1x8x8xf32> to vector<8x8xf32>
    %cst_618 = arith.constant dense<0.000000e+00> : vector<8x134xf32>
    %669 = tpu.matmul %668, %666, %cst_618 {dimension_numbers = #tpu.dot_dimension_numbers<[1], [0], [0], [1], [0, 0, 1, 1], [], []>} : vector<8x8xf32>, vector<8x134xf32>, vector<8x134xf32> -> vector<8x134xf32>
    %c8_619 = arith.constant 8 : index
    %c2_620 = arith.constant 2 : index
    %670 = vector.load %arg15[%c8_619, %c2_620] : memref<32x140xf32, #tpu.memory_space<vmem>>, vector<8x134xf32>
    %c1_621 = arith.constant 1 : index
    %c0_622 = arith.constant 0 : index
    %c8_623 = arith.constant 8 : index
    %671 = vector.load %arg10[%c1_621, %c0_622, %c8_623] : memref<2x8x56xf32, #tpu.memory_space<vmem>>, vector<1x8x8xf32>
    %672 = vector.shape_cast %671 : vector<1x8x8xf32> to vector<8x8xf32>
    %cst_624 = arith.constant dense<0.000000e+00> : vector<8x134xf32>
    %673 = tpu.matmul %672, %670, %cst_624 {dimension_numbers = #tpu.dot_dimension_numbers<[1], [0], [0], [1], [0, 0, 1, 1], [], []>} : vector<8x8xf32>, vector<8x134xf32>, vector<8x134xf32> -> vector<8x134xf32>
    %674 = arith.addf %669, %673 : vector<8x134xf32>
    %c0_625 = arith.constant 0 : index
    %c3_626 = arith.constant 3 : index
    %675 = vector.load %arg15[%c0_625, %c3_626] : memref<32x140xf32, #tpu.memory_space<vmem>>, vector<8x134xf32>
    %c1_627 = arith.constant 1 : index
    %c0_628 = arith.constant 0 : index
    %c16_629 = arith.constant 16 : index
    %676 = vector.load %arg10[%c1_627, %c0_628, %c16_629] : memref<2x8x56xf32, #tpu.memory_space<vmem>>, vector<1x8x8xf32>
    %677 = vector.shape_cast %676 : vector<1x8x8xf32> to vector<8x8xf32>
    %cst_630 = arith.constant dense<0.000000e+00> : vector<8x134xf32>
    %678 = tpu.matmul %677, %675, %cst_630 {dimension_numbers = #tpu.dot_dimension_numbers<[1], [0], [0], [1], [0, 0, 1, 1], [], []>} : vector<8x8xf32>, vector<8x134xf32>, vector<8x134xf32> -> vector<8x134xf32>
    %679 = arith.addf %674, %678 : vector<8x134xf32>
    %c24_631 = arith.constant 24 : index
    %c3_632 = arith.constant 3 : index
    %680 = vector.load %arg15[%c24_631, %c3_632] : memref<32x140xf32, #tpu.memory_space<vmem>>, vector<8x134xf32>
    %c1_633 = arith.constant 1 : index
    %c0_634 = arith.constant 0 : index
    %c24_635 = arith.constant 24 : index
    %681 = vector.load %arg10[%c1_633, %c0_634, %c24_635] : memref<2x8x56xf32, #tpu.memory_space<vmem>>, vector<1x8x8xf32>
    %682 = vector.shape_cast %681 : vector<1x8x8xf32> to vector<8x8xf32>
    %cst_636 = arith.constant dense<0.000000e+00> : vector<8x134xf32>
    %683 = tpu.matmul %682, %680, %cst_636 {dimension_numbers = #tpu.dot_dimension_numbers<[1], [0], [0], [1], [0, 0, 1, 1], [], []>} : vector<8x8xf32>, vector<8x134xf32>, vector<8x134xf32> -> vector<8x134xf32>
    %684 = arith.addf %679, %683 : vector<8x134xf32>
    %c16_637 = arith.constant 16 : index
    %c4_638 = arith.constant 4 : index
    %685 = vector.load %arg15[%c16_637, %c4_638] : memref<32x140xf32, #tpu.memory_space<vmem>>, vector<8x134xf32>
    %c1_639 = arith.constant 1 : index
    %c0_640 = arith.constant 0 : index
    %c32_641 = arith.constant 32 : index
    %686 = vector.load %arg10[%c1_639, %c0_640, %c32_641] : memref<2x8x56xf32, #tpu.memory_space<vmem>>, vector<1x8x8xf32>
    %687 = vector.shape_cast %686 : vector<1x8x8xf32> to vector<8x8xf32>
    %cst_642 = arith.constant dense<0.000000e+00> : vector<8x134xf32>
    %688 = tpu.matmul %687, %685, %cst_642 {dimension_numbers = #tpu.dot_dimension_numbers<[1], [0], [0], [1], [0, 0, 1, 1], [], []>} : vector<8x8xf32>, vector<8x134xf32>, vector<8x134xf32> -> vector<8x134xf32>
    %689 = arith.addf %684, %688 : vector<8x134xf32>
    %c8_643 = arith.constant 8 : index
    %c5_644 = arith.constant 5 : index
    %690 = vector.load %arg15[%c8_643, %c5_644] : memref<32x140xf32, #tpu.memory_space<vmem>>, vector<8x134xf32>
    %c1_645 = arith.constant 1 : index
    %c0_646 = arith.constant 0 : index
    %c40_647 = arith.constant 40 : index
    %691 = vector.load %arg10[%c1_645, %c0_646, %c40_647] : memref<2x8x56xf32, #tpu.memory_space<vmem>>, vector<1x8x8xf32>
    %692 = vector.shape_cast %691 : vector<1x8x8xf32> to vector<8x8xf32>
    %cst_648 = arith.constant dense<0.000000e+00> : vector<8x134xf32>
    %693 = tpu.matmul %692, %690, %cst_648 {dimension_numbers = #tpu.dot_dimension_numbers<[1], [0], [0], [1], [0, 0, 1, 1], [], []>} : vector<8x8xf32>, vector<8x134xf32>, vector<8x134xf32> -> vector<8x134xf32>
    %694 = arith.addf %689, %693 : vector<8x134xf32>
    %c0_649 = arith.constant 0 : index
    %c6_650 = arith.constant 6 : index
    %695 = vector.load %arg15[%c0_649, %c6_650] : memref<32x140xf32, #tpu.memory_space<vmem>>, vector<8x134xf32>
    %c1_651 = arith.constant 1 : index
    %c0_652 = arith.constant 0 : index
    %c48_653 = arith.constant 48 : index
    %696 = vector.load %arg10[%c1_651, %c0_652, %c48_653] : memref<2x8x56xf32, #tpu.memory_space<vmem>>, vector<1x8x8xf32>
    %697 = vector.shape_cast %696 : vector<1x8x8xf32> to vector<8x8xf32>
    %cst_654 = arith.constant dense<0.000000e+00> : vector<8x134xf32>
    %698 = tpu.matmul %697, %695, %cst_654 {dimension_numbers = #tpu.dot_dimension_numbers<[1], [0], [0], [1], [0, 0, 1, 1], [], []>} : vector<8x8xf32>, vector<8x134xf32>, vector<8x134xf32> -> vector<8x134xf32>
    %699 = arith.addf %694, %698 : vector<8x134xf32>
    %c24_655 = arith.constant 24 : index
    %c3_656 = arith.constant 3 : index
    %700 = vector.load %arg15[%c24_655, %c3_656] : memref<32x140xf32, #tpu.memory_space<vmem>>, vector<8x134xf32>
    %701 = arith.addf %699, %700 : vector<8x134xf32>
    %702 = vector.broadcast %118 : vector<1x134xf32> to vector<8x134xf32>
    %703 = arith.mulf %701, %702 : vector<8x134xf32>
    %c24_657 = arith.constant 24 : index
    %c3_658 = arith.constant 3 : index
    %704 = vector.load %arg14[%c24_657, %c3_658] : memref<32x140xf32, #tpu.memory_space<vmem>>, vector<8x134xf32>
    tpu.vector_store %arg14[%c24_657, %c3_658], %703 {strides = array<i32>} : memref<32x140xf32, #tpu.memory_space<vmem>>, vector<8x134xf32>,
    %c0_659 = arith.constant 0 : index
    %c6_660 = arith.constant 6 : index
    %705 = vector.load %arg14[%c0_659, %c6_660] : memref<32x140xf32, #tpu.memory_space<vmem>>, vector<32x128xf32>
    %706 = arith.addf %343, %705 : vector<32x128xf32>
    %c0_661 = arith.constant 0 : index
    %c0_662 = arith.constant 0 : index
    %c0_663 = arith.constant 0 : index
    %707 = vector.load %arg11[%c0_661, %c0_662, %c0_663] : memref<1x32x128xf32, #tpu.memory_space<vmem>>, vector<1x32x128xf32>
    %708 = vector.shape_cast %707 : vector<1x32x128xf32> to vector<32x128xf32>
    %709 = vector.shape_cast %706 : vector<32x128xf32> to vector<1x32x128xf32>
    tpu.vector_store %arg11[%c0_661, %c0_662, %c0_663], %709 {strides = array<i32>} : memref<1x32x128xf32, #tpu.memory_space<vmem>>, vector<1x32x128xf32>,
    return
  }
  func.func @transform_0(%arg0: i32, %arg1: i32) -> (i32, i32, i32) {
    %c0_i32 = arith.constant 0 : i32
    %c0_i32_0 = arith.constant 0 : i32
    return %arg0, %c0_i32, %arg1 : i32, i32, i32
  }
  func.func @transform_1(%arg0: i32, %arg1: i32) -> (i32, i32, i32) {
    %c1_i32 = arith.constant 1 : i32
    %0 = arith.muli %arg1, %c1_i32 : i32
    %c1_i32_0 = arith.constant 1 : i32
    %1 = arith.subi %0, %c1_i32_0 : i32
    %c0_i32 = arith.constant 0 : i32
    %2 = arith.maxsi %1, %c0_i32 : i32
    %c0_i32_1 = arith.constant 0 : i32
    %c0_i32_2 = arith.constant 0 : i32
    return %arg0, %c0_i32_1, %2 : i32, i32, i32
  }
  func.func @transform_2(%arg0: i32, %arg1: i32) -> (i32, i32, i32) {
    %c1_i32 = arith.constant 1 : i32
    %0 = arith.addi %arg1, %c1_i32 : i32
    %c1_i32_0 = arith.constant 1 : i32
    %1 = arith.muli %0, %c1_i32_0 : i32
    %c0_i32 = arith.constant 0 : i32
    %2 = arith.minsi %1, %c0_i32 : i32
    %c0_i32_1 = arith.constant 0 : i32
    %c0_i32_2 = arith.constant 0 : i32
    return %arg0, %c0_i32_1, %2 : i32, i32, i32
  }
  func.func @transform_3(%arg0: i32, %arg1: i32) -> (i32, i32) {
    %c0_i32 = arith.constant 0 : i32
    %c0_i32_0 = arith.constant 0 : i32
    %c0_i32_1 = arith.constant 0 : i32
    return %c0_i32, %c0_i32_0 : i32, i32
  }
  func.func @transform_4(%arg0: i32, %arg1: i32) -> (i32, i32) {
    %c0_i32 = arith.constant 0 : i32
    %c0_i32_0 = arith.constant 0 : i32
    %c0_i32_1 = arith.constant 0 : i32
    return %c0_i32, %c0_i32_0 : i32, i32
  }
  func.func @transform_5(%arg0: i32, %arg1: i32) -> (i32, i32) {
    %c0_i32 = arith.constant 0 : i32
    %c0_i32_0 = arith.constant 0 : i32
    %c0_i32_1 = arith.constant 0 : i32
    return %c0_i32, %c0_i32_0 : i32, i32
  }
  func.func @transform_6(%arg0: i32, %arg1: i32) -> (i32, i32, i32) {
    %c0_i32 = arith.constant 0 : i32
    %c0_i32_0 = arith.constant 0 : i32
    %c0_i32_1 = arith.constant 0 : i32
    %c0_i32_2 = arith.constant 0 : i32
    return %c0_i32, %c0_i32_0, %c0_i32_1 : i32, i32, i32
  }
  func.func @transform_7(%arg0: i32, %arg1: i32) -> (i32, i32) {
    %c0_i32 = arith.constant 0 : i32
    %c0_i32_0 = arith.constant 0 : i32
    %c0_i32_1 = arith.constant 0 : i32
    return %c0_i32, %c0_i32_0 : i32, i32
  }
  func.func @transform_8(%arg0: i32, %arg1: i32) -> (i32, i32, i32) {
    %c0_i32 = arith.constant 0 : i32
    %c0_i32_0 = arith.constant 0 : i32
    %c0_i32_1 = arith.constant 0 : i32
    %c0_i32_2 = arith.constant 0 : i32
    return %c0_i32, %c0_i32_0, %c0_i32_1 : i32, i32, i32
  }
  func.func @transform_9(%arg0: i32, %arg1: i32) -> (i32, i32, i32) {
    %c0_i32 = arith.constant 0 : i32
    %c0_i32_0 = arith.constant 0 : i32
    return %arg0, %c0_i32, %arg1 : i32, i32, i32
  }
}

</mosaic_0001>

<bundles_post_ra>
// kernel: tile.14
= control target key start
LH: loop header
LB: loop body
LE: loop exit
PB: predicated region body
PF: predicated region fallthrough
CT: control target
= control target key end

     0   :  { %s22_s0 = inlined_call_operand.vmem [shape: f32[8], index: 0, kind: input, shape index: {}]   ;;  %s23_s1 = inlined_call_operand.vmem [shape: f32[4,1,1,8], index: 1, kind: output, shape index: {}]  }
   0x1   :  { %v4_v0 = vld [vmem:[%s22_s0] ss:$0 sm:$0xff] }
   0x2   :  { %5 = vst [vmem:[%s23_s1] sm:$0xf] %v4_v0 }

// kernel: tile.2
= control target key start
LH: loop header
LB: loop body
LE: loop exit
PB: predicated region body
PF: predicated region fallthrough
CT: control target
= control target key end

     0   :  { %s135_s0 = inlined_call_operand.vmem [shape: f32[4,1,1,8], index: 0, kind: input, shape index: {}]   ;;  %s136_s1 = inlined_call_operand.hbm [shape: f32[32,1], index: 1, kind: output, shape index: {}]  }
   0x1   :  { %v5_v0 = vld [vmem:[%s135_s0] sm:$0xf] }
   0x2   :  { %6 = vst [vmem:[#allocation2] sm:$0xf] %v5_v0 }
   0x3   :  { %2 = vsyncpa [#allocation1], 0  ;;  %s94_s0 = smov 127   ;;  %s95_s8 = smov 125   ;;  %vm8_vm0 = vcmask 7168  }
   0x4   :  { %s96_s9 = smov 126   ;;  %s97_s10 = smov 124  }
   0x5   :  { %s98_s11 = smov 123   ;;  %s99_s12 = smov 122  }
   0x6   :  { %s100_s13 = smov 121   ;;  %s101_s14 = smov [#allocation0]  }
   0x7   :  { %s56_s15 = sshll.u32 %s101_s14, 4  ;;  %s57_s15 = int_to_ptr.vmem [resolvable:$true] %s56_s15 }
   0x8   :  { %s70_s16 = scalar_lea.vmem %s57_s15, 512  ;;  %p75_p1 = scmp.lt.s32.totalorder %s57_s15, %s57_s15 }
   0x9   :  { %v10_v1 = vld [vmem:[#allocation2] sm:$0xf]   ;;  %p71_p0 = scmp.ne.s32.totalorder %s57_s15, %s70_s16  ;;  %p76_p2 = scmp.lt.s32.totalorder %s70_s16, %s70_s16 }
   0xa   :  { %v22_v2 = vld [vmem:[#allocation2] sm:$0xf]   ;;  %11 = vrot.lane.b32.xlu0 %v10_v1, %s94_s0 }
   0xb   :  { %23 = vrot.lane.b32.xlu1 %v22_v2, %s95_s8  ;;  %v16_v3 = vld [vmem:[#allocation2] sm:$0xf]   ;;  %p77_p3 = por %p76_p2, %p75_p1 }
   0xc   :  { %v28_v4 = vld [vmem:[#allocation2] sm:$0xf]  }
   0xd   :  { %v7_v5 = vld [vmem:[#allocation2] sm:$0xf]   ;;  %p78_p4 = pnand %p77_p3, %p71_p0 }
   0xe   :  { %9 = vst.msk [vmem:[#allocation0] ss:$8 sm:$0xf] %vm8_vm0, %v7_v5   ;;  %17 = vrot.lane.b32.xlu0 %v16_v3, %s96_s9  ;;  %v34_v6 = vld [vmem:[#allocation2] sm:$0xf]  }
   0xf   :  { %29 = vrot.lane.b32.xlu1 %v28_v4, %s97_s10  ;;  %v40_v7 = vld [vmem:[#allocation2] sm:$0xf]  }
  0x10   :  { %v46_v8 = vld [vmem:[#allocation2] sm:$0xf]  }
  0x12   :  { %35 = vrot.lane.b32.xlu0 %v34_v6, %s98_s11 }
  0x13   :  { %41 = vrot.lane.b32.xlu1 %v40_v7, %s99_s12 }
  0x16   :  { %47 = vrot.lane.b32.xlu0 %v46_v8, %s100_s13 }
  0x7c   :  { %v12_v9 = vpop.permute.xlu0 %11  }
  0x7d   :  { %v24_v10 = vpop.permute.xlu1 %23   ;;  %15 = vst.msk [vmem:[#allocation0 + $0x1] ss:$8 sm:$0xf] %vm8_vm0, %v12_v9  }
  0x7e   :  { %27 = vst.msk [vmem:[#allocation0 + $0x3] ss:$8 sm:$0xf] %vm8_vm0, %v24_v10  }
  0x80   :  { %v18_v11 = vpop.permute.xlu0 %17  }
  0x81   :  { %v30_v12 = vpop.permute.xlu1 %29   ;;  %21 = vst.msk [vmem:[#allocation0 + $0x2] ss:$8 sm:$0xf] %vm8_vm0, %v18_v11  }
  0x82   :  { %33 = vst.msk [vmem:[#allocation0 + $0x4] ss:$8 sm:$0xf] %vm8_vm0, %v30_v12  }
  0x84   :  { %v36_v13 = vpop.permute.xlu0 %35  }
  0x85   :  { %v42_v14 = vpop.permute.xlu1 %41   ;;  %39 = vst.msk [vmem:[#allocation0 + $0x5] ss:$8 sm:$0xf] %vm8_vm0, %v36_v13  }
  0x86   :  { %45 = vst.msk [vmem:[#allocation0 + $0x6] ss:$8 sm:$0xf] %vm8_vm0, %v42_v14  }
  0x88   :  { %v48_v15 = vpop.permute.xlu0 %47  }
  0x89   :  { %51 = vst.msk [vmem:[#allocation0 + $0x7] ss:$8 sm:$0xf] %vm8_vm0, %v48_v15  }
  0x8a   :  { %81 = shalt.err (!%p78_p4)
}
  0x8b   :  { %s82_s19 = scalar_lea.hbm %s136_s1, 512 }
  0x8c   :  { %p83_p5 = scmp.ne.s32.totalorder %s136_s1, %s82_s19  ;;  %p86_p6 = scmp.lt.u32.totalorder %s82_s19, %s136_s1 }
  0x8e   :  { %p88_p7 = pnand %p86_p6, %p83_p5 }
  0x90   :  { %91 = shalt.err (!%p88_p7)
}
  0x91   :  { %59 = dma.vmem_to_hbm [thread:$0]  %s57_s15, 512, %s136_s1, [#allocation1]  }
  0x92   :  { %92 = dma.done.wait [#allocation1], 512  }
  0x93   :  { %93 = vsyncadd [#allocation1], 4294966784 }
  0x94   :  { %61 = vsyncpa [#allocation1], 1 }

// kernel: general_block.1
= control target key start
LH: loop header
LB: loop body
LE: loop exit
PB: predicated region body
PF: predicated region fallthrough
CT: control target
= control target key end

     0   :  { %s14612_s0 = inlined_call_operand.hbm [shape: f32[2,8,128], index: 0, kind: input, shape index: {}, may-alias: {0,1,2}]   ;;  %s14613_s1 = inlined_call_operand.hbm [shape: f32[2,8,128], index: 1, kind: input, shape index: {}, may-alias: {0,1,2}]   ;;  %s14614_s2 = inlined_call_operand.hbm [shape: f32[2,8,128], index: 2, kind: input, shape index: {}, may-alias: {0,1,2}]   ;;  %s14615_s3 = inlined_call_operand.hbm [shape: f32[32,24], index: 3, kind: input, shape index: {}]   ;;  %s14616_s4 = inlined_call_operand.hbm [shape: f32[32,1], index: 4, kind: input, shape index: {}]   ;;  %s14617_s5 = inlined_call_operand.hbm [shape: f32[32,1], index: 5, kind: input, shape index: {}]   ;;  %s14618_s6 = inlined_call_operand.hbm [shape: f32[2,8,24], index: 6, kind: input, shape index: {}]   ;;  %s14619_s7 = inlined_call_operand.hbm [shape: f32[32,1], index: 7, kind: input, shape index: {}]   ;;  %s14620_s8 = inlined_call_operand.hbm [shape: f32[2,8,56], index: 8, kind: input, shape index: {}]   ;;  %s14621_s9 = inlined_call_operand.hbm [shape: f32[2,32,128], index: 9, kind: output, shape index: {}]  }
   0x1   :  { %14700 = sst [smem:[#allocation54_spill]] %s14613_s1 }
   0x2   :  { %14701 = sst [smem:[#allocation55_spill]] %s14615_s3 }
   0x3   :  { %14702 = sst [smem:[#allocation56_spill]] %s14617_s5 }
   0x4   :  { %14703 = sst [smem:[#allocation57_spill]] %s14619_s7 }
   0x5   :  { %14704 = sst [smem:[#allocation58_spill]] %s14621_s9 }
   0x6   :  { %14 = vsyncpa [#allocation7], 0 }
   0x7   :  { %16 = vsyncpa [#allocation7 + $0x1], 0 }
   0x8   :  { %17 = vsyncpa [#allocation10], 0 }
   0x9   :  { %19 = vsyncpa [#allocation10 + $0x1], 0 }
   0xa   :  { %20 = vsyncpa [#allocation13], 0 }
   0xb   :  { %21 = vsyncpa [#allocation16], 0 }
   0xc   :  { %22 = vsyncpa [#allocation19], 0 }
   0xd   :  { %23 = vsyncpa [#allocation8], 0 }
   0xe   :  { %25 = vsyncpa [#allocation8 + $0x1], 0  ;;  %s11602_s30 = smov 0   ;;  %s11604_s10 = smov 0  }
   0xf   :  { %s11606_s11 = smov 0   ;;  %s11608_s12 = smov 0  }
  0x10   :  { %s11610_s13 = smov 0   ;;  %s11612_s14 = smov 0  }
  0x11 LB: > { %14705 = sst [smem:[#allocation28_spill]] %s11493_s30  ;;  %s11633_s15 = sadd.s32 4294967295, %s11513_s14   ;;  %s11513_s14 = sphi %s11612_s14, %s31_s14   ;;  %s11509_s13 = sphi %s11610_s13, %s14872_s13   ;;  %s11505_s12 = sphi %s11608_s12, %s14876_s12   ;;  %s11501_s11 = sphi %s11606_s11, %s14875_s11   ;;  %s11497_s10 = sphi %s11604_s10, %s14874_s10   ;;  %s11493_s30 = sphi %s11602_s30, %s14873_s30  }
  0x12   : > { %14706 = sst [smem:[#allocation29_spill]] %s11505_s12  ;;  %p10502_p0 = scmp.ge.s32.totalorder %s11513_s14, 1 }
  0x13   : > { %14707 = sst [smem:[#allocation30_spill]] %s11509_s13  ;;  %p14624_p1 = scmp.eq.s32.totalorder %s11633_s15, 0 }
  0x14   : > { %14708 = sst [smem:[#allocation31_spill]] %s11513_s14  ;;  %p298_p2 = scmp.lt.s32.totalorder %s11513_s14, 3 }
  0x15   : > { %s11515_s17 = smov [#allocation12]   ;;  %s11516_s20 = smov [#allocation15]  }
  0x16   : > { %p11638_p3 = pnand %p10502_p0, %p298_p2  ;;  %s310_s18 = sshll.u32 %s11515_s17, 4  ;;  %s11642_s18 = int_to_ptr.vmem [resolvable:$true] %s310_s18 }
  0x17   : > { %s336_s21 = sshll.u32 %s11516_s20, 4  ;;  %s11517_s22 = smov [#allocation18]   ;;  %s11653_s21 = int_to_ptr.vmem [resolvable:$true] %s336_s21 }
  0x18   : > { %s14709_s16 = scalar_select %p11638_p3, 1, 0 }
  0x19   : > { %p10923_p4 = pneg %p11638_p3  ;;  %s11655_s23 = sshll.u32 %s11517_s22, 4  ;;  %s363_s23 = int_to_ptr.vmem [resolvable:$true] %s11655_s23 }
  0x1a   : > { %14710 = sst [smem:[#allocation32_spill]] %s14709_s16  ;;  %s14712_s3 = sld [smem:[#allocation55_spill]] }
  0x1b   : > { %p11649_p6 = pnand %p10923_p4, %p14624_p1 }
  0x1d   : > { %s14711_s19 = scalar_select %p11649_p6, 1, 0 }
  0x1e   : > { %p11665_p8 = pneg %p11649_p6 }
  0x20   : > { %s11157_s26 = scalar_lea.hbm %s14712_s3, 512 }
  0x21   : > { %p11158_p7 = scmp.ne.s32.totalorder %s14712_s3, %s11157_s26  ;;  %p11164_p11 = scmp.lt.u32.totalorder %s11157_s26, %s14712_s3 }
  0x22   : > { %s14713_s29 = scalar_select %p11665_p8, 1, 0 }
  0x23   : > { %p11160_p9 = pnand %p11665_p8, %p11158_p7 }
  0x25   : > { %p11161_p10 = pneg %p11160_p9 }
  0x27   : > { %p11166_p12 = pnand %p11164_p11, %p11161_p10 }
  0x29   : > { %11169 = shalt.err (!%p11166_p12)
}
  0x2a   : > { %s11170_s22 = scalar_lea.vmem %s11642_s18, 512  ;;  %p11178_p4 = scmp.lt.s32.totalorder %s11642_s18, %s11642_s18 }
  0x2b   : > { %p11171_p13 = scmp.ne.s32.totalorder %s11642_s18, %s11170_s22  ;;  %p11179_p5 = scmp.lt.s32.totalorder %s11170_s22, %s11170_s22 }
  0x2d   : > { %p11173_p0 = pnand %p11171_p13, %p11665_p8  ;;  %p11180_p7 = por %p11179_p5, %p11178_p4 }
  0x2f   : > { %p11174_p2 = pneg %p11173_p0 }
  0x31   : > { %p11181_p9 = pnand %p11180_p7, %p11174_p2 }
  0x33   : > { %11184 = shalt.err (!%p11181_p9)
}
  0x34   : > { %s14626_s24 = smov 128   ;;  %s14628_s25 = smov 8  }
  0x35   : > { %10926 = dma.hbm_to_vmem [thread:$0]  (!%p11649_p6), %s14712_s3, 512, %s11642_s18, [#allocation13], %s14626_s24, %s14626_s24, %s14628_s25  }
  0x36   : > { %s14714_s5 = sld [smem:[#allocation56_spill]] }
  0x3c   : > { %s11185_s20 = scalar_lea.hbm %s14714_s5, 512 }
  0x3d   : > { %p11186_p5 = scmp.ne.s32.totalorder %s14714_s5, %s11185_s20  ;;  %p11192_p12 = scmp.lt.u32.totalorder %s11185_s20, %s14714_s5 }
  0x3f   : > { %p11188_p10 = pnand %p11186_p5, %p11665_p8 }
  0x41   : > { %p11189_p11 = pneg %p11188_p10 }
  0x43   : > { %p11194_p13 = pnand %p11192_p12, %p11189_p11 }
  0x45   : > { %11197 = shalt.err (!%p11194_p13)
}
  0x46   : > { %s11198_s18 = scalar_lea.vmem %s11653_s21, 512  ;;  %p11206_p7 = scmp.lt.s32.totalorder %s11653_s21, %s11653_s21 }
  0x47   : > { %p11199_p0 = scmp.ne.s32.totalorder %s11653_s21, %s11198_s18  ;;  %p11207_p9 = scmp.lt.s32.totalorder %s11198_s18, %s11198_s18 }
  0x49   : > { %p11201_p2 = pnand %p11199_p0, %p11665_p8  ;;  %p11208_p5 = por %p11207_p9, %p11206_p7 }
  0x4b   : > { %p11202_p4 = pneg %p11201_p2 }
  0x4d   : > { %p11209_p10 = pnand %p11208_p5, %p11202_p4 }
  0x4f   : > { %11212 = shalt.err (!%p11209_p10)
}
  0x50   : > { %10932 = dma.hbm_to_vmem [thread:$0]  (!%p11649_p6), %s14714_s5, 512, %s11653_s21, [#allocation16], %s14626_s24, %s14626_s24, %s14628_s25  }
  0x51   : > { %s14715_s7 = sld [smem:[#allocation57_spill]] }
  0x57   : > { %s11213_s27 = scalar_lea.hbm %s14715_s7, 512 }
  0x58   : > { %p11214_p11 = scmp.ne.s32.totalorder %s14715_s7, %s11213_s27  ;;  %p11220_p0 = scmp.lt.u32.totalorder %s11213_s27, %s14715_s7 }
  0x5a   : > { %p11216_p12 = pnand %p11214_p11, %p11665_p8 }
  0x5c   : > { %p11217_p13 = pneg %p11216_p12 }
  0x5e   : > { %p11222_p2 = pnand %p11220_p0, %p11217_p13 }
  0x60   : > { %11225 = shalt.err (!%p11222_p2)
}
  0x61   : > { %s11226_s18 = scalar_lea.vmem %s363_s23, 512  ;;  %p11234_p5 = scmp.lt.s32.totalorder %s363_s23, %s363_s23 }
  0x62   : > { %p11227_p4 = scmp.ne.s32.totalorder %s363_s23, %s11226_s18  ;;  %p11235_p10 = scmp.lt.s32.totalorder %s11226_s18, %s11226_s18 }
  0x64   : > { %p11229_p7 = pnand %p11227_p4, %p11665_p8  ;;  %p11236_p1 = por %p11235_p10, %p11234_p5 }
  0x66   : > { %p11230_p9 = pneg %p11229_p7 }
  0x68   : > { %p11237_p3 = pnand %p11236_p1, %p11230_p9 }
  0x6a   : > { %11240 = shalt.err (!%p11237_p3)
}
  0x6b   : > { %10938 = dma.hbm_to_vmem [thread:$0]  (!%p11649_p6), %s14715_s7, 512, %s363_s23, [#allocation19], %s14626_s24, %s14626_s24, %s14628_s25  }
  0x6c   : > { %s10501_s12 = sadd.s32 4294967294, %s11513_s14   ;;  %s43_s16 = sadd.s32 1, %s11509_s13 }
  0x6d   : > { %s52_s26 = sadd.s32 1, %s11501_s11  ;;  %p45_p1 = scmp.ge.s32.totalorder %s43_s16, 2 }
  0x6e   : > { %p59_p3 = scmp.ne.s32.totalorder %s11501_s11, %s11497_s10  ;;  %p60_p11 = scmp.eq.s32.totalorder %s11513_s14, 0 }
  0x6f   : > { %p65_p12 = scmp.ne.s32.totalorder %s11497_s10, %s11493_s30  ;;  %s14878_s16 = smov (%p45_p1, %s43_s16), 0 }
  0x70   : > { %14716 = sst [smem:[#allocation33_spill]] %s14878_s16  ;;  %p11747_p13 = por %p60_p11, %p59_p3 }
  0x71   : > { %p14718_p0 = scmp.eq.s32.totalorder %s11633_s15, 0  ;;  %s47_s28 = ssub.s32 %s11509_s13, %s14878_s16 }
  0x72   : > { %p285_p4 = scmp.eq.s32.totalorder %s11633_s15, 1  ;;  %p50_p7 = scmp.eq.s32.totalorder %s47_s28, 0 }
  0x73   : > { %p11753_p2 = por %p14718_p0, %p65_p12  ;;  %p291_p9 = scmp.eq.s32.totalorder %s10501_s12, 1 }
  0x74   : > { %p11760_p5 = por %p285_p4, %p59_p3  ;;  %p10962_p10 = scmp.lt.s32.totalorder %s11513_s14, 2 }
  0x75   : > { %s14719_s23 = scalar_select %p11753_p2, 1, 0 }
  0x76   : > { %s14720_s17 = scalar_select %p11760_p5, 1, 0 }
  0x77   : > { %s11766_s20 = scalar_select %p50_p7, %s11501_s11, %s52_s26  }
  0x78   : > { %14721 = sst [smem:[#allocation34_spill]] %s14720_s17  ;;  %p11768_p1 = por %p291_p9, %p65_p12 }
  0x79   : > { %14722 = sst [smem:[#allocation35_spill]] %s11766_s20  ;;  %s14630_s18 = sand.u32 1, %s11501_s11  }
  0x7a   : > { %s14723_s22 = scalar_select %p11768_p1, 1, 0 }
  0x7b   : > { %s11775_s21 = sshll.u32 %s14630_s18, 3  ;;  %s11778_s9 = sshll.u32 %s11509_s13, 7 }
  0x7c   : > { %14724 = sst [smem:[#allocation36_spill]] %s14723_s22  ;;  %p11782_p3 = pnand %p10962_p10, %p11747_p13 }
  0x7d   : > { %s408_s26 = sand.u32 1, %s11513_s14   ;;  %s14726_s1 = sld [smem:[#allocation54_spill]] }
  0x7e   : > { %s14725_s12 = scalar_select %p11782_p3, 1, 0 }
  0x7f   : > { %s412_s18 = scalar_lea.vmem [#allocation9], %s11775_s21  ;;  %s11520_s27 = smov [#allocation14]  }
  0x80   : > { %s423_s3 = sshll.u32 %s412_s18, 4  ;;  %s11796_s5 = sshll.u32 %s11520_s27, 4  ;;  %s11794_s3 = int_to_ptr.vmem [resolvable:$true] %s423_s3  ;;  %s324_s5 = int_to_ptr.vmem [resolvable:$true] %s11796_s5 }
  0x81   : > { %s11798_s7 = scalar_lea.sflag [#allocation10], %s408_s26  ;;  %p11804_p12 = pneg %p11782_p3 }
  0x83   : > { %s11791_s25 = scalar_lea.hbm %s14726_s1, %s11778_s9  ;;  %s11246_s13 = scalar_lea.hbm %s14726_s1, 256 }
  0x84   : > { %s11241_s16 = scalar_lea.hbm %s11791_s25, 128  ;;  %p11247_p4 = scmp.lt.u32.totalorder %s11791_s25, %s14726_s1 }
  0x85   : > { %p11242_p11 = scmp.ne.s32.totalorder %s11791_s25, %s11241_s16  ;;  %p11248_p7 = scmp.lt.u32.totalorder %s11246_s13, %s11241_s16 }
  0x86   : > { %s14727_s24 = scalar_select %p11804_p12, 1, 0 }
  0x87   : > { %p11244_p13 = pnand %p11804_p12, %p11242_p11  ;;  %p11249_p9 = por %p11248_p7, %p11247_p4 }
  0x88   : > { %p11250_p10 = scmp.lt.u32.totalorder %s11241_s16, %s11791_s25 }
  0x89   : > { %p11245_p0 = pneg %p11244_p13 }
  0x8a   : > { %p11251_p1 = por %p11250_p10, %p11249_p9 }
  0x8c   : > { %p11252_p5 = pnand %p11251_p1, %p11245_p0 }
  0x8e   : > { %11255 = shalt.err (!%p11252_p5)
}
  0x8f   : > { %s11256_s26 = scalar_lea.vmem %s11794_s3, 128  ;;  %s11521_s28 = smov [#allocation9]  }
  0x90   : > { %p11257_p11 = scmp.ne.s32.totalorder %s11794_s3, %s11256_s26  ;;  %s11261_s18 = sshll.u32 %s11521_s28, 4  ;;  %s11262_s18 = int_to_ptr.vmem [resolvable:$false] %s11261_s18 }
  0x91   : > { %s11263_s20 = scalar_lea.vmem %s11262_s18, 256  ;;  %p11264_p6 = scmp.lt.s32.totalorder %s11794_s3, %s11262_s18 }
  0x92   : > { %p11259_p13 = pnand %p11257_p11, %p11804_p12  ;;  %p11265_p8 = scmp.lt.s32.totalorder %s11263_s20, %s11256_s26 }
  0x94   : > { %p11260_p2 = pneg %p11259_p13  ;;  %p11266_p4 = por %p11265_p8, %p11264_p6 }
  0x96   : > { %p11267_p7 = pnand %p11266_p4, %p11260_p2 }
  0x98   : > { %11270 = shalt.err (!%p11267_p7)
}
  0x99   : > { %10948 = dma.hbm_to_vmem [thread:$0]  (!%p11782_p3), %s11791_s25, 128, %s11794_s3, %s11798_s7  }
  0x9a   : > { %s11271_s27 = scalar_lea.hbm %s14616_s4, 512  ;;  %p14728_p6 = scmp.ne.s32.totalorder %s14713_s29, 0 }
  0x9b   : > { %p11272_p5 = scmp.ne.s32.totalorder %s14616_s4, %s11271_s27  ;;  %p11278_p1 = scmp.lt.u32.totalorder %s11271_s27, %s14616_s4 }
  0x9d   : > { %p11274_p8 = pnand %p11272_p5, %p14728_p6 }
  0x9f   : > { %p11275_p2 = pneg %p11274_p8 }
  0xa1   : > { %p11280_p0 = pnand %p11278_p1, %p11275_p2 }
  0xa3   : > { %11283 = shalt.err (!%p11280_p0)
}
  0xa4   : > { %s11284_s20 = scalar_lea.vmem %s324_s5, 512  ;;  %p11292_p13 = scmp.lt.s32.totalorder %s324_s5, %s324_s5 }
  0xa5   : > { %p11285_p9 = scmp.ne.s32.totalorder %s324_s5, %s11284_s20  ;;  %p11293_p4 = scmp.lt.s32.totalorder %s11284_s20, %s11284_s20 }
  0xa7   : > { %p11287_p10 = pnand %p11285_p9, %p14728_p6  ;;  %p11294_p7 = por %p11293_p4, %p11292_p13 }
  0xa9   : > { %p11288_p11 = pneg %p11287_p10 }
  0xab   : > { %p11295_p3 = pnand %p11294_p7, %p11288_p11 }
  0xad   : > { %11298 = shalt.err (!%p11295_p3)
}
  0xae   : > { %p14729_p5 = scmp.ne.s32.totalorder %s14711_s19, 0  ;;  %s14730_s1 = smov 8  }
  0xaf   : > { %s14731_s3 = smov 128   ;;  %s11522_s16 = smov [#allocation17]  }
  0xb0   : > { %10929 = dma.hbm_to_vmem [thread:$0]  (!%p14729_p5), %s14616_s4, 512, %s324_s5, [#allocation13], %s14731_s3, %s14731_s3, %s14730_s1  }
  0xb1   : > { %s349_s27 = sshll.u32 %s11522_s16, 4  ;;  %s11523_s28 = smov [#allocation20]   ;;  %s350_s27 = int_to_ptr.vmem [resolvable:$true] %s349_s27 }
  0xb2   : > { %s375_s26 = sshll.u32 %s11523_s28, 4  ;;  %s11299_s14 = scalar_lea.hbm %s14618_s6, 256  ;;  %s376_s26 = int_to_ptr.vmem [resolvable:$true] %s375_s26 }
  0xb3   : > { %p11300_p3 = scmp.ne.s32.totalorder %s14618_s6, %s11299_s14  ;;  %p11306_p1 = scmp.lt.u32.totalorder %s11299_s14, %s14618_s6 }
  0xb5   : > { %p11302_p8 = pnand %p11300_p3, %p14728_p6 }
  0xb7   : > { %p11303_p2 = pneg %p11302_p8 }
  0xb9   : > { %p11308_p0 = pnand %p11306_p1, %p11303_p2 }
  0xbb   : > { %11311 = shalt.err (!%p11308_p0)
}
  0xbc   : > { %s11312_s5 = scalar_lea.vmem %s350_s27, 256  ;;  %p11320_p13 = scmp.lt.s32.totalorder %s350_s27, %s350_s27 }
  0xbd   : > { %p11313_p9 = scmp.ne.s32.totalorder %s350_s27, %s11312_s5  ;;  %p11321_p4 = scmp.lt.s32.totalorder %s11312_s5, %s11312_s5 }
  0xbf   : > { %p11315_p10 = pnand %p11313_p9, %p14728_p6  ;;  %p11322_p7 = por %p11321_p4, %p11320_p13 }
  0xc1   : > { %p11316_p11 = pneg %p11315_p10 }
  0xc3   : > { %p11323_p12 = pnand %p11322_p7, %p11316_p11 }
  0xc5   : > { %11326 = shalt.err (!%p11323_p12)
}
  0xc6   : > { %10935 = dma.hbm_to_vmem [thread:$0]  (!%p14729_p5), %s14618_s6, 256, %s350_s27, [#allocation16], %s14731_s3, %s14731_s3, %s14730_s1  }
  0xc7   : > { %s11327_s13 = scalar_lea.hbm %s14620_s8, 256 }
  0xc8   : > { %p11328_p3 = scmp.ne.s32.totalorder %s14620_s8, %s11327_s13  ;;  %p11334_p2 = scmp.lt.u32.totalorder %s11327_s13, %s14620_s8 }
  0xca   : > { %p11330_p12 = pnand %p11328_p3, %p14728_p6 }
  0xcc   : > { %p11331_p8 = pneg %p11330_p12 }
  0xce   : > { %p11336_p1 = pnand %p11334_p2, %p11331_p8 }
  0xd0   : > { %11339 = shalt.err (!%p11336_p1)
}
  0xd1   : > { %s11340_s25 = scalar_lea.vmem %s376_s26, 256  ;;  %p11348_p11 = scmp.lt.s32.totalorder %s376_s26, %s376_s26 }
  0xd2   : > { %p11341_p0 = scmp.ne.s32.totalorder %s376_s26, %s11340_s25  ;;  %p11349_p13 = scmp.lt.s32.totalorder %s11340_s25, %s11340_s25 }
  0xd4   : > { %p11343_p9 = pnand %p11341_p0, %p14728_p6  ;;  %p11350_p4 = por %p11349_p13, %p11348_p11 }
  0xd6   : > { %p11344_p10 = pneg %p11343_p9 }
  0xd8   : > { %p11351_p7 = pnand %p11350_p4, %p11344_p10 }
  0xda   : > { %11354 = shalt.err (!%p11351_p7)
}
  0xdb   : > { %10941 = dma.hbm_to_vmem [thread:$0]  (!%p14729_p5), %s14620_s8, 256, %s376_s26, [#allocation19], %s14731_s3, %s14731_s3, %s14730_s1  }
  0xdc   : > { %s11896_s14 = scalar_lea.hbm %s14612_s0, %s11778_s9  ;;  %s393_s19 = scalar_lea.vmem [#allocation6], %s11775_s21 }
  0xdd   : > { %s401_s17 = sshll.u32 %s393_s19, 4  ;;  %s11905_s16 = scalar_lea.hbm %s14614_s2, %s11778_s9  ;;  %s11899_s17 = int_to_ptr.vmem [resolvable:$true] %s401_s17 }
  0xde   : > { %s14732_s28 = sand.u32 1, %s11501_s11   ;;  %s11355_s3 = scalar_lea.hbm %s11896_s14, 128 }
  0xdf   : > { %s390_s1 = scalar_lea.sflag [#allocation7], %s14732_s28  ;;  %p11356_p6 = scmp.ne.s32.totalorder %s11896_s14, %s11355_s3 }
  0xe0   : > { %p14733_p5 = scmp.ne.s32.totalorder %s14727_s24, 0  ;;  %s11360_s20 = scalar_lea.hbm %s14612_s0, 256 }
  0xe1   : > { %p11361_p8 = scmp.lt.u32.totalorder %s11896_s14, %s14612_s0  ;;  %p11362_p2 = scmp.lt.u32.totalorder %s11360_s20, %s11355_s3 }
  0xe2   : > { %p11358_p3 = pnand %p11356_p6, %p14733_p5  ;;  %p11364_p0 = scmp.lt.u32.totalorder %s11355_s3, %s11896_s14 }
  0xe3   : > { %p11363_p1 = por %p11362_p2, %p11361_p8 }
  0xe4   : > { %p11359_p12 = pneg %p11358_p3 }
  0xe5   : > { %p11365_p9 = por %p11364_p0, %p11363_p1 }
  0xe7   : > { %p11366_p10 = pnand %p11365_p9, %p11359_p12 }
  0xe9   : > { %11369 = shalt.err (!%p11366_p10)
}
  0xea   : > { %s11370_s9 = scalar_lea.vmem %s11899_s17, 128  ;;  %s11524_s5 = smov [#allocation6]  }
  0xeb   : > { %p11371_p11 = scmp.ne.s32.totalorder %s11899_s17, %s11370_s9  ;;  %s11375_s29 = sshll.u32 %s11524_s5, 4  ;;  %s11376_s29 = int_to_ptr.vmem [resolvable:$false] %s11375_s29 }
  0xec   : > { %s11377_s30 = scalar_lea.vmem %s11376_s29, 256  ;;  %p11378_p7 = scmp.lt.s32.totalorder %s11899_s17, %s11376_s29 }
  0xed   : > { %p11373_p13 = pnand %p11371_p11, %p14733_p5  ;;  %p11379_p6 = scmp.lt.s32.totalorder %s11377_s30, %s11370_s9 }
  0xef   : > { %p11374_p4 = pneg %p11373_p13  ;;  %p11380_p3 = por %p11379_p6, %p11378_p7 }
  0xf1   : > { %p11381_p8 = pnand %p11380_p3, %p11374_p4 }
  0xf3   : > { %11384 = shalt.err (!%p11381_p8)
}
  0xf4   : > { %p14734_p12 = scmp.ne.s32.totalorder %s14725_s12, 0  ;;  %s434_s19 = scalar_lea.vmem [#allocation11], %s11775_s21 }
  0xf5   : > { %s445_s22 = sshll.u32 %s434_s19, 4  ;;  %s11385_s13 = scalar_lea.hbm %s11905_s16, 128  ;;  %s446_s22 = int_to_ptr.vmem [resolvable:$true] %s445_s22 }
  0xf6   : > { %10945 = dma.hbm_to_vmem [thread:$0]  (!%p14734_p12), %s11896_s14, 128, %s11899_s17, %s390_s1  }
  0xf7   : > { %p11386_p2 = scmp.ne.s32.totalorder %s11905_s16, %s11385_s13  ;;  %s11390_s26 = scalar_lea.hbm %s14614_s2, 256 }
  0xf8   : > { %p11391_p9 = scmp.lt.u32.totalorder %s11905_s16, %s14614_s2  ;;  %p11392_p10 = scmp.lt.u32.totalorder %s11390_s26, %s11385_s13 }
  0xf9   : > { %p11388_p1 = pnand %p11386_p2, %p14733_p5  ;;  %p11394_p13 = scmp.lt.u32.totalorder %s11385_s13, %s11905_s16 }
  0xfa   : > { %p11393_p11 = por %p11392_p10, %p11391_p9 }
  0xfb   : > { %p11389_p0 = pneg %p11388_p1 }
  0xfc   : > { %p11395_p4 = por %p11394_p13, %p11393_p11 }
  0xfe   : > { %p11396_p7 = pnand %p11395_p4, %p11389_p0 }
 0x100   : > { %11399 = shalt.err (!%p11396_p7)
}
 0x101   : > { %s11400_s21 = scalar_lea.vmem %s446_s22, 128  ;;  %s11525_s14 = smov [#allocation11]  }
 0x102   : > { %p11401_p6 = scmp.ne.s32.totalorder %s446_s22, %s11400_s21  ;;  %s11405_s17 = sshll.u32 %s11525_s14, 4  ;;  %s11406_s17 = int_to_ptr.vmem [resolvable:$false] %s11405_s17 }
 0x103   : > { %s11407_s1 = scalar_lea.vmem %s11406_s17, 256  ;;  %p11408_p2 = scmp.lt.s32.totalorder %s446_s22, %s11406_s17 }
 0x104   : > { %p11403_p3 = pnand %p11401_p6, %p14733_p5  ;;  %p11409_p1 = scmp.lt.s32.totalorder %s11407_s1, %s11400_s21 }
 0x106   : > { %p11404_p8 = pneg %p11403_p3  ;;  %p11410_p12 = por %p11409_p1, %p11408_p2 }
 0x108   : > { %p11411_p9 = pnand %p11410_p12, %p11404_p8 }
 0x10a   : > { %11414 = shalt.err (!%p11411_p9)
}
 0x10b   : > { %p14735_p10 = scmp.ne.s32.totalorder %s14725_s12, 0  ;;  %s14736_s25 = sld [smem:[#allocation32_spill]] }
 0x10d   : > { %10951 = dma.hbm_to_vmem [thread:$0]  (!%p14735_p10), %s11905_s16, 128, %s446_s22, %s11798_s7  }
 0x111   : > { %p14737_p0 = scmp.ne.s32.totalorder %s14736_s25, 0 }
 0x113   : > { %454 = sbr.rel (%p14737_p0) target bundleno = 3374 (0xd2e), region = 56 }
 0x11a   : > { %s11952_s24 = sand.u32 1, %s11497_s10   ;;  %p14738_p5 = scmp.ne.s32.totalorder %s14719_s23, 0 }
 0x11b   : > { %s10517_s27 = sshll.u32 %s11952_s24, 3  ;;  %s457_s9 = scalar_lea.sflag [#allocation7], %s11952_s24 }
 0x11c   : > { %s460_s5 = scalar_lea.vmem [#allocation6], %s10517_s27 }
 0x11d   : > { %11468 = dma.done.wait (%p14738_p5), %s457_s9, 128  }
 0x11e   : > { %11470 = vsyncadd (%p14738_p5), %s457_s9, 4294967168  ;;  %s465_s7 = sand.u32 1, %s11633_s15  }
 0x11f   : > { %s466_s12 = scalar_lea.sflag [#allocation10], %s465_s7 }
 0x120   : > { %11472 = dma.done.wait (%p14738_p5), %s466_s12, 256  }
 0x121   : > { %11474 = vsyncadd (%p14738_p5), %s466_s12, 4294967040  ;;  %p14739_p12 = scmp.eq.s32.totalorder %s11633_s15, 0 }
 0x123   : > { %11476 = dma.done.wait (%p14739_p12), [#allocation13], 1024   ;;  %p14740_p11 = pmov %p14739_p12 }
 0x125   : > { %11478 = vsyncadd (%p14740_p11), [#allocation13], 4294966272  ;;  %p14741_p13 = pmov %p14740_p11 }
 0x126   : > { %p14742_p4 = pmov %p14740_p11 }
 0x127   : > { %11480 = dma.done.wait (%p14741_p13), [#allocation16], 768  }
 0x128   : > { %11482 = vsyncadd (%p14742_p4), [#allocation16], 4294966528  ;;  %p14743_p7 = pmov %p14742_p4 }
 0x129   : > { %p14744_p6 = pmov %p14742_p4 }
 0x12a   : > { %11484 = dma.done.wait (%p14743_p7), [#allocation19], 768  }
 0x12b   : > { %11486 = vsyncadd (%p14744_p6), [#allocation19], 4294966528  ;;  %v554_v0 = vlaneseq  ;;  %v14649_v1 = vmov 0.0   ;;  %s11527_s23 = smov 3   ;;  %vm804_vm1 = vcmask 23552   ;;  %v572_v3 = vld [vmem:[%s460_s5] sm:$0xff] }
 0x12c   : > { %727 = vmatprep.mubr.f32.mxu0 %v14649_v1  ;;  %887 = vmatprep.mubr.f32.mxu1 %v14649_v1  ;;  %1147 = vst.msk [vmem:[#allocation4] sm:$0xff] %vm804_vm1, %v14649_v1  ;;  %1148 = vst.msk [vmem:[#allocation4 + $0x10] sm:$0xff] %vm804_vm1, %v14649_v1  ;;  %s11528_s15 = smov 2   ;;  %v12001_v5 = vld [vmem:[#allocation12 + $0x8] sm:$0xff]  ;;  %s11529_s16 = smov 120   ;;  %v12006_v6 = vld [vmem:[#allocation12] sm:$0xff] }
 0x12d   : > { %v11979_v2 = vand.u32 127, %v554_v0  ;;  %11057 = vrot.lane.b32.xlu1 %v14649_v1, %s11527_s23  ;;  %1149 = vst.msk [vmem:[#allocation4 + $0x20] sm:$0xff] %vm804_vm1, %v14649_v1  ;;  %1150 = vst.msk [vmem:[#allocation4 + $0x30] sm:$0xff] %vm804_vm1, %v14649_v1  ;;  %s11530_s29 = smov 4   ;;  %s11531_s30 = smov 112   ;;  %v12013_v7 = vld [vmem:[#allocation12 + $0x10] sm:$0xff] }
 0x12e   : > { %1156 = vst.msk [vmem:[#allocation5] sm:$0xff] %vm804_vm1, %v14649_v1  ;;  %1157 = vst.msk [vmem:[#allocation5 + $0x10] sm:$0xff] %vm804_vm1, %v14649_v1  ;;  %v12019_v8 = vld [vmem:[#allocation12 + $0x18] sm:$0xff]  ;;  %v588_v9 = vld [vmem:[#allocation14] sm:$0xff]  ;;  %v11532_v11 = vmov 0   ;;  %vm645_vm2 = vcmask 15360  }
 0x12f   : > { %vm570_vm0 = vcmp.lt.s32.totalorder %v11979_v2, 16  ;;  %1158 = vst.msk [vmem:[#allocation5 + $0x20] sm:$0xff] %vm804_vm1, %v14649_v1  ;;  %1159 = vst.msk [vmem:[#allocation5 + $0x30] sm:$0xff] %vm804_vm1, %v14649_v1  ;;  %v591_v10 = vld [vmem:[#allocation14 + $0x18] sm:$0xff]  ;;  %11066 = vset.pattern.permute.xlu0 %v11532_v11  ;;  %11067 = vset.pattern.permute.xlu1 %v11532_v11  ;;  %v1164_v13 = vld [vmem:[#allocation15] sm:$0xff]  ;;  %vm650_vm3 = vcmask 64512  }
 0x130   : > { %v575_v4 = vsel %vm570_vm0, %v572_v3, 0.0  ;;  %v1167_v12 = vld [vmem:[#allocation15 + $0x18] sm:$0xff]  ;;  %v1168_v15 = vadd.f32 1e-09, %v1164_v13  ;;  %v1166_v16 = vld [vmem:[#allocation15 + $0x10] sm:$0xff]  ;;  %v1165_v17 = vld [vmem:[#allocation15 + $0x8] sm:$0xff] }
 0x131   : > { %641 = vrot.lane.b32.xlu0 %v575_v4, %s11528_s15  ;;  %800 = vrot.lane.b32.xlu1 %v575_v4, %s11527_s23  ;;  %v1171_v14 = vadd.f32 1e-09, %v1167_v12  ;;  %v590_v18 = vld [vmem:[#allocation14 + $0x10] sm:$0xff]  ;;  %v589_v19 = vld [vmem:[#allocation14 + $0x8] sm:$0xff]  ;;  %v1170_v20 = vadd.f32 1e-09, %v1166_v16 }
 0x132   : > { %v1169_v21 = vadd.f32 1e-09, %v1165_v17  ;;  %vm958_vm4 = vcmask 31744   ;;  %vm613_vm5 = vcmask 48128   ;;  %s11539_s19 = smov 125   ;;  %s11540_s22 = smov 126  }
 0x133   : > { %11068 = vrcp.f32 %v1171_v14  ;;  %s11541_s13 = smov 124   ;;  %s11542_s28 = smov 104  }
 0x134   : > { %11070 = vrcp.f32 %v1168_v15  ;;  %s11543_s3 = smov 96   ;;  %s11544_s26 = smov 88  }
 0x135   : > { %11052 = vrot.lane.b32.xlu0 %v14649_v1, %s11528_s15  ;;  %789 = vrot.lane.b32.xlu1 %v12001_v5, %s11529_s16  ;;  %11072 = vrcp.f32 %v1170_v20  ;;  %v1076_v20 = vadd.s32 128, %v11979_v2  ;;  %s11545_s18 = smov 80   ;;  %s11546_s20 = smov 127  }
 0x136   : > { %11074 = vrcp.f32 %v1169_v21  ;;  %s11547_s21 = smov 123   ;;  %s11548_s14 = smov 122  }
 0x137   : > { %s14861_s17 = sld [smem:[#allocation29_spill]]  ;;  %s10526_s1 = sshll.u32 %s11952_s24, 5 }
 0x138   : > { %s546_s25 = scalar_lea.vmem [#allocation21], %s10526_s1  ;;  %s14862_s27 = sld [smem:[#allocation34_spill]] }
 0x139   : > { %787 = vrot.lane.b32.xlu0 %v12006_v6, %s11529_s16  ;;  %11062 = vrot.lane.b32.xlu1 %v14649_v1, %s11530_s29  ;;  %s10314_s9 = sshll.u32 %s546_s25, 4  ;;  %s14557_s9 = int_to_ptr.vmem [resolvable:$true] %s10314_s9 }
 0x13d   : > { %954 = vrot.lane.b32.xlu0 %v575_v4, %s11530_s29  ;;  %941 = vrot.lane.b32.xlu1 %v12006_v6, %s11531_s30  ;;  %v11069_v22 = vpop.eup %11068  ;;  %v12065_v4 = vadd.s32 4294967293, %v11979_v2  ;;  %s10696_s5 = sshll.u32 %s14861_s17, 9  ;;  %s11415_s29 = scalar_lea.vmem %s14557_s9, 512 }
 0x13e   : > { %v11071_v23 = vpop.eup %11070  ;;  %p11416_p3 = scmp.ne.s32.totalorder %s14557_s9, %s11415_s29  ;;  %p14864_p8 = scmp.ne.s32.totalorder %s14862_s27, 0 }
 0x13f   : > { %v11073_v24 = vpop.eup %11072  ;;  %vm1081_vm6 = vcmp.ge.s32.totalorder %v12065_v4, 0 }
 0x140   : > { %v11075_v25 = vpop.eup %11074  ;;  %p11417_p2 = pnand %p11416_p3, %p14864_p8 }
 0x141   : > { %791 = vrot.lane.b32.xlu0 %v12013_v7, %s11529_s16  ;;  %943 = vrot.lane.b32.xlu1 %v12001_v5, %s11531_s30 }
 0x142   : > { %p11418_p1 = pneg %p11417_p2 }
 0x145   : > { %793 = vrot.lane.b32.xlu0 %v12019_v8, %s11529_s16  ;;  %947 = vrot.lane.b32.xlu1 %v12019_v8, %s11531_s30 }
 0x149   : > { %945 = vrot.lane.b32.xlu0 %v12013_v7, %s11531_s30  ;;  %609 = vperm.xlu1 %11067, %v591_v10  }
 0x14d   : > { %594 = vperm.xlu0 %11066, %v588_v9   ;;  %599 = vperm.xlu1 %11067, %v589_v19  }
 0x151   : > { %604 = vperm.xlu0 %11066, %v590_v18   ;;  %1184 = vperm.xlu1 %11067, %v1164_v13   ;;  %v1083_v13 = vmul.u32 4, %v12065_v4 }
 0x153   : > { %vm1085_vm7 = vcmp.lt.s32.totalorder %v1083_v13, 64 }
 0x154   : > { %vm1087_vm8 = vmand %vm1081_vm6, %vm1085_vm7 }
 0x155   : > { %1903 = vperm.xlu0 %11066, %v1167_v12   ;;  %1425 = vperm.xlu1 %11067, %v1165_v17  }
 0x159   : > { %1664 = vperm.xlu0 %11066, %v1166_v16   ;;  %1401 = vperm.xlu1 %11067, %v11071_v23   ;;  %v1093_v23 = vadd.s32 1, %v1083_v13 }
 0x15b   : > { %vm1095_vm9 = vcmp.lt.s32.totalorder %v1093_v23, 64 }
 0x15c   : > { %vm1097_vm10 = vmand %vm1081_vm6, %vm1095_vm9 }
 0x15d   : > { %2120 = vperm.xlu0 %11066, %v11069_v22   ;;  %1642 = vperm.xlu1 %11067, %v11075_v25  }
 0x161   : > { %1881 = vperm.xlu0 %11066, %v11073_v24  }
 0x19f   : > { %v11058_v26 = vpop.permute.xlu1 %11057 }
 0x1a0   : > { %v11060_v27 = vunpack.i.h.bf16 %v11058_v26  ;;  %v11059_v28 = vunpack.i.l.bf16 %v11058_v26 }
 0x1a3   : > { %v642_v29 = vpop.permute.xlu0 %641  ;;  %v801_v30 = vpop.permute.xlu1 %800 }
 0x1a4   : > { %v806_v31 = vsel %vm804_vm1, %v801_v30, %v11059_v28  ;;  %v805_v32 = vsel %vm804_vm1, %v11060_v27, %v801_v30 }
 0x1a5   : > { %10697 = vmatprep.subr.mxu1 %v806_v31 }
 0x1a6   : > { %10698 = vmatpush1.msra.mxu1 %v805_v32 }
 0x1a7   : > { %v11053_v33 = vpop.permute.xlu0 %11052  ;;  %v790_v34 = vpop.permute.xlu1 %789 }
 0x1a8   : > { %v11055_v35 = vunpack.i.h.bf16 %v11053_v33  ;;  %v11054_v36 = vunpack.i.l.bf16 %v11053_v33  ;;  %10532 = vmatmul.mubr.msk.f32.vlgmr.msra.gmra.mrb[0].mxu1 %vm650_vm3, %v790_v34  ;;  %v1103_v33 = vadd.s32 2, %v1083_v13 }
 0x1a9   : > { %893 = vmatprep.mubr.f32.mxu1 %v14649_v1 }
 0x1aa   : > { %v647_v37 = vsel %vm645_vm2, %v642_v29, %v11054_v36  ;;  %v646_v38 = vsel %vm645_vm2, %v11055_v35, %v642_v29  ;;  %v12081_v36 = vsel %vm1087_vm8, 1.0, %v14649_v1  ;;  %vm1105_vm11 = vcmp.lt.s32.totalorder %v1103_v33, 64 }
 0x1ab   : > { %663 = vmatprep.subr.mxu0 %v647_v37  ;;  %v788_v39 = vpop.permute.xlu0 %787  ;;  %v11063_v40 = vpop.permute.xlu1 %11062  ;;  %14745 = vst [vmem:[#allocation37_spill] sm:$0xff] %v12081_v36  ;;  %vm1107_vm12 = vmand %vm1081_vm6, %vm1105_vm11 }
 0x1ac   : > { %664 = vmatpush1.msra.mxu0 %v646_v38  ;;  %v11064_v41 = vunpack.i.l.bf16 %v11063_v40  ;;  %v11065_v45 = vunpack.i.h.bf16 %v11063_v40 }
 0x1ad   : > { %10527 = vmatmul.mubr.msk.f32.vlgmr.msra.gmra.mrb[0].mxu0 %vm650_vm3, %v12006_v6  ;;  %817 = vmatprep.subr.mxu0 %v806_v31 }
 0x1ae   : > { %733 = vmatprep.mubr.f32.mxu0 %v14649_v1  ;;  %818 = vmatpush1.msra.mxu0 %v805_v32  ;;  %v1080_v32 = vadd.s32 4294967293, %v1076_v20 }
 0x1af   : > { %v955_v42 = vpop.permute.xlu0 %954  ;;  %v942_v48 = vpop.permute.xlu1 %941 }
 0x1b0   : > { %v960_v43 = vsel %vm958_vm4, %v955_v42, %v11064_v41  ;;  %v959_v47 = vsel %vm958_vm4, %v11065_v45, %v955_v42  ;;  %v1084_v41 = vmul.u32 4, %v1080_v32  ;;  %v1113_v42 = vadd.s32 3, %v1083_v13 }
 0x1b1   : > { %10528 = vmatmul.mubr.msk.f32.gmra.mrb[2].mxu0 %vm650_vm3, %v12001_v5  ;;  %971 = vmatprep.subr.mxu0 %v960_v43 }
 0x1b2   : > { %739 = vmatprep.mubr.f32.mxu0 %v14649_v1  ;;  %vm1115_vm13 = vcmp.lt.s32.totalorder %v1113_v42, 64  ;;  %vm1086_vm0 = vcmp.lt.s32.totalorder %v1084_v41, 64 }
 0x1b3   : > { %v792_v44 = vpop.permute.xlu0 %791  ;;  %v944_v49 = vpop.permute.xlu1 %943  ;;  %vm1117_vm14 = vmand %vm1081_vm6, %vm1115_vm13  ;;  %v12133_v20 = vsel %vm1086_vm0, 1.0, %v14649_v1 }
 0x1b4   : > { %10533 = vmatmul.mubr.msk.f32.gmra.mrb[2].mxu1 %vm650_vm3, %v792_v44  ;;  %14750 = vst [vmem:[#allocation42_spill] sm:$0xff] %v12133_v20 }
 0x1b5   : > { %10529 = vmatmul.mubr.msk.f32.gmra.mrb[4].mxu0 %vm650_vm3, %v12013_v7  ;;  %899 = vmatprep.mubr.f32.mxu1 %v14649_v1 }
 0x1b6   : > { %745 = vmatprep.mubr.f32.mxu0 %v14649_v1 }
 0x1b7   : > { %v794_v46 = vpop.permute.xlu0 %793  ;;  %v948_v51 = vpop.permute.xlu1 %947 }
 0x1b8   : > { %10534 = vmatmul.mubr.msk.f32.gmra.mrb[4].mxu1 %vm650_vm3, %v794_v46  ;;  %v12093_v46 = vsel %vm1097_vm10, 1.0, %v14649_v1 }
 0x1b9   : > { %10530 = vmatmul.mubr.msk.f32.gmra.mrb[6].mxu0 %vm650_vm3, %v12019_v8  ;;  %2222 = vmatprep.mubr.f32.mxu1 %v14649_v1  ;;  %14746 = vst [vmem:[#allocation38_spill] sm:$0xff] %v12093_v46 }
 0x1ba   : > { %881 = vmatprep.mubr.f32.mxu0 %v14649_v1 }
 0x1bb   : > { %v946_v50 = vpop.permute.xlu0 %945 }
 0x1bd   : > { %10531 = vmatmul.mubr.msk.f32.vlgmr.msra.gmra.mrb[8].mxu0 %vm650_vm3, %v788_v39 }
 0x1be   : > { %972 = vmatpush1.msra.mxu0 %v959_v47  ;;  %1035 = vmatprep.mubr.f32.mxu0 %v14649_v1 }
 0x1c1   : > { %10535 = vmatmul.mubr.msk.f32.vlgmr.msra.gmra.mrb[10].mxu0 %vm650_vm3, %v942_v48 }
 0x1c2   : > { %1041 = vmatprep.mubr.f32.mxu0 %v14649_v1 }
 0x1c5   : > { %10536 = vmatmul.mubr.msk.f32.gmra.mrb[12].mxu0 %vm650_vm3, %v944_v49 }
 0x1c6   : > { %1047 = vmatprep.mubr.f32.mxu0 %v14649_v1 }
 0x1c8   : > { %v610_v53 = vpop.permute.xlu1 %609 }
 0x1c9   : > { %10537 = vmatmul.mubr.msk.f32.gmra.mrb[14].mxu0 %vm650_vm3, %v946_v50  ;;  %620 = vst.msk [vmem:[#allocation3 + $0x38] sm:$0xff] %vm613_vm5, %v610_v53 }
 0x1ca   : > { %1053 = vmatprep.mubr.f32.mxu0 %v14649_v1 }
 0x1cc   : > { %v595_v52 = vpop.permute.xlu0 %594  ;;  %v600_v55 = vpop.permute.xlu1 %599 }
 0x1cd   : > { %10538 = vmatmul.mubr.msk.f32.gmra.mrb[16].mxu0 %vm650_vm3, %v948_v51  ;;  %614 = vst.msk [vmem:[#allocation3 + $0x8] sm:$0xff] %vm613_vm5, %v595_v52  ;;  %616 = vst.msk [vmem:[#allocation3 + $0x18] sm:$0xff] %vm613_vm5, %v600_v55 }
 0x1ce   : > { %2773 = vmatprep.mubr.f32.mxu0 %v14649_v1 }
 0x1d0   : > { %v605_v54 = vpop.permute.xlu0 %604  ;;  %v628_v15 = vld [vmem:[#allocation3 + $0x38] sm:$0xff]  ;;  %v12086_v43 = vpop.permute.xlu1 %1184 }
 0x1d1   : > { %618 = vst.msk [vmem:[#allocation3 + $0x28] sm:$0xff] %vm613_vm5, %v605_v54 }
 0x1d4   : > { %v622_v58 = vld [vmem:[#allocation3 + $0x8] sm:$0xff]  ;;  %v624_v62 = vld [vmem:[#allocation3 + $0x18] sm:$0xff] }
 0x1d8   : > { %v626_v6 = vld [vmem:[#allocation3 + $0x28] sm:$0xff] }
 0x27b   : > { %v889_v56 = vpop.f32.mrb[0].mxu1 }
 0x27c   : > { %v891_v57 = vpop.f32.mrb[1].mxu1 }
 0x280   : > { %v729_v59 = vpop.f32.mrb[0].mxu0 }
 0x281   : > { %v731_v60 = vpop.f32.mrb[1].mxu0  ;;  %v752_v25 = vadd.f32 %v729_v59, %v595_v52  ;;  %v1104_v59 = vadd.s32 2, %v1084_v41 }
 0x282   : > { %v753_v61 = vadd.f32 %v731_v60, %v622_v58  ;;  %v12107_v60 = vsel %vm1107_vm12, 1.0, %v14649_v1 }
 0x283   : > { %14747 = vst [vmem:[#allocation39_spill] sm:$0xff] %v12107_v60  ;;  %vm1106_vm2 = vcmp.lt.s32.totalorder %v1104_v59, 64 }
 0x284   : > { %761 = vst.msk [vmem:[#allocation3 + $0x8] sm:$0xff] %vm613_vm5, %v753_v61  ;;  %v735_v63 = vpop.f32.mrb[2].mxu0  ;;  %v12109_v61 = vpop.permute.xlu1 %1425 }
 0x285   : > { %v754_v0 = vadd.f32 %v735_v63, %v600_v55  ;;  %v737_v3 = vpop.f32.mrb[3].mxu0 }
 0x286   : > { %v755_v5 = vadd.f32 %v737_v3, %v624_v62 }
 0x287   : > { %v908_v7 = vadd.f32 %v889_v56, %v754_v0  ;;  %v895_v8 = vpop.f32.mrb[2].mxu1  ;;  %v1114_v0 = vadd.s32 3, %v1084_v41 }
 0x288   : > { %763 = vst.msk [vmem:[#allocation3 + $0x18] sm:$0xff] %vm613_vm5, %v755_v5  ;;  %v741_v9 = vpop.f32.mrb[4].mxu0  ;;  %v897_v10 = vpop.f32.mrb[3].mxu1 }
 0x289   : > { %v756_v11 = vadd.f32 %v741_v9, %v605_v54  ;;  %v743_v12 = vpop.f32.mrb[5].mxu0  ;;  %vm1116_vm4 = vcmp.lt.s32.totalorder %v1114_v0, 64 }
 0x28a   : > { %v757_v14 = vadd.f32 %v743_v12, %v626_v6  ;;  %v12123_v12 = vsel %vm1117_vm14, 1.0, %v14649_v1 }
 0x28b   : > { %v12069_v16 = vadd.f32 %v895_v8, %v756_v11  ;;  %v901_v17 = vpop.f32.mrb[4].mxu1  ;;  %v769_v2 = vld [vmem:[#allocation3 + $0x8] sm:$0xff]  ;;  %14748 = vst [vmem:[#allocation40_spill] sm:$0xff] %v12123_v12 }
 0x28c   : > { %765 = vst.msk [vmem:[#allocation3 + $0x28] sm:$0xff] %vm613_vm5, %v757_v14  ;;  %v747_v18 = vpop.f32.mrb[6].mxu0  ;;  %v903_v19 = vpop.f32.mrb[5].mxu1 }
 0x28d   : > { %v758_v21 = vadd.f32 %v747_v18, %v610_v53  ;;  %v749_v22 = vpop.f32.mrb[7].mxu0  ;;  %v1094_v53 = vadd.s32 1, %v1084_v41 }
 0x28e   : > { %v759_v24 = vadd.f32 %v749_v22, %v628_v15  ;;  %v12136_v22 = vsel %vm1106_vm2, 1.0, %v14649_v1 }
 0x28f   : > { %v771_v26 = vld [vmem:[#allocation3 + $0x18] sm:$0xff]  ;;  %v12074_v27 = vadd.f32 %v901_v17, %v758_v21  ;;  %vm1096_vm15 = vcmp.lt.s32.totalorder %v1094_v53, 64  ;;  %14751 = vst [vmem:[#allocation43_spill] sm:$0xff] %v12136_v22 }
 0x290   : > { %v909_v28 = vadd.f32 %v891_v57, %v771_v26  ;;  %767 = vst.msk [vmem:[#allocation3 + $0x38] sm:$0xff] %vm613_vm5, %v759_v24  ;;  %v883_v29 = vpop.f32.mrb[8].mxu0  ;;  %v12128_v15 = vsel %vm1096_vm15, 1.0, %v14649_v1  ;;  %v12142_v26 = vsel %vm1116_vm4, 1.0, %v14649_v1 }
 0x291   : > { %v906_v30 = vadd.f32 %v883_v29, %v752_v25  ;;  %v885_v31 = vpop.f32.mrb[9].mxu0  ;;  %14749 = vst [vmem:[#allocation41_spill] sm:$0xff] %v12128_v15  ;;  %14752 = vst [vmem:[#allocation44_spill] sm:$0xff] %v12142_v26 }
 0x292   : > { %917 = vst.msk [vmem:[#allocation3 + $0x18] sm:$0xff] %vm613_vm5, %v909_v28  ;;  %v907_v34 = vadd.f32 %v885_v31, %v769_v2 }
 0x293   : > { %v773_v35 = vld [vmem:[#allocation3 + $0x28] sm:$0xff] }
 0x294   : > { %915 = vst.msk [vmem:[#allocation3 + $0x8] sm:$0xff] %vm613_vm5, %v907_v34  ;;  %v911_v37 = vadd.f32 %v897_v10, %v773_v35  ;;  %v1037_v38 = vpop.f32.mrb[10].mxu0 }
 0x295   : > { %v1060_v39 = vadd.f32 %v1037_v38, %v906_v30  ;;  %v1039_v40 = vpop.f32.mrb[11].mxu0  ;;  %v14663_v38 = vmov 683565275  }
 0x296   : > { %919 = vst.msk [vmem:[#allocation3 + $0x28] sm:$0xff] %vm613_vm5, %v911_v37 }
 0x297   : > { %v12090_v44 = vmul.f32 %v12081_v36, %v1060_v39  ;;  %v775_v45 = vld [vmem:[#allocation3 + $0x38] sm:$0xff] }
 0x298   : > { %v913_v47 = vadd.f32 %v903_v19, %v775_v45  ;;  %v1043_v48 = vpop.f32.mrb[12].mxu0 }
 0x299   : > { %1127 = vst [vmem:[#allocation3] sm:$0xff] %v12090_v44  ;;  %v1062_v49 = vadd.f32 %v1043_v48, %v908_v7  ;;  %v925_v50 = vld [vmem:[#allocation3 + $0x18] sm:$0xff]  ;;  %v1045_v51 = vpop.f32.mrb[13].mxu0  ;;  %v12100_v52 = vmul.f32 %v12086_v43, %v12090_v44 }
 0x29a   : > { %921 = vst.msk [vmem:[#allocation3 + $0x38] sm:$0xff] %vm613_vm5, %v913_v47  ;;  %v1063_v54 = vadd.f32 %v1045_v51, %v925_v50  ;;  %v14653_v47 = vmov 2131351028   ;;  %v14657_v50 = vmov 2102212464  }
 0x29b   : > { %v923_v55 = vld [vmem:[#allocation3 + $0x8] sm:$0xff]  ;;  %v1131_v56 = vmul.f32 %v12093_v46, %v1062_v49  ;;  %v1189_v57 = vand.u32 2147483647, %v12100_v52  ;;  %v1192_v58 = vand.u32 2139095040, %v12100_v52  ;;  %vm1191_vm14 = vcmp.lt.s32.totalorder %v12100_v52, 0 }
 0x29c   : > { %v1061_v62 = vadd.f32 %v1039_v40, %v923_v55  ;;  %1071 = vst.msk [vmem:[#allocation3 + $0x18] sm:$0xff] %vm613_vm5, %v1063_v54  ;;  %v1049_v63 = vpop.f32.mrb[14].mxu0  ;;  %v14655_v40 = vmov 2475754826  }
 0x29d   : > { %1133 = vst [vmem:[#allocation3 + $0x10] sm:$0xff] %v1131_v56  ;;  %v1064_v3 = vadd.f32 %v1049_v63, %v12069_v16  ;;  %v927_v5 = vld [vmem:[#allocation3 + $0x28] sm:$0xff]  ;;  %v1051_v6 = vpop.f32.mrb[15].mxu0  ;;  %v1193_v7 = vshrl.u32 %v1192_v58, 23  ;;  %v12116_v8 = vmul.f32 %v12109_v61, %v1131_v56  ;;  %v1196_v4 = vand.u32 8388607, %v1189_v57 }
 0x29e   : > { %1069 = vst.msk [vmem:[#allocation3 + $0x8] sm:$0xff] %vm613_vm5, %v1061_v62  ;;  %v1065_v9 = vadd.f32 %v1051_v6, %v927_v5  ;;  %v14668_v54 = vmov 920167782   ;;  %v14666_v58 = vmov 1326507024  }
 0x29f   : > { %v1137_v10 = vmul.f32 %v12107_v60, %v1064_v3  ;;  %v10547_v11 = vadd.s32 4294967169, %v1193_v7  ;;  %v1433_v14 = vand.u32 2139095040, %v12116_v8  ;;  %v1197_v25 = vor.u32 8388608, %v1196_v4 }
 0x2a0   : > { %1073 = vst.msk [vmem:[#allocation3 + $0x28] sm:$0xff] %vm613_vm5, %v1065_v9  ;;  %v1055_v13 = vpop.f32.mrb[16].mxu0  ;;  %v1904_v9 = vpop.permute.xlu0 %1903 }
 0x2a1   : > { %1139 = vst [vmem:[#allocation3 + $0x20] sm:$0xff] %v1137_v10  ;;  %v1066_v16 = vadd.f32 %v1055_v13, %v12074_v27  ;;  %v929_v17 = vld [vmem:[#allocation3 + $0x38] sm:$0xff]  ;;  %v1057_v18 = vpop.f32.mrb[17].mxu0  ;;  %v1199_v19 = vadd.s32 1, %v10547_v11  ;;  %v1434_v29 = vshrl.u32 %v1433_v14, 23  ;;  %v12149_v35 = vshll.u32 %v1197_v25, 8 }
 0x2a2   : > { %v1067_v21 = vadd.f32 %v1057_v18, %v929_v17 }
 0x2a3   : > { %v1130_v23 = vld [vmem:[#allocation3 + $0x18] sm:$0xff]  ;;  %v12139_v24 = vmul.f32 %v12123_v12, %v1066_v16  ;;  %vm1200_vm6 = vcmp.gt.s32.totalorder %v1199_v19, 0  ;;  %v10555_v42 = vadd.s32 4294967169, %v1434_v29 }
 0x2a4   : > { %v1132_v27 = vmul.f32 %v12128_v15, %v1130_v23  ;;  %1075 = vst.msk [vmem:[#allocation3 + $0x38] sm:$0xff] %vm613_vm5, %v1067_v21  ;;  %v1201_v28 = vsel %vm1200_vm6, %v1199_v19, 0  ;;  %vm12243_vm6 = vcmp.le.f32.partialorder %v1189_v57, 0.7853982 }
 0x2a5   : > { %v1124_v30 = vld [vmem:[#allocation3 + $0x8] sm:$0xff]  ;;  %1145 = vst [vmem:[#allocation3 + $0x30] sm:$0xff] %v12139_v24  ;;  %v1203_v2 = vand.u32 31, %v1201_v28  ;;  %v1202_v33 = vshrl.u32 %v1201_v28, 5  ;;  %v12170_v17 = vmul.f32 %v1904_v9, %v12139_v24 }
 0x2a6   : > { %v1126_v31 = vmul.f32 %v12133_v20, %v1124_v30  ;;  %1134 = vst.msk [vmem:[#allocation3 + $0x18] sm:$0xff] %vm613_vm5, %v1132_v27 }
 0x2a7   : > { %v1136_v32 = vld [vmem:[#allocation3 + $0x28] sm:$0xff]  ;;  %v1204_v34 = vsub.s32 32, %v1203_v2  ;;  %v1206_v39 = vshll.u32 %v14663_v38, %v1203_v2  ;;  %v1209_v41 = vshll.u32 %v14655_v40, %v1203_v2  ;;  %v1212_v49 = vshll.u32 %v14653_v47, %v1203_v2 }
 0x2a8   : > { %1128 = vst.msk [vmem:[#allocation3 + $0x8] sm:$0xff] %vm613_vm5, %v1126_v31  ;;  %v1138_v37 = vmul.f32 %v12136_v22, %v1136_v32  ;;  %v1215_v53 = vshll.u32 %v14657_v50, %v1203_v2  ;;  %v1218_v56 = vshll.u32 %v14668_v54, %v1203_v2  ;;  %vm1221_vm7 = vcmp.lt.s32.totalorder %v1202_v33, 1 }
 0x2a9   : > { %v1207_v45 = vshrl.u32 %v14655_v40, %v1204_v34  ;;  %v1210_v48 = vshrl.u32 %v14653_v47, %v1204_v34  ;;  %v1213_v51 = vshrl.u32 %v14657_v50, %v1204_v34  ;;  %v1216_v55 = vshrl.u32 %v14668_v54, %v1204_v34 }
 0x2aa   : > { %1140 = vst.msk [vmem:[#allocation3 + $0x28] sm:$0xff] %vm613_vm5, %v1138_v37  ;;  %v1219_v59 = vshrl.u32 %v14666_v58, %v1204_v34  ;;  %vm1224_vm8 = vcmp.lt.s32.totalorder %v1202_v33, 4  ;;  %v1205_v10 = vshrl.u32 %v14663_v38, %v1204_v34  ;;  %vm1223_vm9 = vcmp.lt.s32.totalorder %v1202_v33, 3 }
 0x2ab   : > { %v1142_v62 = vld [vmem:[#allocation3 + $0x38] sm:$0xff]  ;;  %v1208_v63 = vor.u32 %v1207_v45, %v1206_v39  ;;  %v1211_v0 = vor.u32 %v1210_v48, %v1209_v41  ;;  %v1214_v3 = vor.u32 %v1213_v51, %v1212_v49  ;;  %v1217_v6 = vor.u32 %v1216_v55, %v1215_v53 }
 0x2ac   : > { %v1144_v5 = vmul.f32 %v12142_v26, %v1142_v62  ;;  %v1220_v7 = vor.u32 %v1219_v59, %v1218_v56  ;;  %vm1222_vm10 = vcmp.lt.s32.totalorder %v1202_v33, 2  ;;  %v1908_v37 = vand.u32 2147483647, %v12170_v17 }
 0x2ad   : > { %v1226_v11 = vsel %vm1224_vm8, %v1214_v3, 2102212464  ;;  %v1229_v4 = vsel %vm1221_vm7, %v1208_v63, %v1211_v0  ;;  %v1233_v13 = vsel %vm1221_vm7, %v1211_v0, %v1214_v3  ;;  %v1230_v14 = vsel %vm1224_vm8, %v1217_v6, 920167782 }
 0x2ae   : > { %1146 = vst.msk [vmem:[#allocation3 + $0x38] sm:$0xff] %vm613_vm5, %v1144_v5  ;;  %v1234_v16 = vsel %vm1224_vm8, %v1220_v7, 1326507024  ;;  %v1225_v18 = vsel %vm1221_vm7, %v1205_v10, %v1208_v63  ;;  %v1231_v19 = vsel %vm1223_vm9, %v1214_v3, %v1230_v14  ;;  %v1227_v25 = vsel %vm1223_vm9, %v1211_v0, %v1226_v11 }
 0x2af   : > { %v1235_v21 = vsel %vm1223_vm9, %v1217_v6, %v1234_v16  ;;  %v12173_v23 = vld [vmem:[#allocation3 + $0x8] sm:$0xff]  ;;  %v1232_v27 = vsel %vm1222_vm10, %v1229_v4, %v1231_v19  ;;  %v1228_v39 = vsel %vm1222_vm10, %v1225_v18, %v1227_v25  ;;  %v1911_v41 = vand.u32 2139095040, %v12170_v17 }
 0x2b0   : > { %v1236_v28 = vsel %vm1222_vm10, %v1233_v13, %v1235_v21  ;;  %v12177_v29 = vmul.f32 %v12086_v43, %v12173_v23  ;;  %v12184_v31 = vmul.u32.u64.low %v12149_v35, %v1232_v27  ;;  %v12185_v32 = vmul.u32.u64.high %v12149_v35, %v1232_v27, %v12184_v31 }
 0x2b1   : > { %v12180_v30 = vmul.u32.u64.low %v12149_v35, %v1236_v28  ;;  %v12181_v2 = vmul.u32.u64.high %v12149_v35, %v1236_v28, %v12180_v30  ;;  %v1440_v45 = vadd.s32 1, %v10555_v42  ;;  %v14651_v48 = vand.u32 2147483647, %v12116_v8 }
 0x2b2   : > { %v1293_v33 = vand.u32 2147483647, %v12177_v29  ;;  %v1296_v34 = vand.u32 2139095040, %v12177_v29  ;;  %v1247_v49 = vadd.s32 1, %v12185_v32  ;;  %v1912_v53 = vshrl.u32 %v1911_v41, 23 }
 0x2b3   : > { %vm1246_vm5 = vc.u32 %v12181_v2, %v12184_v31  ;;  %v1244_v56 = vmul.u32 %v12149_v35, %v1228_v39  ;;  %v1915_v62 = vand.u32 8388607, %v1908_v37  ;;  %vm1441_vm11 = vcmp.gt.s32.totalorder %v1440_v45, 0 }
 0x2b4   : > { %v1297_v43 = vshrl.u32 %v1296_v34, 23  ;;  %v1300_v51 = vand.u32 8388607, %v1293_v33  ;;  %v1248_v42 = vsel %vm1246_vm5, %v1247_v49, %v12185_v32  ;;  %v10571_v63 = vadd.s32 4294967169, %v1912_v53 }
 0x2b5   : > { %v1900_v55 = vld [vmem:[#allocation3 + $0x38] sm:$0xff]  ;;  %v1249_v3 = vadd.s32 %v1248_v42, %v1244_v56  ;;  %v12204_v10 = vand.u32 8388607, %v14651_v48  ;;  %v1916_v35 = vor.u32 8388608, %v1915_v62  ;;  %v12206_v4 = vsel %vm1441_vm11, %v1440_v45, 0 }
 0x2b6   : > { %v10551_v59 = vadd.s32 4294967169, %v1297_v43  ;;  %v12200_v0 = vmul.f32 %v1904_v9, %v1900_v55  ;;  %v1301_v6 = vor.u32 8388608, %v1300_v51  ;;  %v1918_v7 = vadd.s32 1, %v10571_v63 }
 0x2b7   : > { %v1250_v11 = vadd.s32 536870912, %v1249_v3  ;;  %v12210_v19 = vadd.s32 %v12184_v31, %v12181_v2  ;;  %v1438_v25 = vor.u32 8388608, %v12204_v10  ;;  %v12216_v27 = vand.u32 31, %v12206_v4 }
 0x2b8   : > { %v1303_v5 = vadd.s32 1, %v10551_v59  ;;  %vm1919_vm13 = vcmp.gt.s32.totalorder %v1918_v7, 0  ;;  %v2015_v14 = vand.u32 2139095040, %v12200_v0  ;;  %v12212_v21 = vshll.u32 %v1301_v6, 8 }
 0x2b9   : > { %v1251_v9 = vshrl.u32 %v1250_v11, 30  ;;  %v1920_v18 = vsel %vm1919_vm13, %v1918_v7, 0  ;;  %v12218_v32 = vshll.u32 %v1916_v35, 8  ;;  %v14652_v34 = vand.u32 2147483647, %v12200_v0 }
 0x2ba   : > { %vm1304_vm12 = vcmp.gt.s32.totalorder %v1303_v5, 0  ;;  %v12222_v45 = vshrl.u32 %v1920_v18, 5  ;;  %v2016_v2 = vshrl.u32 %v2015_v14, 23  ;;  %v1922_v11 = vand.u32 31, %v1920_v18 }
 0x2bb   : > { %v1305_v13 = vsel %vm1304_vm12, %v1303_v5, 0  ;;  %v1252_v28 = vshll.u32 %v1251_v9, 30  ;;  %v1275_v1 = vsub.s32 4, %v1251_v9  ;;  %vm1295_vm9 = vcmp.lt.s32.totalorder %v12177_v29, 0 }
 0x2bc   : > { %v1307_v16 = vand.u32 31, %v1305_v13  ;;  %v1306_v39 = vshrl.u32 %v1305_v13, 5  ;;  %vm12287_vm10 = vcmp.le.f32.partialorder %v1293_v33, 0.7853982  ;;  %vm1940_vm5 = vcmp.lt.s32.totalorder %v12222_v45, 1 }
 0x2bd   : > { %v12224_v31 = vsub.s32 %v1249_v3, %v1252_v28  ;;  %v12239_v28 = vadd.s32 4294967169, %v2016_v2  ;;  %vm1941_vm11 = vcmp.lt.s32.totalorder %v12222_v45, 2  ;;  %vm1943_vm12 = vcmp.lt.s32.totalorder %v12222_v45, 4 }
 0x2be   : > { %v1308_v30 = vsub.s32 32, %v1307_v16  ;;  %v1310_v41 = vshll.u32 %v14663_v38, %v1307_v16  ;;  %v1313_v49 = vshll.u32 %v14655_v40, %v1307_v16  ;;  %v1316_v51 = vshll.u32 %v14653_v47, %v1307_v16 }
 0x2bf   : > { %v1319_v56 = vshll.u32 %v14657_v50, %v1307_v16  ;;  %v1255_v62 = vsub.s32 0, %v12224_v31  ;;  %v1322_v63 = vshll.u32 %v14668_v54, %v1307_v16  ;;  %vm1325_vm15 = vcmp.lt.s32.totalorder %v1306_v39, 1 }
 0x2c0   : > { %v1311_v43 = vshrl.u32 %v14655_v40, %v1308_v30  ;;  %v1314_v53 = vshrl.u32 %v14653_v47, %v1308_v30  ;;  %v1317_v55 = vshrl.u32 %v14657_v50, %v1308_v30  ;;  %v1320_v59 = vshrl.u32 %v14668_v54, %v1308_v30 }
 0x2c1   : > { %v1323_v3 = vshrl.u32 %v14666_v58, %v1308_v30  ;;  %v10548_v35 = vmin.u32 %v1255_v62, %v12224_v31  ;;  %v1309_v13 = vshrl.u32 %v14663_v38, %v1308_v30  ;;  %vm1326_vm0 = vcmp.lt.s32.totalorder %v1306_v39, 2 }
 0x2c2   : > { %v1312_v42 = vor.u32 %v1311_v43, %v1310_v41  ;;  %v1315_v5 = vor.u32 %v1314_v53, %v1313_v49  ;;  %v1318_v6 = vor.u32 %v1317_v55, %v1316_v51  ;;  %v1321_v7 = vor.u32 %v1320_v59, %v1319_v56 }
 0x2c3   : > { %v1324_v14 = vor.u32 %v1323_v3, %v1322_v63  ;;  %vm1327_vm2 = vcmp.lt.s32.totalorder %v1306_v39, 3  ;;  %v1257_v41 = vclz %v10548_v35  ;;  %vm1328_vm4 = vcmp.lt.s32.totalorder %v1306_v39, 4 }
 0x2c4   : > { %v1329_v16 = vsel %vm1325_vm15, %v1309_v13, %v1312_v42  ;;  %v1333_v43 = vsel %vm1325_vm15, %v1312_v42, %v1315_v5  ;;  %v1330_v48 = vsel %vm1328_vm4, %v1318_v6, 2102212464  ;;  %v1334_v49 = vsel %vm1328_vm4, %v1321_v7, 920167782 }
 0x2c5   : > { %v1337_v51 = vsel %vm1325_vm15, %v1315_v5, %v1318_v6  ;;  %v1338_v53 = vsel %vm1328_vm4, %v1324_v14, 1326507024  ;;  %v10549_v18 = vadd.s32 4294967294, %v1257_v41  ;;  %v1331_v55 = vsel %vm1327_vm2, %v1315_v5, %v1330_v48 }
 0x2c6   : > { %v1335_v56 = vsel %vm1327_vm2, %v1318_v6, %v1334_v49  ;;  %v1339_v59 = vsel %vm1327_vm2, %v1321_v7, %v1338_v53  ;;  %v1332_v2 = vsel %vm1326_vm0, %v1329_v16, %v1331_v55  ;;  %v1923_v63 = vsub.s32 32, %v1922_v11 }
 0x2c7   : > { %v1336_v62 = vsel %vm1326_vm0, %v1333_v43, %v1335_v56  ;;  %v1340_v42 = vsel %vm1326_vm0, %v1337_v51, %v1339_v59  ;;  %vm10550_vm7 = vcmp.lt.s32.totalorder %v10549_v18, 0  ;;  %v12256_v48 = vand.u32 8388607, %v14652_v34 }
 0x2c8   : > { %v12251_v3 = vmul.u32.u64.low %v12212_v21, %v1340_v42  ;;  %v12252_v35 = vmul.u32.u64.high %v12212_v21, %v1340_v42, %v12251_v3  ;;  %v1260_v57 = vsel %vm10550_vm7, 0, %v10549_v18  ;;  %v1276_v5 = vsel %vm1191_vm14, %v1275_v1, %v1251_v9 }
 0x2c9   : > { %v12261_v6 = vmul.u32.u64.low %v12212_v21, %v1336_v62  ;;  %v12262_v7 = vmul.u32.u64.high %v12212_v21, %v1336_v62, %v12261_v6  ;;  %v1261_v39 = vsub.s32 32, %v1260_v57  ;;  %v1262_v13 = vshll.u32 %v12224_v31, %v1260_v57 }
 0x2ca   : > { %v1265_v14 = vsub.s32 4294967266, %v1260_v57  ;;  %v1348_v41 = vmul.u32 %v12212_v21, %v1332_v2  ;;  %v1925_v16 = vshll.u32 %v14663_v38, %v1922_v11  ;;  %v1926_v43 = vshrl.u32 %v14655_v40, %v1923_v63 }
 0x2cb   : > { %v1928_v49 = vshll.u32 %v14655_v40, %v1922_v11  ;;  %v1929_v51 = vshrl.u32 %v14653_v47, %v1923_v63  ;;  %v1263_v1 = vshrl.u32 %v12210_v19, %v1261_v39  ;;  %vm1350_vm8 = vc.u32 %v12252_v35, %v12261_v6 }
 0x2cc   : > { %v1266_v9 = vadd.s32 127, %v1265_v14  ;;  %v1931_v53 = vshll.u32 %v14653_v47, %v1922_v11  ;;  %v1351_v31 = vadd.s32 1, %v12262_v7  ;;  %v1927_v18 = vor.u32 %v1926_v43, %v1925_v16 }
 0x2cd   : > { %v1930_v21 = vor.u32 %v1929_v51, %v1928_v49  ;;  %v1932_v55 = vshrl.u32 %v14657_v50, %v1923_v63  ;;  %v1264_v56 = vor.u32 %v1263_v1, %v1262_v13  ;;  %v1934_v2 = vshll.u32 %v14657_v50, %v1922_v11 }
 0x2ce   : > { %v1267_v59 = vshll.u32 %v1266_v9, 23  ;;  %v1935_v62 = vshrl.u32 %v14668_v54, %v1923_v63  ;;  %v1352_v19 = vsel %vm1350_vm8, %v1351_v31, %v12262_v7  ;;  %v1937_v3 = vshll.u32 %v14668_v54, %v1922_v11 }
 0x2cf   : > { %v1933_v42 = vor.u32 %v1932_v55, %v1931_v53  ;;  %v1938_v57 = vshrl.u32 %v14666_v58, %v1923_v63  ;;  %v1278_v14 = vsel %vm12243_vm6, 0, %v1276_v5  ;;  %v1353_v16 = vadd.s32 %v1352_v19, %v1348_v41 }
 0x2d0   : > { %v1268_v39 = vor.u32 4788187, %v1267_v59  ;;  %v1936_v13 = vor.u32 %v1935_v62, %v1934_v2  ;;  %v1271_v43 = vcvt.s32.f32 %v1264_v56  ;;  %v1924_v7 = vshrl.u32 %v14663_v38, %v1923_v63 }
 0x2d1   : > { %v1939_v51 = vor.u32 %v1938_v57, %v1937_v3  ;;  %v1354_v1 = vadd.s32 536870912, %v1353_v16  ;;  %vm1942_vm13 = vcmp.lt.s32.totalorder %v12222_v45, 3  ;;  %v1945_v5 = vsel %vm1943_vm12, %v1933_v42, 2102212464 }
 0x2d2   : > { %v1269_v11 = vand.u32 2147483647, %v1268_v39  ;;  %v1948_v41 = vsel %vm1940_vm5, %v1927_v18, %v1930_v21  ;;  %v1949_v9 = vsel %vm1943_vm12, %v1936_v13, 920167782  ;;  %v1952_v63 = vsel %vm1940_vm5, %v1930_v21, %v1933_v42 }
 0x2d3   : > { %v1355_v53 = vshrl.u32 %v1354_v1, 30  ;;  %v1950_v31 = vsel %vm1942_vm13, %v1933_v42, %v1949_v9  ;;  %v1282_v55 = vadd.s32 3, %v1278_v14  ;;  %v1944_v56 = vsel %vm1940_vm5, %v1924_v7, %v1927_v18 }
 0x2d4   : > { %v1272_v33 = vmul.f32 %v1271_v43, %v1269_v11  ;;  %v1951_v59 = vsel %vm1941_vm11, %v1948_v41, %v1950_v31  ;;  %v1953_v2 = vsel %vm1943_vm12, %v1939_v51, 1326507024  ;;  %v1946_v39 = vsel %vm1942_vm13, %v1930_v21, %v1945_v5 }
 0x2d5   : > { %v1356_v19 = vshll.u32 %v1355_v53, 30  ;;  %v1379_v3 = vsub.s32 4, %v1355_v53  ;;  %v1954_v57 = vsel %vm1942_vm13, %v1936_v13, %v1953_v2  ;;  %v2022_v13 = vadd.s32 1, %v12239_v28 }
 0x2d6   : > { %v1273_v62 = vxor.u32 2147483648, %v1272_v33  ;;  %v1955_v43 = vsel %vm1941_vm11, %v1952_v63, %v1954_v57  ;;  %v12307_v42 = vmul.u32.u64.low %v12218_v32, %v1951_v59  ;;  %v12308_v14 = vmul.u32.u64.high %v12218_v32, %v1951_v59, %v12307_v42 }
 0x2d7   : > { %v12313_v7 = vsub.s32 %v1353_v16, %v1356_v19  ;;  %v1380_v51 = vsel %vm1295_vm9, %v1379_v3, %v1355_v53  ;;  %v12321_v11 = vand.u32 3, %v1282_v55  ;;  %v1947_v28 = vsel %vm1941_vm11, %v1944_v56, %v1946_v39 }
 0x2d8   : > { %v1274_v18 = vsel %vm1191_vm14, %v1273_v62, %v1272_v33  ;;  %v12324_v1 = vmul.u32.u64.low %v12218_v32, %v1955_v43  ;;  %v12325_v5 = vmul.u32.u64.high %v12218_v32, %v1955_v43, %v12324_v1  ;;  %v1382_v16 = vsel %vm12287_vm10, 0, %v1380_v51 }
 0x2d9   : > { %v1277_v21 = vsel %vm12243_vm6, %v12100_v52, %v1274_v18  ;;  %v1359_v41 = vsub.s32 0, %v12313_v7  ;;  %vm2023_vm14 = vcmp.gt.s32.totalorder %v2022_v13, 0  ;;  %v1966_v30 = vadd.s32 1, %v12308_v14 }
 0x2da   : > { %11076 = vcosq.f32 %v1277_v21  ;;  %v2024_v9 = vsel %vm2023_vm14, %v2022_v13, 0  ;;  %v1386_v31 = vadd.s32 3, %v1382_v16  ;;  %vm1965_vm15 = vc.u32 %v12325_v5, %v12307_v42 }
 0x2db   : > { %11078 = vsinq.f32 %v1277_v21  ;;  %v10552_v33 = vmin.u32 %v1359_v41, %v12313_v7  ;;  %v2026_v53 = vand.u32 31, %v2024_v9  ;;  %v2020_v63 = vor.u32 8388608, %v12256_v48 }
 0x2dc   : > { %v1963_v59 = vmul.u32 %v12218_v32, %v1947_v28  ;;  %v12339_v2 = vshrl.u32 %v12206_v4, 5  ;;  %v12343_v45 = vshll.u32 %v1438_v25, 8  ;;  %vm1285_vm0 = vcmp.eq.s32.totalorder %v12321_v11, 0 }
 0x2dd   : > { %v1361_v55 = vclz %v10552_v33  ;;  %v1967_v56 = vsel %vm1965_vm15, %v1966_v30, %v12308_v14  ;;  %v2027_v62 = vsub.s32 32, %v2026_v53  ;;  %v12348_v19 = vsub.s32 32, %v12216_v27 }
 0x2de   : > { %vm1284_vm2 = vcmp.lt.s32.totalorder %v12321_v11, 2  ;;  %vm1288_vm4 = vcmp.eq.s32.totalorder %v12321_v11, 2  ;;  %v1349_v4 = vadd.s32 %v12261_v6, %v12252_v35  ;;  %v1968_v48 = vadd.s32 %v1967_v56, %v1963_v59  ;;  %v12387_v11 = vpop.permute.xlu1 %1401 }
 0x2df   : > { %v10553_v32 = vadd.s32 4294967294, %v1361_v55  ;;  %vm1281_vm6 = vweird.f32 %v12100_v52  ;;  %v12355_v10 = vand.u32 3, %v1386_v31  ;;  %v12357_v25 = vshrl.u32 %v2024_v9, 5 }
 0x2e0   : > { %v2029_v3 = vshll.u32 %v14663_v38, %v2026_v53  ;;  %v12360_v57 = vshll.u32 %v2020_v63, 8  ;;  %v1969_v39 = vadd.s32 536870912, %v1968_v48  ;;  %v2032_v43 = vshll.u32 %v14655_v40, %v2026_v53 }
 0x2e1   : > { %vm10554_vm7 = vcmp.lt.s32.totalorder %v10553_v32, 0  ;;  %v2035_v14 = vshll.u32 %v14653_v47, %v2026_v53  ;;  %v2028_v35 = vshrl.u32 %v14663_v38, %v2027_v62  ;;  %v2030_v6 = vshrl.u32 %v14655_v40, %v2027_v62 }
 0x2e2   : > { %v1364_v18 = vsel %vm10554_vm7, 0, %v10553_v32  ;;  %v2038_v51 = vshll.u32 %v14657_v50, %v2026_v53  ;;  %v1970_v41 = vshrl.u32 %v1969_v39, 30  ;;  %v2033_v16 = vshrl.u32 %v14653_v47, %v2027_v62 }
 0x2e3   : > { %v1365_v21 = vsub.s32 32, %v1364_v18  ;;  %v1369_v1 = vsub.s32 4294967266, %v1364_v18  ;;  %v1366_v9 = vshll.u32 %v12313_v7, %v1364_v18  ;;  %v2036_v33 = vshrl.u32 %v14657_v50, %v2027_v62 }
 0x2e4   : > { %v11077_v13 = vpop.eup %11076  ;;  %v2039_v31 = vshrl.u32 %v14668_v54, %v2027_v62  ;;  %v1971_v56 = vshll.u32 %v1970_v41, 30  ;;  %v2031_v34 = vor.u32 %v2030_v6, %v2029_v3  ;;  %v2041_v39 = vshll.u32 %v14668_v54, %v2026_v53 }
 0x2e5   : > { %v11079_v28 = vpop.eup %11078  ;;  %v1289_v30 = vxor.u32 2147483648, %v11077_v13  ;;  %v1367_v55 = vshrl.u32 %v1349_v4, %v1365_v21  ;;  %v1370_v59 = vadd.s32 127, %v1369_v1  ;;  %v2042_v47 = vshrl.u32 %v14666_v58, %v2027_v62 }
 0x2e6   : > { %v1286_v63 = vxor.u32 2147483648, %v11079_v28  ;;  %v12377_v50 = vsub.s32 %v1968_v48, %v1971_v56  ;;  %vm1910_vm8 = vcmp.lt.s32.totalorder %v12170_v17, 0  ;;  %v2034_v21 = vor.u32 %v2033_v16, %v2032_v43 }
 0x2e7   : > { %v1290_v32 = vsel %vm1288_vm4, %v1289_v30, %v11079_v28  ;;  %v1368_v7 = vor.u32 %v1367_v55, %v1366_v9  ;;  %v1371_v18 = vshll.u32 %v1370_v59, 23  ;;  %v2037_v1 = vor.u32 %v2036_v33, %v2035_v14 }
 0x2e8   : > { %v1287_v40 = vsel %vm1285_vm0, %v11077_v13, %v1286_v63  ;;  %v2040_v28 = vor.u32 %v2039_v31, %v2038_v51  ;;  %v1974_v62 = vsub.s32 0, %v12377_v50  ;;  %vm2044_vm5 = vcmp.lt.s32.totalorder %v12357_v25, 1 }
 0x2e9   : > { %v1291_v4 = vsel %vm1284_vm2, %v1287_v40, %v1290_v32  ;;  %v1372_v3 = vor.u32 4788187, %v1371_v18  ;;  %v1994_v13 = vsub.s32 4, %v1970_v41  ;;  %v2043_v48 = vor.u32 %v2042_v47, %v2041_v39 }
 0x2ea   : > { %v1292_v53 = vsel %vm1281_vm6, nan, %v1291_v4  ;;  %vm2045_vm11 = vcmp.lt.s32.totalorder %v12357_v25, 2  ;;  %v1375_v30 = vcvt.s32.f32 %v1368_v7  ;;  %v10572_v43 = vmin.u32 %v1974_v62, %v12377_v50 }
 0x2eb   : > { %v1397_v6 = vmul.f32 %v1292_v53, %v1292_v53  ;;  %v1373_v40 = vand.u32 2147483647, %v1372_v3  ;;  %vm2047_vm12 = vcmp.lt.s32.totalorder %v12357_v25, 4  ;;  %vm12394_vm13 = vcmp.le.f32.partialorder %v1908_v37, 0.7853982 }
 0x2ec   : > { %vm2046_vm14 = vcmp.lt.s32.totalorder %v12357_v25, 3  ;;  %v2052_v47 = vsel %vm2044_vm5, %v2031_v34, %v2034_v21  ;;  %v2053_v51 = vsel %vm2047_vm12, %v2040_v28, 920167782  ;;  %v1976_v9 = vclz %v10572_v43 }
 0x2ed   : > { %v1404_v52 = vmul.f32 %v12387_v11, %v1397_v6  ;;  %v1376_v16 = vmul.f32 %v1375_v30, %v1373_v40  ;;  %v2049_v33 = vsel %vm2047_vm12, %v2037_v1, 2102212464  ;;  %v2054_v31 = vsel %vm2046_vm14, %v2037_v1, %v2053_v51 }
 0x2ee   : > { %v2055_v37 = vsel %vm2045_vm11, %v2052_v47, %v2054_v31  ;;  %v2056_v55 = vsel %vm2044_vm5, %v2034_v21, %v2037_v1  ;;  %v2057_v59 = vsel %vm2047_vm12, %v2043_v48, 1326507024  ;;  %v1964_v32 = vadd.s32 %v12307_v42, %v12325_v5 }
 0x2ef   : > { %v1406_v63 = vadd.f32 %v1404_v52, %v12090_v44  ;;  %v1377_v56 = vxor.u32 2147483648, %v1376_v16  ;;  %v10573_v39 = vadd.s32 4294967294, %v1976_v9  ;;  %v2048_v7 = vsel %vm2044_vm5, %v2028_v35, %v2031_v34 }
 0x2f0   : > { %v2050_v44 = vsel %vm2046_vm14, %v2034_v21, %v2049_v33  ;;  %v2058_v18 = vsel %vm2046_vm14, %v2040_v28, %v2057_v59  ;;  %v12418_v4 = vmul.u32.u64.low %v12360_v57, %v2055_v37  ;;  %v12419_v1 = vmul.u32.u64.high %v12360_v57, %v2055_v37, %v12418_v4 }
 0x2f1   : > { %1410 = vrot.lane.b32.xlu1 %v1406_v63, %s11527_s23  ;;  %v1378_v42 = vsel %vm1295_vm9, %v1377_v56, %v1376_v16  ;;  %vm10574_vm15 = vcmp.lt.s32.totalorder %v10573_v39, 0  ;;  %v1995_v34 = vsel %vm1910_vm8, %v1994_v13, %v1970_v41  ;;  %v2059_v5 = vsel %vm2045_vm11, %v2056_v55, %v2058_v18 }
 0x2f2   : > { %v1381_v35 = vsel %vm12287_vm10, %v12177_v29, %v1378_v42  ;;  %v1979_v21 = vsel %vm10574_vm15, 0, %v10573_v39  ;;  %v12432_v28 = vmul.u32.u64.low %v12360_v57, %v2059_v5  ;;  %v12433_v53 = vmul.u32.u64.high %v12360_v57, %v2059_v5, %v12432_v28 }
 0x2f3   : > { %11080 = vcosq.f32 %v1381_v35  ;;  %v1980_v3 = vsub.s32 32, %v1979_v21  ;;  %v1984_v62 = vsub.s32 4294967266, %v1979_v21  ;;  %v2051_v6 = vsel %vm2045_vm11, %v2048_v7, %v2050_v44 }
 0x2f4   : > { %11082 = vsinq.f32 %v1381_v35  ;;  %v2070_v41 = vadd.s32 1, %v12419_v1  ;;  %v12440_v13 = vshrl.u32 %v14663_v38, %v12348_v19  ;;  %v1447_v49 = vshll.u32 %v14663_v38, %v12216_v27 }
 0x2f5   : > { %v1981_v48 = vshll.u32 %v12377_v50, %v1979_v21  ;;  %v1982_v40 = vshrl.u32 %v1964_v32, %v1980_v3  ;;  %v1985_v30 = vadd.s32 127, %v1984_v62  ;;  %v1997_v43 = vsel %vm12394_vm13, 0, %v1995_v34 }
 0x2f6   : > { %v2067_v25 = vmul.u32 %v12360_v57, %v2051_v6  ;;  %vm2069_vm9 = vc.u32 %v12433_v53, %v12418_v4  ;;  %v14759_v52 = vmov 2475754826   ;;  %v14760_v51 = vmov 2131351028  }
 0x2f7   : > { %v1448_v47 = vshrl.u32 %v14759_v52, %v12348_v19  ;;  %v1451_v16 = vshrl.u32 %v14760_v51, %v12348_v19  ;;  %v1983_v9 = vor.u32 %v1982_v40, %v1981_v48  ;;  %v1986_v33 = vshll.u32 %v1985_v30, 23 }
 0x2f8   : > { %v2071_v50 = vsel %vm2069_vm9, %v2070_v41, %v12419_v1  ;;  %v14761_v31 = vmov 2102212464   ;;  %v1450_v57 = vshll.u32 %v14759_v52, %v12216_v27  ;;  %v1457_v59 = vshrl.u32 %v14668_v54, %v12348_v19 }
 0x2f9   : > { %v1454_v63 = vshrl.u32 %v14761_v31, %v12348_v19  ;;  %v2072_v37 = vadd.s32 %v2071_v50, %v2067_v25  ;;  %v1456_v55 = vshll.u32 %v14761_v31, %v12216_v27  ;;  %vm1388_vm10 = vcmp.lt.s32.totalorder %v12355_v10, 2 }
 0x2fa   : > { %v1987_v56 = vor.u32 4788187, %v1986_v33  ;;  %v1453_v32 = vshll.u32 %v14760_v51, %v12216_v27  ;;  %v1459_v39 = vshll.u32 %v14668_v54, %v12216_v27  ;;  %v1460_v7 = vshrl.u32 %v14666_v58, %v12348_v19 }
 0x2fb   : > { %vm1385_vm0 = vweird.f32 %v12177_v29  ;;  %v2073_v44 = vadd.s32 536870912, %v2072_v37  ;;  %v1449_v18 = vor.u32 %v1448_v47, %v1447_v49  ;;  %v1452_v1 = vor.u32 %v1451_v16, %v1450_v57 }
 0x2fc   : > { %v1458_v42 = vor.u32 %v1457_v59, %v1456_v55  ;;  %v1988_v34 = vand.u32 2147483647, %v1987_v56  ;;  %v1990_v5 = vcvt.s32.f32 %v1983_v9  ;;  %v1455_v35 = vor.u32 %v1454_v63, %v1453_v32 }
 0x2fd   : > { %v1461_v21 = vor.u32 %v1460_v7, %v1459_v39  ;;  %vm1389_vm2 = vcmp.eq.s32.totalorder %v12355_v10, 0  ;;  %vm1392_vm4 = vcmp.eq.s32.totalorder %v12355_v10, 2  ;;  %v2074_v28 = vshrl.u32 %v2073_v44, 30  ;;  %v11081_v27 = vpop.eup %11080 }
 0x2fe   : > { %vm1465_vm6 = vcmp.lt.s32.totalorder %v12339_v2, 4  ;;  %v1991_v3 = vmul.f32 %v1990_v5, %v1988_v34  ;;  %v2001_v19 = vadd.s32 3, %v1997_v43  ;;  %vm1462_vm7 = vcmp.lt.s32.totalorder %v12339_v2, 1  ;;  %v11083_v6 = vpop.eup %11082 }
 0x2ff   : > { %v1471_v62 = vsel %vm1465_vm6, %v1458_v42, 920167782  ;;  %v1393_v41 = vxor.u32 2147483648, %v11081_v27  ;;  %v2075_v49 = vshll.u32 %v2074_v28, 30  ;;  %vm1464_vm5 = vcmp.lt.s32.totalorder %v12339_v2, 3 }
 0x300   : > { %v1470_v48 = vsel %vm1462_vm7, %v1449_v18, %v1452_v1  ;;  %v1390_v40 = vxor.u32 2147483648, %v11083_v6  ;;  %v1992_v30 = vxor.u32 2147483648, %v1991_v3  ;;  %v1472_v25 = vsel %vm1464_vm5, %v1455_v35, %v1471_v62 }
 0x301   : > { %v1475_v43 = vsel %vm1465_vm6, %v1461_v21, 1326507024  ;;  %v1394_v47 = vsel %vm1392_vm4, %v1393_v41, %v11083_v6  ;;  %v12486_v16 = vsub.s32 %v2072_v37, %v2075_v49  ;;  %vm1463_vm11 = vcmp.lt.s32.totalorder %v12339_v2, 2 }
 0x302   : > { %v1474_v9 = vsel %vm1462_vm7, %v1452_v1, %v1455_v35  ;;  %v1391_v33 = vsel %vm1389_vm2, %v11081_v27, %v1390_v40  ;;  %v1993_v50 = vsel %vm1910_vm8, %v1992_v30, %v1991_v3  ;;  %v1467_v63 = vsel %vm1465_vm6, %v1455_v35, 2102212464 }
 0x303   : > { %v1476_v57 = vsel %vm1464_vm5, %v1458_v42, %v1475_v43  ;;  %v1395_v37 = vsel %vm1388_vm10, %v1391_v33, %v1394_v47  ;;  %v1996_v55 = vsel %vm12394_vm13, %v12170_v17, %v1993_v50  ;;  %v2078_v59 = vsub.s32 0, %v12486_v16  ;;  %v12517_v42 = vld [vmem:[#allocation3 + $0x18] sm:$0xff]  ;;  %v12556_v47 = vld [vmem:[#allocation3 + $0x20] sm:$0xff] }
 0x304   : > { %v1473_v56 = vsel %vm1463_vm11, %v1470_v48, %v1472_v25  ;;  %v1396_v32 = vsel %vm1385_vm0, nan, %v1395_v37  ;;  %11084 = vcosq.f32 %v1996_v55  ;;  %v1466_v39 = vsel %vm1462_vm7, %v12440_v13, %v1449_v18  ;;  %v12563_v37 = vpop.permute.xlu0 %1664 }
 0x305   : > { %v1477_v10 = vsel %vm1463_vm11, %v1474_v9, %v1476_v57  ;;  %v1398_v7 = vmul.f32 %v1396_v32, %v1396_v32  ;;  %11086 = vsinq.f32 %v1996_v55  ;;  %v10576_v14 = vmin.u32 %v2078_v59, %v12486_v16 }
 0x306   : > { %v1468_v44 = vsel %vm1464_vm5, %v1452_v1, %v1467_v63  ;;  %v12520_v29 = vmul.u32.u64.low %v12343_v45, %v1477_v10  ;;  %v12521_v34 = vmul.u32.u64.high %v12343_v45, %v1477_v10, %v12520_v29  ;;  %v2098_v21 = vsub.s32 4, %v2074_v28 }
 0x307   : > { %v12524_v5 = vmul.u32.u64.low %v12343_v45, %v1473_v56  ;;  %v12525_v35 = vmul.u32.u64.high %v12343_v45, %v1473_v56, %v12524_v5  ;;  %v1405_v13 = vmul.f32 %v12387_v11, %v1398_v7  ;;  %v2080_v18 = vclz %v10576_v14 }
 0x308   : > { %v2002_v27 = vand.u32 3, %v2001_v19  ;;  %v1469_v3 = vsel %vm1463_vm11, %v1466_v39, %v1468_v44  ;;  %v12533_v1 = vmul.f32 %v12109_v61, %v12517_v42  ;;  %vm2014_vm8 = vcmp.lt.s32.totalorder %v12200_v0, 0 }
 0x309   : > { %v1407_v62 = vadd.f32 %v1405_v13, %v12173_v23  ;;  %v10577_v6 = vadd.s32 4294967294, %v2080_v18  ;;  %vm1487_vm12 = vc.u32 %v12521_v34, %v12524_v5  ;;  %v1488_v11 = vadd.s32 1, %v12525_v35 }
 0x30a   : > { %v1534_v41 = vand.u32 2147483647, %v12533_v1  ;;  %vm2000_vm13 = vweird.f32 %v12170_v17  ;;  %v2099_v61 = vsel %vm2014_vm8, %v2098_v21, %v2074_v28  ;;  %v1485_v23 = vmul.u32 %v12343_v45, %v1469_v3 }
 0x30b   : > { %1412 = vrot.lane.b32.xlu0 %v1407_v62, %s11527_s23  ;;  %vm10578_vm14 = vcmp.lt.s32.totalorder %v10577_v6, 0  ;;  %v1537_v2 = vand.u32 2139095040, %v12533_v1  ;;  %vm2004_vm15 = vcmp.eq.s32.totalorder %v2002_v27, 0  ;;  %v14762_v19 = vand.u32 2147483647, %v12200_v0 }
 0x30c   : > { %v2083_v48 = vsel %vm10578_vm14, 0, %v10577_v6  ;;  %v1489_v40 = vsel %vm1487_vm12, %v1488_v11, %v12525_v35  ;;  %v2068_v30 = vadd.s32 %v12418_v4, %v12433_v53  ;;  %v1541_v63 = vand.u32 8388607, %v1534_v41 }
 0x30d   : > { %vm12549_vm9 = vcmp.le.f32.partialorder %v14762_v19, 0.7853982  ;;  %v2084_v25 = vsub.s32 32, %v2083_v48  ;;  %v2088_v43 = vsub.s32 4294967266, %v2083_v48  ;;  %v1490_v28 = vadd.s32 %v1489_v40, %v1485_v23 }
 0x30e   : > { %v11085_v45 = vpop.eup %11084  ;;  %v2085_v9 = vshll.u32 %v12486_v16, %v2083_v48  ;;  %v2101_v33 = vsel %vm12549_vm9, 0, %v2099_v61  ;;  %v1538_v50 = vshrl.u32 %v1537_v2, 23  ;;  %vm2007_vm10 = vcmp.eq.s32.totalorder %v2002_v27, 2 }
 0x30f   : > { %v11087_v57 = vpop.eup %11086  ;;  %v2008_v55 = vxor.u32 2147483648, %v11085_v45  ;;  %v2086_v4 = vshrl.u32 %v2068_v30, %v2084_v25  ;;  %v2089_v53 = vadd.s32 127, %v2088_v43  ;;  %v1491_v59 = vadd.s32 536870912, %v1490_v28 }
 0x310   : > { %v2005_v56 = vxor.u32 2147483648, %v11087_v57  ;;  %v10559_v32 = vadd.s32 4294967169, %v1538_v50  ;;  %v12567_v16 = vmul.f32 %v12563_v37, %v12556_v47  ;;  %vm2003_vm0 = vcmp.lt.s32.totalorder %v2002_v27, 2  ;;  %v12575_v27 = vpop.permute.xlu0 %2120 }
 0x311   : > { %v2009_v39 = vsel %vm2007_vm10, %v2008_v55, %v11087_v57  ;;  %v2087_v10 = vor.u32 %v2086_v4, %v2085_v9  ;;  %v2090_v7 = vshll.u32 %v2089_v53, 23  ;;  %v1492_v14 = vshrl.u32 %v1491_v59, 30 }
 0x312   : > { %v2006_v44 = vsel %vm2004_vm15, %v11085_v45, %v2005_v56  ;;  %v2105_v29 = vadd.s32 3, %v2101_v33  ;;  %v1544_v35 = vadd.s32 1, %v10559_v32  ;;  %v1542_v3 = vor.u32 8388608, %v1541_v63 }
 0x313   : > { %v2010_v13 = vsel %vm2003_vm0, %v2006_v44, %v2009_v39  ;;  %v2091_v18 = vor.u32 4788187, %v2090_v7  ;;  %v1493_v21 = vshll.u32 %v1492_v14, 30  ;;  %v2094_v6 = vcvt.s32.f32 %v2087_v10 }
 0x314   : > { %v2011_v62 = vsel %vm2000_vm13, nan, %v2010_v13  ;;  %vm1545_vm2 = vcmp.gt.s32.totalorder %v1544_v35, 0  ;;  %v1672_v11 = vand.u32 2139095040, %v12567_v16  ;;  %vm1432_vm4 = vcmp.lt.s32.totalorder %v12116_v8, 0 }
 0x315   : > { %v2116_v61 = vmul.f32 %v2011_v62, %v2011_v62  ;;  %v2092_v23 = vand.u32 2147483647, %v2091_v18  ;;  %v12573_v2 = vsub.s32 %v1490_v28, %v1493_v21  ;;  %v1546_v19 = vsel %vm1545_vm2, %v1544_v35, 0 }
 0x316   : > { %v1516_v48 = vsub.s32 4, %v1492_v14  ;;  %v1548_v40 = vand.u32 31, %v1546_v19  ;;  %v12579_v17 = vand.u32 3, %v2105_v29  ;;  %v1486_v45 = vadd.s32 %v12524_v5, %v12521_v34 }
 0x317   : > { %v2123_v30 = vmul.f32 %v12575_v27, %v2116_v61  ;;  %v2095_v25 = vmul.f32 %v2094_v6, %v2092_v23  ;;  %v1496_v43 = vsub.s32 0, %v12573_v2  ;;  %v1669_v28 = vand.u32 2147483647, %v12567_v16 }
 0x318   : > { %v1549_v9 = vsub.s32 32, %v1548_v40  ;;  %v1673_v33 = vshrl.u32 %v1672_v11, 23  ;;  %v12587_v55 = vshll.u32 %v1542_v3, 8  ;;  %v12591_v4 = vsel %vm1432_vm4, %v1516_v48, %v1492_v14 }
 0x319   : > { %v2125_v50 = vadd.f32 %v2123_v30, %v12139_v24  ;;  %v2096_v63 = vxor.u32 2147483648, %v2095_v25  ;;  %v10556_v57 = vmin.u32 %v1496_v43, %v12573_v2  ;;  %v12593_v53 = vshrl.u32 %v1546_v19, 5 }
 0x31a   : > { %v1552_v59 = vshrl.u32 %v14759_v52, %v1549_v9  ;;  %v1555_v34 = vshrl.u32 %v14760_v51, %v1549_v9  ;;  %v1551_v56 = vshll.u32 %v14663_v38, %v1548_v40  ;;  %v1558_v32 = vshrl.u32 %v14761_v31, %v1549_v9 }
 0x31b   : > { %2129 = vrot.lane.b32.xlu1 %v2125_v50, %s11527_s23  ;;  %v2097_v24 = vsel %vm2014_vm8, %v2096_v63, %v2095_v25  ;;  %v1498_v5 = vclz %v10556_v57  ;;  %v1554_v10 = vshll.u32 %v14759_v52, %v1548_v40  ;;  %v1557_v7 = vshll.u32 %v14760_v51, %v1548_v40 }
 0x31c   : > { %v2100_v39 = vsel %vm12549_vm9, %v12200_v0, %v2097_v24  ;;  %v10563_v14 = vadd.s32 4294967169, %v1673_v33  ;;  %v1553_v29 = vor.u32 %v1552_v59, %v1551_v56  ;;  %v1560_v35 = vshll.u32 %v14761_v31, %v1548_v40 }
 0x31d   : > { %11088 = vcosq.f32 %v2100_v39  ;;  %v10557_v44 = vadd.s32 4294967294, %v1498_v5  ;;  %v14765_v13 = vand.u32 2147483647, %v12116_v8  ;;  %v1556_v21 = vor.u32 %v1555_v34, %v1554_v10 }
 0x31e   : > { %11090 = vsinq.f32 %v2100_v39  ;;  %v1559_v49 = vor.u32 %v1558_v32, %v1557_v7  ;;  %v1561_v3 = vshrl.u32 %v14668_v54, %v1549_v9  ;;  %v1550_v62 = vshrl.u32 %v14663_v38, %v1549_v9 }
 0x31f   : > { %vm12610_vm6 = vcmp.le.f32.partialorder %v14765_v13, 0.7853982  ;;  %vm10558_vm7 = vcmp.lt.s32.totalorder %v10557_v44, 0  ;;  %v1563_v6 = vshll.u32 %v14668_v54, %v1548_v40  ;;  %v1564_v11 = vshrl.u32 %v14666_v58, %v1549_v9 }
 0x320   : > { %v1501_v61 = vsel %vm10558_vm7, 0, %v10557_v44  ;;  %v1562_v23 = vor.u32 %v1561_v3, %v1560_v35  ;;  %vm1566_vm5 = vcmp.lt.s32.totalorder %v12593_v53, 1  ;;  %vm1567_vm11 = vcmp.lt.s32.totalorder %v12593_v53, 2 }
 0x321   : > { %v1502_v19 = vsub.s32 32, %v1501_v61  ;;  %v1506_v48 = vsub.s32 4294967266, %v1501_v61  ;;  %v1565_v30 = vor.u32 %v1564_v11, %v1563_v6  ;;  %vm1569_vm8 = vcmp.lt.s32.totalorder %v12593_v53, 4 }
 0x322   : > { %vm1568_vm12 = vcmp.lt.s32.totalorder %v12593_v53, 3  ;;  %v1571_v25 = vsel %vm1569_vm8, %v1559_v49, 2102212464  ;;  %v1574_v43 = vsel %vm1566_vm5, %v1553_v29, %v1556_v21  ;;  %v1575_v40 = vsel %vm1569_vm8, %v1562_v23, 920167782 }
 0x323   : > { %vm2107_vm13 = vcmp.lt.s32.totalorder %v12579_v17, 2  ;;  %v1503_v9 = vshll.u32 %v12573_v2, %v1501_v61  ;;  %v1504_v33 = vshrl.u32 %v1486_v45, %v1502_v19  ;;  %v1507_v50 = vadd.s32 127, %v1506_v48  ;;  %v12659_v19 = vld [vmem:[#allocation3 + $0x28] sm:$0xff] }
 0x324   : > { %v1576_v63 = vsel %vm1568_vm12, %v1559_v49, %v1575_v40  ;;  %vm2104_vm14 = vweird.f32 %v12200_v0  ;;  %v1570_v57 = vsel %vm1566_vm5, %v1550_v62, %v1553_v29  ;;  %v1578_v34 = vsel %vm1566_vm5, %v1556_v21, %v1559_v49 }
 0x325   : > { %v1577_v59 = vsel %vm1567_vm11, %v1574_v43, %v1576_v63  ;;  %v1579_v24 = vsel %vm1569_vm8, %v1565_v30, 1326507024  ;;  %v1505_v5 = vor.u32 %v1504_v33, %v1503_v9  ;;  %v1508_v56 = vshll.u32 %v1507_v50, 23 }
 0x326   : > { %v1572_v2 = vsel %vm1568_vm12, %v1556_v21, %v1571_v25  ;;  %v1580_v45 = vsel %vm1568_vm12, %v1562_v23, %v1579_v24  ;;  %vm2108_vm15 = vcmp.eq.s32.totalorder %v12579_v17, 0  ;;  %v1519_v29 = vsel %vm12610_vm6, 0, %v12591_v4 }
 0x327   : > { %v1581_v32 = vsel %vm1567_vm11, %v1578_v34, %v1580_v45  ;;  %v12643_v39 = vmul.u32.u64.low %v12587_v55, %v1577_v59  ;;  %v12644_v10 = vmul.u32.u64.high %v12587_v55, %v1577_v59, %v12643_v39  ;;  %v11089_v7 = vpop.eup %11088  ;;  %v1509_v44 = vor.u32 4788187, %v1508_v56 }
 0x328   : > { %v12651_v35 = vmul.u32.u64.low %v12587_v55, %v1581_v32  ;;  %v12652_v13 = vmul.u32.u64.high %v12587_v55, %v1581_v32, %v12651_v35  ;;  %v11091_v21 = vpop.eup %11090  ;;  %vm2111_vm9 = vcmp.eq.s32.totalorder %v12579_v17, 2  ;;  %v2112_v49 = vxor.u32 2147483648, %v11089_v7 }
 0x329   : > { %v1573_v3 = vsel %vm1567_vm11, %v1570_v57, %v1572_v2  ;;  %v1679_v62 = vadd.s32 1, %v10563_v14  ;;  %v2109_v6 = vxor.u32 2147483648, %v11091_v21  ;;  %v1510_v11 = vand.u32 2147483647, %v1509_v44 }
 0x32a   : > { %v1512_v61 = vcvt.s32.f32 %v1505_v5  ;;  %v1676_v23 = vand.u32 8388607, %v1669_v28  ;;  %v2113_v4 = vsel %vm2111_vm9, %v2112_v49, %v11091_v21  ;;  %v1523_v48 = vadd.s32 3, %v1519_v29 }
 0x32b   : > { %v1592_v30 = vadd.s32 1, %v12644_v10  ;;  %vm1680_vm10 = vcmp.gt.s32.totalorder %v1679_v62, 0  ;;  %v2110_v25 = vsel %vm2108_vm15, %v11089_v7, %v2109_v6  ;;  %v1589_v53 = vmul.u32 %v12587_v55, %v1573_v3  ;;  %v11148_v7 = vld [vmem:[#allocation3 + $0x38] sm:$0xff] }
 0x32c   : > { %v1513_v43 = vmul.f32 %v1512_v61, %v1510_v11  ;;  %vm1591_vm0 = vc.u32 %v12652_v13, %v12643_v39  ;;  %v2114_v14 = vsel %vm2107_vm13, %v2110_v25, %v2113_v4  ;;  %v1681_v9 = vsel %vm1680_vm10, %v1679_v62, 0 }
 0x32d   : > { %v1593_v40 = vsel %vm1591_vm0, %v1592_v30, %v12644_v10  ;;  %v12672_v33 = vmul.f32 %v12563_v37, %v12659_v19  ;;  %v2115_v50 = vsel %vm2104_vm14, nan, %v2114_v14  ;;  %v1683_v55 = vand.u32 31, %v1681_v9 }
 0x32e   : > { %v1514_v63 = vxor.u32 2147483648, %v1513_v43  ;;  %v1594_v57 = vadd.s32 %v1593_v40, %v1589_v53  ;;  %v2117_v59 = vmul.f32 %v2115_v50, %v2115_v50  ;;  %v12678_v24 = vand.u32 3, %v1523_v48 }
 0x32f   : > { %v1677_v5 = vor.u32 8388608, %v1676_v23  ;;  %v1684_v2 = vsub.s32 32, %v1683_v55  ;;  %v1776_v0 = vand.u32 2139095040, %v12672_v33  ;;  %v1682_v32 = vshrl.u32 %v1681_v9, 5 }
 0x330   : > { %v1515_v34 = vsel %vm1432_vm4, %v1514_v63, %v1513_v43  ;;  %v1595_v17 = vadd.s32 536870912, %v1594_v57  ;;  %v2124_v56 = vmul.f32 %v12575_v27, %v2117_v59  ;;  %v1686_v10 = vshll.u32 %v14663_v38, %v1683_v55 }
 0x331   : > { %v1518_v37 = vsel %vm12610_vm6, %v12116_v8, %v1515_v34  ;;  %v1687_v29 = vshrl.u32 %v14759_v52, %v1684_v2  ;;  %v1689_v27 = vshll.u32 %v14759_v52, %v1683_v55  ;;  %v1690_v18 = vshrl.u32 %v14760_v51, %v1684_v2 }
 0x332   : > { %11092 = vcosq.f32 %v1518_v37  ;;  %v12685_v45 = vshrl.u32 %v1595_v17, 30  ;;  %v2126_v44 = vadd.f32 %v11148_v7, %v2124_v56  ;;  %v1692_v21 = vshll.u32 %v14760_v51, %v1683_v55 }
 0x333   : > { %11094 = vsinq.f32 %v1518_v37  ;;  %v1693_v49 = vshrl.u32 %v14761_v31, %v1684_v2  ;;  %v1688_v3 = vor.u32 %v1687_v29, %v1686_v10  ;;  %v1695_v62 = vshll.u32 %v14761_v31, %v1683_v55 }
 0x334   : > { %v1597_v35 = vshll.u32 %v12685_v45, 30  ;;  %2131 = vrot.lane.b32.xlu0 %v2126_v44, %s11527_s23  ;;  %v1696_v6 = vshrl.u32 %v14668_v54, %v1684_v2  ;;  %v12697_v11 = vshll.u32 %v1677_v5, 8  ;;  %v1691_v23 = vor.u32 %v1690_v18, %v1689_v27 }
 0x335   : > { %v1694_v4 = vor.u32 %v1693_v49, %v1692_v21  ;;  %v1777_v48 = vshrl.u32 %v1776_v0, 23  ;;  %v1698_v25 = vshll.u32 %v14668_v54, %v1683_v55  ;;  %v1699_v43 = vshrl.u32 %v14666_v58, %v1684_v2 }
 0x336   : > { %v12699_v61 = vsub.s32 %v1594_v57, %v1597_v35  ;;  %v1697_v30 = vor.u32 %v1696_v6, %v1695_v62  ;;  %vm1701_vm2 = vcmp.lt.s32.totalorder %v1682_v32, 1  ;;  %v1685_v14 = vshrl.u32 %v14663_v38, %v1684_v2 }
 0x337   : > { %vm1703_vm4 = vcmp.lt.s32.totalorder %v1682_v32, 3  ;;  %vm1704_vm6 = vcmp.lt.s32.totalorder %v1682_v32, 4  ;;  %vm1522_vm7 = vweird.f32 %v12116_v8  ;;  %v1700_v40 = vor.u32 %v1699_v43, %v1698_v25 }
 0x338   : > { %v1600_v53 = vsub.s32 0, %v12699_v61  ;;  %v1706_v9 = vsel %vm1704_vm6, %v1694_v4, 2102212464  ;;  %v1709_v50 = vsel %vm1701_vm2, %v1688_v3, %v1691_v23  ;;  %v1710_v63 = vsel %vm1704_vm6, %v1697_v30, 920167782 }
 0x339   : > { %vm1702_vm5 = vcmp.lt.s32.totalorder %v1682_v32, 2  ;;  %v1705_v59 = vsel %vm1701_vm2, %v1685_v14, %v1688_v3  ;;  %v1711_v55 = vsel %vm1703_vm4, %v1694_v4, %v1710_v63  ;;  %v1707_v34 = vsel %vm1703_vm4, %v1691_v23, %v1706_v9 }
 0x33a   : > { %v10560_v57 = vmin.u32 %v1600_v53, %v12699_v61  ;;  %v1712_v17 = vsel %vm1702_vm5, %v1709_v50, %v1711_v55  ;;  %v1713_v5 = vsel %vm1701_vm2, %v1691_v23, %v1694_v4  ;;  %v1714_v56 = vsel %vm1704_vm6, %v1700_v40, 1326507024 }
 0x33b   : > { %vm1525_vm11 = vcmp.lt.s32.totalorder %v12678_v24, 2  ;;  %vm1526_vm8 = vcmp.eq.s32.totalorder %v12678_v24, 0  ;;  %vm1529_vm12 = vcmp.eq.s32.totalorder %v12678_v24, 2  ;;  %v1715_v7 = vsel %vm1703_vm4, %v1697_v30, %v1714_v56 }
 0x33c   : > { %v11093_v37 = vpop.eup %11092  ;;  %v1602_v2 = vclz %v10560_v57  ;;  %v12718_v44 = vmul.u32.u64.low %v12697_v11, %v1712_v17  ;;  %v12719_v29 = vmul.u32.u64.high %v12697_v11, %v1712_v17, %v12718_v44  ;;  %v1708_v18 = vsel %vm1702_vm5, %v1705_v59, %v1707_v34 }
 0x33d   : > { %v11095_v0 = vpop.eup %11094  ;;  %v1530_v10 = vxor.u32 2147483648, %v11093_v37  ;;  %v1716_v21 = vsel %vm1702_vm5, %v1713_v5, %v1715_v7  ;;  %v10567_v6 = vadd.s32 4294967169, %v1777_v48  ;;  %v1590_v4 = vadd.s32 %v12643_v39, %v12652_v13  ;;  %v12740_v13 = vpop.permute.xlu1 %1642 }
 0x33e   : > { %v1527_v27 = vxor.u32 2147483648, %v11095_v0  ;;  %v10561_v35 = vadd.s32 4294967294, %v1602_v2  ;;  %v12725_v3 = vmul.u32.u64.low %v12697_v11, %v1716_v21  ;;  %v12726_v62 = vmul.u32.u64.high %v12697_v11, %v1716_v21, %v12725_v3 }
 0x33f   : > { %v1531_v49 = vsel %vm1529_vm12, %v1530_v10, %v11095_v0  ;;  %v1773_v30 = vand.u32 2147483647, %v12672_v33  ;;  %v1727_v32 = vadd.s32 1, %v12719_v29  ;;  %v1783_v53 = vadd.s32 1, %v10567_v6 }
 0x340   : > { %v1528_v23 = vsel %vm1526_vm8, %v11093_v37, %v1527_v27  ;;  %vm10562_vm13 = vcmp.lt.s32.totalorder %v10561_v35, 0  ;;  %v1724_v48 = vmul.u32 %v12697_v11, %v1708_v18  ;;  %vm1726_vm14 = vc.u32 %v12726_v62, %v12718_v44 }
 0x341   : > { %v1532_v25 = vsel %vm1525_vm11, %v1528_v23, %v1531_v49  ;;  %v1605_v43 = vsel %vm10562_vm13, 0, %v10561_v35  ;;  %vm1784_vm15 = vcmp.gt.s32.totalorder %v1783_v53, 0  ;;  %v1728_v57 = vsel %vm1726_vm14, %v1727_v32, %v12719_v29 }
 0x342   : > { %v1533_v14 = vsel %vm1522_vm7, nan, %v1532_v25  ;;  %v1606_v40 = vsub.s32 32, %v1605_v43  ;;  %v1610_v9 = vsub.s32 4294967266, %v1605_v43  ;;  %v1607_v39 = vshll.u32 %v12699_v61, %v1605_v43  ;;  %v11149_v61 = vld [vmem:[#allocation3 + $0x10] sm:$0xff] }
 0x343   : > { %v1638_v50 = vmul.f32 %v1533_v14, %v1533_v14  ;;  %v1785_v59 = vsel %vm1784_vm15, %v1783_v53, 0  ;;  %v1620_v55 = vsub.s32 4, %v12685_v45  ;;  %v1729_v34 = vadd.s32 %v1728_v57, %v1724_v48 }
 0x344   : > { %v1608_v24 = vshrl.u32 %v1590_v4, %v1606_v40  ;;  %v1611_v63 = vadd.s32 127, %v1610_v9  ;;  %v1787_v11 = vand.u32 31, %v1785_v59  ;;  %v1780_v2 = vand.u32 8388607, %v1773_v30 }
 0x345   : > { %v1645_v8 = vmul.f32 %v12740_v13, %v1638_v50  ;;  %v1730_v37 = vadd.s32 536870912, %v1729_v34  ;;  %vm12749_vm9 = vcmp.le.f32.partialorder %v1534_v41, 0.7853982  ;;  %vm1536_vm10 = vcmp.lt.s32.totalorder %v12533_v1, 0 }
 0x346   : > { %v1609_v17 = vor.u32 %v1608_v24, %v1607_v39  ;;  %v1612_v5 = vshll.u32 %v1611_v63, 23  ;;  %v1788_v0 = vsub.s32 32, %v1787_v11  ;;  %v1621_v27 = vsel %vm1536_vm10, %v1620_v55, %v12685_v45 }
 0x347   : > { %v1647_v56 = vadd.f32 %v11149_v61, %v1645_v8  ;;  %v12758_v35 = vshrl.u32 %v1730_v37, 30  ;;  %v1781_v23 = vor.u32 8388608, %v1780_v2  ;;  %v1790_v4 = vshll.u32 %v14663_v38, %v1787_v11 }
 0x348   : > { %v1613_v7 = vor.u32 4788187, %v1612_v5  ;;  %v1616_v29 = vcvt.s32.f32 %v1609_v17  ;;  %v1791_v18 = vshrl.u32 %v14759_v52, %v1788_v0  ;;  %v1794_v41 = vshrl.u32 %v14760_v51, %v1788_v0 }
 0x349   : > { %1651 = vrot.lane.b32.xlu1 %v1647_v56, %s11527_s23  ;;  %v1797_v49 = vshrl.u32 %v14761_v31, %v1788_v0  ;;  %v1800_v3 = vshrl.u32 %v14668_v54, %v1788_v0  ;;  %v1732_v6 = vshll.u32 %v12758_v35, 30  ;;  %v1796_v25 = vshll.u32 %v14760_v51, %v1787_v11 }
 0x34a   : > { %v1614_v21 = vand.u32 2147483647, %v1613_v7  ;;  %v1786_v45 = vshrl.u32 %v1785_v59, 5  ;;  %v1793_v32 = vshll.u32 %v14759_v52, %v1787_v11  ;;  %v1799_v53 = vshll.u32 %v14761_v31, %v1787_v11 }
 0x34b   : > { %v12769_v14 = vsub.s32 %v1729_v34, %v1732_v6  ;;  %v1792_v40 = vor.u32 %v1791_v18, %v1790_v4  ;;  %v1798_v9 = vor.u32 %v1797_v49, %v1796_v25  ;;  %v1803_v48 = vshrl.u32 %v14666_v58, %v1788_v0 }
 0x34c   : > { %v1617_v43 = vmul.f32 %v1616_v29, %v1614_v21  ;;  %v1795_v39 = vor.u32 %v1794_v41, %v1793_v32  ;;  %v1801_v24 = vor.u32 %v1800_v3, %v1799_v53  ;;  %v1802_v63 = vshll.u32 %v14668_v54, %v1787_v11 }
 0x34d   : > { %v1623_v57 = vsel %vm12749_vm9, 0, %v1621_v27  ;;  %v1735_v59 = vsub.s32 0, %v12769_v14  ;;  %v1821_v8 = vshll.u32 %v1781_v23, 8  ;;  %v1789_v34 = vshrl.u32 %v14663_v38, %v1788_v0 }
 0x34e   : > { %v1618_v50 = vxor.u32 2147483648, %v1617_v43  ;;  %v1804_v17 = vor.u32 %v1803_v48, %v1802_v63  ;;  %vm1808_vm0 = vcmp.lt.s32.totalorder %v1786_v45, 4  ;;  %vm1805_vm2 = vcmp.lt.s32.totalorder %v1786_v45, 1 }
 0x34f   : > { %v10564_v61 = vmin.u32 %v1735_v59, %v12769_v14  ;;  %v1810_v11 = vsel %vm1808_vm0, %v1798_v9, 2102212464  ;;  %vm1806_vm4 = vcmp.lt.s32.totalorder %v1786_v45, 2  ;;  %v1813_v56 = vsel %vm1805_vm2, %v1792_v40, %v1795_v39 }
 0x350   : > { %v1619_v55 = vsel %vm1536_vm10, %v1618_v50, %v1617_v43  ;;  %v1814_v37 = vsel %vm1808_vm0, %v1801_v24, 920167782  ;;  %vm1807_vm6 = vcmp.lt.s32.totalorder %v1786_v45, 3  ;;  %v1817_v0 = vsel %vm1805_vm2, %v1795_v39, %v1798_v9 }
 0x351   : > { %v1622_v5 = vsel %vm12749_vm9, %v12533_v1, %v1619_v55  ;;  %v1737_v2 = vclz %v10564_v61  ;;  %v1809_v7 = vsel %vm1805_vm2, %v1789_v34, %v1792_v40  ;;  %v1811_v29 = vsel %vm1807_vm6, %v1795_v39, %v1810_v11 }
 0x352   : > { %11096 = vcosq.f32 %v1622_v5  ;;  %v1815_v27 = vsel %vm1807_vm6, %v1798_v9, %v1814_v37  ;;  %v1818_v10 = vsel %vm1808_vm0, %v1804_v17, 1326507024  ;;  %vm1151_vm7 = vcmask 97352  }
 0x353   : > { %11098 = vsinq.f32 %v1622_v5  ;;  %v10565_v18 = vadd.s32 4294967294, %v1737_v2  ;;  %v1816_v21 = vsel %vm1806_vm4, %v1813_v56, %v1815_v27  ;;  %v1819_v41 = vsel %vm1807_vm6, %v1801_v24, %v1818_v10 }
 0x354   : > { %v1627_v49 = vadd.s32 3, %v1623_v57  ;;  %v1820_v3 = vsel %vm1806_vm4, %v1817_v0, %v1819_v41  ;;  %v12788_v6 = vmul.u32.u64.low %v1821_v8, %v1816_v21  ;;  %v12789_v23 = vmul.u32.u64.high %v1821_v8, %v1816_v21, %v12788_v6 }
 0x355   : > { %v14770_v4 = vmov 0.0   ;;  %vm10566_vm5 = vcmp.lt.s32.totalorder %v10565_v18, 0  ;;  %v1812_v25 = vsel %vm1806_vm4, %v1809_v7, %v1811_v29  ;;  %v1725_v40 = vadd.s32 %v12718_v44, %v12726_v62 }
 0x356   : > { %1152 = vst.msk [vmem:[#allocation4 + $0x8] sm:$0xff] %vm1151_vm7, %v14770_v4  ;;  %1153 = vst.msk [vmem:[#allocation4 + $0x18] sm:$0xff] %vm1151_vm7, %v14770_v4  ;;  %v12801_v43 = vmul.u32.u64.low %v1821_v8, %v1820_v3  ;;  %v12802_v32 = vmul.u32.u64.high %v1821_v8, %v1820_v3, %v12801_v43  ;;  %v1740_v53 = vsel %vm10566_vm5, 0, %v10565_v18  ;;  %v1628_v50 = vand.u32 3, %v1627_v49 }
 0x357   : > { %1154 = vst.msk [vmem:[#allocation4 + $0x28] sm:$0xff] %vm1151_vm7, %v14770_v4  ;;  %1155 = vst.msk [vmem:[#allocation4 + $0x38] sm:$0xff] %vm1151_vm7, %v14770_v4  ;;  %v1741_v9 = vsub.s32 32, %v1740_v53  ;;  %v1745_v48 = vsub.s32 4294967266, %v1740_v53  ;;  %v1828_v39 = vmul.u32 %v1821_v8, %v1812_v25  ;;  %v1831_v24 = vadd.s32 1, %v12789_v23 }
 0x358   : > { %1160 = vst.msk [vmem:[#allocation5 + $0x8] sm:$0xff] %vm1151_vm7, %v14770_v4  ;;  %1161 = vst.msk [vmem:[#allocation5 + $0x18] sm:$0xff] %vm1151_vm7, %v14770_v4  ;;  %v1742_v63 = vshll.u32 %v12769_v14, %v1740_v53  ;;  %vm1830_vm11 = vc.u32 %v12802_v32, %v12788_v6  ;;  %vm1633_vm8 = vcmp.eq.s32.totalorder %v1628_v50, 2  ;;  %vm1630_vm12 = vcmp.eq.s32.totalorder %v1628_v50, 0 }
 0x359   : > { %1162 = vst.msk [vmem:[#allocation5 + $0x28] sm:$0xff] %vm1151_vm7, %v14770_v4  ;;  %1163 = vst.msk [vmem:[#allocation5 + $0x38] sm:$0xff] %vm1151_vm7, %v14770_v4  ;;  %v1743_v57 = vshrl.u32 %v1725_v40, %v1741_v9  ;;  %v1746_v59 = vadd.s32 127, %v1745_v48  ;;  %v1832_v55 = vsel %vm1830_vm11, %v1831_v24, %v12789_v23  ;;  %vm1626_vm13 = vweird.f32 %v12533_v1 }
 0x35a   : > { %v1833_v62 = vadd.s32 %v1832_v55, %v1828_v39  ;;  %vm1629_vm14 = vcmp.lt.s32.totalorder %v1628_v50, 2  ;;  %vm1417_vm15 = vcmask 1047576   ;;  %v1755_v18 = vsub.s32 4, %v12758_v35 }
 0x35b   : > { %v1744_v5 = vor.u32 %v1743_v57, %v1742_v63  ;;  %v1747_v44 = vshll.u32 %v1746_v59, 23  ;;  %vm1670_vm9 = vcmp.le.f32.partialorder %v1669_v28, 0.7853982  ;;  %vm1671_vm10 = vcmp.lt.s32.totalorder %v12567_v16, 0 }
 0x35c   : > { %v11097_v45 = vpop.eup %11096  ;;  %v1834_v56 = vadd.s32 536870912, %v1833_v62  ;;  %v1756_v43 = vsel %vm1671_vm10, %v1755_v18, %v12758_v35  ;;  %vm1761_vm7 = vweird.f32 %v12567_v16  ;;  %vm1419_vm5 = vcmask 72704  }
 0x35d   : > { %v11099_v34 = vpop.eup %11098  ;;  %v1634_v17 = vxor.u32 2147483648, %v11097_v45  ;;  %v1748_v11 = vor.u32 4788187, %v1747_v44  ;;  %v1751_v0 = vcvt.s32.f32 %v1744_v5  ;;  %v1758_v9 = vsel %vm1670_vm9, 0, %v1756_v43 }
 0x35e   : > { %v1631_v61 = vxor.u32 2147483648, %v11099_v34  ;;  %v12812_v7 = vshrl.u32 %v1834_v56, 30  ;;  %v1762_v50 = vadd.s32 3, %v1758_v9  ;;  %vm1775_vm11 = vcmp.lt.s32.totalorder %v12672_v33, 0 }
 0x35f   : > { %v1635_v8 = vsel %vm1633_vm8, %v1634_v17, %v11099_v34  ;;  %v1749_v2 = vand.u32 2147483647, %v1748_v11  ;;  %vm1774_vm8 = vcmp.le.f32.partialorder %v1773_v30, 0.7853982 }
 0x360   : > { %v1632_v14 = vsel %vm1630_vm12, %v11097_v45, %v1631_v61  ;;  %v1836_v21 = vshll.u32 %v12812_v7, 30  ;;  %v1763_v24 = vand.u32 3, %v1762_v50 }
 0x361   : > { %v1636_v37 = vsel %vm1629_vm14, %v1632_v14, %v1635_v8  ;;  %v1752_v10 = vmul.f32 %v1751_v0, %v1749_v2 }
 0x362   : > { %v1637_v29 = vsel %vm1626_vm13, nan, %v1636_v37  ;;  %v1837_v1 = vsub.s32 %v1833_v62, %v1836_v21  ;;  %vm1768_vm2 = vcmp.eq.s32.totalorder %v1763_v24, 2  ;;  %vm1765_vm4 = vcmp.eq.s32.totalorder %v1763_v24, 0  ;;  %v1882_v37 = vpop.permute.xlu0 %1881 }
 0x363   : > { %v1639_v27 = vmul.f32 %v1637_v29, %v1637_v29  ;;  %v1411_v41 = vpop.permute.xlu1 %1410  ;;  %v1753_v3 = vxor.u32 2147483648, %v1752_v10  ;;  %vm1764_vm6 = vcmp.lt.s32.totalorder %v1763_v24, 2  ;;  %v1859_v29 = vsub.s32 4, %v12812_v7 }
 0x364   : > { %1418 = vst.msk [vmem:[#allocation4] sm:$0xff] %vm1417_vm15, %v1411_v41  ;;  %v1839_v53 = vsub.s32 0, %v1837_v1 }
 0x365   : > { %v1646_v49 = vmul.f32 %v12740_v13, %v1639_v27  ;;  %v1754_v25 = vsel %vm1671_vm10, %v1753_v3, %v1752_v10  ;;  %vm14699_vm10 = vcmask 1022976  }
 0x366   : > { %v1757_v40 = vsel %vm1670_vm9, %v12567_v16, %v1754_v25  ;;  %v10568_v13 = vmin.u32 %v1839_v53, %v1837_v1  ;;  %vm1865_vm9 = vweird.f32 %v12672_v33 }
 0x367   : > { %v1648_v23 = vadd.f32 %v1646_v49, %v12517_v42  ;;  %11100 = vcosq.f32 %v1757_v40  ;;  %v1829_v42 = vadd.s32 %v12788_v6, %v12802_v32  ;;  %v1860_v49 = vsel %vm1775_vm11, %v1859_v29, %v12812_v7 }
 0x368   : > { %11102 = vsinq.f32 %v1757_v40  ;;  %v1841_v48 = vclz %v10568_v13 }
 0x369   : > { %1653 = vrot.lane.b32.xlu0 %v1648_v23, %s11527_s23  ;;  %v12838_v23 = vld [vmem:[#allocation17] sm:$0xff] }
 0x36a   : > { %v10569_v39 = vadd.s32 4294967294, %v1841_v48 }
 0x36b   : > { %v12842_v25 = vld [vmem:[#allocation4] sm:$0xff] }
 0x36c   : > { %vm10570_vm0 = vcmp.lt.s32.totalorder %v10569_v39, 0 }
 0x36d   : > { %v1844_v28 = vsel %vm10570_vm0, 0, %v10569_v39  ;;  %vm2235_vm0 = vcmask 1031168  }
 0x36e   : > { %v1845_v63 = vsub.s32 32, %v1844_v28  ;;  %v1849_v35 = vsub.s32 4294967266, %v1844_v28  ;;  %v1846_v59 = vshll.u32 %v1837_v1, %v1844_v28 }
 0x370   : > { %v1847_v45 = vshrl.u32 %v1829_v42, %v1845_v63  ;;  %v1850_v55 = vadd.s32 127, %v1849_v35 }
 0x371   : > { %v11101_v57 = vpop.eup %11100 }
 0x372   : > { %v11103_v34 = vpop.eup %11102  ;;  %v1769_v17 = vxor.u32 2147483648, %v11101_v57  ;;  %v1848_v44 = vor.u32 %v1847_v45, %v1846_v59  ;;  %v1851_v62 = vshll.u32 %v1850_v55, 23 }
 0x373   : > { %v1766_v5 = vxor.u32 2147483648, %v11103_v34 }
 0x374   : > { %v1770_v61 = vsel %vm1768_vm2, %v1769_v17, %v11103_v34  ;;  %v1852_v11 = vor.u32 4788187, %v1851_v62  ;;  %v1855_v14 = vcvt.s32.f32 %v1848_v44  ;;  %vm14698_vm2 = vcmask 1014784  }
 0x375   : > { %v1767_v8 = vsel %vm1765_vm4, %v11101_v57, %v1766_v5 }
 0x376   : > { %v1771_v6 = vsel %vm1764_vm6, %v1767_v8, %v1770_v61  ;;  %v1853_v56 = vand.u32 2147483647, %v1852_v11 }
 0x377   : > { %v1772_v32 = vsel %vm1761_vm7, nan, %v1771_v6 }
 0x378   : > { %v1877_v2 = vmul.f32 %v1772_v32, %v1772_v32  ;;  %v1856_v0 = vmul.f32 %v1855_v14, %v1853_v56 }
 0x37a   : > { %v1884_v27 = vmul.f32 %v1882_v37, %v1877_v2  ;;  %v1857_v10 = vxor.u32 2147483648, %v1856_v0 }
 0x37c   : > { %v1886_v18 = vadd.f32 %v1884_v27, %v12556_v47  ;;  %v1858_v16 = vsel %vm1775_vm11, %v1857_v10, %v1856_v0  ;;  %v1862_v47 = vsel %vm1774_vm8, 0, %v1860_v49 }
 0x37d   : > { %v1413_v21 = vpop.permute.xlu0 %1412  ;;  %v1861_v1 = vsel %vm1774_vm8, %v12672_v33, %v1858_v16  ;;  %v1866_v30 = vadd.s32 3, %v1862_v47 }
 0x37e   : > { %v1414_v3 = vsel %vm804_vm1, %v1411_v41, %v1413_v21  ;;  %1890 = vrot.lane.b32.xlu1 %v1886_v18, %s11527_s23  ;;  %11104 = vcosq.f32 %v1861_v1 }
 0x37f   : > { %1420 = vst.msk [vmem:[#allocation4 + $0x8] sm:$0xff] %vm1419_vm5, %v1414_v3  ;;  %11106 = vsinq.f32 %v1861_v1  ;;  %v1867_v7 = vand.u32 3, %v1866_v30 }
 0x381   : > { %vm1872_vm12 = vcmp.eq.s32.totalorder %v1867_v7, 2  ;;  %vm1869_vm13 = vcmp.eq.s32.totalorder %v1867_v7, 0  ;;  %vm1868_vm14 = vcmp.lt.s32.totalorder %v1867_v7, 2 }
 0x382   : > { %2144 = vrot.lane.b32.xlu1 %v12838_v23, %s11529_s16 }
 0x386   : > { %2148 = vrot.lane.b32.xlu1 %v12842_v25, %s11539_s19  ;;  %v2142_v33 = vld [vmem:[#allocation4 + $0x8] sm:$0xff] }
 0x388   : > { %v11105_v41 = vpop.eup %11104 }
 0x389   : > { %v11107_v43 = vpop.eup %11106  ;;  %v1873_v53 = vxor.u32 2147483648, %v11105_v41 }
 0x38a   : > { %v1870_v40 = vxor.u32 2147483648, %v11107_v43 }
 0x38b   : > { %v1874_v13 = vsel %vm1872_vm12, %v1873_v53, %v11107_v43 }
 0x38c   : > { %v1871_v48 = vsel %vm1869_vm13, %v11105_v41, %v1870_v40 }
 0x38d   : > { %v2130_v9 = vpop.permute.xlu1 %2129  ;;  %v1875_v50 = vsel %vm1868_vm14, %v1871_v48, %v1874_v13 }
 0x38e   : > { %2136 = vst.msk [vmem:[#allocation4 + $0x30] sm:$0xff] %vm1417_vm15, %v2130_v9  ;;  %v1876_v39 = vsel %vm1865_vm9, nan, %v1875_v50 }
 0x38f   : > { %v1878_v28 = vmul.f32 %v1876_v39, %v1876_v39 }
 0x391   : > { %v1885_v24 = vmul.f32 %v1882_v37, %v1878_v28 }
 0x393   : > { %v1887_v42 = vadd.f32 %v1885_v24, %v12659_v19 }
 0x395   : > { %1892 = vrot.lane.b32.xlu0 %v1887_v42, %s11527_s23  ;;  %v2138_v19 = vld [vmem:[#allocation4 + $0x30] sm:$0xff] }
 0x3a6   : > { %v2132_v63 = vpop.permute.xlu0 %2131 }
 0x3a7   : > { %v2133_v35 = vsel %vm804_vm1, %v2130_v9, %v2132_v63 }
 0x3a8   : > { %2137 = vst.msk [vmem:[#allocation4 + $0x38] sm:$0xff] %vm1419_vm5, %v2133_v35 }
 0x3af   : > { %v2139_v17 = vld [vmem:[#allocation4 + $0x38] sm:$0xff] }
 0x3bb   : > { %v1652_v57 = vpop.permute.xlu1 %1651 }
 0x3bc   : > { %1658 = vst.msk [vmem:[#allocation4 + $0x10] sm:$0xff] %vm1417_vm15, %v1652_v57 }
 0x3c3   : > { %v2312_v59 = vld [vmem:[#allocation4 + $0x10] sm:$0xff] }
 0x3c4   : > { %2318 = vrot.lane.b32.xlu0 %v2312_v59, %s11539_s19 }
 0x3c8   : > { %2150 = vrot.lane.b32.xlu0 %v2142_v33, %s11539_s19 }
 0x3cc   : > { %2314 = vrot.lane.b32.xlu0 %v12838_v23, %s11531_s30 }
 0x3d0   : > { %2231 = vrot.lane.b32.xlu0 %v2138_v19, %s11540_s22 }
 0x3db   : > { %v1654_v45 = vpop.permute.xlu0 %1653 }
 0x3dc   : > { %v1655_v55 = vsel %vm804_vm1, %v1652_v57, %v1654_v45 }
 0x3dd   : > { %1659 = vst.msk [vmem:[#allocation4 + $0x18] sm:$0xff] %vm1419_vm5, %v1655_v55 }
 0x3e4   : > { %v2313_v34 = vld [vmem:[#allocation4 + $0x18] sm:$0xff] }
 0x3e5   : > { %2320 = vrot.lane.b32.xlu1 %v2313_v34, %s11539_s19  ;;  %2427 = vrot.lane.b32.xlu0 %v2313_v34, %s11539_s19 }
 0x3e9   : > { %2233 = vrot.lane.b32.xlu1 %v2139_v17, %s11540_s22  ;;  %2507 = vrot.lane.b32.xlu0 %v12842_v25, %s11539_s19 }
 0x3ed   : > { %2425 = vrot.lane.b32.xlu1 %v2312_v59, %s11539_s19 }
 0x3f0   : > { %v1891_v5 = vpop.permute.xlu1 %1890 }
 0x3f1   : > { %2421 = vrot.lane.b32.xlu1 %v12838_v23, %s11529_s16  ;;  %1897 = vst.msk [vmem:[#allocation4 + $0x20] sm:$0xff] %vm1417_vm15, %v1891_v5 }
 0x3f4   : > { %v2145_v11 = vpop.permute.xlu1 %2144 }
 0x3f5   : > { %2509 = vrot.lane.b32.xlu1 %v2142_v33, %s11539_s19 }
 0x3f8   : > { %v2693_v44 = vld [vmem:[#allocation4 + $0x20] sm:$0xff]  ;;  %v2149_v32 = vpop.permute.xlu1 %2148 }
 0x3f9   : > { %2700 = vrot.lane.b32.xlu0 %v2693_v44, %s11539_s19 }
 0x3fd   : > { %2696 = vrot.lane.b32.xlu0 %v12838_v23, %s11529_s16 }
 0x407   : > { %v1893_v62 = vpop.permute.xlu0 %1892 }
 0x408   : > { %v1894_v61 = vsel %vm804_vm1, %v1891_v5, %v1893_v62 }
 0x409   : > { %1898 = vst.msk [vmem:[#allocation4 + $0x28] sm:$0xff] %vm1419_vm5, %v1894_v61 }
 0x410   : > { %v2694_v8 = vld [vmem:[#allocation4 + $0x28] sm:$0xff] }
 0x411   : > { %2702 = vrot.lane.b32.xlu1 %v2694_v8, %s11539_s19  ;;  %2595 = vrot.lane.b32.xlu0 %v2694_v8, %s11539_s19 }
 0x415   : > { %2593 = vrot.lane.b32.xlu1 %v2693_v44, %s11539_s19  ;;  %2782 = vrot.lane.b32.xlu0 %v2312_v59, %s11539_s19 }
 0x419   : > { %2589 = vrot.lane.b32.xlu1 %v12838_v23, %s11531_s30  ;;  %2975 = vrot.lane.b32.xlu0 %v2138_v19, %s11539_s19 }
 0x41d   : > { %2784 = vrot.lane.b32.xlu1 %v2313_v34, %s11539_s19  ;;  %2971 = vrot.lane.b32.xlu0 %v12838_v23, %s11529_s16 }
 0x421   : > { %2977 = vrot.lane.b32.xlu1 %v2139_v17, %s11539_s19  ;;  %2870 = vrot.lane.b32.xlu0 %v2139_v17, %s11539_s19 }
 0x425   : > { %2868 = vrot.lane.b32.xlu1 %v2138_v19, %s11539_s19  ;;  %3059 = vrot.lane.b32.xlu0 %v2694_v8, %s11539_s19 }
 0x429   : > { %3057 = vrot.lane.b32.xlu1 %v2693_v44, %s11539_s19  ;;  %3143 = vrot.lane.b32.xlu0 %v12842_v25, %s11541_s13 }
 0x42d   : > { %2864 = vrot.lane.b32.xlu1 %v12838_v23, %s11531_s30  ;;  %3139 = vrot.lane.b32.xlu0 %v12838_v23, %s11531_s30 }
 0x431   : > { %3145 = vrot.lane.b32.xlu1 %v2142_v33, %s11541_s13 }
 0x436   : > { %v2319_v6 = vpop.permute.xlu0 %2318 }
 0x43a   : > { %v12897_v56 = vpop.permute.xlu0 %2150 }
 0x43b   : > { %2158 = vmatprep.subr.mxu1 %v12897_v56  ;;  %v12902_v14 = vsel %vm14699_vm10, %v2149_v32, %v12897_v56 }
 0x43c   : > { %2159 = vmatpush1.msra.mxu1 %v12902_v14 }
 0x43d   : > { %10579 = vmatmul.mubr.msk.f32.vlgmr.msra.gmra.mrb[6].mxu1 %vm650_vm3, %v2145_v11 }
 0x43e   : > { %2305 = vmatprep.mubr.f32.mxu1 %v14770_v4  ;;  %v2315_v37 = vpop.permute.xlu0 %2314 }
 0x442   : > { %v2232_v0 = vpop.permute.xlu0 %2231 }
 0x457   : > { %v2321_v2 = vpop.permute.xlu1 %2320  ;;  %v12911_v21 = vpop.permute.xlu0 %2427 }
 0x458   : > { %v2322_v10 = vsel %vm14699_vm10, %v2319_v6, %v2321_v2 }
 0x45b   : > { %v2234_v29 = vpop.permute.xlu1 %2233  ;;  %v2508_v1 = vpop.permute.xlu0 %2507 }
 0x45c   : > { %2241 = vmatprep.subr.mxu1 %v2234_v29  ;;  %v2236_v27 = vsel %vm2235_vm0, %v2232_v0, %v2234_v29 }
 0x45d   : > { %2242 = vmatpush1.msra.mxu1 %v2236_v27 }
 0x45e   : > { %10580 = vmatmul.mubr.msk.f32.vlgmr.msra.gmra.mrb[6].mxu1 %vm650_vm3, %v12838_v23  ;;  %2327 = vmatprep.subr.mxu1 %v2321_v2 }
 0x45f   : > { %v2426_v18 = vpop.permute.xlu1 %2425  ;;  %2328 = vmatpush1.msra.mxu1 %v2322_v10  ;;  %2391 = vmatprep.mubr.f32.mxu1 %v14770_v4 }
 0x460   : > { %2434 = vmatprep.subr.mxu1 %v12911_v21  ;;  %v12918_v49 = vsel %vm14699_vm10, %v2426_v18, %v12911_v21 }
 0x463   : > { %v2422_v16 = vpop.permute.xlu1 %2421 }
 0x466   : > { %10581 = vmatmul.mubr.msk.f32.vlgmr.msra.gmra.mrb[6].mxu1 %vm650_vm3, %v2315_v37 }
 0x467   : > { %v2510_v3 = vpop.permute.xlu1 %2509  ;;  %2435 = vmatpush1.msra.mxu1 %v12918_v49  ;;  %2498 = vmatprep.mubr.f32.mxu1 %v14770_v4 }
 0x468   : > { %v2511_v47 = vsel %vm14699_vm10, %v2508_v1, %v2510_v3  ;;  %2516 = vmatprep.subr.mxu1 %v2510_v3 }
 0x46a   : > { %10582 = vmatmul.mubr.msk.f32.vlgmr.msra.gmra.mrb[8].mxu1 %vm650_vm3, %v2422_v16 }
 0x46b   : > { %2517 = vmatpush1.msra.mxu1 %v2511_v47  ;;  %2580 = vmatprep.mubr.f32.mxu1 %v14770_v4  ;;  %v2701_v30 = vpop.permute.xlu0 %2700 }
 0x46f   : > { %v2697_v25 = vpop.permute.xlu0 %2696 }
 0x472   : > { %10583 = vmatmul.mubr.msk.f32.vlgmr.msra.gmra.mrb[8].mxu1 %vm650_vm3, %v12838_v23 }
 0x473   : > { %2666 = vmatprep.mubr.f32.mxu1 %v14770_v4 }
 0x483   : > { %v12928_v7 = vpop.permute.xlu1 %2702  ;;  %v2596_v41 = vpop.permute.xlu0 %2595 }
 0x484   : > { %2709 = vmatprep.subr.mxu0 %v12928_v7  ;;  %v12933_v43 = vsel %vm14699_vm10, %v2701_v30, %v12928_v7  ;;  %2602 = vmatprep.subr.mxu1 %v2596_v41 }
 0x485   : > { %2710 = vmatpush1.msra.mxu0 %v12933_v43 }
 0x486   : > { %10585 = vmatmul.mubr.msk.f32.vlgmr.msra.gmra.mrb[18].mxu0 %vm650_vm3, %v2697_v25  ;;  %v12980_v25 = vld [vmem:[#allocation17 + $0x8] sm:$0xff] }
 0x487   : > { %v2594_v53 = vpop.permute.xlu1 %2593  ;;  %v2783_v40 = vpop.permute.xlu0 %2782  ;;  %2855 = vmatprep.mubr.f32.mxu0 %v14770_v4 }
 0x488   : > { %v2597_v13 = vsel %vm14699_vm10, %v2594_v53, %v2596_v41 }
 0x489   : > { %2603 = vmatpush1.msra.mxu1 %v2597_v13 }
 0x48b   : > { %v2590_v9 = vpop.permute.xlu1 %2589  ;;  %v2976_v48 = vpop.permute.xlu0 %2975 }
 0x48c   : > { %10584 = vmatmul.mubr.msk.f32.vlgmr.msra.gmra.mrb[8].mxu1 %vm650_vm3, %v2590_v9 }
 0x48d   : > { %3048 = vmatprep.mubr.f32.mxu1 %v14770_v4 }
 0x48f   : > { %v2785_v50 = vpop.permute.xlu1 %2784  ;;  %v2972_v39 = vpop.permute.xlu0 %2971 }
 0x490   : > { %2791 = vmatprep.subr.mxu0 %v2785_v50  ;;  %v2786_v28 = vsel %vm14699_vm10, %v2783_v40, %v2785_v50 }
 0x491   : > { %2792 = vmatpush1.msra.mxu0 %v2786_v28 }
 0x492   : > { %10586 = vmatmul.mubr.msk.f32.vlgmr.msra.gmra.mrb[18].mxu0 %vm650_vm3, %v12838_v23 }
 0x493   : > { %v2978_v24 = vpop.permute.xlu1 %2977  ;;  %v2871_v42 = vpop.permute.xlu0 %2870  ;;  %2941 = vmatprep.mubr.f32.mxu0 %v14770_v4 }
 0x494   : > { %2984 = vmatprep.subr.mxu1 %v2978_v24  ;;  %v2979_v63 = vsel %vm14699_vm10, %v2976_v48, %v2978_v24  ;;  %2877 = vmatprep.subr.mxu0 %v2871_v42 }
 0x495   : > { %2985 = vmatpush1.msra.mxu1 %v2979_v63 }
 0x496   : > { %10588 = vmatmul.mubr.msk.f32.vlgmr.msra.gmra.mrb[10].mxu1 %vm650_vm3, %v2972_v39 }
 0x497   : > { %v2869_v35 = vpop.permute.xlu1 %2868  ;;  %v3060_v57 = vpop.permute.xlu0 %3059  ;;  %3130 = vmatprep.mubr.f32.mxu1 %v14770_v4 }
 0x498   : > { %v2872_v59 = vsel %vm14699_vm10, %v2869_v35, %v2871_v42  ;;  %3066 = vmatprep.subr.mxu1 %v3060_v57 }
 0x499   : > { %2878 = vmatpush1.msra.mxu0 %v2872_v59 }
 0x49b   : > { %v3058_v33 = vpop.permute.xlu1 %3057  ;;  %v3144_v55 = vpop.permute.xlu0 %3143 }
 0x49c   : > { %v3061_v19 = vsel %vm14699_vm10, %v3058_v33, %v3060_v57 }
 0x49d   : > { %3067 = vmatpush1.msra.mxu1 %v3061_v19 }
 0x49e   : > { %10589 = vmatmul.mubr.msk.f32.vlgmr.msra.gmra.mrb[10].mxu1 %vm650_vm3, %v12838_v23 }
 0x49f   : > { %v2865_v45 = vpop.permute.xlu1 %2864  ;;  %3217 = vmatprep.mubr.f32.mxu1 %v14770_v4  ;;  %v3140_v17 = vpop.permute.xlu0 %3139 }
 0x4a0   : > { %10587 = vmatmul.mubr.msk.f32.vlgmr.msra.gmra.mrb[18].mxu0 %vm650_vm3, %v2865_v45 }
 0x4a1   : > { %3325 = vmatprep.mubr.f32.mxu0 %v14770_v4 }
 0x4a3   : > { %v3146_v34 = vpop.permute.xlu1 %3145 }
 0x4a4   : > { %3153 = vmatprep.subr.mxu1 %v3146_v34  ;;  %v3148_v5 = vsel %vm14698_vm2, %v3144_v55, %v3146_v34  ;;  %v4360_v55 = vld [vmem:[#allocation18 + $0x10] sm:$0xff]  ;;  %v4361_v34 = vld [vmem:[#allocation18 + $0x18] sm:$0xff] }
 0x4a5   : > { %3154 = vmatpush1.msra.mxu1 %v3148_v5  ;;  %v4359_v5 = vld [vmem:[#allocation18 + $0x8] sm:$0xff] }
 0x4a6   : > { %10590 = vmatmul.mubr.msk.f32.vlgmr.msra.gmra.mrb[10].mxu1 %vm650_vm3, %v3140_v17  ;;  %v4364_v17 = vadd.f32 1e-09, %v4360_v55 }
 0x4a7   : > { %3600 = vmatprep.mubr.f32.mxu1 %v14770_v4 }
 0x4a8   : > { %11108 = vrcp.f32 %v4364_v17 }
 0x539   : > { %v2393_v23 = vpop.f32.mrb[6].mxu1 }
 0x53a   : > { %v2400_v44 = vadd.f32 %v2393_v23, %v12902_v14  ;;  %v2395_v62 = vpop.f32.mrb[7].mxu1  ;;  %v4365_v23 = vadd.f32 1e-09, %v4361_v34 }
 0x53b   : > { %v2401_v61 = vadd.f32 %v2395_v62, %v12897_v56  ;;  %v4363_v62 = vadd.f32 1e-09, %v4359_v5 }
 0x53c   : > { %v2402_v8 = vmul.f32 %v12081_v36, %v2400_v44  ;;  %v4358_v44 = vld [vmem:[#allocation18] sm:$0xff]  ;;  %11110 = vrcp.f32 %v4365_v23 }
 0x53d   : > { %v2403_v11 = vmul.f32 %v12133_v20, %v2401_v61  ;;  %11112 = vrcp.f32 %v4363_v62 }
 0x53e   : > { %2406 = vrot.lane.b32.xlu1 %v2402_v8, %s11527_s23 }
 0x53f   : > { %2408 = vrot.lane.b32.xlu0 %v2403_v11, %s11527_s23  ;;  %v4362_v11 = vadd.f32 1e-09, %v4358_v44 }
 0x541   : > { %11114 = vrcp.f32 %v4362_v11 }
 0x55f   : > { %v2668_v6 = vpop.f32.mrb[8].mxu1 }
 0x560   : > { %v2675_v32 = vadd.f32 %v2668_v6, %v12918_v49  ;;  %v2670_v37 = vpop.f32.mrb[9].mxu1 }
 0x561   : > { %v2676_v2 = vadd.f32 %v2670_v37, %v12911_v21  ;;  %v11109_v37 = vpop.eup %11108 }
 0x562   : > { %v2677_v0 = vmul.f32 %v12093_v46, %v2675_v32 }
 0x563   : > { %v2678_v14 = vmul.f32 %v12128_v15, %v2676_v2  ;;  %v11111_v2 = vpop.eup %11110 }
 0x564   : > { %2681 = vrot.lane.b32.xlu1 %v2677_v0, %s11527_s23 }
 0x565   : > { %2683 = vrot.lane.b32.xlu0 %v2678_v14, %s11527_s23 }
 0x573   : > { %v2943_v56 = vpop.f32.mrb[18].mxu0 }
 0x574   : > { %v2950_v29 = vadd.f32 %v2943_v56, %v12933_v43  ;;  %v2945_v27 = vpop.f32.mrb[19].mxu0 }
 0x575   : > { %v2951_v10 = vadd.f32 %v2945_v27, %v12928_v7 }
 0x576   : > { %v2952_v18 = vmul.f32 %v12107_v60, %v2950_v29  ;;  %v11113_v29 = vpop.eup %11112 }
 0x577   : > { %v2953_v16 = vmul.f32 %v12136_v22, %v2951_v10  ;;  %v11115_v27 = vpop.eup %11114 }
 0x578   : > { %2956 = vrot.lane.b32.xlu1 %v2952_v18, %s11527_s23 }
 0x579   : > { %2958 = vrot.lane.b32.xlu0 %v2953_v16, %s11527_s23  ;;  %v3219_v21 = vpop.f32.mrb[10].mxu1 }
 0x57a   : > { %v3226_v49 = vadd.f32 %v3219_v21, %v2979_v63  ;;  %v3221_v3 = vpop.f32.mrb[11].mxu1 }
 0x57b   : > { %v3227_v1 = vadd.f32 %v3221_v3, %v2978_v24 }
 0x57c   : > { %v3228_v47 = vmul.f32 %v12123_v12, %v3226_v49 }
 0x57d   : > { %v3229_v30 = vmul.f32 %v12142_v26, %v3227_v1 }
 0x57e   : > { %3232 = vrot.lane.b32.xlu1 %v3228_v47, %s11527_s23 }
 0x57f   : > { %3234 = vrot.lane.b32.xlu0 %v3229_v30, %s11527_s23 }
 0x582   : > { %3248 = vrot.lane.b32.xlu1 %v12980_v25, %s11529_s16 }
 0x583   : > { %3523 = vrot.lane.b32.xlu0 %v12980_v25, %s11529_s16 }
 0x586   : > { %3416 = vrot.lane.b32.xlu1 %v12980_v25, %s11531_s30 }
 0x587   : > { %3691 = vrot.lane.b32.xlu0 %v12980_v25, %s11531_s30 }
 0x5b0   : > { %v2407_v7 = vpop.permute.xlu1 %2406 }
 0x5b1   : > { %2413 = vst.msk [vmem:[#allocation5] sm:$0xff] %vm1417_vm15, %v2407_v7  ;;  %v2409_v41 = vpop.permute.xlu0 %2408 }
 0x5b2   : > { %v2410_v43 = vsel %vm804_vm1, %v2407_v7, %v2409_v41 }
 0x5b3   : > { %2414 = vst.msk [vmem:[#allocation5 + $0x8] sm:$0xff] %vm1419_vm5, %v2410_v43 }
 0x5b8   : > { %v3245_v53 = vld [vmem:[#allocation5] sm:$0xff] }
 0x5b9   : > { %3252 = vrot.lane.b32.xlu1 %v3245_v53, %s11539_s19 }
 0x5ba   : > { %v3246_v40 = vld [vmem:[#allocation5 + $0x8] sm:$0xff] }
 0x5bb   : > { %3254 = vrot.lane.b32.xlu0 %v3246_v40, %s11539_s19 }
 0x5bd   : > { %3695 = vrot.lane.b32.xlu1 %v3245_v53, %s11541_s13 }
 0x5bf   : > { %3697 = vrot.lane.b32.xlu0 %v3246_v40, %s11541_s13 }
 0x5d6   : > { %v2682_v13 = vpop.permute.xlu1 %2681 }
 0x5d7   : > { %2688 = vst.msk [vmem:[#allocation5 + $0x10] sm:$0xff] %vm1417_vm15, %v2682_v13  ;;  %v2684_v9 = vpop.permute.xlu0 %2683 }
 0x5d8   : > { %v2685_v48 = vsel %vm804_vm1, %v2682_v13, %v2684_v9 }
 0x5d9   : > { %2689 = vst.msk [vmem:[#allocation5 + $0x18] sm:$0xff] %vm1419_vm5, %v2685_v48 }
 0x5de   : > { %v3520_v59 = vld [vmem:[#allocation5 + $0x10] sm:$0xff] }
 0x5e0   : > { %v3521_v33 = vld [vmem:[#allocation5 + $0x18] sm:$0xff] }
 0x5ea   : > { %v2957_v50 = vpop.permute.xlu1 %2956 }
 0x5eb   : > { %2963 = vst.msk [vmem:[#allocation5 + $0x20] sm:$0xff] %vm1417_vm15, %v2957_v50  ;;  %v2959_v39 = vpop.permute.xlu0 %2958 }
 0x5ec   : > { %v2960_v28 = vsel %vm804_vm1, %v2957_v50, %v2959_v39 }
 0x5ed   : > { %2964 = vst.msk [vmem:[#allocation5 + $0x28] sm:$0xff] %vm1419_vm5, %v2960_v28 }
 0x5f0   : > { %v3233_v24 = vpop.permute.xlu1 %3232 }
 0x5f1   : > { %3239 = vst.msk [vmem:[#allocation5 + $0x30] sm:$0xff] %vm1417_vm15, %v3233_v24  ;;  %v3235_v42 = vpop.permute.xlu0 %3234 }
 0x5f2   : > { %v3517_v63 = vld [vmem:[#allocation5 + $0x20] sm:$0xff]  ;;  %v3236_v35 = vsel %vm804_vm1, %v3233_v24, %v3235_v42 }
 0x5f3   : > { %3609 = vrot.lane.b32.xlu1 %v3517_v63, %s11540_s22  ;;  %3240 = vst.msk [vmem:[#allocation5 + $0x38] sm:$0xff] %vm1419_vm5, %v3236_v35 }
 0x5f4   : > { %v3518_v57 = vld [vmem:[#allocation5 + $0x28] sm:$0xff]  ;;  %v3249_v61 = vpop.permute.xlu1 %3248 }
 0x5f5   : > { %3611 = vrot.lane.b32.xlu0 %v3518_v57, %s11540_s22  ;;  %v3524_v8 = vpop.permute.xlu0 %3523 }
 0x5f7   : > { %3527 = vrot.lane.b32.xlu1 %v3520_v59, %s11539_s19 }
 0x5f8   : > { %v3414_v19 = vld [vmem:[#allocation5 + $0x30] sm:$0xff]  ;;  %v3417_v6 = vpop.permute.xlu1 %3416 }
 0x5f9   : > { %3529 = vrot.lane.b32.xlu0 %v3521_v33, %s11539_s19  ;;  %v3692_v32 = vpop.permute.xlu0 %3691 }
 0x5fa   : > { %v3415_v45 = vld [vmem:[#allocation5 + $0x38] sm:$0xff] }
 0x5fb   : > { %3802 = vrot.lane.b32.xlu1 %v3517_v63, %s11539_s19 }
 0x5fd   : > { %3804 = vrot.lane.b32.xlu0 %v3518_v57, %s11539_s19 }
 0x5ff   : > { %3334 = vrot.lane.b32.xlu1 %v3520_v59, %s11540_s22 }
 0x601   : > { %3336 = vrot.lane.b32.xlu0 %v3521_v33, %s11540_s22 }
 0x603   : > { %3798 = vrot.lane.b32.xlu1 %v12980_v25, %s11529_s16 }
 0x605   : > { %4073 = vrot.lane.b32.xlu0 %v12980_v25, %s11529_s16 }
 0x607   : > { %3420 = vrot.lane.b32.xlu1 %v3414_v19, %s11539_s19 }
 0x609   : > { %3422 = vrot.lane.b32.xlu0 %v3415_v45, %s11539_s19 }
 0x60b   : > { %4077 = vrot.lane.b32.xlu1 %v3414_v19, %s11539_s19 }
 0x60d   : > { %4079 = vrot.lane.b32.xlu0 %v3415_v45, %s11539_s19 }
 0x60f   : > { %4159 = vrot.lane.b32.xlu1 %v3245_v53, %s11539_s19 }
 0x611   : > { %4161 = vrot.lane.b32.xlu0 %v3246_v40, %s11539_s19 }
 0x613   : > { %3884 = vrot.lane.b32.xlu1 %v3414_v19, %s11540_s22 }
 0x615   : > { %3886 = vrot.lane.b32.xlu0 %v3415_v45, %s11540_s22 }
 0x617   : > { %3970 = vrot.lane.b32.xlu1 %v3520_v59, %s11541_s13 }
 0x619   : > { %3972 = vrot.lane.b32.xlu0 %v3521_v33, %s11541_s13 }
 0x61b   : > { %4245 = vrot.lane.b32.xlu1 %v3517_v63, %s11541_s13 }
 0x61d   : > { %4247 = vrot.lane.b32.xlu0 %v3518_v57, %s11541_s13 }
 0x61f   : > { %3966 = vrot.lane.b32.xlu1 %v12980_v25, %s11531_s30 }
 0x621   : > { %4241 = vrot.lane.b32.xlu0 %v12980_v25, %s11531_s30 }
 0x623   : > { %4856 = vperm.xlu1 %11067, %v4360_v55  }
 0x625   : > { %5095 = vperm.xlu0 %11066, %v4361_v34  }
 0x627   : > { %4617 = vperm.xlu1 %11067, %v4359_v5  }
 0x629   : > { %4378 = vperm.xlu0 %11066, %v4358_v44  }
 0x62b   : > { %v3253_v0 = vpop.permute.xlu1 %3252  ;;  %5073 = vperm.xlu1 %11067, %v11109_v37  }
 0x62d   : > { %v13034_v14 = vpop.permute.xlu0 %3254  ;;  %5312 = vperm.xlu0 %11066, %v11111_v2  }
 0x62e   : > { %14771 = vst [vmem:[#allocation45_spill] sm:$0xff] %v13034_v14  ;;  %3261 = vmatprep.subr.mxu0 %v13034_v14  ;;  %v13039_v56 = vsel %vm14699_vm10, %v3253_v0, %v13034_v14 }
 0x62f   : > { %14772 = vst [vmem:[#allocation46_spill] sm:$0xff] %v13039_v56  ;;  %3262 = vmatpush1.msra.mxu0 %v13039_v56  ;;  %4834 = vperm.xlu1 %11067, %v11113_v29   ;;  %v3696_v10 = vpop.permute.xlu1 %3695 }
 0x630   : > { %10591 = vmatmul.mubr.msk.f32.vlgmr.msra.gmra.mrb[20].mxu0 %vm650_vm3, %v3249_v61 }
 0x631   : > { %3407 = vmatprep.mubr.f32.mxu0 %v14770_v4  ;;  %4595 = vperm.xlu0 %11066, %v11115_v27   ;;  %v3698_v18 = vpop.permute.xlu0 %3697  ;;  %v5091_v27 = vld [vmem:[#allocation3 + $0x30] sm:$0xff] }
 0x632   : > { %v3699_v13 = vsel %vm14698_vm2, %v3696_v10, %v3698_v18 }
 0x665   : > { %v3610_v16 = vpop.permute.xlu1 %3609 }
 0x667   : > { %v3612_v21 = vpop.permute.xlu0 %3611 }
 0x668   : > { %v3613_v30 = vsel %vm2235_vm0, %v3610_v16, %v3612_v21 }
 0x669   : > { %v3528_v49 = vpop.permute.xlu1 %3527 }
 0x66b   : > { %v13044_v3 = vpop.permute.xlu0 %3529 }
 0x66c   : > { %14773 = vst [vmem:[#allocation47_spill] sm:$0xff] %v13044_v3  ;;  %3536 = vmatprep.subr.mxu1 %v13044_v3  ;;  %v13049_v1 = vsel %vm14699_vm10, %v3528_v49, %v13044_v3 }
 0x66d   : > { %14774 = vst [vmem:[#allocation48_spill] sm:$0xff] %v13049_v1  ;;  %v3803_v47 = vpop.permute.xlu1 %3802  ;;  %3537 = vmatpush1.msra.mxu1 %v13049_v1 }
 0x66e   : > { %10594 = vmatmul.mubr.msk.f32.vlgmr.msra.gmra.mrb[12].mxu1 %vm650_vm3, %v3524_v8  ;;  %3618 = vmatprep.subr.mxu1 %v3612_v21  ;;  %v4853_v8 = vld [vmem:[#allocation3 + $0x28] sm:$0xff] }
 0x66f   : > { %3619 = vmatpush1.msra.mxu1 %v3613_v30  ;;  %v13054_v7 = vpop.permute.xlu0 %3804  ;;  %3682 = vmatprep.mubr.f32.mxu1 %v14770_v4 }
 0x670   : > { %14775 = vst [vmem:[#allocation49_spill] sm:$0xff] %v13054_v7  ;;  %3704 = vmatprep.subr.mxu1 %v3698_v18  ;;  %v13071_v24 = vsel %vm14699_vm10, %v3803_v47, %v13054_v7  ;;  %v5092_v47 = vld [vmem:[#allocation3 + $0x38] sm:$0xff] }
 0x671   : > { %v3335_v41 = vpop.permute.xlu1 %3334  ;;  %14776 = vst [vmem:[#allocation50_spill] sm:$0xff] %v13071_v24 }
 0x673   : > { %v3337_v43 = vpop.permute.xlu0 %3336 }
 0x674   : > { %3343 = vmatprep.subr.mxu0 %v3337_v43  ;;  %v3338_v53 = vsel %vm2235_vm0, %v3335_v41, %v3337_v43 }
 0x675   : > { %v3799_v40 = vpop.permute.xlu1 %3798  ;;  %3344 = vmatpush1.msra.mxu0 %v3338_v53 }
 0x676   : > { %10592 = vmatmul.mubr.msk.f32.vlgmr.msra.gmra.mrb[20].mxu0 %vm650_vm3, %v12980_v25  ;;  %10595 = vmatmul.mubr.msk.f32.vlgmr.msra.gmra.mrb[12].mxu1 %vm650_vm3, %v12980_v25 }
 0x677   : > { %3705 = vmatpush1.msra.mxu1 %v3699_v13  ;;  %v4074_v9 = vpop.permute.xlu0 %4073  ;;  %3493 = vmatprep.mubr.f32.mxu0 %v14770_v4 }
 0x678   : > { %3768 = vmatprep.mubr.f32.mxu1 %v14770_v4 }
 0x679   : > { %v3421_v48 = vpop.permute.xlu1 %3420 }
 0x67b   : > { %v3423_v50 = vpop.permute.xlu0 %3422 }
 0x67c   : > { %3429 = vmatprep.subr.mxu0 %v3423_v50  ;;  %v3424_v39 = vsel %vm14699_vm10, %v3421_v48, %v3423_v50 }
 0x67d   : > { %v4078_v28 = vpop.permute.xlu1 %4077  ;;  %3430 = vmatpush1.msra.mxu0 %v3424_v39 }
 0x67e   : > { %10593 = vmatmul.mubr.msk.f32.vlgmr.msra.gmra.mrb[20].mxu0 %vm650_vm3, %v3417_v6  ;;  %10596 = vmatmul.mubr.msk.f32.vlgmr.msra.gmra.mrb[12].mxu1 %vm650_vm3, %v3692_v32 }
 0x67f   : > { %3811 = vmatprep.subr.mxu0 %v13054_v7  ;;  %v13073_v42 = vpop.permute.xlu0 %4079  ;;  %3875 = vmatprep.mubr.f32.mxu0 %v14770_v4 }
 0x680   : > { %14777 = vst [vmem:[#allocation51_spill] sm:$0xff] %v13073_v42  ;;  %3812 = vmatpush1.msra.mxu0 %v13071_v24  ;;  %4086 = vmatprep.subr.mxu1 %v13073_v42  ;;  %v13080_v63 = vsel %vm14699_vm10, %v4078_v28, %v13073_v42 }
 0x681   : > { %14778 = vst [vmem:[#allocation52_spill] sm:$0xff] %v13080_v63  ;;  %v4160_v35 = vpop.permute.xlu1 %4159  ;;  %4087 = vmatpush1.msra.mxu1 %v13080_v63  ;;  %4150 = vmatprep.mubr.f32.mxu1 %v14770_v4 }
 0x682   : > { %10597 = vmatmul.mubr.msk.f32.vlgmr.msra.gmra.mrb[22].mxu0 %vm650_vm3, %v3799_v40  ;;  %10600 = vmatmul.mubr.msk.f32.vlgmr.msra.gmra.mrb[14].mxu1 %vm650_vm3, %v4074_v9 }
 0x683   : > { %v4162_v57 = vpop.permute.xlu0 %4161  ;;  %3957 = vmatprep.mubr.f32.mxu0 %v14770_v4  ;;  %4232 = vmatprep.mubr.f32.mxu1 %v14770_v4 }
 0x684   : > { %4168 = vmatprep.subr.mxu1 %v4162_v57  ;;  %v4163_v59 = vsel %vm14699_vm10, %v4160_v35, %v4162_v57 }
 0x685   : > { %v3885_v33 = vpop.permute.xlu1 %3884  ;;  %4169 = vmatpush1.msra.mxu1 %v4163_v59 }
 0x687   : > { %v3887_v19 = vpop.permute.xlu0 %3886 }
 0x688   : > { %3893 = vmatprep.subr.mxu0 %v3887_v19  ;;  %v3888_v45 = vsel %vm2235_vm0, %v3885_v33, %v3887_v19 }
 0x689   : > { %v3971_v55 = vpop.permute.xlu1 %3970  ;;  %3894 = vmatpush1.msra.mxu0 %v3888_v45 }
 0x68a   : > { %10598 = vmatmul.mubr.msk.f32.vlgmr.msra.gmra.mrb[22].mxu0 %vm650_vm3, %v12980_v25  ;;  %10601 = vmatmul.mubr.msk.f32.vlgmr.msra.gmra.mrb[14].mxu1 %vm650_vm3, %v12980_v25  ;;  %v4852_v25 = vld [vmem:[#allocation3 + $0x20] sm:$0xff] }
 0x68b   : > { %v3973_v34 = vpop.permute.xlu0 %3972  ;;  %4043 = vmatprep.mubr.f32.mxu0 %v14770_v4  ;;  %4318 = vmatprep.mubr.f32.mxu1 %v14770_v4 }
 0x68c   : > { %3979 = vmatprep.subr.mxu0 %v3973_v34  ;;  %v3974_v17 = vsel %vm14698_vm2, %v3971_v55, %v3973_v34 }
 0x68d   : > { %v4246_v5 = vpop.permute.xlu1 %4245  ;;  %3980 = vmatpush1.msra.mxu0 %v3974_v17 }
 0x68f   : > { %v4248_v23 = vpop.permute.xlu0 %4247 }
 0x690   : > { %4254 = vmatprep.subr.mxu1 %v4248_v23  ;;  %v4249_v44 = vsel %vm14698_vm2, %v4246_v5, %v4248_v23 }
 0x691   : > { %v3967_v62 = vpop.permute.xlu1 %3966  ;;  %4255 = vmatpush1.msra.mxu1 %v4249_v44 }
 0x692   : > { %10599 = vmatmul.mubr.msk.f32.vlgmr.msra.gmra.mrb[22].mxu0 %vm650_vm3, %v3967_v62 }
 0x693   : > { %v4242_v61 = vpop.permute.xlu0 %4241  ;;  %5413 = vmatprep.mubr.f32.mxu0 %v14770_v4 }
 0x694   : > { %10602 = vmatmul.mubr.msk.f32.vlgmr.msra.gmra.mrb[14].mxu1 %vm650_vm3, %v4242_v61 }
 0x695   : > { %6028 = vmatprep.mubr.f32.mxu1 %v14770_v4 }
 0x6a2   : > { %v4857_v11 = vpop.permute.xlu1 %4856 }
 0x6a3   : > { %v13102_v6 = vmul.f32 %v4857_v11, %v4852_v25  ;;  %v13104_v32 = vmul.f32 %v4857_v11, %v4853_v8 }
 0x6a4   : > { %v5096_v37 = vpop.permute.xlu0 %5095 }
 0x6a5   : > { %v14662_v2 = vand.u32 2147483647, %v13102_v6  ;;  %v4864_v0 = vand.u32 2139095040, %v13102_v6  ;;  %v14661_v29 = vand.u32 2147483647, %v13104_v32  ;;  %v4968_v10 = vand.u32 2139095040, %v13104_v32 }
 0x6a6   : > { %v13110_v18 = vmul.f32 %v5096_v37, %v5091_v27  ;;  %v13116_v41 = vmul.f32 %v5096_v37, %v5092_v47 }
 0x6a7   : > { %v4865_v16 = vshrl.u32 %v4864_v0, 23  ;;  %v4868_v21 = vand.u32 8388607, %v14662_v2  ;;  %v4972_v49 = vand.u32 8388607, %v14661_v29  ;;  %v4969_v30 = vshrl.u32 %v4968_v10, 23 }
 0x6a8   : > { %v14660_v43 = vand.u32 2147483647, %v13110_v18  ;;  %v5103_v53 = vand.u32 2139095040, %v13110_v18  ;;  %v5207_v59 = vand.u32 2139095040, %v13116_v41 }
 0x6a9   : > { %v10619_v40 = vadd.s32 4294967169, %v4865_v16  ;;  %v4869_v13 = vor.u32 8388608, %v4868_v21  ;;  %v10623_v9 = vadd.s32 4294967169, %v4969_v30  ;;  %v4973_v39 = vor.u32 8388608, %v4972_v49 }
 0x6aa   : > { %v5104_v48 = vshrl.u32 %v5103_v53, 23  ;;  %v13122_v57 = vand.u32 8388607, %v14660_v43  ;;  %v13134_v62 = vshrl.u32 %v5207_v59, 23 }
 0x6ab   : > { %v4871_v50 = vadd.s32 1, %v10619_v40  ;;  %v4975_v28 = vadd.s32 1, %v10623_v9  ;;  %v13125_v19 = vshll.u32 %v4869_v13, 8  ;;  %v13127_v17 = vshll.u32 %v4973_v39, 8 }
 0x6ac   : > { %v10627_v35 = vadd.s32 4294967169, %v5104_v48  ;;  %v5108_v23 = vor.u32 8388608, %v13122_v57 }
 0x6ad   : > { %vm4872_vm4 = vcmp.gt.s32.totalorder %v4871_v50, 0  ;;  %vm4976_vm6 = vcmp.gt.s32.totalorder %v4975_v28, 0 }
 0x6ae   : > { %v4873_v33 = vsel %vm4872_vm4, %v4871_v50, 0  ;;  %v4977_v34 = vsel %vm4976_vm6, %v4975_v28, 0  ;;  %v13132_v44 = vadd.s32 1, %v10627_v35 }
 0x6af   : > { %v4874_v45 = vshrl.u32 %v4873_v33, 5  ;;  %v4875_v55 = vand.u32 31, %v4873_v33  ;;  %v13129_v5 = vshrl.u32 %v4977_v34, 5  ;;  %v4979_v11 = vand.u32 31, %v4977_v34 }
 0x6b0   : > { %vm5111_vm13 = vcmp.gt.s32.totalorder %v13132_v44, 0 }
 0x6b1   : > { %v4876_v61 = vsub.s32 32, %v4875_v55  ;;  %v4878_v25 = vshll.u32 %v14663_v38, %v4875_v55  ;;  %v4881_v8 = vshll.u32 %v14759_v52, %v4875_v55  ;;  %v4884_v37 = vshll.u32 %v14760_v51, %v4875_v55 }
 0x6b2   : > { %v4887_v0 = vshll.u32 %v14761_v31, %v4875_v55  ;;  %v4890_v27 = vshll.u32 %v14668_v54, %v4875_v55  ;;  %vm4893_vm7 = vcmp.lt.s32.totalorder %v4874_v45, 1  ;;  %vm4894_vm11 = vcmp.lt.s32.totalorder %v4874_v45, 2 }
 0x6b3   : > { %v4879_v10 = vshrl.u32 %v14759_v52, %v4876_v61  ;;  %v4882_v16 = vshrl.u32 %v14760_v51, %v4876_v61  ;;  %v4885_v21 = vshrl.u32 %v14761_v31, %v4876_v61  ;;  %v4877_v49 = vshrl.u32 %v14663_v38, %v4876_v61 }
 0x6b4   : > { %v4888_v47 = vshrl.u32 %v14668_v54, %v4876_v61  ;;  %v4891_v30 = vshrl.u32 %v14666_v58, %v4876_v61  ;;  %vm4895_vm8 = vcmp.lt.s32.totalorder %v4874_v45, 3  ;;  %v4980_v9 = vsub.s32 32, %v4979_v11 }
 0x6b5   : > { %v4880_v53 = vor.u32 %v4879_v10, %v4878_v25  ;;  %v4883_v40 = vor.u32 %v4882_v16, %v4881_v8  ;;  %v4886_v13 = vor.u32 %v4885_v21, %v4884_v37  ;;  %vm4896_vm12 = vcmp.lt.s32.totalorder %v4874_v45, 4 }
 0x6b6   : > { %v4889_v48 = vor.u32 %v4888_v47, %v4887_v0  ;;  %v4892_v50 = vor.u32 %v4891_v30, %v4890_v27  ;;  %v4982_v39 = vshll.u32 %v14663_v38, %v4979_v11  ;;  %v4985_v25 = vshll.u32 %v14759_v52, %v4979_v11 }
 0x6b7   : > { %v4897_v28 = vsel %vm4893_vm7, %v4877_v49, %v4880_v53  ;;  %v4898_v35 = vsel %vm4896_vm12, %v4886_v13, 2102212464  ;;  %v4901_v59 = vsel %vm4893_vm7, %v4880_v53, %v4883_v40  ;;  %v4905_v33 = vsel %vm4893_vm7, %v4883_v40, %v4886_v13 }
 0x6b8   : > { %v4899_v55 = vsel %vm4895_vm8, %v4883_v40, %v4898_v35  ;;  %v4902_v34 = vsel %vm4896_vm12, %v4889_v48, 920167782  ;;  %v4906_v61 = vsel %vm4896_vm12, %v4892_v50, 1326507024  ;;  %v4981_v0 = vshrl.u32 %v14663_v38, %v4980_v9 }
 0x6b9   : > { %v4903_v8 = vsel %vm4895_vm8, %v4886_v13, %v4902_v34  ;;  %v4907_v37 = vsel %vm4895_vm8, %v4889_v48, %v4906_v61  ;;  %v4983_v27 = vshrl.u32 %v14759_v52, %v4980_v9  ;;  %v4900_v10 = vsel %vm4894_vm11, %v4897_v28, %v4899_v55 }
 0x6ba   : > { %v4904_v16 = vsel %vm4894_vm11, %v4901_v59, %v4903_v8  ;;  %v4908_v21 = vsel %vm4894_vm11, %v4905_v33, %v4907_v37  ;;  %v4986_v49 = vshrl.u32 %v14760_v51, %v4980_v9  ;;  %v4988_v50 = vshll.u32 %v14760_v51, %v4979_v11 }
 0x6bb   : > { %v13163_v47 = vmul.u32.u64.low %v13125_v19, %v4908_v21  ;;  %v13164_v30 = vmul.u32.u64.high %v13125_v19, %v4908_v21, %v13163_v47  ;;  %v13167_v53 = vmul.u32.u64.low %v13125_v19, %v4904_v16  ;;  %v13168_v40 = vmul.u32.u64.high %v13125_v19, %v4904_v16, %v13167_v53 }
 0x6bc   : > { %v4984_v13 = vor.u32 %v4983_v27, %v4982_v39  ;;  %v4987_v48 = vor.u32 %v4986_v49, %v4985_v25  ;;  %v4989_v28 = vshrl.u32 %v14761_v31, %v4980_v9  ;;  %v4916_v45 = vmul.u32 %v13125_v19, %v4900_v10 }
 0x6bd   : > { %v4991_v35 = vshll.u32 %v14761_v31, %v4979_v11  ;;  %v4992_v59 = vshrl.u32 %v14668_v54, %v4980_v9  ;;  %v4995_v33 = vshrl.u32 %v14666_v58, %v4980_v9  ;;  %v4994_v34 = vshll.u32 %v14668_v54, %v4979_v11 }
 0x6be   : > { %v4990_v55 = vor.u32 %v4989_v28, %v4988_v50  ;;  %vm4997_vm14 = vcmp.lt.s32.totalorder %v13129_v5, 1  ;;  %vm4998_vm9 = vcmp.lt.s32.totalorder %v13129_v5, 2  ;;  %vm4918_vm4 = vc.u32 %v13164_v30, %v13167_v53 }
 0x6bf   : > { %v4919_v39 = vadd.s32 1, %v13168_v40  ;;  %v4993_v61 = vor.u32 %v4992_v59, %v4991_v35  ;;  %vm4999_vm6 = vcmp.lt.s32.totalorder %v13129_v5, 3  ;;  %v4996_v19 = vor.u32 %v4995_v33, %v4994_v34 }
 0x6c0   : > { %vm5000_vm7 = vcmp.lt.s32.totalorder %v13129_v5, 4  ;;  %v5001_v25 = vsel %vm4997_vm14, %v4981_v0, %v4984_v13  ;;  %v5005_v9 = vsel %vm4997_vm14, %v4984_v13, %v4987_v48  ;;  %v5009_v27 = vsel %vm4997_vm14, %v4987_v48, %v4990_v55 }
 0x6c1   : > { %v4920_v8 = vsel %vm4918_vm4, %v4919_v39, %v13168_v40  ;;  %v5002_v11 = vsel %vm5000_vm7, %v4990_v55, 2102212464  ;;  %v5006_v37 = vsel %vm5000_vm7, %v4993_v61, 920167782  ;;  %v5010_v49 = vsel %vm5000_vm7, %v4996_v19, 1326507024 }
 0x6c2   : > { %v4921_v10 = vadd.s32 %v4920_v8, %v4916_v45  ;;  %v5003_v16 = vsel %vm4999_vm6, %v4987_v48, %v5002_v11  ;;  %v5007_v21 = vsel %vm4999_vm6, %v4990_v55, %v5006_v37  ;;  %v5011_v50 = vsel %vm4999_vm6, %v4993_v61, %v5010_v49 }
 0x6c3   : > { %v5008_v47 = vsel %vm4998_vm9, %v5005_v9, %v5007_v21  ;;  %v5112_v28 = vsel %vm5111_vm13, %v13132_v44, 0  ;;  %v10631_v0 = vadd.s32 4294967169, %v13134_v62  ;;  %v5012_v40 = vsel %vm4998_vm9, %v5009_v27, %v5011_v50 }
 0x6c4   : > { %v4922_v13 = vadd.s32 536870912, %v4921_v10  ;;  %v13195_v35 = vmul.u32.u64.low %v13127_v17, %v5008_v47  ;;  %v13196_v45 = vmul.u32.u64.high %v13127_v17, %v5008_v47, %v13195_v35  ;;  %v5004_v48 = vsel %vm4998_vm9, %v5001_v25, %v5003_v16 }
 0x6c5   : > { %v13202_v59 = vmul.u32.u64.low %v13127_v17, %v5012_v40  ;;  %v13203_v33 = vmul.u32.u64.high %v13127_v17, %v5012_v40, %v13202_v59  ;;  %v5113_v55 = vshrl.u32 %v5112_v28, 5  ;;  %v5114_v62 = vand.u32 31, %v5112_v28 }
 0x6c6   : > { %v13205_v44 = vshrl.u32 %v4922_v13, 30  ;;  %v13209_v34 = vshll.u32 %v5108_v23, 8  ;;  %v5020_v61 = vmul.u32 %v13127_v17, %v5004_v48  ;;  %v5023_v19 = vadd.s32 1, %v13196_v45 }
 0x6c7   : > { %v5115_v5 = vsub.s32 32, %v5114_v62  ;;  %vm5022_vm11 = vc.u32 %v13203_v33, %v13195_v35  ;;  %v5117_v25 = vshll.u32 %v14663_v38, %v5114_v62  ;;  %vm5132_vm8 = vcmp.lt.s32.totalorder %v5113_v55, 1 }
 0x6c8   : > { %v4924_v39 = vshll.u32 %v13205_v44, 30  ;;  %v5214_v9 = vadd.s32 1, %v10631_v0  ;;  %v5024_v57 = vsel %vm5022_vm11, %v5023_v19, %v13196_v45  ;;  %v5120_v11 = vshll.u32 %v14759_v52, %v5114_v62 }
 0x6c9   : > { %v5118_v23 = vshrl.u32 %v14759_v52, %v5115_v5  ;;  %v5025_v37 = vadd.s32 %v5024_v57, %v5020_v61  ;;  %v5121_v17 = vshrl.u32 %v14760_v51, %v5115_v5  ;;  %v5123_v27 = vshll.u32 %v14760_v51, %v5114_v62 }
 0x6ca   : > { %v13217_v8 = vsub.s32 %v4921_v10, %v4924_v39  ;;  %v5124_v16 = vshrl.u32 %v14761_v31, %v5115_v5  ;;  %v5126_v49 = vshll.u32 %v14761_v31, %v5114_v62  ;;  %v5127_v47 = vshrl.u32 %v14668_v54, %v5115_v5 }
 0x6cb   : > { %v5119_v21 = vor.u32 %v5118_v23, %v5117_v25  ;;  %v5129_v10 = vshll.u32 %v14668_v54, %v5114_v62  ;;  %v5026_v50 = vadd.s32 536870912, %v5025_v37  ;;  %v5122_v28 = vor.u32 %v5121_v17, %v5120_v11 }
 0x6cc   : > { %v5125_v0 = vor.u32 %v5124_v16, %v5123_v27  ;;  %v5130_v13 = vshrl.u32 %v14666_v58, %v5115_v5  ;;  %v4927_v40 = vsub.s32 0, %v13217_v8  ;;  %v5128_v45 = vor.u32 %v5127_v47, %v5126_v49 }
 0x6cd   : > { %vm5133_vm12 = vcmp.lt.s32.totalorder %v5113_v55, 2  ;;  %vm5135_vm13 = vcmp.lt.s32.totalorder %v5113_v55, 4  ;;  %v13230_v48 = vshrl.u32 %v5026_v50, 30  ;;  %v5140_v61 = vsel %vm5132_vm8, %v5119_v21, %v5122_v28 }
 0x6ce   : > { %v5131_v59 = vor.u32 %v5130_v13, %v5129_v10  ;;  %v5137_v39 = vsel %vm5135_vm13, %v5125_v0, 2102212464  ;;  %v5116_v19 = vshrl.u32 %v14663_v38, %v5115_v5  ;;  %vm5134_vm14 = vcmp.lt.s32.totalorder %v5113_v55, 3 }
 0x6cf   : > { %v5141_v62 = vsel %vm5135_vm13, %v5128_v45, 920167782  ;;  %v5144_v25 = vsel %vm5132_vm8, %v5122_v28, %v5125_v0  ;;  %v5028_v57 = vshll.u32 %v13230_v48, 30  ;;  %vm5215_vm9 = vcmp.gt.s32.totalorder %v5214_v9, 0 }
 0x6d0   : > { %v5142_v23 = vsel %vm5134_vm14, %v5125_v0, %v5141_v62  ;;  %v5145_v11 = vsel %vm5135_vm13, %v5131_v59, 1326507024  ;;  %v5136_v17 = vsel %vm5132_vm8, %v5116_v19, %v5119_v21  ;;  %v5138_v27 = vsel %vm5134_vm14, %v5122_v28, %v5137_v39 }
 0x6d1   : > { %v5143_v16 = vsel %vm5133_vm12, %v5140_v61, %v5142_v23  ;;  %v5146_v49 = vsel %vm5134_vm14, %v5128_v45, %v5145_v11  ;;  %v10620_v47 = vmin.u32 %v4927_v40, %v13217_v8  ;;  %v5216_v59 = vsel %vm5215_vm9, %v5214_v9, 0 }
 0x6d2   : > { %v5147_v10 = vsel %vm5133_vm12, %v5144_v25, %v5146_v49  ;;  %v13241_v5 = vmul.u32.u64.low %v13209_v34, %v5143_v16  ;;  %v13242_v50 = vmul.u32.u64.high %v13209_v34, %v5143_v16, %v13241_v5  ;;  %v13249_v62 = vsub.s32 %v5025_v37, %v5028_v57 }
 0x6d3   : > { %v13246_v13 = vmul.u32.u64.low %v13209_v34, %v5147_v10  ;;  %v13247_v0 = vmul.u32.u64.high %v13209_v34, %v5147_v10, %v13246_v13  ;;  %v5139_v21 = vsel %vm5133_vm12, %v5136_v17, %v5138_v27  ;;  %v5218_v28 = vand.u32 31, %v5216_v59 }
 0x6d4   : > { %v4929_v45 = vclz %v10620_v47  ;;  %v5158_v40 = vadd.s32 1, %v13242_v50  ;;  %v14659_v39 = vand.u32 2147483647, %v13116_v41  ;;  %v5155_v61 = vmul.u32 %v13209_v34, %v5139_v21 }
 0x6d5   : > { %vm5157_vm4 = vc.u32 %v13247_v0, %v13241_v5  ;;  %v5219_v19 = vsub.s32 32, %v5218_v28  ;;  %v5031_v25 = vsub.s32 0, %v13249_v62  ;;  %v5221_v49 = vshll.u32 %v14663_v38, %v5218_v28  ;;  %v4613_v38 = vld [vmem:[#allocation3 + $0x10] sm:$0xff] }
 0x6d6   : > { %v5159_v9 = vsel %vm5157_vm4, %v5158_v40, %v13242_v50  ;;  %v10621_v57 = vadd.s32 4294967294, %v4929_v45  ;;  %v5211_v55 = vand.u32 8388607, %v14659_v39  ;;  %v5224_v47 = vshll.u32 %v14759_v52, %v5218_v28 }
 0x6d7   : > { %v5160_v37 = vadd.s32 %v5159_v9, %v5155_v61  ;;  %v5222_v11 = vshrl.u32 %v14759_v52, %v5219_v19  ;;  %v5225_v17 = vshrl.u32 %v14760_v51, %v5219_v19  ;;  %v10624_v34 = vmin.u32 %v5031_v25, %v13249_v62  ;;  %v4618_v9 = vpop.permute.xlu1 %4617 }
 0x6d8   : > { %v5231_v27 = vshrl.u32 %v14668_v54, %v5219_v19  ;;  %v5228_v10 = vshrl.u32 %v14761_v31, %v5219_v19  ;;  %vm10622_vm6 = vcmp.lt.s32.totalorder %v10621_v57, 0  ;;  %v5212_v50 = vor.u32 8388608, %v5211_v55 }
 0x6d9   : > { %v5161_v23 = vadd.s32 536870912, %v5160_v37  ;;  %v5217_v13 = vshrl.u32 %v5216_v59, 5  ;;  %v5230_v21 = vshll.u32 %v14761_v31, %v5218_v28  ;;  %v5223_v45 = vor.u32 %v5222_v11, %v5221_v49 }
 0x6da   : > { %v5226_v40 = vor.u32 %v5225_v17, %v5224_v47  ;;  %v5227_v61 = vshll.u32 %v14760_v51, %v5218_v28  ;;  %v5234_v25 = vshrl.u32 %v14666_v58, %v5219_v19  ;;  %v5233_v29 = vshll.u32 %v14668_v54, %v5218_v28  ;;  %v4614_v54 = vld [vmem:[#allocation3 + $0x18] sm:$0xff] }
 0x6db   : > { %v13265_v16 = vshrl.u32 %v5161_v23, 30  ;;  %v5033_v23 = vclz %v10624_v34  ;;  %v5232_v43 = vor.u32 %v5231_v27, %v5230_v21  ;;  %vm5236_vm7 = vcmp.lt.s32.totalorder %v5217_v13, 1 }
 0x6dc   : > { %v5229_v2 = vor.u32 %v5228_v10, %v5227_v61  ;;  %v5235_v4 = vor.u32 %v5234_v25, %v5233_v29  ;;  %v5252_v59 = vshll.u32 %v5212_v50, 8  ;;  %v13275_v55 = vmul.f32 %v4618_v9, %v4613_v38 }
 0x6dd   : > { %v5163_v39 = vshll.u32 %v13265_v16, 30  ;;  %v4932_v11 = vsel %vm10622_vm6, 0, %v10621_v57  ;;  %v14779_v17 = vmov 683565275   ;;  %vm5239_vm11 = vcmp.lt.s32.totalorder %v5217_v13, 4 }
 0x6de   : > { %v5220_v49 = vshrl.u32 %v14779_v17, %v5219_v19  ;;  %v5244_v47 = vsel %vm5236_vm7, %v5223_v45, %v5226_v40  ;;  %v10625_v34 = vadd.s32 4294967294, %v5033_v23  ;;  %vm5238_vm8 = vcmp.lt.s32.totalorder %v5217_v13, 3 }
 0x6df   : > { %v13280_v58 = vsub.s32 %v5160_v37, %v5163_v39  ;;  %v5245_v27 = vsel %vm5239_vm11, %v5232_v43, 920167782  ;;  %vm5237_vm12 = vcmp.lt.s32.totalorder %v5217_v13, 2  ;;  %v5241_v28 = vsel %vm5239_vm11, %v5229_v2, 2102212464 }
 0x6e0   : > { %v5246_v10 = vsel %vm5238_vm8, %v5229_v2, %v5245_v27  ;;  %v5248_v29 = vsel %vm5236_vm7, %v5226_v40, %v5229_v2  ;;  %v4937_v50 = vsub.s32 4294967266, %v4932_v11  ;;  %v5249_v21 = vsel %vm5239_vm11, %v5235_v4, 1326507024 }
 0x6e1   : > { %v5247_v38 = vsel %vm5237_vm12, %v5244_v47, %v5246_v10  ;;  %v5240_v57 = vsel %vm5236_vm7, %v5220_v49, %v5223_v45  ;;  %v5250_v19 = vsel %vm5238_vm8, %v5232_v43, %v5249_v21  ;;  %v5166_v39 = vsub.s32 0, %v13280_v58 }
 0x6e2   : > { %v13285_v61 = vmul.u32.u64.low %v5252_v59, %v5247_v38  ;;  %v13286_v25 = vmul.u32.u64.high %v5252_v59, %v5247_v38, %v13285_v61  ;;  %v5242_v37 = vsel %vm5238_vm8, %v5226_v40, %v5241_v28  ;;  %v5251_v23 = vsel %vm5237_vm12, %v5248_v29, %v5250_v19 }
 0x6e3   : > { %v4625_v27 = vand.u32 2139095040, %v13275_v55  ;;  %vm10626_vm13 = vcmp.lt.s32.totalorder %v10625_v34, 0  ;;  %v13292_v2 = vmul.u32.u64.low %v5252_v59, %v5251_v23  ;;  %v13293_v20 = vmul.u32.u64.high %v5252_v59, %v5251_v23, %v13292_v2 }
 0x6e4   : > { %v13295_v4 = vmul.f32 %v4618_v9, %v4614_v54  ;;  %v4933_v45 = vsub.s32 32, %v4932_v11  ;;  %v4938_v49 = vadd.s32 127, %v4937_v50  ;;  %v5243_v47 = vsel %vm5237_vm12, %v5240_v57, %v5242_v37 }
 0x6e5   : > { %v4626_v43 = vshrl.u32 %v4625_v27, 23  ;;  %v5262_v10 = vadd.s32 1, %v13286_v25  ;;  %v14672_v40 = vand.u32 2147483647, %v13275_v55  ;;  %v4917_v28 = vadd.s32 %v13167_v53, %v13164_v30 }
 0x6e6   : > { %v13302_v29 = vsel %vm10626_vm13, 0, %v10625_v34  ;;  %v10628_v38 = vmin.u32 %v5166_v39, %v13280_v58  ;;  %v4729_v54 = vand.u32 2139095040, %v13295_v4  ;;  %v5259_v19 = vmul.u32 %v5252_v59, %v5243_v47 }
 0x6e7   : > { %v10611_v21 = vadd.s32 4294967169, %v4626_v43  ;;  %v4935_v9 = vshrl.u32 %v4917_v28, %v4933_v45  ;;  %vm5261_vm14 = vc.u32 %v13293_v20, %v13285_v61  ;;  %v4939_v50 = vshll.u32 %v4938_v49, 23 }
 0x6e8   : > { %v5037_v57 = vsub.s32 32, %v13302_v29  ;;  %v5041_v37 = vsub.s32 4294967266, %v13302_v29  ;;  %v5263_v30 = vsel %vm5261_vm14, %v5262_v10, %v13286_v25  ;;  %v5168_v53 = vclz %v10628_v38 }
 0x6e9   : > { %v4632_v13 = vadd.s32 1, %v10611_v21  ;;  %v5264_v34 = vadd.s32 %v5263_v30, %v5259_v19  ;;  %v4629_v39 = vand.u32 8388607, %v14672_v40  ;;  %v4934_v23 = vshll.u32 %v13217_v8, %v4932_v11 }
 0x6ea   : > { %v5021_v59 = vadd.s32 %v13195_v35, %v13203_v33  ;;  %v4730_v2 = vshrl.u32 %v4729_v54, 23  ;;  %v13318_v47 = vor.u32 4788187, %v4939_v50  ;;  %v5042_v10 = vadd.s32 127, %v5041_v37 }
 0x6eb   : > { %vm4633_vm9 = vcmp.gt.s32.totalorder %v4632_v13, 0  ;;  %v5265_v45 = vadd.s32 536870912, %v5264_v34  ;;  %v13316_v49 = vor.u32 %v4935_v9, %v4934_v23  ;;  %v10629_v28 = vadd.s32 4294967294, %v5168_v53 }
 0x6ec   : > { %v4634_v27 = vsel %vm4633_vm9, %v4632_v13, 0  ;;  %v5039_v25 = vshrl.u32 %v5021_v59, %v5037_v57  ;;  %v4630_v21 = vor.u32 8388608, %v4629_v39  ;;  %v10615_v33 = vadd.s32 4294967169, %v4730_v2 }
 0x6ed   : > { %v4636_v43 = vand.u32 31, %v4634_v27  ;;  %v13320_v38 = vshrl.u32 %v5265_v45, 30  ;;  %v4635_v30 = vshrl.u32 %v4634_v27, 5  ;;  %v14780_v57 = vmov 920167782  }
 0x6ee   : > { %v14781_v39 = vmov 1326507024   ;;  %v5043_v59 = vshll.u32 %v5042_v10, 23  ;;  %v4736_v56 = vadd.s32 1, %v10615_v33  ;;  %vm10630_vm4 = vcmp.lt.s32.totalorder %v10629_v28, 0 }
 0x6ef   : > { %v4637_v19 = vsub.s32 32, %v4636_v43  ;;  %v4639_v8 = vshll.u32 %v14779_v17, %v4636_v43  ;;  %v4642_v35 = vshll.u32 %v14759_v52, %v4636_v43  ;;  %v4645_v9 = vshll.u32 %v14760_v51, %v4636_v43 }
 0x6f0   : > { %v4648_v13 = vshll.u32 %v14761_v31, %v4636_v43  ;;  %v4651_v53 = vshll.u32 %v14780_v57, %v4636_v43  ;;  %v5267_v27 = vshll.u32 %v13320_v38, 30  ;;  %vm4654_vm6 = vcmp.lt.s32.totalorder %v4635_v30, 1 }
 0x6f1   : > { %v4640_v11 = vshrl.u32 %v14759_v52, %v4637_v19  ;;  %v4643_v54 = vshrl.u32 %v14760_v51, %v4637_v19  ;;  %v4646_v50 = vshrl.u32 %v14761_v31, %v4637_v19  ;;  %v4649_v37 = vshrl.u32 %v14780_v57, %v4637_v19 }
 0x6f2   : > { %v4652_v23 = vshrl.u32 %v14781_v39, %v4637_v19  ;;  %vm4657_vm7 = vcmp.lt.s32.totalorder %v4635_v30, 4  ;;  %v14685_v22 = vand.u32 2147483647, %v13295_v4  ;;  %v4638_v60 = vshrl.u32 %v14779_v17, %v4637_v19 }
 0x6f3   : > { %v4641_v2 = vor.u32 %v4640_v11, %v4639_v8  ;;  %v4644_v45 = vor.u32 %v4643_v54, %v4642_v35  ;;  %v4647_v40 = vor.u32 %v4646_v50, %v4645_v9  ;;  %v4650_v36 = vor.u32 %v4649_v37, %v4648_v13 }
 0x6f4   : > { %v4653_v14 = vor.u32 %v4652_v23, %v4651_v53  ;;  %v4670_v7 = vshll.u32 %v4630_v21, 8  ;;  %v13335_v42 = vsub.s32 %v5264_v34, %v5267_v27  ;;  %vm4656_vm11 = vcmp.lt.s32.totalorder %v4635_v30, 3 }
 0x6f5   : > { %v4659_v26 = vsel %vm4657_vm7, %v4647_v40, 2102212464  ;;  %v4662_v43 = vsel %vm4654_vm6, %v4641_v2, %v4644_v45  ;;  %v4663_v10 = vsel %vm4657_vm7, %v4650_v36, 920167782  ;;  %v4666_v8 = vsel %vm4654_vm6, %v4644_v45, %v4647_v40 }
 0x6f6   : > { %vm4655_vm8 = vcmp.lt.s32.totalorder %v4635_v30, 2  ;;  %v4664_v35 = vsel %vm4656_vm11, %v4647_v40, %v4663_v10  ;;  %v4667_v11 = vsel %vm4657_vm7, %v4653_v14, 1326507024  ;;  %vm4737_vm12 = vcmp.gt.s32.totalorder %v4736_v56, 0  ;;  %v13354_v40 = vpop.permute.xlu0 %4378 }
 0x6f7   : > { %v4658_v33 = vsel %vm4654_vm6, %v4638_v60, %v4641_v2  ;;  %v4660_v54 = vsel %vm4656_vm11, %v4644_v45, %v4659_v26  ;;  %v4665_v9 = vsel %vm4655_vm8, %v4662_v43, %v4664_v35  ;;  %v4668_v13 = vsel %vm4656_vm11, %v4650_v36, %v4667_v11 }
 0x6f8   : > { %v4669_v50 = vsel %vm4655_vm8, %v4666_v8, %v4668_v13  ;;  %v13339_v19 = vmul.u32.u64.low %v4670_v7, %v4665_v9  ;;  %v13340_v37 = vmul.u32.u64.high %v4670_v7, %v4665_v9, %v13339_v19  ;;  %v4738_v34 = vsel %vm4737_vm12, %v4736_v56, 0 }
 0x6f9   : > { %v5270_v21 = vsub.s32 0, %v13335_v42  ;;  %v13344_v53 = vmul.u32.u64.low %v4670_v7, %v4669_v50  ;;  %v13345_v23 = vmul.u32.u64.high %v4670_v7, %v4669_v50, %v13344_v53  ;;  %v4733_v14 = vand.u32 8388607, %v14685_v22 }
 0x6fa   : > { %v5038_v60 = vshll.u32 %v13249_v62, %v13302_v29  ;;  %v13352_v36 = vsel %vm10630_vm4, 0, %v10629_v28  ;;  %v4740_v26 = vand.u32 31, %v4738_v34  ;;  %v4661_v2 = vsel %vm4655_vm8, %v4658_v33, %v4660_v54  ;;  %v4374_v62 = vld [vmem:[#allocation3] sm:$0xff] }
 0x6fb   : > { %v13361_v43 = vor.u32 4788187, %v5043_v59  ;;  %v4680_v10 = vadd.s32 1, %v13340_v37  ;;  %v10632_v28 = vmin.u32 %v5270_v21, %v13335_v42  ;;  %v4734_v35 = vor.u32 8388608, %v4733_v14 }
 0x6fc   : > { %v13359_v45 = vor.u32 %v5039_v25, %v5038_v60  ;;  %v4741_v8 = vsub.s32 32, %v4740_v26  ;;  %v13367_v11 = vmul.f32 %v13354_v40, %v4374_v62  ;;  %v4677_v9 = vmul.u32 %v4670_v7, %v4661_v2 }
 0x6fd   : > { %vm4679_vm13 = vc.u32 %v13345_v23, %v13339_v19  ;;  %v4739_v25 = vshrl.u32 %v4738_v34, 5  ;;  %v4743_v33 = vshll.u32 %v14779_v17, %v4740_v26  ;;  %v4746_v54 = vshll.u32 %v14759_v52, %v4740_v26 }
 0x6fe   : > { %v4744_v30 = vshrl.u32 %v14759_v52, %v4741_v8  ;;  %v4681_v59 = vsel %vm4679_vm13, %v4680_v10, %v13340_v37  ;;  %v4747_v13 = vshrl.u32 %v14760_v51, %v4741_v8  ;;  %v5176_v50 = vsub.s32 4294967266, %v13352_v36 }
 0x6ff   : > { %v4682_v21 = vadd.s32 %v4681_v59, %v4677_v9  ;;  %v4749_v53 = vshll.u32 %v14760_v51, %v4740_v26  ;;  %v4750_v7 = vshrl.u32 %v14761_v31, %v4741_v8  ;;  %v5272_v14 = vclz %v10632_v28 }
 0x700   : > { %v4745_v60 = vor.u32 %v4744_v30, %v4743_v33  ;;  %v4748_v34 = vor.u32 %v4747_v13, %v4746_v54  ;;  %v4774_v2 = vshll.u32 %v4734_v35, 8  ;;  %v4752_v37 = vshll.u32 %v14761_v31, %v4740_v26 }
 0x701   : > { %v4683_v62 = vadd.s32 536870912, %v4682_v21  ;;  %v4751_v22 = vor.u32 %v4750_v7, %v4749_v53  ;;  %v4753_v10 = vshrl.u32 %v14780_v57, %v4741_v8  ;;  %v4755_v29 = vshll.u32 %v14780_v57, %v4740_v26 }
 0x702   : > { %v4756_v56 = vshrl.u32 %v14781_v39, %v4741_v8  ;;  %vm4761_vm14 = vcmp.lt.s32.totalorder %v4739_v25, 4  ;;  %v4386_v9 = vand.u32 2139095040, %v13367_v11  ;;  %vm4758_vm9 = vcmp.lt.s32.totalorder %v4739_v25, 1 }
 0x703   : > { %v13384_v59 = vshrl.u32 %v4683_v62, 30  ;;  %v4754_v27 = vor.u32 %v4753_v10, %v4752_v37  ;;  %v4763_v28 = vsel %vm4761_vm14, %v4751_v22, 2102212464  ;;  %v10633_v35 = vadd.s32 4294967294, %v5272_v14 }
 0x704   : > { %v4742_v30 = vshrl.u32 %v14779_v17, %v4741_v8  ;;  %v4757_v33 = vor.u32 %v4756_v56, %v4755_v29  ;;  %v4766_v54 = vsel %vm4758_vm9, %v4745_v60, %v4748_v34  ;;  %vm4759_vm4 = vcmp.lt.s32.totalorder %v4739_v25, 2 }
 0x705   : > { %vm4760_vm6 = vcmp.lt.s32.totalorder %v4739_v25, 3  ;;  %v4767_v26 = vsel %vm4761_vm14, %v4754_v27, 920167782  ;;  %v4770_v13 = vsel %vm4758_vm9, %v4748_v34, %v4751_v22  ;;  %v4685_v37 = vshll.u32 %v13384_v59, 30 }
 0x706   : > { %v4762_v53 = vsel %vm4758_vm9, %v4742_v30, %v4745_v60  ;;  %v4764_v7 = vsel %vm4760_vm6, %v4748_v34, %v4763_v28  ;;  %v4768_v12 = vsel %vm4760_vm6, %v4751_v22, %v4767_v26  ;;  %v4771_v62 = vsel %vm4761_vm14, %v4757_v33, 1326507024  ;;  %v13400_v60 = vld [vmem:[#allocation3 + $0x8] sm:$0xff] }
 0x707   : > { %v4769_v10 = vsel %vm4759_vm4, %v4766_v54, %v4768_v12  ;;  %v4772_v24 = vsel %vm4760_vm6, %v4754_v27, %v4771_v62  ;;  %v4387_v14 = vshrl.u32 %v4386_v9, 23  ;;  %vm10634_vm7 = vcmp.lt.s32.totalorder %v10633_v35, 0  ;;  %14782 = vst [vmem:[#allocation53_spill] sm:$0xff] %v13400_v60 }
 0x708   : > { %v4773_v56 = vsel %vm4759_vm4, %v4770_v13, %v4772_v24  ;;  %v13393_v8 = vmul.u32.u64.low %v4774_v2, %v4769_v10  ;;  %v13394_v29 = vmul.u32.u64.high %v4774_v2, %v4769_v10, %v13393_v8  ;;  %v14692_v22 = vand.u32 2147483647, %v13367_v11 }
 0x709   : > { %v13397_v63 = vmul.u32.u64.low %v4774_v2, %v4773_v56  ;;  %v13398_v15 = vmul.u32.u64.high %v4774_v2, %v4773_v56, %v13397_v63  ;;  %v10603_v34 = vadd.s32 4294967169, %v4387_v14  ;;  %v14783_v28 = vand.u32 2147483647, %v13318_v47 }
 0x70a   : > { %v14784_v12 = vcvt.s32.f32 %v13316_v49  ;;  %v5156_v24 = vadd.s32 %v13241_v5, %v13247_v0  ;;  %v4765_v9 = vsel %vm4759_vm4, %v4762_v53, %v4764_v7  ;;  %v13414_v30 = vmul.f32 %v13354_v40, %v13400_v60 }
 0x70b   : > { %v5047_v63 = vcvt.s32.f32 %v13359_v45  ;;  %v13417_v33 = vsel %vm10634_vm7, 0, %v10633_v35  ;;  %v13419_v54 = vsub.s32 %v4682_v21, %v4685_v37  ;;  %v4393_v47 = vadd.s32 1, %v10603_v34 }
 0x70c   : > { %v13407_v27 = vmul.f32 %v14784_v12, %v14783_v28  ;;  %v5045_v49 = vand.u32 2147483647, %v13361_v43  ;;  %v14785_v26 = vsub.s32 32, %v13352_v36  ;;  %v5177_v62 = vadd.s32 127, %v5176_v50 }
 0x70d   : > { %v4784_v5 = vadd.s32 1, %v13394_v29  ;;  %v4781_v0 = vmul.u32 %v4774_v2, %v4765_v9  ;;  %vm4783_vm11 = vc.u32 %v13398_v15, %v13393_v8  ;;  %v4390_v40 = vand.u32 8388607, %v14692_v22 }
 0x70e   : > { %v5174_v13 = vshrl.u32 %v5156_v24, %v14785_v26  ;;  %vm4394_vm8 = vcmp.gt.s32.totalorder %v4393_v47, 0  ;;  %v5280_v45 = vsub.s32 4294967266, %v13417_v33  ;;  %v4490_v43 = vand.u32 2139095040, %v13414_v30 }
 0x70f   : > { %v4785_v25 = vsel %vm4783_vm11, %v4784_v5, %v13394_v29  ;;  %v4395_v21 = vsel %vm4394_vm8, %v4393_v47, 0  ;;  %v5173_v50 = vshll.u32 %v13280_v58, %v13352_v36  ;;  %v4688_v35 = vsub.s32 0, %v13419_v54 }
 0x710   : > { %v4786_v2 = vadd.s32 %v4785_v25, %v4781_v0  ;;  %v4397_v53 = vand.u32 31, %v4395_v21  ;;  %v4945_v7 = vxor.u32 2147483648, %v13407_v27  ;;  %v13436_v37 = vmul.f32 %v5047_v63, %v5045_v49 }
 0x711   : > { %v13438_v10 = vor.u32 %v5174_v13, %v5173_v50  ;;  %v5260_v14 = vadd.s32 %v13285_v61, %v13293_v20  ;;  %v5178_v34 = vshll.u32 %v5177_v62, 23  ;;  %v5281_v28 = vadd.s32 127, %v5280_v45 }
 0x712   : > { %v4787_v56 = vadd.s32 536870912, %v4786_v2  ;;  %v4398_v29 = vsub.s32 32, %v4397_v53  ;;  %v4391_v12 = vor.u32 8388608, %v4390_v40  ;;  %v4491_v24 = vshrl.u32 %v4490_v43, 23 }
 0x713   : > { %v10612_v58 = vmin.u32 %v4688_v35, %v13419_v54  ;;  %v4396_v9 = vshrl.u32 %v4395_v21, 5  ;;  %v4400_v47 = vshll.u32 %v14779_v17, %v4397_v53  ;;  %v4403_v49 = vshll.u32 %v14759_v52, %v4397_v53 }
 0x714   : > { %v13443_v36 = vshrl.u32 %v4787_v56, 30  ;;  %v4401_v63 = vshrl.u32 %v14759_v52, %v4398_v29  ;;  %v4404_v26 = vshrl.u32 %v14760_v51, %v4398_v29  ;;  %v4407_v20 = vshrl.u32 %v14761_v31, %v4398_v29 }
 0x715   : > { %v4406_v13 = vshll.u32 %v14760_v51, %v4397_v53  ;;  %v4409_v62 = vshll.u32 %v14761_v31, %v4397_v53  ;;  %v4410_v5 = vshrl.u32 %v14780_v57, %v4398_v29  ;;  %v13454_v0 = vor.u32 4788187, %v5178_v34 }
 0x716   : > { %v4789_v61 = vshll.u32 %v13443_v36, 30  ;;  %v4402_v40 = vor.u32 %v4401_v63, %v4400_v47  ;;  %v4405_v45 = vor.u32 %v4404_v26, %v4403_v49  ;;  %v10607_v25 = vadd.s32 4294967169, %v4491_v24 }
 0x717   : > { %vm4863_vm12 = vcmp.lt.s32.totalorder %v13102_v6, 0  ;;  %v4408_v43 = vor.u32 %v4407_v20, %v4406_v13  ;;  %v4411_v50 = vor.u32 %v4410_v5, %v4409_v62  ;;  %v5276_v56 = vsub.s32 32, %v13417_v33 }
 0x718   : > { %v13457_v21 = vsub.s32 %v4786_v2, %v4789_v61  ;;  %v5282_v22 = vshll.u32 %v5281_v28, 23  ;;  %v4412_v60 = vshll.u32 %v14780_v57, %v4397_v53  ;;  %v4413_v3 = vshrl.u32 %v14781_v39, %v4398_v29 }
 0x719   : > { %v4690_v34 = vclz %v10612_v58  ;;  %vm4415_vm13 = vcmp.lt.s32.totalorder %v4396_v9, 1  ;;  %v4431_v24 = vshll.u32 %v4391_v12, 8  ;;  %vm4418_vm14 = vcmp.lt.s32.totalorder %v4396_v9, 4 }
 0x71a   : > { %v4792_v47 = vsub.s32 0, %v13457_v21  ;;  %v4414_v63 = vor.u32 %v4413_v3, %v4412_v60  ;;  %v4423_v2 = vsel %vm4415_vm13, %v4402_v40, %v4405_v45  ;;  %v4497_v49 = vadd.s32 1, %v10607_v25 }
 0x71b   : > { %v4399_v26 = vshrl.u32 %v14779_v17, %v4398_v29  ;;  %vm4417_vm9 = vcmp.lt.s32.totalorder %v4396_v9, 3  ;;  %v4420_v20 = vsel %vm4418_vm14, %v4408_v43, 2102212464  ;;  %v4424_v61 = vsel %vm4418_vm14, %v4411_v50, 920167782 }
 0x71c   : > { %vm4416_vm4 = vcmp.lt.s32.totalorder %v4396_v9, 2  ;;  %v4425_v28 = vsel %vm4417_vm9, %v4408_v43, %v4424_v61  ;;  %v4427_v13 = vsel %vm4415_vm13, %v4405_v45, %v4408_v43  ;;  %v4428_v53 = vsel %vm4418_vm14, %v4414_v63, 1326507024 }
 0x71d   : > { %v10616_v62 = vmin.u32 %v4792_v47, %v13457_v21  ;;  %v4419_v58 = vsel %vm4415_vm13, %v4399_v26, %v4402_v40  ;;  %v4426_v5 = vsel %vm4416_vm4, %v4423_v2, %v4425_v28  ;;  %v4429_v35 = vsel %vm4417_vm9, %v4411_v50, %v4428_v53 }
 0x71e   : > { %v4421_v12 = vsel %vm4417_vm9, %v4405_v45, %v4420_v20  ;;  %v4430_v3 = vsel %vm4416_vm4, %v4427_v13, %v4429_v35  ;;  %v13468_v60 = vmul.u32.u64.low %v4431_v24, %v4426_v5  ;;  %v13469_v25 = vmul.u32.u64.high %v4431_v24, %v4426_v5, %v13468_v60 }
 0x71f   : > { %v5278_v29 = vshrl.u32 %v5260_v14, %v5276_v56  ;;  %v13472_v46 = vor.u32 4788187, %v5282_v22  ;;  %v13474_v1 = vmul.u32.u64.low %v4431_v24, %v4430_v3  ;;  %v13475_v61 = vmul.u32.u64.high %v4431_v24, %v4430_v3, %v13474_v1 }
 0x720   : > { %v4946_v40 = vsel %vm4863_vm12, %v4945_v7, %v13407_v27  ;;  %v5277_v43 = vshll.u32 %v13335_v42, %v13417_v33  ;;  %v14786_v45 = vand.u32 2147483647, %v13414_v30  ;;  %vm4498_vm6 = vcmp.gt.s32.totalorder %v4497_v49, 0 }
 0x721   : > { %v10613_v35 = vadd.s32 4294967294, %v4690_v34  ;;  %v4794_v47 = vclz %v10616_v62  ;;  %v4422_v14 = vsel %vm4416_vm4, %v4419_v58, %v4421_v12  ;;  %v4499_v22 = vsel %vm4498_vm6, %v4497_v49, 0 }
 0x722   : > { %v4494_v50 = vand.u32 8388607, %v14786_v45  ;;  %v5049_v56 = vxor.u32 2147483648, %v13436_v37  ;;  %v5182_v1 = vcvt.s32.f32 %v13438_v10  ;;  %v4441_v63 = vadd.s32 1, %v13469_v25 }
 0x723   : > { %v4501_v2 = vand.u32 31, %v4499_v22  ;;  %v5180_v27 = vand.u32 2147483647, %v13454_v0  ;;  %v13489_v7 = vor.u32 %v5278_v29, %v5277_v43  ;;  %v5284_v42 = vand.u32 2147483647, %v13472_v46 }
 0x724   : > { %v14787_v33 = vand.u32 2147483647, %v13102_v6  ;;  %v4438_v9 = vmul.u32 %v4431_v24, %v4422_v14  ;;  %vm4440_vm11 = vc.u32 %v13475_v61, %v13468_v60  ;;  %v4947_v26 = vsub.s32 4, %v13205_v44 }
 0x725   : > { %v4502_v49 = vsub.s32 32, %v4501_v2  ;;  %vm10614_vm8 = vcmp.lt.s32.totalorder %v10613_v35, 0  ;;  %v10617_v20 = vadd.s32 4294967294, %v4794_v47  ;;  %v4442_v28 = vsel %vm4440_vm11, %v4441_v63, %v13469_v25 }
 0x726   : > { %vm13494_vm7 = vcmp.le.f32.partialorder %v14787_v33, 0.7853982  ;;  %v4495_v13 = vor.u32 8388608, %v4494_v50  ;;  %v4443_v53 = vadd.s32 %v4442_v28, %v4438_v9  ;;  %v4500_v62 = vshrl.u32 %v4499_v22, 5 }
 0x727   : > { %v4505_v58 = vshrl.u32 %v14759_v52, %v4502_v49  ;;  %v4508_v5 = vshrl.u32 %v14760_v51, %v4502_v49  ;;  %v4504_v12 = vshll.u32 %v14779_v17, %v4501_v2  ;;  %v4507_v24 = vshll.u32 %v14759_v52, %v4501_v2 }
 0x728   : > { %v4510_v3 = vshll.u32 %v14760_v51, %v4501_v2  ;;  %v4511_v29 = vshrl.u32 %v14761_v31, %v4502_v49  ;;  %v13508_v43 = vsel %vm10614_vm8, 0, %v10613_v35  ;;  %v4444_v45 = vadd.s32 536870912, %v4443_v53 }
 0x729   : > { %v4513_v25 = vshll.u32 %v14761_v31, %v4501_v2  ;;  %v4514_v50 = vshrl.u32 %v14780_v57, %v4502_v49  ;;  %v4506_v47 = vor.u32 %v4505_v58, %v4504_v12  ;;  %v4509_v14 = vor.u32 %v4508_v5, %v4507_v24 }
 0x72a   : > { %v4512_v22 = vor.u32 %v4511_v29, %v4510_v3  ;;  %v4535_v63 = vshll.u32 %v4495_v13, 8  ;;  %v13512_v33 = vshrl.u32 %v4444_v45, 30  ;;  %v4516_v52 = vshll.u32 %v14780_v57, %v4501_v2 }
 0x72b   : > { %v4515_v9 = vor.u32 %v4514_v50, %v4513_v25  ;;  %v4517_v51 = vshrl.u32 %v14781_v39, %v4502_v49  ;;  %v4698_v28 = vsub.s32 4294967266, %v13508_v43  ;;  %vm10618_vm13 = vcmp.lt.s32.totalorder %v10617_v20, 0 }
 0x72c   : > { %vm4522_vm14 = vcmp.lt.s32.totalorder %v4500_v62, 4  ;;  %v4949_v31 = vsel %vm13494_vm7, %v13102_v6, %v4946_v40  ;;  %v4446_v35 = vshll.u32 %v13512_v33, 30  ;;  %vm4519_vm9 = vcmp.lt.s32.totalorder %v4500_v62, 1 }
 0x72d   : > { %v4518_v58 = vor.u32 %v4517_v51, %v4516_v52  ;;  %v4524_v13 = vsel %vm4522_vm14, %v4512_v22, 2102212464  ;;  %v4503_v5 = vshrl.u32 %v14779_v17, %v4502_v49  ;;  %vm4521_vm4 = vcmp.lt.s32.totalorder %v4500_v62, 3 }
 0x72e   : > { %v4527_v57 = vsel %vm4519_vm9, %v4506_v47, %v4509_v14  ;;  %v4528_v39 = vsel %vm4522_vm14, %v4515_v9, 920167782  ;;  %v13524_v2 = vsub.s32 %v4443_v53, %v4446_v35  ;;  %vm4520_vm6 = vcmp.lt.s32.totalorder %v4500_v62, 2 }
 0x72f   : > { %v4529_v12 = vsel %vm4521_vm4, %v4512_v22, %v4528_v39  ;;  %v4531_v24 = vsel %vm4519_vm9, %v4509_v14, %v4512_v22  ;;  %v4523_v3 = vsel %vm4519_vm9, %v4503_v5, %v4506_v47  ;;  %v4525_v29 = vsel %vm4521_vm4, %v4509_v14, %v4524_v13 }
 0x730   : > { %v4530_v40 = vsel %vm4520_vm6, %v4527_v57, %v4529_v12  ;;  %v4532_v45 = vsel %vm4522_vm14, %v4518_v58, 1326507024  ;;  %v4449_v25 = vsub.s32 0, %v13524_v2  ;;  %v5286_v49 = vcvt.s32.f32 %v13489_v7 }
 0x731   : > { %v4533_v50 = vsel %vm4521_vm4, %v4515_v9, %v4532_v45  ;;  %v13529_v52 = vmul.u32.u64.low %v4535_v63, %v4530_v40  ;;  %v13530_v17 = vmul.u32.u64.high %v4535_v63, %v4530_v40, %v13529_v52  ;;  %v4699_v53 = vadd.s32 127, %v4698_v28 }
 0x732   : > { %v4534_v51 = vsel %vm4520_vm6, %v4531_v24, %v4533_v50  ;;  %11116 = vsinq.f32 %v4949_v31  ;;  %v13536_v47 = vsel %vm10618_vm13, 0, %v10617_v20  ;;  %v10604_v14 = vmin.u32 %v4449_v25, %v13524_v2 }
 0x733   : > { %v13539_v22 = vmul.u32.u64.low %v4535_v63, %v4534_v51  ;;  %v13540_v35 = vmul.u32.u64.high %v4535_v63, %v4534_v51, %v13539_v22  ;;  %v5183_v9 = vmul.f32 %v5182_v1, %v5180_v27  ;;  %v4694_v58 = vsub.s32 32, %v13508_v43 }
 0x734   : > { %v4526_v7 = vsel %vm4520_vm6, %v4523_v3, %v4525_v29  ;;  %11118 = vcosq.f32 %v4949_v31  ;;  %v5287_v28 = vmul.f32 %v5286_v49, %v5284_v42  ;;  %v4451_v20 = vclz %v10604_v14 }
 0x735   : > { %v4545_v13 = vadd.s32 1, %v13530_v17  ;;  %v4948_v0 = vsel %vm4863_vm12, %v4947_v26, %v13205_v44  ;;  %vm4967_vm11 = vcmp.lt.s32.totalorder %v13104_v32, 0  ;;  %v4678_v10 = vadd.s32 %v13339_v19, %v13345_v23 }
 0x736   : > { %v4700_v1 = vshll.u32 %v4699_v53, 23  ;;  %v4802_v27 = vsub.s32 4294967266, %v13536_v47  ;;  %v5050_v46 = vsel %vm4967_vm11, %v5049_v56, %v13436_v37  ;;  %v10605_v42 = vadd.s32 4294967294, %v4451_v20 }
 0x737   : > { %v4542_v62 = vmul.u32 %v4535_v63, %v4526_v7  ;;  %vm4544_vm8 = vc.u32 %v13540_v35, %v13529_v52  ;;  %v5184_v44 = vxor.u32 2147483648, %v5183_v9  ;;  %v4696_v26 = vshrl.u32 %v4678_v10, %v4694_v58 }
 0x738   : > { %v4546_v31 = vsel %vm4544_vm8, %v4545_v13, %v13530_v17  ;;  %v4950_v19 = vsel %vm13494_vm7, 0, %v4948_v0  ;;  %v5288_v23 = vxor.u32 2147483648, %v5287_v28  ;;  %v4695_v5 = vshll.u32 %v13419_v54, %v13508_v43 }
 0x739   : > { %vm10606_vm12 = vcmp.lt.s32.totalorder %v10605_v42, 0  ;;  %v4547_v57 = vadd.s32 %v4546_v31, %v4542_v62  ;;  %v4701_v39 = vor.u32 4788187, %v4700_v1  ;;  %v4798_v37 = vsub.s32 32, %v13536_v47 }
 0x73a   : > { %v4803_v56 = vadd.s32 127, %v4802_v27  ;;  %v4454_v63 = vsel %vm10606_vm12, 0, %v10605_v42  ;;  %v4954_v3 = vadd.s32 3, %v4950_v19  ;;  %v14790_v29 = vand.u32 2147483647, %v13104_v32 }
 0x73b   : > { %v4459_v12 = vsub.s32 4294967266, %v4454_v63  ;;  %v4548_v24 = vadd.s32 536870912, %v4547_v57  ;;  %vm5102_vm7 = vcmp.lt.s32.totalorder %v13110_v18, 0  ;;  %vm5206_vm14 = vcmp.lt.s32.totalorder %v13116_v41, 0 }
 0x73c   : > { %vm13575_vm13 = vcmp.le.f32.partialorder %v14790_v29, 0.7853982  ;;  %v11117_v34 = vpop.eup %11116  ;;  %v4697_v54 = vor.u32 %v4696_v26, %v4695_v5  ;;  %v5185_v45 = vsel %vm5102_vm7, %v5184_v44, %v5183_v9  ;;  %v13588_v25 = vsel %vm5206_vm14, %v5288_v23, %v5287_v28 }
 0x73d   : > { %v5053_v43 = vsel %vm13575_vm13, %v13104_v32, %v5050_v46  ;;  %v4782_v50 = vadd.s32 %v13393_v8, %v13398_v15  ;;  %v13592_v17 = vshrl.u32 %v4548_v24, 30  ;;  %v4702_v53 = vand.u32 2147483647, %v4701_v39 }
 0x73e   : > { %v11119_v49 = vpop.eup %11118  ;;  %v4804_v51 = vshll.u32 %v4803_v56, 23  ;;  %v4460_v14 = vadd.s32 127, %v4459_v12  ;;  %v5051_v22 = vsub.s32 4, %v13230_v48  ;;  %v4955_v20 = vand.u32 3, %v4954_v3 }
 0x73f   : > { %v4800_v58 = vshrl.u32 %v4782_v50, %v4798_v37  ;;  %v4550_v7 = vshll.u32 %v13592_v17, 30  ;;  %11120 = vcosq.f32 %v5053_v43  ;;  %v4704_v9 = vcvt.s32.f32 %v4697_v54  ;;  %v14814_v54 = vld [vmem:[#allocation41_spill] sm:$0xff] }
 0x740   : > { %v4455_v13 = vsub.s32 32, %v4454_v63  ;;  %v4958_v28 = vxor.u32 2147483648, %v11117_v34  ;;  %11122 = vsinq.f32 %v5053_v43  ;;  %v4799_v15 = vshll.u32 %v13457_v21, %v13536_v47 }
 0x741   : > { %v4439_v8 = vadd.s32 %v13468_v60, %v13475_v61  ;;  %v13600_v0 = vsub.s32 %v4547_v57, %v4550_v7  ;;  %v4961_v10 = vxor.u32 2147483648, %v11119_v49  ;;  %v4805_v1 = vor.u32 4788187, %v4804_v51 }
 0x742   : > { %v4461_v27 = vshll.u32 %v4460_v14, 23  ;;  %v5052_v46 = vsel %vm4967_vm11, %v5051_v22, %v13230_v48  ;;  %v5186_v42 = vsub.s32 4, %v13265_v16  ;;  %v13606_v62 = vmul.f32 %v4704_v9, %v4702_v53 }
 0x743   : > { %v4801_v44 = vor.u32 %v4800_v58, %v4799_v15  ;;  %v4553_v26 = vsub.s32 0, %v13600_v0  ;;  %vm4957_vm9 = vcmp.eq.s32.totalorder %v4955_v20, 0  ;;  %v4457_v21 = vshrl.u32 %v4439_v8, %v4455_v13 }
 0x744   : > { %v4959_v47 = vsel %vm4957_vm9, %v11119_v49, %v4958_v28  ;;  %vm4960_vm4 = vcmp.eq.s32.totalorder %v4955_v20, 2  ;;  %v14793_v60 = vand.u32 2147483647, %v13110_v18  ;;  %v5054_v19 = vsel %vm13575_vm13, 0, %v5052_v46 }
 0x745   : > { %v10608_v31 = vmin.u32 %v4553_v26, %v13600_v0  ;;  %v4962_v48 = vsel %vm4960_vm4, %v4961_v10, %v11117_v34  ;;  %v4806_v5 = vand.u32 2147483647, %v4805_v1  ;;  %v4456_v57 = vshll.u32 %v13524_v2, %v4454_v63 }
 0x746   : > { %vm13611_vm6 = vcmp.le.f32.partialorder %v14793_v60, 0.7853982  ;;  %v4462_v39 = vor.u32 4788187, %v4461_v27  ;;  %v5187_v37 = vsel %vm5102_vm7, %v5186_v42, %v13265_v16  ;;  %v4706_v56 = vxor.u32 2147483648, %v13606_v62 }
 0x747   : > { %v5188_v23 = vsel %vm13611_vm6, %v13110_v18, %v5185_v45  ;;  %v4808_v12 = vcvt.s32.f32 %v4801_v44  ;;  %v4555_v24 = vclz %v10608_v31  ;;  %vm4956_vm11 = vcmp.lt.s32.totalorder %v4955_v20, 2 }
 0x748   : > { %v4458_v3 = vor.u32 %v4457_v21, %v4456_v57  ;;  %v4963_v29 = vsel %vm4956_vm11, %v4959_v47, %v4962_v48  ;;  %v5058_v40 = vadd.s32 3, %v5054_v19  ;;  %11124 = vcosq.f32 %v5188_v23  ;;  %v13668_v57 = vpop.permute.xlu1 %5073 }
 0x749   : > { %v11121_v34 = vpop.eup %11120  ;;  %vm4624_vm8 = vcmp.lt.s32.totalorder %v13275_v55, 0  ;;  %vm4728_vm12 = vcmp.lt.s32.totalorder %v13295_v4, 0  ;;  %v10609_v2 = vadd.s32 4294967294, %v4555_v24  ;;  %v5189_v63 = vsel %vm13611_vm6, 0, %v5187_v37 }
 0x74a   : > { %11126 = vsinq.f32 %v5188_v23  ;;  %v14796_v16 = vand.u32 2147483647, %v13116_v41  ;;  %v11123_v50 = vpop.eup %11122  ;;  %v4809_v49 = vmul.f32 %v4808_v12, %v4806_v5  ;;  %v4463_v53 = vand.u32 2147483647, %v4462_v39 }
 0x74b   : > { %vm4953_vm7 = vweird.f32 %v13102_v6  ;;  %v5290_v51 = vsub.s32 4, %v13320_v38  ;;  %v4543_v58 = vadd.s32 %v13529_v52, %v13540_v35  ;;  %vm10610_vm9 = vcmp.lt.s32.totalorder %v10609_v2, 0 }
 0x74c   : > { %vm13632_vm13 = vcmp.le.f32.partialorder %v14796_v16, 0.7853982  ;;  %v4964_v7 = vsel %vm4953_vm7, nan, %v4963_v29  ;;  %v4465_v9 = vcvt.s32.f32 %v4458_v3  ;;  %v4558_v13 = vsel %vm10610_vm9, 0, %v10609_v2 }
 0x74d   : > { %v5292_v20 = vsel %vm13632_vm13, %v13116_v41, %v13588_v25  ;;  %v5059_v28 = vand.u32 3, %v5058_v40  ;;  %v5193_v6 = vadd.s32 3, %v5189_v63  ;;  %vm4385_vm4 = vcmp.lt.s32.totalorder %v13367_v11, 0 }
 0x74e   : > { %v4559_v15 = vsub.s32 32, %v4558_v13  ;;  %v4563_v8 = vsub.s32 4294967266, %v4558_v13  ;;  %v5062_v10 = vxor.u32 2147483648, %v11123_v50  ;;  %v5065_v1 = vxor.u32 2147483648, %v11121_v34 }
 0x74f   : > { %v4810_v27 = vxor.u32 2147483648, %v4809_v49  ;;  %v4466_v46 = vmul.f32 %v4465_v9, %v4463_v53  ;;  %v5291_v52 = vsel %vm5206_vm14, %v5290_v51, %v13320_v38  ;;  %11128 = vcosq.f32 %v5292_v20 }
 0x750   : > { %v4560_v35 = vshll.u32 %v13600_v0, %v4558_v13  ;;  %v4561_v25 = vshrl.u32 %v4543_v58, %v4559_v15  ;;  %v4564_v42 = vadd.s32 127, %v4563_v8  ;;  %11130 = vsinq.f32 %v5292_v20 }
 0x751   : > { %v13636_v43 = vpop.f32.mrb[20].mxu0  ;;  %v13638_v45 = vpop.f32.mrb[12].mxu1  ;;  %vm5061_vm6 = vcmp.eq.s32.totalorder %v5059_v28, 0  ;;  %vm5064_vm11 = vcmp.eq.s32.totalorder %v5059_v28, 2  ;;  %v5069_v44 = vmul.f32 %v4964_v7, %v4964_v7  ;;  %v13657_v26 = vand.u32 3, %v5193_v6 }
 0x752   : > { %v13642_v14 = vpop.f32.mrb[21].mxu0  ;;  %v13644_v22 = vpop.f32.mrb[13].mxu1  ;;  %v4562_v21 = vor.u32 %v4561_v25, %v4560_v35  ;;  %v4565_v47 = vshll.u32 %v4564_v42, 23  ;;  %v5063_v60 = vsel %vm5061_vm6, %v11121_v34, %v5062_v10  ;;  %v5066_v61 = vsel %vm5064_vm11, %v5065_v1, %v11123_v50 }
 0x753   : > { %v11125_v31 = vpop.eup %11124  ;;  %v4707_v38 = vsel %vm4624_vm8, %v4706_v56, %v13606_v62  ;;  %v4811_v0 = vsel %vm4728_vm12, %v4810_v27, %v4809_v49  ;;  %v4467_v48 = vxor.u32 2147483648, %v4466_v46  ;;  %vm4489_vm14 = vcmp.lt.s32.totalorder %v13414_v30, 0 }
 0x754   : > { %v5293_v19 = vsel %vm13632_vm13, 0, %v5291_v52  ;;  %v11127_v23 = vpop.eup %11126  ;;  %v4566_v5 = vor.u32 4788187, %v4565_v47  ;;  %vm5057_vm7 = vweird.f32 %v13104_v32  ;;  %vm5060_vm9 = vcmp.lt.s32.totalorder %v5059_v28, 2 }
 0x755   : > { %v4708_v39 = vsub.s32 4, %v13384_v59  ;;  %v5067_v37 = vsel %vm5060_vm9, %v5063_v60, %v5066_v61  ;;  %v13672_v62 = vmul.f32 %v13668_v57, %v5069_v44  ;;  %vm5196_vm6 = vcmp.eq.s32.totalorder %v13657_v26, 0 }
 0x756   : > { %v14799_v56 = vand.u32 2147483647, %v13275_v55  ;;  %v4567_v24 = vand.u32 2147483647, %v4566_v5  ;;  %v4569_v3 = vcvt.s32.f32 %v4562_v21  ;;  %vm5195_vm13 = vcmp.lt.s32.totalorder %v13657_v26, 2 }
 0x757   : > { %v5297_v29 = vadd.s32 3, %v5293_v19  ;;  %v4468_v34 = vsel %vm4385_vm4, %v4467_v48, %v4466_v46  ;;  %v5197_v2 = vxor.u32 2147483648, %v11127_v23  ;;  %v5200_v63 = vxor.u32 2147483648, %v11125_v31 }
 0x758   : > { %vm13677_vm11 = vcmp.le.f32.partialorder %v14799_v56, 0.7853982  ;;  %v14802_v16 = vand.u32 2147483647, %v13295_v4  ;;  %v4570_v50 = vmul.f32 %v4569_v3, %v4567_v24  ;;  %vm5199_vm2 = vcmp.eq.s32.totalorder %v13657_v26, 2 }
 0x759   : > { %v4710_v40 = vsel %vm13677_vm11, %v13275_v55, %v4707_v38  ;;  %v4709_v49 = vsel %vm4624_vm8, %v4708_v39, %v13384_v59  ;;  %v11129_v51 = vpop.eup %11128  ;;  %v5068_v58 = vsel %vm5057_vm7, nan, %v5067_v37  ;;  %v4812_v7 = vsub.s32 4, %v13443_v36  ;;  %v14811_v38 = vld [vmem:[#allocation48_spill] sm:$0xff] }
 0x75a   : > { %vm13689_vm9 = vcmp.le.f32.partialorder %v14802_v16, 0.7853982  ;;  %11132 = vcosq.f32 %v4710_v40  ;;  %v14805_v20 = vand.u32 2147483647, %v13367_v11  ;;  %v11131_v13 = vpop.eup %11130  ;;  %v4571_v28 = vxor.u32 2147483648, %v4570_v50 }
 0x75b   : > { %v4814_v53 = vsel %vm13689_vm9, %v13295_v4, %v4811_v0  ;;  %v5298_v59 = vand.u32 3, %v5297_v29  ;;  %11134 = vsinq.f32 %v4710_v40  ;;  %v5198_v32 = vsel %vm5196_vm6, %v11125_v31, %v5197_v2  ;;  %v14813_v29 = vld [vmem:[#allocation47_spill] sm:$0xff] }
 0x75c   : > { %vm13705_vm10 = vcmp.le.f32.partialorder %v14805_v20, 0.7853982  ;;  %v5201_v15 = vsel %vm5199_vm2, %v5200_v63, %v11127_v23  ;;  %v4711_v8 = vsel %vm13677_vm11, 0, %v4709_v49  ;;  %11136 = vcosq.f32 %v4814_v53  ;;  %v14815_v49 = vld [vmem:[#allocation52_spill] sm:$0xff] }
 0x75d   : > { %v4471_v6 = vsel %vm13705_vm10, %v13367_v11, %v4468_v34  ;;  %v4572_v10 = vsel %vm4489_vm14, %v4571_v28, %v4570_v50  ;;  %v5304_v1 = vxor.u32 2147483648, %v11129_v51  ;;  %11138 = vsinq.f32 %v4814_v53  ;;  %v11150_v34 = vld [vmem:[#allocation3 + $0x20] sm:$0xff] }
 0x75e   : > { %v4469_v27 = vsub.s32 4, %v13512_v33  ;;  %v5301_v46 = vxor.u32 2147483648, %v11131_v13  ;;  %v4813_v52 = vsel %vm4728_vm12, %v4812_v7, %v13443_v36  ;;  %11140 = vcosq.f32 %v4471_v6 }
 0x75f   : > { %v14808_v35 = vand.u32 2147483647, %v13414_v30  ;;  %v4715_v42 = vadd.s32 3, %v4711_v8  ;;  %11142 = vsinq.f32 %v4471_v6  ;;  %v4573_v44 = vsub.s32 4, %v13592_v17  ;;  %v14816_v6 = vld [vmem:[#allocation50_spill] sm:$0xff] }
 0x760   : > { %v5202_v60 = vsel %vm5195_vm13, %v5198_v32, %v5201_v15  ;;  %vm5300_vm8 = vcmp.eq.s32.totalorder %v5298_v59, 0  ;;  %vm5303_vm12 = vcmp.eq.s32.totalorder %v5298_v59, 2  ;;  %v4815_v61 = vsel %vm13689_vm9, 0, %v4813_v52  ;;  %v14817_v15 = vld [vmem:[#allocation40_spill] sm:$0xff] }
 0x761   : > { %vm13724_vm2 = vcmp.le.f32.partialorder %v14808_v35, 0.7853982  ;;  %v4470_v31 = vsel %vm4385_vm4, %v4469_v27, %v13512_v33  ;;  %v3777_v0 = vadd.f32 %v13638_v45, %v14811_v38  ;;  %v5070_v19 = vmul.f32 %v5068_v58, %v5068_v58  ;;  %v14812_v45 = vld [vmem:[#allocation38_spill] sm:$0xff] }
 0x762   : > { %v4575_v21 = vsel %vm13724_vm2, %v13414_v30, %v4572_v10  ;;  %vm5192_vm7 = vweird.f32 %v13110_v18  ;;  %v5302_v26 = vsel %vm5300_vm8, %v11129_v51, %v5301_v46  ;;  %v5305_v23 = vsel %vm5303_vm12, %v5304_v1, %v11131_v13  ;;  %v14818_v10 = vld [vmem:[#allocation51_spill] sm:$0xff] }
 0x763   : > { %11144 = vcosq.f32 %v4575_v21  ;;  %v5203_v39 = vsel %vm5192_vm7, nan, %v5202_v60  ;;  %vm5299_vm6 = vcmp.lt.s32.totalorder %v5298_v59, 2  ;;  %v4716_v37 = vand.u32 3, %v4715_v42  ;;  %v14819_v42 = vld [vmem:[#allocation49_spill] sm:$0xff] }
 0x764   : > { %11146 = vsinq.f32 %v4575_v21  ;;  %v4574_v56 = vsel %vm4489_vm14, %v4573_v44, %v13592_v17  ;;  %v11133_v12 = vpop.eup %11132  ;;  %v4819_v33 = vadd.s32 3, %v4815_v61  ;;  %v4472_v24 = vsel %vm13705_vm10, 0, %v4470_v31  ;;  %v14820_v21 = vld [vmem:[#allocation44_spill] sm:$0xff] }
 0x765   : > { %v4045_v47 = vpop.f32.mrb[22].mxu0  ;;  %v3779_v3 = vmul.f32 %v14812_v45, %v3777_v0  ;;  %v3778_v18 = vadd.f32 %v13644_v22, %v14813_v29  ;;  %v11135_v40 = vpop.eup %11134  ;;  %v13751_v2 = vadd.f32 %v11150_v34, %v13672_v62  ;;  %v5306_v63 = vsel %vm5299_vm6, %v5302_v26, %v5305_v23 }
 0x766   : > { %v4047_v36 = vpop.f32.mrb[23].mxu0  ;;  %v11137_v16 = vpop.eup %11136  ;;  %vm5296_vm4 = vweird.f32 %v13116_v41  ;;  %v4576_v17 = vsel %vm13724_vm2, 0, %v4574_v56  ;;  %v5077_v22 = vmul.f32 %v13668_v57, %v5070_v19  ;;  %v5308_v58 = vmul.f32 %v5203_v39, %v5203_v39 }
 0x767   : > { %v4320_v48 = vpop.f32.mrb[14].mxu1  ;;  %v3780_v50 = vmul.f32 %v14814_v54, %v3778_v18  ;;  %3783 = vrot.lane.b32.xlu1 %v3779_v3, %s11527_s23  ;;  %v11139_v51 = vpop.eup %11138  ;;  %vm4717_vm10 = vcmp.lt.s32.totalorder %v4716_v37, 2  ;;  %v4476_v62 = vadd.s32 3, %v4472_v24  ;;  %v5307_v20 = vsel %vm5296_vm4, nan, %v5306_v63  ;;  %v11151_v63 = vld [vmem:[#allocation3 + $0x28] sm:$0xff] }
 0x768   : > { %v4322_v5 = vpop.f32.mrb[15].mxu1  ;;  %v4327_v53 = vadd.f32 %v4320_v48, %v14815_v49  ;;  %v11141_v7 = vpop.eup %11140  ;;  %v4719_v9 = vxor.u32 2147483648, %v11135_v40  ;;  %v4722_v13 = vxor.u32 2147483648, %v11133_v12  ;;  %v4820_v41 = vand.u32 3, %v4819_v33  ;;  %v14821_v48 = vld [vmem:[#allocation39_spill] sm:$0xff]  ;;  %v11152_v49 = vld [vmem:[#allocation3 + $0x30] sm:$0xff] }
 0x769   : > { %3785 = vrot.lane.b32.xlu0 %v3780_v50, %s11527_s23  ;;  %v11143_v28 = vpop.eup %11142  ;;  %v4580_v59 = vadd.s32 3, %v4576_v17  ;;  %v4052_v32 = vadd.f32 %v4045_v47, %v14816_v6  ;;  %v4328_v1 = vadd.f32 %v4322_v5, %v14818_v10  ;;  %vm4718_vm14 = vcmp.eq.s32.totalorder %v4716_v37, 0  ;;  %v14825_v6 = vld [vmem:[#allocation37_spill] sm:$0xff]  ;;  %v14826_v10 = vld [vmem:[#allocation42_spill] sm:$0xff] }
 0x76a   : > { %v4329_v8 = vmul.f32 %v14817_v15, %v4327_v53  ;;  %vm4721_vm11 = vcmp.eq.s32.totalorder %v4716_v37, 2  ;;  %v4823_v57 = vxor.u32 2147483648, %v11139_v51  ;;  %v4826_v46 = vxor.u32 2147483648, %v11137_v16 }
 0x76b   : > { %v5309_v35 = vmul.f32 %v5307_v20, %v5307_v20  ;;  %v4477_v25 = vand.u32 3, %v4476_v62  ;;  %v4053_v44 = vadd.f32 %v4047_v36, %v14819_v42  ;;  %v4330_v60 = vmul.f32 %v14820_v21, %v4328_v1  ;;  %v5313_v36 = vpop.permute.xlu0 %5312  ;;  %v14823_v62 = vld [vmem:[#allocation46_spill] sm:$0xff] }
 0x76c   : > { %4333 = vrot.lane.b32.xlu1 %v4329_v8, %s11527_s23  ;;  %v4720_v61 = vsel %vm4718_vm14, %v11133_v12, %v4719_v9  ;;  %v4723_v47 = vsel %vm4721_vm11, %v4722_v13, %v11135_v40  ;;  %v4480_v31 = vxor.u32 2147483648, %v11143_v28  ;;  %v4483_v38 = vxor.u32 2147483648, %v11141_v7  ;;  %v14822_v12 = vld [vmem:[#allocation43_spill] sm:$0xff]  ;;  %v11153_v20 = vld [vmem:[#allocation3 + $0x38] sm:$0xff] }
 0x76d   : > { %v11145_v27 = vpop.eup %11144  ;;  %vm4822_vm13 = vcmp.eq.s32.totalorder %v4820_v41, 0  ;;  %vm4825_vm9 = vcmp.eq.s32.totalorder %v4820_v41, 2  ;;  %v4581_v0 = vand.u32 3, %v4580_v59  ;;  %v4054_v19 = vmul.f32 %v14821_v48, %v4052_v32  ;;  %4335 = vrot.lane.b32.xlu0 %v4330_v60, %s11527_s23 }
 0x76e   : > { %v11147_v52 = vpop.eup %11146  ;;  %v4824_v26 = vsel %vm4822_vm13, %v11137_v16, %v4823_v57  ;;  %v4827_v23 = vsel %vm4825_vm9, %v4826_v46, %v11139_v51  ;;  %v4587_v39 = vxor.u32 2147483648, %v11145_v27  ;;  %v4724_v56 = vsel %vm4717_vm10, %v4720_v61, %v4723_v47  ;;  %v11155_v46 = vld [vmem:[#allocation3 + $0x18] sm:$0xff]  ;;  %v13794_v61 = vld [vmem:[#allocation20] sm:$0xff] }
 0x76f   : > { %v4584_v5 = vxor.u32 2147483648, %v11147_v52  ;;  %vm4479_vm2 = vcmp.eq.s32.totalorder %v4477_v25, 0  ;;  %vm4482_vm8 = vcmp.eq.s32.totalorder %v4477_v25, 2  ;;  %v4055_v33 = vmul.f32 %v14822_v12, %v4053_v44  ;;  %v14827_v44 = vld [vmem:[#allocation53_spill] sm:$0xff] }
 0x770   : > { %4058 = vrot.lane.b32.xlu1 %v4054_v19, %s11527_s23  ;;  %v5315_v24 = vmul.f32 %v5313_v36, %v5308_v58  ;;  %vm4821_vm12 = vcmp.lt.s32.totalorder %v4820_v41, 2  ;;  %v4481_v3 = vsel %vm4479_vm2, %v11141_v7, %v4480_v31  ;;  %v4484_v29 = vsel %vm4482_vm8, %v4483_v38, %v11143_v28  ;;  %v4835_v41 = vpop.permute.xlu1 %4834 }
 0x771   : > { %vm4714_vm7 = vweird.f32 %v13275_v55  ;;  %v4828_v18 = vsel %vm4821_vm12, %v4824_v26, %v4827_v23  ;;  %vm4583_vm6 = vcmp.eq.s32.totalorder %v4581_v0, 0  ;;  %vm4586_vm4 = vcmp.eq.s32.totalorder %v4581_v0, 2  ;;  %4060 = vrot.lane.b32.xlu0 %v4055_v33, %s11527_s23 }
 0x772   : > { %v4725_v40 = vsel %vm4714_vm7, nan, %v4724_v56  ;;  %vm4478_vm14 = vcmp.lt.s32.totalorder %v4477_v25, 2  ;;  %v4585_v37 = vsel %vm4583_vm6, %v11145_v27, %v4584_v5  ;;  %v4588_v34 = vsel %vm4586_vm4, %v4587_v39, %v11147_v52  ;;  %v11154_v27 = vld [vmem:[#allocation3 + $0x10] sm:$0xff]  ;;  %v11156_v25 = vld [vmem:[#allocation3] sm:$0xff] }
 0x773   : > { %v5079_v16 = vadd.f32 %v11151_v63, %v5077_v22  ;;  %v5316_v17 = vmul.f32 %v5313_v36, %v5309_v35  ;;  %vm4818_vm10 = vweird.f32 %v13295_v4  ;;  %v4485_v50 = vsel %vm4478_vm14, %v4481_v3, %v4484_v29 }
 0x774   : > { %5082 = vrot.lane.b32.xlu1 %v13751_v2, %s11527_s23  ;;  %v5317_v55 = vadd.f32 %v11152_v49, %v5315_v24  ;;  %v4829_v53 = vsel %vm4818_vm10, nan, %v4828_v18  ;;  %vm4582_vm11 = vcmp.lt.s32.totalorder %v4581_v0, 2  ;;  %v4830_v51 = vmul.f32 %v4725_v40, %v4725_v40  ;;  %v14824_v2 = vld [vmem:[#allocation45_spill] sm:$0xff] }
 0x775   : > { %vm4475_vm13 = vweird.f32 %v13367_v11  ;;  %v4589_v58 = vsel %vm4582_vm11, %v4585_v37, %v4588_v34  ;;  %v3502_v7 = vadd.f32 %v13636_v43, %v14823_v62  ;;  %5084 = vrot.lane.b32.xlu0 %v5079_v16, %s11527_s23  ;;  %v5318_v4 = vadd.f32 %v11153_v20, %v5316_v17 }
 0x776   : > { %v4486_v22 = vsel %vm4475_vm13, nan, %v4485_v50  ;;  %v4831_v9 = vmul.f32 %v4829_v53, %v4829_v53  ;;  %vm4579_vm9 = vweird.f32 %v13414_v30  ;;  %v3503_v13 = vadd.f32 %v13642_v14, %v14824_v2  ;;  %v4596_v30 = vpop.permute.xlu0 %4595 }
 0x777   : > { %v4590_v28 = vsel %vm4579_vm9, nan, %v4589_v58  ;;  %v4837_v11 = vmul.f32 %v4835_v41, %v4830_v51  ;;  %v4591_v59 = vmul.f32 %v4486_v22, %v4486_v22  ;;  %v3504_v32 = vmul.f32 %v14825_v6, %v3502_v7 }
 0x778   : > { %5321 = vrot.lane.b32.xlu1 %v5317_v55, %s11527_s23  ;;  %v4838_v43 = vmul.f32 %v4835_v41, %v4831_v9  ;;  %v4592_v8 = vmul.f32 %v4590_v28, %v4590_v28  ;;  %v3505_v1 = vmul.f32 %v14826_v10, %v3503_v13  ;;  %vm14829_vm2 = vcmask 1022976  }
 0x779   : > { %5323 = vrot.lane.b32.xlu0 %v5318_v4, %s11527_s23  ;;  %v4839_v57 = vadd.f32 %v11154_v27, %v4837_v11  ;;  %v4598_v14 = vmul.f32 %v4596_v30, %v4591_v59  ;;  %vm14830_vm8 = vmmov %vm14829_vm2  ;;  %vm14837_vm11 = vcmask 1014784  }
 0x77a   : > { %v4840_v52 = vadd.f32 %v11155_v46, %v4838_v43  ;;  %v4599_v35 = vmul.f32 %v4596_v30, %v4592_v8  ;;  %vm14831_vm12 = vmmov %vm14829_vm2 }
 0x77b   : > { %v4600_v42 = vadd.f32 %v11156_v25, %v4598_v14  ;;  %vm14832_vm7 = vmmov %vm14829_vm2 }
 0x77c   : > { %3508 = vrot.lane.b32.xlu1 %v3504_v32, %s11527_s23  ;;  %v4601_v60 = vadd.f32 %v4599_v35, %v14827_v44  ;;  %vm14833_vm6 = vmmov %vm14829_vm2 }
 0x77d   : > { %3510 = vrot.lane.b32.xlu0 %v3505_v1, %s11527_s23  ;;  %vm14834_vm4 = vmmov %vm14829_vm2 }
 0x77e   : > { %vm14835_vm14 = vmmov %vm14829_vm2 }
 0x77f   : > { %vm14836_vm10 = vmmov %vm14829_vm2 }
 0x780   : > { %4843 = vrot.lane.b32.xlu1 %v4839_v57, %s11527_s23  ;;  %vm14838_vm13 = vmmov %vm14829_vm2 }
 0x781   : > { %4845 = vrot.lane.b32.xlu0 %v4840_v52, %s11527_s23  ;;  %vm14839_vm9 = vmmov %vm14829_vm2 }
 0x784   : > { %4604 = vrot.lane.b32.xlu1 %v4600_v42, %s11527_s23 }
 0x785   : > { %4606 = vrot.lane.b32.xlu0 %v4601_v60, %s11527_s23 }
 0x788   : > { %5336 = vrot.lane.b32.xlu1 %v13794_v61, %s11529_s16 }
 0x789   : > { %5951 = vrot.lane.b32.xlu0 %v13794_v61, %s11529_s16 }
 0x78c   : > { %5504 = vrot.lane.b32.xlu1 %v13794_v61, %s11531_s30 }
 0x78d   : > { %6119 = vrot.lane.b32.xlu0 %v13794_v61, %s11531_s30 }
 0x790   : > { %5592 = vrot.lane.b32.xlu1 %v13794_v61, %s11542_s28 }
 0x791   : > { %6207 = vrot.lane.b32.xlu0 %v13794_v61, %s11542_s28 }
 0x794   : > { %5678 = vrot.lane.b32.xlu1 %v13794_v61, %s11543_s3 }
 0x795   : > { %6293 = vrot.lane.b32.xlu0 %v13794_v61, %s11543_s3 }
 0x798   : > { %5762 = vrot.lane.b32.xlu1 %v13794_v61, %s11544_s26 }
 0x799   : > { %6377 = vrot.lane.b32.xlu0 %v13794_v61, %s11544_s26 }
 0x7d9   : > { %v3784_v47 = vpop.permute.xlu1 %3783 }
 0x7da   : > { %3790 = vst.msk [vmem:[#allocation4 + $0x10] sm:$0xff] %vm1417_vm15, %v3784_v47 }
 0x7db   : > { %v3786_v31 = vpop.permute.xlu0 %3785 }
 0x7dc   : > { %v3787_v38 = vsel %vm804_vm1, %v3784_v47, %v3786_v31 }
 0x7dd   : > { %3791 = vst.msk [vmem:[#allocation4 + $0x18] sm:$0xff] %vm1419_vm5, %v3787_v38 }
 0x7de   : > { %v4334_v0 = vpop.permute.xlu1 %4333 }
 0x7df   : > { %4340 = vst.msk [vmem:[#allocation4 + $0x30] sm:$0xff] %vm1417_vm15, %v4334_v0  ;;  %v4336_v19 = vpop.permute.xlu0 %4335 }
 0x7e0   : > { %v4337_v26 = vsel %vm804_vm1, %v4334_v0, %v4336_v19 }
 0x7e1   : > { %4341 = vst.msk [vmem:[#allocation4 + $0x38] sm:$0xff] %vm1419_vm5, %v4337_v26  ;;  %v13843_v50 = vld [vmem:[#allocation4 + $0x10] sm:$0xff] }
 0x7e2   : > { %v4059_v23 = vpop.permute.xlu1 %4058 }
 0x7e3   : > { %4065 = vst.msk [vmem:[#allocation4 + $0x20] sm:$0xff] %vm1417_vm15, %v4059_v23  ;;  %v4061_v5 = vpop.permute.xlu0 %4060 }
 0x7e4   : > { %v4062_v39 = vsel %vm804_vm1, %v4059_v23, %v4061_v5  ;;  %v13846_v53 = vld [vmem:[#allocation4 + $0x18] sm:$0xff] }
 0x7e5   : > { %4066 = vst.msk [vmem:[#allocation4 + $0x28] sm:$0xff] %vm1419_vm5, %v4062_v39 }
 0x7e6   : > { %v5083_v36 = vpop.permute.xlu1 %5082  ;;  %v13828_v24 = vld [vmem:[#allocation4 + $0x30] sm:$0xff] }
 0x7e7   : > { %v5085_v56 = vpop.permute.xlu0 %5084 }
 0x7e8   : > { %v5086_v40 = vsel %vm804_vm1, %v5083_v36, %v5085_v56  ;;  %v13835_v37 = vld [vmem:[#allocation4 + $0x38] sm:$0xff]  ;;  %v14828_v56 = vmov 0.0  }
 0x7ea   : > { %v13826_v33 = vld [vmem:[#allocation4 + $0x20] sm:$0xff]  ;;  %v5322_v3 = vpop.permute.xlu1 %5321 }
 0x7eb   : > { %5089 = vst.msk [vmem:[#allocation4 + $0x20] sm:$0xff] %vm1417_vm15, %v5083_v36  ;;  %5328 = vst.msk [vmem:[#allocation4 + $0x30] sm:$0xff] %vm1417_vm15, %v5322_v3  ;;  %v5324_v29 = vpop.permute.xlu0 %5323 }
 0x7ec   : > { %v13832_v18 = vld [vmem:[#allocation4 + $0x28] sm:$0xff]  ;;  %v5325_v34 = vsel %vm804_vm1, %v5322_v3, %v5324_v29 }
 0x7ed   : > { %5090 = vst.msk [vmem:[#allocation4 + $0x28] sm:$0xff] %vm1419_vm5, %v5086_v40  ;;  %5329 = vst.msk [vmem:[#allocation4 + $0x38] sm:$0xff] %vm1419_vm5, %v5325_v34 }
 0x7ee   : > { %v3509_v63 = vpop.permute.xlu1 %3508 }
 0x7ef   : > { %3515 = vst.msk [vmem:[#allocation4] sm:$0xff] %vm1417_vm15, %v3509_v63  ;;  %v3511_v16 = vpop.permute.xlu0 %3510 }
 0x7f0   : > { %v3512_v17 = vsel %vm804_vm1, %v3509_v63, %v3511_v16 }
 0x7f1   : > { %3516 = vst.msk [vmem:[#allocation4 + $0x8] sm:$0xff] %vm1419_vm5, %v3512_v17 }
 0x7f2   : > { %v4844_v49 = vpop.permute.xlu1 %4843  ;;  %v5948_v41 = vld [vmem:[#allocation4 + $0x30] sm:$0xff]  ;;  %v13891_v11 = vld [vmem:[#allocation4 + $0x20] sm:$0xff] }
 0x7f3   : > { %4850 = vst.msk [vmem:[#allocation4 + $0x10] sm:$0xff] %vm1417_vm15, %v4844_v49  ;;  %v4846_v55 = vpop.permute.xlu0 %4845 }
 0x7f4   : > { %v4847_v51 = vsel %vm804_vm1, %v4844_v49, %v4846_v55  ;;  %v5949_v28 = vld [vmem:[#allocation4 + $0x38] sm:$0xff]  ;;  %v13895_v59 = vld [vmem:[#allocation4 + $0x28] sm:$0xff] }
 0x7f5   : > { %4851 = vst.msk [vmem:[#allocation4 + $0x18] sm:$0xff] %vm1419_vm5, %v4847_v51 }
 0x7f6   : > { %v13850_v58 = vld [vmem:[#allocation4] sm:$0xff]  ;;  %v4605_v62 = vpop.permute.xlu1 %4604 }
 0x7f7   : > { %4611 = vst.msk [vmem:[#allocation4] sm:$0xff] %vm1417_vm15, %v4605_v62  ;;  %v4607_v7 = vpop.permute.xlu0 %4606 }
 0x7f8   : > { %v13853_v22 = vld [vmem:[#allocation4 + $0x8] sm:$0xff]  ;;  %v4608_v20 = vsel %vm804_vm1, %v4605_v62, %v4607_v7 }
 0x7f9   : > { %4612 = vst.msk [vmem:[#allocation4 + $0x8] sm:$0xff] %vm1419_vm5, %v4608_v20 }
 0x7fa   : > { %v13857_v4 = vld [vmem:[#allocation4 + $0x10] sm:$0xff]  ;;  %v13945_v32 = vpop.permute.xlu1 %5336 }
 0x7fb   : > { %5422 = vrot.lane.b32.xlu1 %v13857_v4, %s11540_s22  ;;  %v5952_v43 = vpop.permute.xlu0 %5951 }
 0x7fc   : > { %v13861_v9 = vld [vmem:[#allocation4 + $0x18] sm:$0xff] }
 0x7fd   : > { %5424 = vrot.lane.b32.xlu0 %v13861_v9, %s11540_s22 }
 0x7fe   : > { %v13873_v2 = vld [vmem:[#allocation4] sm:$0xff]  ;;  %v13951_v8 = vpop.permute.xlu1 %5504 }
 0x7ff   : > { %6211 = vrot.lane.b32.xlu1 %v13857_v4, %s11539_s19  ;;  %v13956_v1 = vpop.permute.xlu0 %6119 }
 0x800   : > { %v13877_v13 = vld [vmem:[#allocation4 + $0x8] sm:$0xff] }
 0x801   : > { %6213 = vrot.lane.b32.xlu0 %v13861_v9, %s11539_s19 }
 0x802   : > { %v13961_v30 = vpop.permute.xlu1 %5592 }
 0x803   : > { %5680 = vrot.lane.b32.xlu1 %v13857_v4, %s11539_s19  ;;  %v13964_v27 = vpop.permute.xlu0 %6207 }
 0x805   : > { %5682 = vrot.lane.b32.xlu0 %v13861_v9, %s11539_s19 }
 0x806   : > { %v13968_v57 = vpop.permute.xlu1 %5678 }
 0x807   : > { %6123 = vrot.lane.b32.xlu1 %v13873_v2, %s11539_s19  ;;  %v13973_v14 = vpop.permute.xlu0 %6293 }
 0x809   : > { %6125 = vrot.lane.b32.xlu0 %v13877_v13, %s11539_s19 }
 0x80a   : > { %v13979_v46 = vpop.permute.xlu1 %5762 }
 0x80b   : > { %5596 = vrot.lane.b32.xlu1 %v13873_v2, %s11539_s19  ;;  %v13983_v52 = vpop.permute.xlu0 %6377 }
 0x80d   : > { %5598 = vrot.lane.b32.xlu0 %v13877_v13, %s11539_s19 }
 0x80f   : > { %5955 = vrot.lane.b32.xlu1 %v5948_v41, %s11540_s22 }
 0x811   : > { %5957 = vrot.lane.b32.xlu0 %v5949_v28, %s11540_s22 }
 0x813   : > { %5508 = vrot.lane.b32.xlu1 %v5948_v41, %s11540_s22 }
 0x815   : > { %5510 = vrot.lane.b32.xlu0 %v5949_v28, %s11540_s22 }
 0x817   : > { %6379 = vrot.lane.b32.xlu1 %v5948_v41, %s11539_s19 }
 0x819   : > { %6381 = vrot.lane.b32.xlu0 %v5949_v28, %s11539_s19 }
 0x81b   : > { %5340 = vrot.lane.b32.xlu1 %v13891_v11, %s11540_s22 }
 0x81d   : > { %5342 = vrot.lane.b32.xlu0 %v13895_v59, %s11540_s22 }
 0x81f   : > { %5848 = vrot.lane.b32.xlu1 %v5948_v41, %s11539_s19 }
 0x821   : > { %5850 = vrot.lane.b32.xlu0 %v5949_v28, %s11539_s19 }
 0x823   : > { %6037 = vrot.lane.b32.xlu1 %v13891_v11, %s11540_s22 }
 0x825   : > { %6039 = vrot.lane.b32.xlu0 %v13895_v59, %s11540_s22 }
 0x827   : > { %6295 = vrot.lane.b32.xlu1 %v13891_v11, %s11539_s19 }
 0x829   : > { %6465 = vrot.lane.b32.xlu0 %v13877_v13, %s11541_s13 }
 0x82b   : > { %5764 = vrot.lane.b32.xlu1 %v13891_v11, %s11539_s19 }
 0x82d   : > { %6461 = vrot.lane.b32.xlu0 %v13794_v61, %s11545_s18 }
 0x82f   : > { %6463 = vrot.lane.b32.xlu1 %v13873_v2, %s11541_s13 }
 0x831   : > { %6572 = vrot.lane.b32.xlu0 %v13877_v13, %s11539_s19 }
 0x833   : > { %5846 = vrot.lane.b32.xlu1 %v13794_v61, %s11545_s18 }
 0x835   : > { %7187 = vrot.lane.b32.xlu0 %v13861_v9, %s11539_s19 }
 0x837   : > { %6570 = vrot.lane.b32.xlu1 %v13873_v2, %s11539_s19 }
 0x839   : > { %7181 = vrot.lane.b32.xlu0 %v13794_v61, %s11529_s16 }
 0x83b   : > { %7185 = vrot.lane.b32.xlu1 %v13857_v4, %s11539_s19 }
 0x83d   : > { %6297 = vrot.lane.b32.xlu0 %v13895_v59, %s11539_s19 }
 0x83f   : > { %6566 = vrot.lane.b32.xlu1 %v13794_v61, %s11529_s16 }
 0x841   : > { %6654 = vrot.lane.b32.xlu0 %v5949_v28, %s11540_s22 }
 0x843   : > { %6652 = vrot.lane.b32.xlu1 %v5948_v41, %s11540_s22 }
 0x845   : > { %5766 = vrot.lane.b32.xlu0 %v13895_v59, %s11539_s19 }
 0x847   : > { %7267 = vrot.lane.b32.xlu1 %v13873_v2, %s11539_s19 }
 0x849   : > { %7269 = vrot.lane.b32.xlu0 %v13877_v13, %s11539_s19 }
 0x84b   : > { %6738 = vrot.lane.b32.xlu1 %v13857_v4, %s11539_s19 }
 0x84d   : > { %6740 = vrot.lane.b32.xlu0 %v13861_v9, %s11539_s19 }
 0x84f   : > { %7353 = vrot.lane.b32.xlu1 %v13891_v11, %s11539_s19 }
 0x851   : > { %7349 = vrot.lane.b32.xlu0 %v13794_v61, %s11531_s30 }
 0x853   : > { %6734 = vrot.lane.b32.xlu1 %v13794_v61, %s11531_s30 }
 0x855   : > { %7443 = vrot.lane.b32.xlu0 %v5949_v28, %s11539_s19 }
 0x857   : > { %6826 = vrot.lane.b32.xlu1 %v13891_v11, %s11539_s19 }
 0x859   : > { %7437 = vrot.lane.b32.xlu0 %v13794_v61, %s11542_s28 }
 0x85b   : > { %7441 = vrot.lane.b32.xlu1 %v5948_v41, %s11539_s19 }
 0x85d   : > { %6912 = vrot.lane.b32.xlu0 %v5949_v28, %s11539_s19 }
 0x85f   : > { %6822 = vrot.lane.b32.xlu1 %v13794_v61, %s11542_s28 }
 0x861   : > { %7355 = vrot.lane.b32.xlu0 %v13895_v59, %s11539_s19 }
 0x863   : > { %6910 = vrot.lane.b32.xlu1 %v5948_v41, %s11539_s19 }
 0x865   : > { %7527 = vrot.lane.b32.xlu0 %v13877_v13, %s11541_s13 }
 0x867   : > { %7525 = vrot.lane.b32.xlu1 %v13873_v2, %s11541_s13 }
 0x869   : > { %6828 = vrot.lane.b32.xlu0 %v13895_v59, %s11539_s19 }
 0x86b   : > { %6908 = vrot.lane.b32.xlu1 %v13794_v61, %s11543_s3 }
 0x86d   : > { %v5423_v35 = vpop.permute.xlu1 %5422  ;;  %7523 = vrot.lane.b32.xlu0 %v13794_v61, %s11543_s3 }
 0x86f   : > { %6994 = vrot.lane.b32.xlu1 %v13873_v2, %s11541_s13  ;;  %v5425_v25 = vpop.permute.xlu0 %5424 }
 0x870   : > { %v5426_v17 = vsel %vm2235_vm0, %v5423_v35, %v5425_v25 }
 0x871   : > { %v13991_v42 = vpop.permute.xlu1 %6211  ;;  %6996 = vrot.lane.b32.xlu0 %v13877_v13, %s11541_s13 }
 0x873   : > { %7609 = vrot.lane.b32.xlu1 %v13857_v4, %s11541_s13  ;;  %v13997_v44 = vpop.permute.xlu0 %6213 }
 0x875   : > { %v13999_v60 = vpop.permute.xlu1 %5680  ;;  %7611 = vrot.lane.b32.xlu0 %v13861_v9, %s11541_s13 }
 0x877   : > { %6992 = vrot.lane.b32.xlu1 %v13794_v61, %s11544_s26  ;;  %v14005_v47 = vpop.permute.xlu0 %5682 }
 0x879   : > { %v6124_v31 = vpop.permute.xlu1 %6123  ;;  %7607 = vrot.lane.b32.xlu0 %v13794_v61, %s11544_s26 }
 0x87b   : > { %7078 = vrot.lane.b32.xlu1 %v13857_v4, %s11541_s13  ;;  %v6126_v38 = vpop.permute.xlu0 %6125 }
 0x87c   : > { %v6127_v4 = vsel %vm14829_vm2, %v6124_v31, %v6126_v38 }
 0x87d   : > { %v5597_v0 = vpop.permute.xlu1 %5596  ;;  %7080 = vrot.lane.b32.xlu0 %v13861_v9, %s11541_s13 }
 0x87f   : > { %7693 = vrot.lane.b32.xlu1 %v13891_v11, %s11541_s13  ;;  %v14015_v19 = vpop.permute.xlu0 %5598  ;;  %v14061_v11 = vsel %vm14831_vm12, %v13991_v42, %v13997_v44  ;;  %vm14841_vm12 = vmmov %vm14829_vm2 }
 0x880   : > { %v14054_v28 = vsel %vm14830_vm8, %v5597_v0, %v14015_v19  ;;  %vm14840_vm8 = vmmov %vm14829_vm2 }
 0x881   : > { %v5956_v26 = vpop.permute.xlu1 %5955  ;;  %7695 = vrot.lane.b32.xlu0 %v13895_v59, %s11541_s13 }
 0x883   : > { %7076 = vrot.lane.b32.xlu1 %v13794_v61, %s11545_s18  ;;  %v5958_v23 = vpop.permute.xlu0 %5957 }
 0x884   : > { %5964 = vmatprep.subr.mxu1 %v5958_v23  ;;  %v5959_v39 = vsel %vm2235_vm0, %v5956_v26, %v5958_v23 }
 0x885   : > { %v5509_v5 = vpop.permute.xlu1 %5508  ;;  %7691 = vrot.lane.b32.xlu0 %v13794_v61, %s11545_s18  ;;  %5965 = vmatpush1.msra.mxu1 %v5959_v39 }
 0x886   : > { %10642 = vmatmul.mubr.msk.f32.vlgmr.msra.gmra.mrb[16].mxu1 %vm650_vm3, %v5952_v43 }
 0x887   : > { %v5511_v36 = vpop.permute.xlu0 %5510  ;;  %6110 = vmatprep.mubr.f32.mxu1 %v14828_v56 }
 0x888   : > { %v5512_v20 = vsel %vm2235_vm0, %v5509_v5, %v5511_v36 }
 0x889   : > { %v14026_v3 = vpop.permute.xlu1 %6379 }
 0x88b   : > { %v14028_v29 = vpop.permute.xlu0 %6381 }
 0x88d   : > { %v5341_v40 = vpop.permute.xlu1 %5340 }
 0x88f   : > { %v5343_v34 = vpop.permute.xlu0 %5342 }
 0x890   : > { %5349 = vmatprep.subr.mxu0 %v5343_v34  ;;  %v5344_v16 = vsel %vm2235_vm0, %v5341_v40, %v5343_v34 }
 0x891   : > { %v14030_v63 = vpop.permute.xlu1 %5848  ;;  %5350 = vmatpush1.msra.mxu0 %v5344_v16 }
 0x892   : > { %10635 = vmatmul.mubr.msk.f32.vlgmr.msra.gmra.mrb[24].mxu0 %vm650_vm3, %v13945_v32  ;;  %5431 = vmatprep.subr.mxu0 %v5425_v25 }
 0x893   : > { %5432 = vmatpush1.msra.mxu0 %v5426_v17  ;;  %v14036_v49 = vpop.permute.xlu0 %5850  ;;  %5495 = vmatprep.mubr.f32.mxu0 %v14828_v56 }
 0x894   : > { %5517 = vmatprep.subr.mxu0 %v5511_v36 }
 0x895   : > { %v6038_v55 = vpop.permute.xlu1 %6037 }
 0x897   : > { %v6040_v51 = vpop.permute.xlu0 %6039 }
 0x898   : > { %6046 = vmatprep.subr.mxu1 %v6040_v51  ;;  %v6041_v7 = vsel %vm2235_vm0, %v6038_v55, %v6040_v51 }
 0x899   : > { %v6296_v62 = vpop.permute.xlu1 %6295  ;;  %6047 = vmatpush1.msra.mxu1 %v6041_v7 }
 0x89a   : > { %10636 = vmatmul.mubr.msk.f32.vlgmr.msra.gmra.mrb[24].mxu0 %vm650_vm3, %v13794_v61  ;;  %10643 = vmatmul.mubr.msk.f32.vlgmr.msra.gmra.mrb[16].mxu1 %vm650_vm3, %v13794_v61 }
 0x89b   : > { %5518 = vmatpush1.msra.mxu0 %v5512_v20  ;;  %6132 = vmatprep.subr.mxu1 %v6126_v38  ;;  %v6466_v9 = vpop.permute.xlu0 %6465 }
 0x89c   : > { %5605 = vmatprep.subr.mxu0 %v14015_v19  ;;  %6133 = vmatpush1.msra.mxu1 %v6127_v4 }
 0x89d   : > { %v5765_v2 = vpop.permute.xlu1 %5764  ;;  %6220 = vmatprep.subr.mxu1 %v13997_v44  ;;  %5581 = vmatprep.mubr.f32.mxu0 %v14828_v56 }
 0x89e   : > { %6196 = vmatprep.mubr.f32.mxu1 %v14828_v56 }
 0x89f   : > { %v6462_v13 = vpop.permute.xlu0 %6461 }
 0x8a1   : > { %v6464_v41 = vpop.permute.xlu1 %6463 }
 0x8a2   : > { %10637 = vmatmul.mubr.msk.f32.vlgmr.msra.gmra.mrb[24].mxu0 %vm650_vm3, %v13951_v8  ;;  %10644 = vmatmul.mubr.msk.f32.vlgmr.msra.gmra.mrb[16].mxu1 %vm650_vm3, %v13956_v1  ;;  %v5684_v1 = vsel %vm14832_vm7, %v13999_v60, %v14005_v47  ;;  %v6467_v26 = vsel %vm14837_vm11, %v6464_v41, %v6466_v9  ;;  %vm14842_vm7 = vmmov %vm14829_vm2 }
 0x8a3   : > { %5606 = vmatpush1.msra.mxu0 %v14054_v28  ;;  %6221 = vmatpush1.msra.mxu1 %v14061_v11  ;;  %v6573_v59 = vpop.permute.xlu0 %6572 }
 0x8a4   : > { %5689 = vmatprep.subr.mxu0 %v14005_v47  ;;  %5669 = vmatprep.mubr.f32.mxu0 %v14828_v56 }
 0x8a5   : > { %v5847_v32 = vpop.permute.xlu1 %5846  ;;  %6284 = vmatprep.mubr.f32.mxu1 %v14828_v56 }
 0x8a7   : > { %v7188_v43 = vpop.permute.xlu0 %7187 }
 0x8a9   : > { %v6571_v8 = vpop.permute.xlu1 %6570 }
 0x8aa   : > { %10638 = vmatmul.mubr.msk.f32.vlgmr.msra.gmra.mrb[24].mxu0 %vm650_vm3, %v13961_v30  ;;  %10645 = vmatmul.mubr.msk.f32.vlgmr.msra.gmra.mrb[16].mxu1 %vm650_vm3, %v13964_v27  ;;  %v6383_v30 = vsel %vm14834_vm4, %v14026_v3, %v14028_v29  ;;  %v6574_v36 = vsel %vm14838_vm13, %v6571_v8, %v6573_v59  ;;  %vm14844_vm4 = vmmov %vm14829_vm2 }
 0x8ab   : > { %5690 = vmatpush1.msra.mxu0 %v5684_v1  ;;  %v7182_v35 = vpop.permute.xlu0 %7181  ;;  %5753 = vmatprep.mubr.f32.mxu0 %v14828_v56 }
 0x8ac   : > { %6368 = vmatprep.mubr.f32.mxu1 %v14828_v56 }
 0x8ad   : > { %v7186_v25 = vpop.permute.xlu1 %7185 }
 0x8ae   : > { %v7189_v3 = vsel %vm14839_vm9, %v7186_v25, %v7188_v43 }
 0x8af   : > { %v6298_v42 = vpop.permute.xlu0 %6297 }
 0x8b0   : > { %6304 = vmatprep.subr.mxu1 %v6298_v42  ;;  %v6299_v38 = vsel %vm14833_vm6, %v6296_v62, %v6298_v42  ;;  %vm14843_vm6 = vmmov %vm14829_vm2 }
 0x8b1   : > { %v6567_v31 = vpop.permute.xlu1 %6566  ;;  %6305 = vmatpush1.msra.mxu1 %v6299_v38 }
 0x8b2   : > { %10639 = vmatmul.mubr.msk.f32.vlgmr.msra.gmra.mrb[24].mxu0 %vm650_vm3, %v13968_v57  ;;  %10646 = vmatmul.mubr.msk.f32.vlgmr.msra.gmra.mrb[16].mxu1 %vm650_vm3, %v13973_v14  ;;  %v5852_v14 = vsel %vm14836_vm10, %v14030_v63, %v14036_v49  ;;  %vm14846_vm10 = vmmov %vm14837_vm11 }
 0x8b3   : > { %6388 = vmatprep.subr.mxu1 %v14028_v29  ;;  %v6655_v27 = vpop.permute.xlu0 %6654  ;;  %5837 = vmatprep.mubr.f32.mxu0 %v14828_v56  ;;  %vm14848_vm13 = vmmov %vm14846_vm10 }
 0x8b4   : > { %6389 = vmatpush1.msra.mxu1 %v6383_v30  ;;  %6452 = vmatprep.mubr.f32.mxu1 %v14828_v56  ;;  %vm14849_vm9 = vmmov %vm14846_vm10 }
 0x8b5   : > { %v6653_v60 = vpop.permute.xlu1 %6652  ;;  %6472 = vmatprep.subr.mxu1 %v6466_v9 }
 0x8b6   : > { %v6656_v40 = vsel %vm2235_vm0, %v6653_v60, %v6655_v27 }
 0x8b7   : > { %v5767_v47 = vpop.permute.xlu0 %5766 }
 0x8b8   : > { %5773 = vmatprep.subr.mxu0 %v5767_v47  ;;  %v5768_v0 = vsel %vm14835_vm14, %v5765_v2, %v5767_v47  ;;  %vm14845_vm14 = vmmov %vm14837_vm11 }
 0x8b9   : > { %v7268_v57 = vpop.permute.xlu1 %7267  ;;  %5774 = vmatpush1.msra.mxu0 %v5768_v0  ;;  %vm14847_vm11 = vmmov %vm14846_vm10 }
 0x8ba   : > { %10640 = vmatmul.mubr.msk.f32.vlgmr.msra.gmra.mrb[24].mxu0 %vm650_vm3, %v13979_v46  ;;  %5857 = vmatprep.subr.mxu0 %v14036_v49 }
 0x8bb   : > { %10647 = vmatmul.mubr.msk.f32.vlgmr.msra.gmra.mrb[16].mxu1 %vm650_vm3, %v13983_v52  ;;  %5858 = vmatpush1.msra.mxu0 %v5852_v14  ;;  %v7270_v23 = vpop.permute.xlu0 %7269 }
 0x8bc   : > { %6473 = vmatpush1.msra.mxu1 %v6467_v26  ;;  %6579 = vmatprep.subr.mxu0 %v6573_v59  ;;  %v7271_v34 = vsel %vm14829_vm2, %v7268_v57, %v7270_v23  ;;  %vm7805_vm2 = vcmask 1039360  }
 0x8bd   : > { %v6739_v5 = vpop.permute.xlu1 %6738  ;;  %7194 = vmatprep.subr.mxu1 %v7188_v43  ;;  %5921 = vmatprep.mubr.f32.mxu0 %v14828_v56 }
 0x8be   : > { %6536 = vmatprep.mubr.f32.mxu1 %v14828_v56 }
 0x8bf   : > { %v6741_v46 = vpop.permute.xlu0 %6740 }
 0x8c0   : > { %v6742_v55 = vsel %vm14840_vm8, %v6739_v5, %v6741_v46  ;;  %vm14850_vm8 = vmmov %vm14844_vm4 }
 0x8c1   : > { %v7354_v39 = vpop.permute.xlu1 %7353 }
 0x8c2   : > { %10641 = vmatmul.mubr.msk.f32.vlgmr.msra.gmra.mrb[24].mxu0 %vm650_vm3, %v5847_v32 }
 0x8c3   : > { %10648 = vmatmul.mubr.msk.f32.vlgmr.msra.gmra.mrb[16].mxu1 %vm650_vm3, %v6462_v13  ;;  %6580 = vmatpush1.msra.mxu0 %v6574_v36  ;;  %v7350_v52 = vpop.permute.xlu0 %7349 }
 0x8c4   : > { %7195 = vmatpush1.msra.mxu1 %v7189_v3  ;;  %6661 = vmatprep.subr.mxu0 %v6655_v27 }
 0x8c5   : > { %v6735_v29 = vpop.permute.xlu1 %6734  ;;  %7276 = vmatprep.subr.mxu1 %v7270_v23  ;;  %6643 = vmatprep.mubr.f32.mxu0 %v14828_v56 }
 0x8c6   : > { %7258 = vmatprep.mubr.f32.mxu1 %v14828_v56  ;;  %10649 = vmatmul.mubr.msk.f32.vlgmr.msra.gmra.mrb[26].mxu0 %vm650_vm3, %v6567_v31 }
 0x8c7   : > { %6662 = vmatpush1.msra.mxu0 %v6656_v40  ;;  %10656 = vmatmul.mubr.msk.f32.vlgmr.msra.gmra.mrb[18].mxu1 %vm650_vm3, %v7182_v35  ;;  %v14110_v63 = vpop.permute.xlu0 %7443 }
 0x8c8   : > { %7277 = vmatpush1.msra.mxu1 %v7271_v34  ;;  %6747 = vmatprep.subr.mxu0 %v6741_v46 }
 0x8c9   : > { %v6827_v16 = vpop.permute.xlu1 %6826  ;;  %6725 = vmatprep.mubr.f32.mxu0 %v14828_v56  ;;  %7340 = vmatprep.mubr.f32.mxu1 %v14828_v56 }
 0x8cb   : > { %v7438_v17 = vpop.permute.xlu0 %7437 }
 0x8cd   : > { %v7442_v49 = vpop.permute.xlu1 %7441 }
 0x8ce   : > { %10650 = vmatmul.mubr.msk.f32.vlgmr.msra.gmra.mrb[26].mxu0 %vm650_vm3, %v13794_v61  ;;  %v14126_v9 = vsel %vm14842_vm7, %v7442_v49, %v14110_v63  ;;  %vm14852_vm7 = vmmov %vm14849_vm9 }
 0x8cf   : > { %6748 = vmatpush1.msra.mxu0 %v6742_v55  ;;  %10657 = vmatmul.mubr.msk.f32.vlgmr.msra.gmra.mrb[18].mxu1 %vm650_vm3, %v13794_v61  ;;  %v6913_v51 = vpop.permute.xlu0 %6912 }
 0x8d0   : > { %6811 = vmatprep.mubr.f32.mxu0 %v14828_v56  ;;  %7426 = vmatprep.mubr.f32.mxu1 %v14828_v56 }
 0x8d1   : > { %v6823_v62 = vpop.permute.xlu1 %6822 }
 0x8d3   : > { %v7356_v7 = vpop.permute.xlu0 %7355 }
 0x8d4   : > { %7362 = vmatprep.subr.mxu1 %v7356_v7  ;;  %v7357_v4 = vsel %vm14841_vm12, %v7354_v39, %v7356_v7  ;;  %vm14851_vm12 = vmmov %vm14844_vm4 }
 0x8d5   : > { %v6911_v20 = vpop.permute.xlu1 %6910  ;;  %7363 = vmatpush1.msra.mxu1 %v7357_v4 }
 0x8d6   : > { %10651 = vmatmul.mubr.msk.f32.vlgmr.msra.gmra.mrb[26].mxu0 %vm650_vm3, %v6735_v29  ;;  %7450 = vmatprep.subr.mxu1 %v14110_v63  ;;  %v6914_v32 = vsel %vm14844_vm4, %v6911_v20, %v6913_v51 }
 0x8d7   : > { %10658 = vmatmul.mubr.msk.f32.vlgmr.msra.gmra.mrb[18].mxu1 %vm650_vm3, %v7350_v52  ;;  %v7528_v61 = vpop.permute.xlu0 %7527  ;;  %6899 = vmatprep.mubr.f32.mxu0 %v14828_v56 }
 0x8d8   : > { %7451 = vmatpush1.msra.mxu1 %v14126_v9  ;;  %7514 = vmatprep.mubr.f32.mxu1 %v14828_v56 }
 0x8d9   : > { %v7526_v2 = vpop.permute.xlu1 %7525  ;;  %7534 = vmatprep.subr.mxu1 %v7528_v61 }
 0x8da   : > { %v7529_v43 = vsel %vm14845_vm14, %v7526_v2, %v7528_v61  ;;  %vm8307_vm14 = vcmask 1006592  }
 0x8db   : > { %v6829_v13 = vpop.permute.xlu0 %6828 }
 0x8dc   : > { %6835 = vmatprep.subr.mxu0 %v6829_v13  ;;  %v6830_v59 = vsel %vm14843_vm6, %v6827_v16, %v6829_v13  ;;  %vm14853_vm6 = vmmov %vm14844_vm4 }
 0x8dd   : > { %v6909_v41 = vpop.permute.xlu1 %6908  ;;  %6836 = vmatpush1.msra.mxu0 %v6830_v59  ;;  %vm14854_vm4 = vmmov %vm14852_vm7 }
 0x8de   : > { %10652 = vmatmul.mubr.msk.f32.vlgmr.msra.gmra.mrb[26].mxu0 %vm650_vm3, %v6823_v62  ;;  %6919 = vmatprep.subr.mxu0 %v6913_v51 }
 0x8df   : > { %10659 = vmatmul.mubr.msk.f32.vlgmr.msra.gmra.mrb[18].mxu1 %vm650_vm3, %v7438_v17  ;;  %6920 = vmatpush1.msra.mxu0 %v6914_v32  ;;  %v7524_v8 = vpop.permute.xlu0 %7523 }
 0x8e0   : > { %7535 = vmatpush1.msra.mxu1 %v7529_v43  ;;  %6983 = vmatprep.mubr.f32.mxu0 %v14828_v56 }
 0x8e1   : > { %v6995_v1 = vpop.permute.xlu1 %6994  ;;  %7598 = vmatprep.mubr.f32.mxu1 %v14828_v56 }
 0x8e3   : > { %v6997_v35 = vpop.permute.xlu0 %6996 }
 0x8e4   : > { %7003 = vmatprep.subr.mxu0 %v6997_v35  ;;  %v6998_v42 = vsel %vm14846_vm10, %v6995_v1, %v6997_v35  ;;  %vm14855_vm10 = vmmov %vm14854_vm4 }
 0x8e5   : > { %v7610_v25 = vpop.permute.xlu1 %7609 }
 0x8e6   : > { %10653 = vmatmul.mubr.msk.f32.vlgmr.msra.gmra.mrb[26].mxu0 %vm650_vm3, %v6909_v41  ;;  %v14177_v41 = vld [vmem:[#allocation20 + $0x8] sm:$0xff] }
 0x8e7   : > { %7004 = vmatpush1.msra.mxu0 %v6998_v42  ;;  %10660 = vmatmul.mubr.msk.f32.vlgmr.msra.gmra.mrb[18].mxu1 %vm650_vm3, %v7524_v8  ;;  %v7612_v31 = vpop.permute.xlu0 %7611 }
 0x8e8   : > { %7618 = vmatprep.subr.mxu1 %v7612_v31  ;;  %v7613_v30 = vsel %vm14847_vm11, %v7610_v25, %v7612_v31  ;;  %7067 = vmatprep.mubr.f32.mxu0 %v14828_v56  ;;  %vm14856_vm11 = vmmov %vm14853_vm6 }
 0x8e9   : > { %v6993_v38 = vpop.permute.xlu1 %6992  ;;  %7619 = vmatpush1.msra.mxu1 %v7613_v30  ;;  %7682 = vmatprep.mubr.f32.mxu1 %v14828_v56 }
 0x8eb   : > { %v7608_v27 = vpop.permute.xlu0 %7607 }
 0x8ed   : > { %v7079_v60 = vpop.permute.xlu1 %7078 }
 0x8ee   : > { %10654 = vmatmul.mubr.msk.f32.vlgmr.msra.gmra.mrb[26].mxu0 %vm650_vm3, %v6993_v38 }
 0x8ef   : > { %10661 = vmatmul.mubr.msk.f32.vlgmr.msra.gmra.mrb[18].mxu1 %vm650_vm3, %v7608_v27  ;;  %v7081_v47 = vpop.permute.xlu0 %7080  ;;  %7151 = vmatprep.mubr.f32.mxu0 %v14828_v56 }
 0x8f0   : > { %7087 = vmatprep.subr.mxu0 %v7081_v47  ;;  %v7082_v0 = vsel %vm14848_vm13, %v7079_v60, %v7081_v47  ;;  %7766 = vmatprep.mubr.f32.mxu1 %v14828_v56 }
 0x8f1   : > { %v7694_v57 = vpop.permute.xlu1 %7693  ;;  %7088 = vmatpush1.msra.mxu0 %v7082_v0 }
 0x8f3   : > { %v7696_v14 = vpop.permute.xlu0 %7695 }
 0x8f4   : > { %7702 = vmatprep.subr.mxu1 %v7696_v14  ;;  %v7697_v23 = vsel %vm14849_vm9, %v7694_v57, %v7696_v14  ;;  %vm14859_vm9 = vmmov %vm14854_vm4 }
 0x8f5   : > { %v7077_v26 = vpop.permute.xlu1 %7076  ;;  %7703 = vmatpush1.msra.mxu1 %v7697_v23 }
 0x8f6   : > { %10655 = vmatmul.mubr.msk.f32.vlgmr.msra.gmra.mrb[26].mxu0 %vm650_vm3, %v7077_v26 }
 0x8f7   : > { %v7692_v5 = vpop.permute.xlu0 %7691  ;;  %7875 = vmatprep.mubr.f32.mxu0 %v14828_v56 }
 0x8f8   : > { %10662 = vmatmul.mubr.msk.f32.vlgmr.msra.gmra.mrb[18].mxu1 %vm650_vm3, %v7692_v5 }
 0x8f9   : > { %8484 = vmatprep.mubr.f32.mxu1 %v14828_v56 }
 0x995   : > { %v5923_v46 = vpop.f32.mrb[24].mxu0 }
 0x996   : > { %v6538_v39 = vpop.f32.mrb[16].mxu1  ;;  %v5925_v36 = vpop.f32.mrb[25].mxu0  ;;  %v5930_v7 = vadd.f32 %v5923_v46, %v14054_v28 }
 0x997   : > { %v6540_v3 = vpop.f32.mrb[17].mxu1  ;;  %v5931_v4 = vadd.f32 %v5925_v36, %v14015_v19 }
 0x999   : > { %v5933_v2 = vmul.f32 %v14826_v10, %v5931_v4 }
 0x9c9   : > { %v7153_v52 = vpop.f32.mrb[26].mxu0 }
 0x9ca   : > { %v7160_v29 = vadd.f32 %v7153_v52, %v6830_v59  ;;  %v7155_v40 = vpop.f32.mrb[27].mxu0 }
 0x9cb   : > { %v7161_v34 = vadd.f32 %v7155_v40, %v6829_v13  ;;  %v7768_v16 = vpop.f32.mrb[18].mxu1  ;;  %v6546_v13 = vadd.f32 %v6540_v3, %v13997_v44 }
 0x9cc   : > { %v7162_v17 = vmul.f32 %v14821_v48, %v7160_v29  ;;  %v7775_v49 = vadd.f32 %v7768_v16, %v14126_v9  ;;  %v7770_v55 = vpop.f32.mrb[19].mxu1  ;;  %v5932_v9 = vmul.f32 %v14825_v6, %v5930_v7 }
 0x9cd   : > { %v7163_v51 = vmul.f32 %v14822_v12, %v7161_v34  ;;  %v7776_v62 = vadd.f32 %v7770_v55, %v14110_v63  ;;  %v6545_v63 = vadd.f32 %v6538_v39, %v14061_v11  ;;  %v6548_v28 = vmul.f32 %v14814_v54, %v6546_v13 }
 0x9ce   : > { %7166 = vrot.lane.b32.xlu1 %v7162_v17, %s11527_s23  ;;  %v7777_v20 = vmul.f32 %v14817_v15, %v7775_v49 }
 0x9cf   : > { %7168 = vrot.lane.b32.xlu0 %v7163_v51, %s11527_s23  ;;  %v7778_v61 = vmul.f32 %v14820_v21, %v7776_v62  ;;  %v6547_v19 = vmul.f32 %v14812_v45, %v6545_v63 }
 0x9d2   : > { %7781 = vrot.lane.b32.xlu1 %v7777_v20, %s11527_s23 }
 0x9d3   : > { %7783 = vrot.lane.b32.xlu0 %v7778_v61, %s11527_s23 }
 0x9d6   : > { %5936 = vrot.lane.b32.xlu1 %v5932_v9, %s11527_s23 }
 0x9d7   : > { %5938 = vrot.lane.b32.xlu0 %v5933_v2, %s11527_s23 }
 0x9da   : > { %6551 = vrot.lane.b32.xlu1 %v6547_v19, %s11527_s23 }
 0x9db   : > { %6553 = vrot.lane.b32.xlu0 %v6548_v28, %s11527_s23 }
 0x9de   : > { %7797 = vrot.lane.b32.xlu1 %v14177_v41, %s11529_s16 }
 0x9df   : > { %8407 = vrot.lane.b32.xlu0 %v14177_v41, %s11529_s16 }
 0x9e2   : > { %7957 = vrot.lane.b32.xlu1 %v14177_v41, %s11531_s30 }
 0x9e3   : > { %8575 = vrot.lane.b32.xlu0 %v14177_v41, %s11531_s30 }
 0x9e6   : > { %8045 = vrot.lane.b32.xlu1 %v14177_v41, %s11542_s28 }
 0x9e7   : > { %8663 = vrot.lane.b32.xlu0 %v14177_v41, %s11542_s28 }
 0x9ea   : > { %8131 = vrot.lane.b32.xlu1 %v14177_v41, %s11543_s3 }
 0x9eb   : > { %8749 = vrot.lane.b32.xlu0 %v14177_v41, %s11543_s3 }
 0xa40   : > { %v7167_v44 = vpop.permute.xlu1 %7166 }
 0xa41   : > { %7173 = vst.msk [vmem:[#allocation5 + $0x20] sm:$0xff] %vm1417_vm15, %v7167_v44  ;;  %v7169_v11 = vpop.permute.xlu0 %7168 }
 0xa42   : > { %v7170_v59 = vsel %vm804_vm1, %v7167_v44, %v7169_v11 }
 0xa43   : > { %7174 = vst.msk [vmem:[#allocation5 + $0x28] sm:$0xff] %vm1419_vm5, %v7170_v59 }
 0xa44   : > { %v7782_v32 = vpop.permute.xlu1 %7781 }
 0xa45   : > { %7788 = vst.msk [vmem:[#allocation5 + $0x30] sm:$0xff] %vm1417_vm15, %v7782_v32  ;;  %v7784_v43 = vpop.permute.xlu0 %7783 }
 0xa46   : > { %v7785_v8 = vsel %vm804_vm1, %v7782_v32, %v7784_v43 }
 0xa47   : > { %7789 = vst.msk [vmem:[#allocation5 + $0x38] sm:$0xff] %vm1419_vm5, %v7785_v8 }
 0xa48   : > { %v5937_v1 = vpop.permute.xlu1 %5936  ;;  %v7794_v14 = vld [vmem:[#allocation5 + $0x20] sm:$0xff] }
 0xa49   : > { %5943 = vst.msk [vmem:[#allocation5] sm:$0xff] %vm1417_vm15, %v5937_v1  ;;  %v5939_v35 = vpop.permute.xlu0 %5938 }
 0xa4a   : > { %v5940_v25 = vsel %vm804_vm1, %v5937_v1, %v5939_v35  ;;  %v7795_v26 = vld [vmem:[#allocation5 + $0x28] sm:$0xff] }
 0xa4b   : > { %5944 = vst.msk [vmem:[#allocation5 + $0x8] sm:$0xff] %vm1419_vm5, %v5940_v25 }
 0xa4c   : > { %v6552_v42 = vpop.permute.xlu1 %6551  ;;  %v14235_v57 = vld [vmem:[#allocation5 + $0x30] sm:$0xff] }
 0xa4d   : > { %6558 = vst.msk [vmem:[#allocation5 + $0x10] sm:$0xff] %vm1417_vm15, %v6552_v42  ;;  %v6554_v31 = vpop.permute.xlu0 %6553 }
 0xa4e   : > { %v6555_v38 = vsel %vm804_vm1, %v6552_v42, %v6554_v31  ;;  %v14239_v0 = vld [vmem:[#allocation5 + $0x38] sm:$0xff] }
 0xa4f   : > { %6559 = vst.msk [vmem:[#allocation5 + $0x18] sm:$0xff] %vm1419_vm5, %v6555_v38 }
 0xa50   : > { %v14219_v60 = vld [vmem:[#allocation5] sm:$0xff]  ;;  %v14302_v23 = vpop.permute.xlu1 %7797 }
 0xa51   : > { %v8408_v5 = vpop.permute.xlu0 %8407 }
 0xa52   : > { %v14223_v47 = vld [vmem:[#allocation5 + $0x8] sm:$0xff] }
 0xa54   : > { %v14207_v30 = vld [vmem:[#allocation5 + $0x10] sm:$0xff]  ;;  %v14308_v46 = vpop.permute.xlu1 %7957 }
 0xa55   : > { %7961 = vrot.lane.b32.xlu1 %v14207_v30, %s11540_s22  ;;  %v14312_v39 = vpop.permute.xlu0 %8575 }
 0xa56   : > { %v14211_v27 = vld [vmem:[#allocation5 + $0x18] sm:$0xff] }
 0xa57   : > { %7963 = vrot.lane.b32.xlu0 %v14211_v27, %s11540_s22 }
 0xa58   : > { %v14318_v36 = vpop.permute.xlu1 %8045 }
 0xa59   : > { %8667 = vrot.lane.b32.xlu1 %v14207_v30, %s11539_s19  ;;  %v14322_v3 = vpop.permute.xlu0 %8663 }
 0xa5b   : > { %8669 = vrot.lane.b32.xlu0 %v14211_v27, %s11539_s19 }
 0xa5c   : > { %v14327_v52 = vpop.permute.xlu1 %8131 }
 0xa5d   : > { %8493 = vrot.lane.b32.xlu1 %v14219_v60, %s11546_s20  ;;  %v14330_v29 = vpop.permute.xlu0 %8749 }
 0xa5f   : > { %8495 = vrot.lane.b32.xlu0 %v14223_v47, %s11546_s20 }
 0xa61   : > { %8049 = vrot.lane.b32.xlu1 %v14219_v60, %s11539_s19 }
 0xa63   : > { %8051 = vrot.lane.b32.xlu0 %v14223_v47, %s11539_s19 }
 0xa65   : > { %8751 = vrot.lane.b32.xlu1 %v14219_v60, %s11541_s13 }
 0xa67   : > { %8753 = vrot.lane.b32.xlu0 %v14223_v47, %s11541_s13 }
 0xa69   : > { %8411 = vrot.lane.b32.xlu1 %v14235_v57, %s11546_s20 }
 0xa6b   : > { %8413 = vrot.lane.b32.xlu0 %v14239_v0, %s11546_s20 }
 0xa6d   : > { %8135 = vrot.lane.b32.xlu1 %v14235_v57, %s11539_s19 }
 0xa6f   : > { %8137 = vrot.lane.b32.xlu0 %v14239_v0, %s11539_s19 }
 0xa71   : > { %8835 = vrot.lane.b32.xlu1 %v14235_v57, %s11541_s13 }
 0xa73   : > { %8837 = vrot.lane.b32.xlu0 %v14239_v0, %s11541_s13 }
 0xa75   : > { %7801 = vrot.lane.b32.xlu1 %v7794_v14, %s11546_s20 }
 0xa77   : > { %7803 = vrot.lane.b32.xlu0 %v7795_v26, %s11546_s20 }
 0xa79   : > { %8217 = vrot.lane.b32.xlu1 %v14177_v41, %s11544_s26 }
 0xa7b   : > { %8833 = vrot.lane.b32.xlu0 %v14177_v41, %s11544_s26 }
 0xa7d   : > { %8579 = vrot.lane.b32.xlu1 %v7794_v14, %s11540_s22 }
 0xa7f   : > { %8305 = vrot.lane.b32.xlu0 %v14211_v27, %s11547_s21 }
 0xa81   : > { %8219 = vrot.lane.b32.xlu1 %v7794_v14, %s11541_s13 }
 0xa83   : > { %8917 = vrot.lane.b32.xlu0 %v14177_v41, %s11545_s18 }
 0xa85   : > { %8303 = vrot.lane.b32.xlu1 %v14207_v30, %s11547_s21 }
 0xa87   : > { %8581 = vrot.lane.b32.xlu0 %v7795_v26, %s11540_s22 }
 0xa89   : > { %8919 = vrot.lane.b32.xlu1 %v7794_v14, %s11547_s21 }
 0xa8b   : > { %9028 = vrot.lane.b32.xlu0 %v14223_v47, %s11540_s22 }
 0xa8d   : > { %8301 = vrot.lane.b32.xlu1 %v14177_v41, %s11545_s18 }
 0xa8f   : > { %9643 = vrot.lane.b32.xlu0 %v14211_v27, %s11540_s22 }
 0xa91   : > { %9026 = vrot.lane.b32.xlu1 %v14219_v60, %s11540_s22 }
 0xa93   : > { %9637 = vrot.lane.b32.xlu0 %v14177_v41, %s11529_s16 }
 0xa95   : > { %9641 = vrot.lane.b32.xlu1 %v14207_v30, %s11540_s22 }
 0xa97   : > { %9110 = vrot.lane.b32.xlu0 %v14211_v27, %s11546_s20 }
 0xa99   : > { %9022 = vrot.lane.b32.xlu1 %v14177_v41, %s11529_s16  ;;  %s10300_s16 = scalar_lea.sflag [#allocation8], %s11952_s24 }
 0xa9b   : > { %9196 = vrot.lane.b32.xlu0 %v14239_v0, %s11540_s22 }
 0xa9d   : > { %9108 = vrot.lane.b32.xlu1 %v14207_v30, %s11546_s20 }
 0xa9f   : > { %8221 = vrot.lane.b32.xlu0 %v7795_v26, %s11541_s13 }
 0xaa1   : > { %9723 = vrot.lane.b32.xlu1 %v7794_v14, %s11546_s20 }
 0xaa3   : > { %9811 = vrot.lane.b32.xlu0 %v14223_v47, %s11539_s19 }
 0xaa5   : > { %9194 = vrot.lane.b32.xlu1 %v14235_v57, %s11540_s22 }
 0xaa7   : > { %8921 = vrot.lane.b32.xlu0 %v7795_v26, %s11547_s21 }
 0xaa9   : > { %9809 = vrot.lane.b32.xlu1 %v14219_v60, %s11539_s19 }
 0xaab   : > { %9805 = vrot.lane.b32.xlu0 %v14177_v41, %s11531_s30 }
 0xaad   : > { %9190 = vrot.lane.b32.xlu1 %v14177_v41, %s11531_s30  ;;  %s11549_s30 = smov [#allocation21]  }
 0xaaf   : > { %9899 = vrot.lane.b32.xlu0 %v14239_v0, %s11539_s19 }
 0xab1   : > { %9282 = vrot.lane.b32.xlu1 %v7794_v14, %s11539_s19 }
 0xab3   : > { %9725 = vrot.lane.b32.xlu0 %v7795_v26, %s11546_s20 }
 0xab5   : > { %9897 = vrot.lane.b32.xlu1 %v14235_v57, %s11539_s19 }
 0xab7   : > { %9893 = vrot.lane.b32.xlu0 %v14177_v41, %s11542_s28 }
 0xab9   : > { %9278 = vrot.lane.b32.xlu1 %v14177_v41, %s11542_s28 }
 0xabb   : > { %9368 = vrot.lane.b32.xlu0 %v14211_v27, %s11541_s13 }
 0xabd   : > { %9366 = vrot.lane.b32.xlu1 %v14207_v30, %s11541_s13 }
 0xabf   : > { %9979 = vrot.lane.b32.xlu0 %v14177_v41, %s11543_s3 }
 0xac1   : > { %9981 = vrot.lane.b32.xlu1 %v7794_v14, %s11541_s13 }
 0xac3   : > { %9284 = vrot.lane.b32.xlu0 %v7795_v26, %s11539_s19  ;;  %s11419_s19 = sshll.u32 %s11549_s30, 4  ;;  %s11420_s19 = int_to_ptr.vmem [resolvable:$false] %s11419_s19 }
 0xac4   : > { %s11421_s22 = scalar_lea.vmem %s11420_s19, 1024  ;;  %p11422_p9 = scmp.lt.s32.totalorder %s14557_s9, %s11420_s19 }
 0xac5   : > { %9364 = vrot.lane.b32.xlu1 %v14177_v41, %s11543_s3  ;;  %p11423_p10 = scmp.lt.s32.totalorder %s11421_s22, %s11415_s29 }
 0xac7   : > { %v7962_v40 = vpop.permute.xlu1 %7961  ;;  %9452 = vrot.lane.b32.xlu0 %v14223_v47, %s11547_s21  ;;  %p11424_p0 = por %p11423_p10, %p11422_p9 }
 0xac9   : > { %9450 = vrot.lane.b32.xlu1 %v14219_v60, %s11547_s21  ;;  %v7964_v34 = vpop.permute.xlu0 %7963  ;;  %p11425_p5 = pnand %p11424_p0, %p11418_p1 }
 0xaca   : > { %v7965_v25 = vsel %vm2235_vm0, %v7962_v40, %v7964_v34 }
 0xacb   : > { %v14338_v16 = vpop.permute.xlu1 %8667  ;;  %9983 = vrot.lane.b32.xlu0 %v7795_v26, %s11541_s13 }
 0xacd   : > { %10065 = vrot.lane.b32.xlu1 %v14207_v30, %s11547_s21  ;;  %v14343_v17 = vpop.permute.xlu0 %8669 }
 0xacf   : > { %v8494_v49 = vpop.permute.xlu1 %8493  ;;  %10067 = vrot.lane.b32.xlu0 %v14211_v27, %s11547_s21 }
 0xad1   : > { %9448 = vrot.lane.b32.xlu1 %v14177_v41, %s11544_s26  ;;  %v8496_v55 = vpop.permute.xlu0 %8495 }
 0xad2   : > { %v8497_v2 = vsel %vm7805_vm2, %v8494_v49, %v8496_v55 }
 0xad3   : > { %v8050_v51 = vpop.permute.xlu1 %8049  ;;  %10063 = vrot.lane.b32.xlu0 %v14177_v41, %s11544_s26 }
 0xad5   : > { %9534 = vrot.lane.b32.xlu1 %v14235_v57, %s11547_s21  ;;  %v14353_v62 = vpop.permute.xlu0 %8051 }
 0xad7   : > { %v14355_v7 = vpop.permute.xlu1 %8751  ;;  %9536 = vrot.lane.b32.xlu0 %v14239_v0, %s11547_s21 }
 0xad9   : > { %10149 = vrot.lane.b32.xlu1 %v14219_v60, %s11548_s14  ;;  %v14361_v20 = vpop.permute.xlu0 %8753  ;;  %v14398_v60 = vsel %vm14850_vm8, %v8050_v51, %v14353_v62  ;;  %vm10153_vm8 = vcmask 998400  }
 0xadb   : > { %v8412_v4 = vpop.permute.xlu1 %8411  ;;  %10151 = vrot.lane.b32.xlu0 %v14223_v47, %s11548_s14  ;;  %v14407_v47 = vsel %vm14851_vm12, %v14338_v16, %v14343_v17 }
 0xadd   : > { %9532 = vrot.lane.b32.xlu1 %v14177_v41, %s11545_s18  ;;  %v8414_v61 = vpop.permute.xlu0 %8413 }
 0xade   : > { %v8415_v9 = vsel %vm7805_vm2, %v8412_v4, %v8414_v61  ;;  %8420 = vmatprep.subr.mxu1 %v8414_v61 }
 0xadf   : > { %v8136_v63 = vpop.permute.xlu1 %8135  ;;  %10147 = vrot.lane.b32.xlu0 %v14177_v41, %s11545_s18  ;;  %8421 = vmatpush1.msra.mxu1 %v8415_v9 }
 0xae0   : > { %10670 = vmatmul.mubr.msk.f32.vlgmr.msra.gmra.mrb[20].mxu1 %vm650_vm3, %v8408_v5  ;;  %8502 = vmatprep.subr.mxu1 %v8496_v55 }
 0xae1   : > { %8503 = vmatpush1.msra.mxu1 %v8497_v2  ;;  %v8138_v13 = vpop.permute.xlu0 %8137  ;;  %8566 = vmatprep.mubr.f32.mxu1 %v14828_v56 }
 0xae2   : > { %v8139_v5 = vsel %vm14853_vm6, %v8136_v63, %v8138_v13 }
 0xae3   : > { %v8836_v19 = vpop.permute.xlu1 %8835 }
 0xae5   : > { %v8838_v28 = vpop.permute.xlu0 %8837 }
 0xae6   : > { %v8839_v16 = vsel %vm14854_vm4, %v8836_v19, %v8838_v28 }
 0xae7   : > { %v7802_v44 = vpop.permute.xlu1 %7801 }
 0xae8   : > { %10671 = vmatmul.mubr.msk.f32.vlgmr.msra.gmra.mrb[20].mxu1 %vm650_vm3, %v14177_v41 }
 0xae9   : > { %v7804_v11 = vpop.permute.xlu0 %7803  ;;  %8652 = vmatprep.mubr.f32.mxu1 %v14828_v56 }
 0xaea   : > { %v7806_v59 = vsel %vm7805_vm2, %v7802_v44, %v7804_v11  ;;  %7811 = vmatprep.subr.mxu0 %v7804_v11 }
 0xaeb   : > { %v14377_v32 = vpop.permute.xlu1 %8217  ;;  %7812 = vmatpush1.msra.mxu0 %v7806_v59 }
 0xaec   : > { %10663 = vmatmul.mubr.msk.f32.vlgmr.msra.gmra.mrb[28].mxu0 %vm650_vm3, %v14302_v23  ;;  %7884 = vmatprep.subr.mxu0 %v14239_v0  ;;  %v8755_v23 = vsel %vm14852_vm7, %v14355_v7, %v14361_v20 }
 0xaed   : > { %7885 = vmatpush1.msra.mxu0 %v14235_v57  ;;  %v14383_v43 = vpop.permute.xlu0 %8833  ;;  %7948 = vmatprep.mubr.f32.mxu0 %v14828_v56 }
 0xaee   : > { %7970 = vmatprep.subr.mxu0 %v7964_v34 }
 0xaef   : > { %v8580_v8 = vpop.permute.xlu1 %8579 }
 0xaf1   : > { %v8306_v1 = vpop.permute.xlu0 %8305 }
 0xaf3   : > { %v8220_v35 = vpop.permute.xlu1 %8219 }
 0xaf4   : > { %10664 = vmatmul.mubr.msk.f32.vlgmr.msra.gmra.mrb[28].mxu0 %vm650_vm3, %v14177_v41 }
 0xaf5   : > { %7971 = vmatpush1.msra.mxu0 %v7965_v25  ;;  %v14389_v42 = vpop.permute.xlu0 %8917  ;;  %8034 = vmatprep.mubr.f32.mxu0 %v14828_v56 }
 0xaf6   : > { %8058 = vmatprep.subr.mxu0 %v14353_v62 }
 0xaf7   : > { %v8304_v31 = vpop.permute.xlu1 %8303 }
 0xaf8   : > { %v8308_v7 = vsel %vm8307_vm14, %v8304_v31, %v8306_v1 }
 0xaf9   : > { %v8582_v38 = vpop.permute.xlu0 %8581 }
 0xafa   : > { %v8583_v30 = vsel %vm2235_vm0, %v8580_v8, %v8582_v38  ;;  %8588 = vmatprep.subr.mxu1 %v8582_v38 }
 0xafb   : > { %v8920_v27 = vpop.permute.xlu1 %8919  ;;  %8589 = vmatpush1.msra.mxu1 %v8583_v30 }
 0xafc   : > { %10665 = vmatmul.mubr.msk.f32.vlgmr.msra.gmra.mrb[28].mxu0 %vm650_vm3, %v14308_v46  ;;  %10672 = vmatmul.mubr.msk.f32.vlgmr.msra.gmra.mrb[20].mxu1 %vm650_vm3, %v14312_v39 }
 0xafd   : > { %8059 = vmatpush1.msra.mxu0 %v14398_v60  ;;  %8676 = vmatprep.subr.mxu1 %v14343_v17  ;;  %v9029_v57 = vpop.permute.xlu0 %9028 }
 0xafe   : > { %8144 = vmatprep.subr.mxu0 %v8138_v13  ;;  %8677 = vmatpush1.msra.mxu1 %v14407_v47 }
 0xaff   : > { %8760 = vmatprep.subr.mxu1 %v14361_v20  ;;  %v8302_v0 = vpop.permute.xlu1 %8301  ;;  %8122 = vmatprep.mubr.f32.mxu0 %v14828_v56 }
 0xb00   : > { %8740 = vmatprep.mubr.f32.mxu1 %v14828_v56 }
 0xb01   : > { %v9644_v14 = vpop.permute.xlu0 %9643 }
 0xb03   : > { %v9027_v26 = vpop.permute.xlu1 %9026 }
 0xb04   : > { %10666 = vmatmul.mubr.msk.f32.vlgmr.msra.gmra.mrb[28].mxu0 %vm650_vm3, %v14318_v36  ;;  %10673 = vmatmul.mubr.msk.f32.vlgmr.msra.gmra.mrb[20].mxu1 %vm650_vm3, %v14322_v3  ;;  %v9030_v9 = vsel %vm2235_vm0, %v9027_v26, %v9029_v57 }
 0xb05   : > { %8145 = vmatpush1.msra.mxu0 %v8139_v5  ;;  %8761 = vmatpush1.msra.mxu1 %v8755_v23  ;;  %v9638_v46 = vpop.permute.xlu0 %9637 }
 0xb06   : > { %8844 = vmatprep.subr.mxu1 %v8838_v28  ;;  %8208 = vmatprep.mubr.f32.mxu0 %v14828_v56 }
 0xb07   : > { %v9642_v39 = vpop.permute.xlu1 %9641  ;;  %8824 = vmatprep.mubr.f32.mxu1 %v14828_v56 }
 0xb08   : > { %v9645_v63 = vsel %vm2235_vm0, %v9642_v39, %v9644_v14 }
 0xb09   : > { %v9111_v40 = vpop.permute.xlu0 %9110 }
 0xb0b   : > { %v9023_v34 = vpop.permute.xlu1 %9022 }
 0xb0c   : > { %10667 = vmatmul.mubr.msk.f32.vlgmr.msra.gmra.mrb[28].mxu0 %vm650_vm3, %v14327_v52  ;;  %10674 = vmatmul.mubr.msk.f32.vlgmr.msra.gmra.mrb[20].mxu1 %vm650_vm3, %v14330_v29 }
 0xb0d   : > { %8845 = vmatpush1.msra.mxu1 %v8839_v16  ;;  %v9197_v36 = vpop.permute.xlu0 %9196  ;;  %8292 = vmatprep.mubr.f32.mxu0 %v14828_v56 }
 0xb0e   : > { %8908 = vmatprep.mubr.f32.mxu1 %v14828_v56 }
 0xb0f   : > { %v9109_v3 = vpop.permute.xlu1 %9108 }
 0xb10   : > { %v9112_v19 = vsel %vm7805_vm2, %v9109_v3, %v9111_v40 }
 0xb11   : > { %v8222_v49 = vpop.permute.xlu0 %8221 }
 0xb12   : > { %v8223_v55 = vsel %vm14855_vm10, %v8220_v35, %v8222_v49  ;;  %8228 = vmatprep.subr.mxu0 %v8222_v49 }
 0xb13   : > { %v9724_v51 = vpop.permute.xlu1 %9723  ;;  %8229 = vmatpush1.msra.mxu0 %v8223_v55 }
 0xb14   : > { %10668 = vmatmul.mubr.msk.f32.vlgmr.msra.gmra.mrb[28].mxu0 %vm650_vm3, %v14377_v32  ;;  %8313 = vmatprep.subr.mxu0 %v8306_v1 }
 0xb15   : > { %10675 = vmatmul.mubr.msk.f32.vlgmr.msra.gmra.mrb[20].mxu1 %vm650_vm3, %v14383_v43  ;;  %8314 = vmatpush1.msra.mxu0 %v8308_v7  ;;  %v9812_v52 = vpop.permute.xlu0 %9811 }
 0xb16   : > { %9035 = vmatprep.subr.mxu0 %v9029_v57  ;;  %8377 = vmatprep.mubr.f32.mxu0 %v14828_v56 }
 0xb17   : > { %v9195_v29 = vpop.permute.xlu1 %9194  ;;  %8992 = vmatprep.mubr.f32.mxu1 %v14828_v56 }
 0xb18   : > { %v9198_v43 = vsel %vm2235_vm0, %v9195_v29, %v9197_v36  ;;  %vm14857_vm0 = vmmov %vm14853_vm6 }
 0xb19   : > { %v8922_v20 = vpop.permute.xlu0 %8921  ;;  %vm14858_vm13 = vmmov %vm14857_vm0 }
 0xb1a   : > { %v8923_v4 = vsel %vm8307_vm14, %v8920_v27, %v8922_v20  ;;  %8928 = vmatprep.subr.mxu1 %v8922_v20 }
 0xb1b   : > { %v9810_v61 = vpop.permute.xlu1 %9809  ;;  %8929 = vmatpush1.msra.mxu1 %v8923_v4 }
 0xb1c   : > { %10669 = vmatmul.mubr.msk.f32.vlgmr.msra.gmra.mrb[28].mxu0 %vm650_vm3, %v8302_v0  ;;  %9650 = vmatprep.subr.mxu1 %v9644_v14  ;;  %v9813_v8 = vsel %vm14856_vm11, %v9810_v61, %v9812_v52 }
 0xb1d   : > { %10676 = vmatmul.mubr.msk.f32.vlgmr.msra.gmra.mrb[20].mxu1 %vm650_vm3, %v14389_v42  ;;  %9036 = vmatpush1.msra.mxu0 %v9030_v9  ;;  %v9806_v2 = vpop.permute.xlu0 %9805 }
 0xb1e   : > { %9117 = vmatprep.subr.mxu0 %v9111_v40  ;;  %9651 = vmatpush1.msra.mxu1 %v9645_v63 }
 0xb1f   : > { %v9191_v13 = vpop.permute.xlu1 %9190  ;;  %9099 = vmatprep.mubr.f32.mxu0 %v14828_v56  ;;  %9714 = vmatprep.mubr.f32.mxu1 %v14828_v56 }
 0xb20   : > { %10677 = vmatmul.mubr.msk.f32.vlgmr.msra.gmra.mrb[30].mxu0 %vm650_vm3, %v9023_v34 }
 0xb21   : > { %9118 = vmatpush1.msra.mxu0 %v9112_v19  ;;  %10684 = vmatmul.mubr.msk.f32.vlgmr.msra.gmra.mrb[22].mxu1 %vm650_vm3, %v9638_v46  ;;  %v14449_v28 = vpop.permute.xlu0 %9899 }
 0xb22   : > { %9203 = vmatprep.subr.mxu0 %v9197_v36  ;;  %9181 = vmatprep.mubr.f32.mxu0 %v14828_v56 }
 0xb23   : > { %v9283_v44 = vpop.permute.xlu1 %9282  ;;  %9796 = vmatprep.mubr.f32.mxu1 %v14828_v56 }
 0xb25   : > { %v9726_v11 = vpop.permute.xlu0 %9725 }
 0xb26   : > { %v9727_v59 = vsel %vm7805_vm2, %v9724_v51, %v9726_v11  ;;  %9732 = vmatprep.subr.mxu1 %v9726_v11  ;;  %vm14860_vm2 = vmmov %vm14854_vm4 }
 0xb27   : > { %v9898_v32 = vpop.permute.xlu1 %9897  ;;  %9733 = vmatpush1.msra.mxu1 %v9727_v59 }
 0xb28   : > { %10678 = vmatmul.mubr.msk.f32.vlgmr.msra.gmra.mrb[30].mxu0 %vm650_vm3, %v14177_v41  ;;  %9818 = vmatprep.subr.mxu1 %v9812_v52  ;;  %v14466_v31 = vsel %vm14857_vm0, %v9898_v32, %v14449_v28 }
 0xb29   : > { %9204 = vmatpush1.msra.mxu0 %v9198_v43  ;;  %10685 = vmatmul.mubr.msk.f32.vlgmr.msra.gmra.mrb[22].mxu1 %vm650_vm3, %v14177_v41  ;;  %v9894_v1 = vpop.permute.xlu0 %9893 }
 0xb2a   : > { %9819 = vmatpush1.msra.mxu1 %v9813_v8  ;;  %9267 = vmatprep.mubr.f32.mxu0 %v14828_v56 }
 0xb2b   : > { %9906 = vmatprep.subr.mxu1 %v14449_v28  ;;  %v9279_v35 = vpop.permute.xlu1 %9278  ;;  %9882 = vmatprep.mubr.f32.mxu1 %v14828_v56 }
 0xb2d   : > { %v9369_v25 = vpop.permute.xlu0 %9368 }
 0xb2f   : > { %v9367_v42 = vpop.permute.xlu1 %9366 }
 0xb30   : > { %10679 = vmatmul.mubr.msk.f32.vlgmr.msra.gmra.mrb[30].mxu0 %vm650_vm3, %v9191_v13  ;;  %v9370_v0 = vsel %vm14859_vm9, %v9367_v42, %v9369_v25 }
 0xb31   : > { %10686 = vmatmul.mubr.msk.f32.vlgmr.msra.gmra.mrb[22].mxu1 %vm650_vm3, %v9806_v2  ;;  %v9980_v41 = vpop.permute.xlu0 %9979  ;;  %9355 = vmatprep.mubr.f32.mxu0 %v14828_v56 }
 0xb32   : > { %9907 = vmatpush1.msra.mxu1 %v14466_v31  ;;  %9970 = vmatprep.mubr.f32.mxu1 %v14828_v56 }
 0xb33   : > { %v9982_v38 = vpop.permute.xlu1 %9981 }
 0xb35   : > { %v14472_v30 = vpop.permute.xlu0 %9284 }
 0xb36   : > { %9291 = vmatprep.subr.mxu0 %v14472_v30  ;;  %v14477_v27 = vsel %vm14858_vm13, %v9283_v44, %v14472_v30 }
 0xb37   : > { %v9365_v57 = vpop.permute.xlu1 %9364  ;;  %9292 = vmatpush1.msra.mxu0 %v14477_v27 }
 0xb38   : > { %10680 = vmatmul.mubr.msk.f32.vlgmr.msra.gmra.mrb[30].mxu0 %vm650_vm3, %v9279_v35  ;;  %9375 = vmatprep.subr.mxu0 %v9369_v25 }
 0xb39   : > { %10687 = vmatmul.mubr.msk.f32.vlgmr.msra.gmra.mrb[22].mxu1 %vm650_vm3, %v9894_v1  ;;  %9376 = vmatpush1.msra.mxu0 %v9370_v0  ;;  %v9453_v14 = vpop.permute.xlu0 %9452 }
 0xb3a   : > { %9459 = vmatprep.subr.mxu0 %v9453_v14  ;;  %9439 = vmatprep.mubr.f32.mxu0 %v14828_v56 }
 0xb3b   : > { %v9451_v26 = vpop.permute.xlu1 %9450  ;;  %10054 = vmatprep.mubr.f32.mxu1 %v14828_v56 }
 0xb3c   : > { %v9454_v39 = vsel %vm8307_vm14, %v9451_v26, %v9453_v14 }
 0xb3d   : > { %v9984_v23 = vpop.permute.xlu0 %9983 }
 0xb3e   : > { %v9985_v5 = vsel %vm14860_vm2, %v9982_v38, %v9984_v23  ;;  %9990 = vmatprep.subr.mxu1 %v9984_v23 }
 0xb3f   : > { %v10066_v46 = vpop.permute.xlu1 %10065  ;;  %9991 = vmatpush1.msra.mxu1 %v9985_v5 }
 0xb40   : > { %10681 = vmatmul.mubr.msk.f32.vlgmr.msra.gmra.mrb[30].mxu0 %vm650_vm3, %v9365_v57 }
 0xb41   : > { %9460 = vmatpush1.msra.mxu0 %v9454_v39  ;;  %10688 = vmatmul.mubr.msk.f32.vlgmr.msra.gmra.mrb[22].mxu1 %vm650_vm3, %v9980_v41  ;;  %v10068_v40 = vpop.permute.xlu0 %10067 }
 0xb42   : > { %v10069_v34 = vsel %vm8307_vm14, %v10066_v46, %v10068_v40  ;;  %10074 = vmatprep.subr.mxu1 %v10068_v40  ;;  %9523 = vmatprep.mubr.f32.mxu0 %v14828_v56 }
 0xb43   : > { %v9449_v16 = vpop.permute.xlu1 %9448  ;;  %10075 = vmatpush1.msra.mxu1 %v10069_v34  ;;  %10138 = vmatprep.mubr.f32.mxu1 %v14828_v56 }
 0xb45   : > { %v10064_v36 = vpop.permute.xlu0 %10063 }
 0xb47   : > { %v9535_v3 = vpop.permute.xlu1 %9534 }
 0xb48   : > { %10682 = vmatmul.mubr.msk.f32.vlgmr.msra.gmra.mrb[30].mxu0 %vm650_vm3, %v9449_v16 }
 0xb49   : > { %v9537_v49 = vpop.permute.xlu0 %9536  ;;  %10689 = vmatmul.mubr.msk.f32.vlgmr.msra.gmra.mrb[22].mxu1 %vm650_vm3, %v10064_v36  ;;  %9607 = vmatprep.mubr.f32.mxu0 %v14828_v56 }
 0xb4a   : > { %v9538_v55 = vsel %vm8307_vm14, %v9535_v3, %v9537_v49  ;;  %9543 = vmatprep.subr.mxu0 %v9537_v49  ;;  %10223 = vmatprep.mubr.f32.mxu1 %v14828_v56 }
 0xb4b   : > { %v10150_v51 = vpop.permute.xlu1 %10149  ;;  %9544 = vmatpush1.msra.mxu0 %v9538_v55 }
 0xb4d   : > { %v10152_v7 = vpop.permute.xlu0 %10151 }
 0xb4e   : > { %v10154_v52 = vsel %vm10153_vm8, %v10150_v51, %v10152_v7  ;;  %10159 = vmatprep.subr.mxu1 %v10152_v7 }
 0xb4f   : > { %v9533_v29 = vpop.permute.xlu1 %9532  ;;  %10160 = vmatpush1.msra.mxu1 %v10154_v52 }
 0xb50   : > { %10683 = vmatmul.mubr.msk.f32.vlgmr.msra.gmra.mrb[30].mxu0 %vm650_vm3, %v9533_v29 }
 0xb51   : > { %v10148_v20 = vpop.permute.xlu0 %10147 }
 0xb52   : > { %10690 = vmatmul.mubr.msk.f32.vlgmr.msra.gmra.mrb[22].mxu1 %vm650_vm3, %v10148_v20 }
 0xbef   : > { %v8379_v4 = vpop.f32.mrb[28].mxu0 }
 0xbf0   : > { %v8994_v61 = vpop.f32.mrb[20].mxu1  ;;  %v8381_v9 = vpop.f32.mrb[29].mxu0  ;;  %v8386_v13 = vadd.f32 %v8379_v4, %v14398_v60 }
 0xbf1   : > { %v9001_v63 = vadd.f32 %v8994_v61, %v14407_v47  ;;  %v8996_v56 = vpop.f32.mrb[21].mxu1  ;;  %v8387_v44 = vadd.f32 %v8381_v9, %v14353_v62 }
 0xbf2   : > { %v9002_v2 = vadd.f32 %v8996_v56, %v14343_v17  ;;  %v8388_v59 = vmul.f32 %v14825_v6, %v8386_v13 }
 0xbf3   : > { %v9003_v19 = vmul.f32 %v14812_v45, %v9001_v63  ;;  %v8389_v32 = vmul.f32 %v14826_v10, %v8387_v44 }
 0xbf4   : > { %v9004_v11 = vmul.f32 %v14814_v54, %v9002_v2 }
 0xbf5   : > { %9007 = vrot.lane.b32.xlu1 %v9003_v19, %s11527_s23 }
 0xbf6   : > { %9009 = vrot.lane.b32.xlu0 %v9004_v11, %s11527_s23 }
 0xbf9   : > { %8392 = vrot.lane.b32.xlu1 %v8388_v59, %s11527_s23 }
 0xbfa   : > { %8394 = vrot.lane.b32.xlu0 %v8389_v32, %s11527_s23 }
 0xc23   : > { %v9609_v17 = vpop.f32.mrb[30].mxu0 }
 0xc24   : > { %v9616_v60 = vadd.f32 %v9609_v17, %v14477_v27  ;;  %v9611_v45 = vpop.f32.mrb[31].mxu0 }
 0xc25   : > { %v9617_v62 = vadd.f32 %v9611_v45, %v14472_v30  ;;  %v10225_v47 = vpop.f32.mrb[22].mxu1 }
 0xc26   : > { %v9618_v54 = vmul.f32 %v14821_v48, %v9616_v60  ;;  %v10232_v43 = vadd.f32 %v10225_v47, %v14466_v31  ;;  %v10227_v8 = vpop.f32.mrb[23].mxu1 }
 0xc27   : > { %v9619_v6 = vmul.f32 %v14822_v12, %v9617_v62  ;;  %v10233_v10 = vadd.f32 %v10227_v8, %v14449_v28 }
 0xc28   : > { %9622 = vrot.lane.b32.xlu1 %v9618_v54, %s11527_s23  ;;  %v10234_v1 = vmul.f32 %v14817_v15, %v10232_v43 }
 0xc29   : > { %9624 = vrot.lane.b32.xlu0 %v9619_v6, %s11527_s23  ;;  %v10235_v35 = vmul.f32 %v14820_v21, %v10233_v10 }
 0xc2c   : > { %10238 = vrot.lane.b32.xlu1 %v10234_v1, %s11527_s23 }
 0xc2d   : > { %10240 = vrot.lane.b32.xlu0 %v10235_v35, %s11527_s23  ;;  %s14863_s23 = sld [smem:[#allocation58_spill]] }
 0xc33   : > { %s14562_s15 = scalar_lea.hbm %s14863_s23, %s10696_s5 }
 0xc67   : > { %v9008_v48 = vpop.permute.xlu1 %9007 }
 0xc68   : > { %9014 = vst.msk [vmem:[#allocation4 + $0x10] sm:$0xff] %vm1417_vm15, %v9008_v48  ;;  %v9010_v25 = vpop.permute.xlu0 %9009 }
 0xc69   : > { %v9011_v12 = vsel %vm804_vm1, %v9008_v48, %v9010_v25 }
 0xc6a   : > { %9015 = vst.msk [vmem:[#allocation4 + $0x18] sm:$0xff] %vm1419_vm5, %v9011_v12 }
 0xc6b   : > { %v8393_v28 = vpop.permute.xlu1 %8392 }
 0xc6c   : > { %8399 = vst.msk [vmem:[#allocation4] sm:$0xff] %vm1417_vm15, %v8393_v28  ;;  %v8395_v42 = vpop.permute.xlu0 %8394 }
 0xc6d   : > { %v8396_v15 = vsel %vm804_vm1, %v8393_v28, %v8395_v42 }
 0xc6e   : > { %8400 = vst.msk [vmem:[#allocation4 + $0x8] sm:$0xff] %vm1419_vm5, %v8396_v15 }
 0xc6f   : > { %v10249_v21 = vld [vmem:[#allocation4 + $0x10] sm:$0xff] }
 0xc70   : > { %v10257_v31 = vadd.f32 %v10249_v21, %v13843_v50 }
 0xc71   : > { %v10250_v41 = vld [vmem:[#allocation4 + $0x18] sm:$0xff] }
 0xc72   : > { %10275 = vrot.lane.b32.xlu1 %v10257_v31, %s11548_s14  ;;  %v10258_v38 = vadd.f32 %v10250_v41, %v13846_v53 }
 0xc73   : > { %v10247_v30 = vld [vmem:[#allocation4] sm:$0xff] }
 0xc74   : > { %10277 = vrot.lane.b32.xlu0 %v10258_v38, %s11548_s14  ;;  %v10255_v27 = vadd.f32 %v10247_v30, %v13850_v58 }
 0xc75   : > { %v10248_v57 = vld [vmem:[#allocation4 + $0x8] sm:$0xff] }
 0xc76   : > { %10271 = vrot.lane.b32.xlu1 %v10255_v27, %s11548_s14  ;;  %v10256_v0 = vadd.f32 %v10248_v57, %v13853_v22 }
 0xc78   : > { %10273 = vrot.lane.b32.xlu0 %v10256_v0, %s11548_s14 }
 0xc9a   : > { %v9623_v14 = vpop.permute.xlu1 %9622 }
 0xc9b   : > { %9629 = vst.msk [vmem:[#allocation4 + $0x20] sm:$0xff] %vm1417_vm15, %v9623_v14  ;;  %v9625_v50 = vpop.permute.xlu0 %9624 }
 0xc9c   : > { %v9626_v26 = vsel %vm804_vm1, %v9623_v14, %v9625_v50 }
 0xc9d   : > { %9630 = vst.msk [vmem:[#allocation4 + $0x28] sm:$0xff] %vm1419_vm5, %v9626_v26 }
 0xc9e   : > { %v10239_v53 = vpop.permute.xlu1 %10238 }
 0xc9f   : > { %10245 = vst.msk [vmem:[#allocation4 + $0x30] sm:$0xff] %vm1417_vm15, %v10239_v53  ;;  %v10241_v58 = vpop.permute.xlu0 %10240 }
 0xca0   : > { %v10242_v23 = vsel %vm804_vm1, %v10239_v53, %v10241_v58 }
 0xca1   : > { %10246 = vst.msk [vmem:[#allocation4 + $0x38] sm:$0xff] %vm1419_vm5, %v10242_v23 }
 0xca2   : > { %v10251_v22 = vld [vmem:[#allocation4 + $0x20] sm:$0xff] }
 0xca3   : > { %v10259_v5 = vadd.f32 %v10251_v22, %v13826_v33 }
 0xca4   : > { %v10252_v46 = vld [vmem:[#allocation4 + $0x28] sm:$0xff] }
 0xca5   : > { %10279 = vrot.lane.b32.xlu1 %v10259_v5, %s11548_s14  ;;  %v10260_v39 = vadd.f32 %v10252_v46, %v13832_v18 }
 0xca6   : > { %v10253_v40 = vld [vmem:[#allocation4 + $0x30] sm:$0xff] }
 0xca7   : > { %10281 = vrot.lane.b32.xlu0 %v10260_v39, %s11548_s14  ;;  %v10261_v34 = vadd.f32 %v10253_v40, %v13828_v24 }
 0xca8   : > { %v10254_v16 = vld [vmem:[#allocation4 + $0x38] sm:$0xff] }
 0xca9   : > { %10283 = vrot.lane.b32.xlu1 %v10261_v34, %s11548_s14  ;;  %v10262_v36 = vadd.f32 %v10254_v16, %v13835_v37 }
 0xcab   : > { %10285 = vrot.lane.b32.xlu0 %v10262_v36, %s11548_s14 }
 0xce4   : > { %v10276_v33 = vpop.permute.xlu1 %10275 }
 0xce6   : > { %v10278_v3 = vpop.permute.xlu0 %10277 }
 0xce7   : > { %v10288_v49 = vsel %vm10153_vm8, %v10276_v33, %v10278_v3 }
 0xce8   : > { %10296 = vst [vmem:[%s546_s25 + $0x8] sm:$0xff] %v10288_v49  ;;  %v10272_v18 = vpop.permute.xlu1 %10271 }
 0xcea   : > { %v10274_v55 = vpop.permute.xlu0 %10273 }
 0xceb   : > { %v10287_v24 = vsel %vm10153_vm8, %v10272_v18, %v10274_v55 }
 0xcec   : > { %10295 = vst [vmem:[%s546_s25] sm:$0xff] %v10287_v24 }
 0xd17   : > { %v10280_v51 = vpop.permute.xlu1 %10279 }
 0xd19   : > { %v10282_v7 = vpop.permute.xlu0 %10281 }
 0xd1a   : > { %v10289_v37 = vsel %vm10153_vm8, %v10280_v51, %v10282_v7 }
 0xd1b   : > { %10297 = vst [vmem:[%s546_s25 + $0x10] sm:$0xff] %v10289_v37  ;;  %v10284_v52 = vpop.permute.xlu1 %10283 }
 0xd1d   : > { %v10286_v29 = vpop.permute.xlu0 %10285 }
 0xd1e   : > { %v10290_v20 = vsel %vm10153_vm8, %v10284_v52, %v10286_v29 }
 0xd1f   : > { %10298 = vst [vmem:[%s546_s25 + $0x18] sm:$0xff] %v10290_v20 }
 0xd20   : > { %11428 = shalt.err (!%p11425_p5)
}
 0xd21   : > { %s11429_s13 = scalar_lea.hbm %s14562_s15, 512  ;;  %s11433_s26 = scalar_lea.hbm %s14863_s23, 1024 }
 0xd22   : > { %p11430_p12 = scmp.ne.s32.totalorder %s14562_s15, %s11429_s13  ;;  %p11434_p4 = scmp.lt.u32.totalorder %s14562_s15, %s14863_s23 }
 0xd23   : > { %p11435_p7 = scmp.lt.u32.totalorder %s11433_s26, %s11429_s13  ;;  %p11437_p3 = scmp.lt.u32.totalorder %s11429_s13, %s14562_s15 }
 0xd24   : > { %p11431_p11 = pnand %p11430_p12, %p14864_p8 }
 0xd25   : > { %p11436_p6 = por %p11435_p7, %p11434_p4 }
 0xd26   : > { %p11432_p13 = pneg %p11431_p11 }
 0xd27   : > { %p11438_p2 = por %p11437_p3, %p11436_p6 }
 0xd29   : > { %p11439_p1 = pnand %p11438_p2, %p11432_p13 }
 0xd2b   : > { %11442 = shalt.err (!%p11439_p1)
}
 0xd2c   : > { %s11550_s21 = smov 128   ;;  %s11551_s14 = smov 8  }
 0xd2d   : > { %10921 = dma.vmem_to_hbm [thread:$0]  (%p14864_p8), %s14557_s9, 512, %s14562_s15, %s10300_s16, %s11550_s21, %s11550_s21, %s11551_s14  }
 0xd2e PF: > { %s14865_s17 = sld [smem:[#allocation28_spill]]  ;;  %s14866_s1 = sld [smem:[#allocation36_spill]] }
 0xd2f   : > { %s14867_s25 = sld [smem:[#allocation31_spill]] }
 0xd34   : > { %s10329_s5 = sand.u32 1, %s14865_s17   ;;  %p14868_p9 = scmp.ne.s32.totalorder %s14866_s1, 0 }
 0xd35   : > { %p14869_p10 = scmp.ge.s32.totalorder %s14867_s25, 2  ;;  %s10330_s7 = scalar_lea.sflag [#allocation8], %s10329_s5 }
 0xd37   : > { %p10953_p0 = pnand %p14869_p10, %p14868_p9 }
 0xd39   : > { %11488 = dma.done.wait (!%p10953_p0), %s10330_s7, 512  }
 0xd3a   : > { %11490 = vsyncadd (!%p10953_p0), %s10330_s7, 4294966784  ;;  %s31_s14 = sadd.s32 1, %s14867_s25   ;;  %s14870_s12 = sld [smem:[#allocation35_spill]] }
 0xd3b   : > { %p28_p5 = scmp.ge.s32.totalorder %s31_s14, 4   ;;  %s14871_s27 = sld [smem:[#allocation30_spill]] }
 0xd3c   : > { %s14872_s13 = sld [smem:[#allocation33_spill]]  ;;  %s14873_s30 = smov %s11497_s10 }
 0xd3d   : > { %s14874_s10 = smov %s11501_s11  ;;  %30 = sbr.rel (!%p28_p5) target bundleno = 17 (0x11), region = 151 }
 0xd40   : > { %s14875_s11 = smov %s14870_s12 }
 0xd41   : > { %s14876_s12 = smov %s14871_s27 }
 0xd44   :  { %10335 = vsyncpa [#allocation7], 1 }
 0xd45   :  { %10337 = vsyncpa [#allocation7 + $0x1], 1 }
 0xd46   :  { %10338 = vsyncpa [#allocation10], 1 }
 0xd47   :  { %10340 = vsyncpa [#allocation10 + $0x1], 1 }
 0xd48   :  { %10341 = vsyncpa [#allocation13], 1 }
 0xd49   :  { %10342 = vsyncpa [#allocation16], 1 }
 0xd4a   :  { %10343 = vsyncpa [#allocation19], 1 }
 0xd4b   :  { %10344 = vsyncpa [#allocation8], 1 }
 0xd4c   :  { %10346 = vsyncpa [#allocation8 + $0x1], 1 }

</bundles_post_ra>
